<compile_context>
chip_gen: v5e
topology: v5e:2x2
jax: 0.10.0
libtpu: 0.0.40
codegen_flags: <defaults>
</compile_context>

<pallas_src>
import numpy as np
import jax
import jax.numpy as jnp
from jax.experimental import pallas as pl
from jax.experimental.pallas import tpu as pltpu

# ---------------- shapes (small, consistent with the module) ----------------
B = 2                 # batch
DIM = 32              # channels == transformer dim
H = W = 8             # spatial
N = H * W             # tokens
HEADS = 4
DIM_HEAD = 8
INNER = HEADS * DIM_HEAD
HIDDEN = 32           # mlp_dim
DEPTH = 2
SCALE = DIM_HEAD ** (-0.5)


# ---------------------------------------------------------------------------
# Precomputed (9*N, N) shift operator: row block t (tap kh*3+kw) maps token
# p=i*W+j to token (i+kh-1)*W+(j+kw-1) (zero rows outside the image), so the
# depthwise 3x3 "same" conv becomes  sum_t  (S_t @ X) * w_tap[t, channel].
# ---------------------------------------------------------------------------
def make_shift_matrices(h, w):
    n = h * w
    s = np.zeros((9, n, n), dtype=np.float32)
    t = 0
    for kh in range(3):
        for kw in range(3):
            dh, dw = kh - 1, kw - 1
            for i in range(h):
                for j in range(w):
                    ii, jj = i + dh, j + dw
                    if 0 <= ii < h and 0 <= jj < w:
                        s[t, i * w + j, ii * w + jj] = 1.0
            t += 1
    return s.reshape(9 * n, n)


# ---------------------------------------------------------------------------
# Pallas kernel: one image (N, DIM) per grid step, all DEPTH layers inside.
# ---------------------------------------------------------------------------
def _tab_kernel(x_ref, shifts_ref,
                ln1g_ref, ln1b_ref, wqkv_ref, wo_ref, bo_ref,
                ln2g_ref, ln2b_ref, w1_ref, b1_ref, wdw_ref, wpw_ref,
                w3_ref, b3_ref, o_ref):
    f32 = jnp.float32
    x = x_ref[0]                    # (N, DIM)
    shifts = shifts_ref[...]        # (9*N, N)

    def layer_norm(z, g, b):
        mu = jnp.mean(z, axis=-1, keepdims=True)
        zc = z - mu
        var = jnp.mean(zc * zc, axis=-1, keepdims=True)
        return zc * jax.lax.rsqrt(var + 1e-5) * g + b

    def erf_approx(z):
        # Abramowitz & Stegun 7.1.26, |err| < 1.5e-7
        a1, a2, a3, a4, a5 = (0.254829592, -0.284496736, 1.421413741,
                              -1.453152027, 1.061405429)
        p = 0.3275911
        az = jnp.abs(z)
        t = 1.0 / (1.0 + p * az)
        poly = ((((a5 * t + a4) * t + a3) * t + a2) * t + a1) * t
        y = 1.0 - poly * jnp.exp(-az * az)
        return jnp.where(z >= 0.0, y, -y)

    def gelu(z):                    # exact (erf) GELU, matches nn.GELU()
        return 0.5 * z * (1.0 + erf_approx(z * 0.7071067811865476))

    for l in range(DEPTH):
        # ----------------- MSA block: x = to_out(attn) + x -----------------
        xn = layer_norm(x, ln1g_ref[l], ln1b_ref[l])
        qkv = jnp.dot(xn, wqkv_ref[l], preferred_element_type=f32)   # (N, 3*INNER)
        wo_l = wo_ref[l]                                             # (INNER, DIM)
        att = jnp.zeros((N, DIM), f32)
        for h in range(HEADS):
            q = qkv[:, h * DIM_HEAD:(h + 1) * DIM_HEAD]
            k = qkv[:, INNER + h * DIM_HEAD:INNER + (h + 1) * DIM_HEAD]
            v = qkv[:, 2 * INNER + h * DIM_HEAD:2 * INNER + (h + 1) * DIM_HEAD]
            s = jax.lax.dot_general(q, k, (((1,), (1,)), ((), ())),
                                    preferred_element_type=f32) * SCALE   # (N, N)
            s = s - jnp.max(s, axis=-1, keepdims=True)
            e = jnp.exp(s)
            p_att = e / jnp.sum(e, axis=-1, keepdims=True)
            oh = jnp.dot(p_att, v, preferred_element_type=f32)            # (N, DH)
            att = att + jnp.dot(oh, wo_l[h * DIM_HEAD:(h + 1) * DIM_HEAD, :],
                                preferred_element_type=f32)
        x = x + att + bo_ref[l]

        # -------------- FFN block: x = out_linear(conv(net(x))) + x --------
        xn = layer_norm(x, ln2g_ref[l], ln2b_ref[l])
        h1 = gelu(jnp.dot(xn, w1_ref[l], preferred_element_type=f32)
                  + b1_ref[l])                                       # (N, HIDDEN)
        # depthwise 3x3 "same" conv via the shift-matrix matmul
        hs = jnp.dot(shifts, h1, preferred_element_type=f32)         # (9*N, HIDDEN)
        dw = jnp.zeros((N, HIDDEN), f32)
        for t in range(9):
            dw = dw + hs[t * N:(t + 1) * N, :] * wdw_ref[l, t]       # (1, HIDDEN) bcast
        # pointwise 1x1 conv (no bias) + GELU
        pw = gelu(jnp.dot(dw, wpw_ref[l], preferred_element_type=f32))
        x = x + jnp.dot(pw, w3_ref[l], preferred_element_type=f32) + b3_ref[l]

    o_ref[0] = x


# ---------------------------------------------------------------------------
# Wrapper: token layout + weight repacking + pallas_call
# ---------------------------------------------------------------------------
def tab_pallas(x, layers, shifts):
    b, c, h, w = x.shape
    n = h * w
    xt = jnp.transpose(x.reshape(b, c, n), (0, 2, 1)).astype(jnp.float32)  # (B,N,DIM)

    stack = lambda name: jnp.stack([lp[name] for lp in layers]).astype(jnp.float32)
    ln1g = stack("ln1_g").reshape(DEPTH, 1, DIM)
    ln1b = stack("ln1_b").reshape(DEPTH, 1, DIM)
    wqkv = jnp.transpose(stack("wqkv"), (0, 2, 1))                 # (D, DIM, 3*INNER)
    wo = jnp.transpose(stack("wo"), (0, 2, 1))                     # (D, INNER, DIM)
    bo = stack("bo").reshape(DEPTH, 1, DIM)
    ln2g = stack("ln2_g").reshape(DEPTH, 1, DIM)
    ln2b = stack("ln2_b").reshape(DEPTH, 1, DIM)
    w1 = jnp.transpose(stack("w1"), (0, 2, 1))                     # (D, DIM, HIDDEN)
    b1 = stack("b1").reshape(DEPTH, 1, HIDDEN)
    wdw = jnp.transpose(stack("wdw").reshape(DEPTH, HIDDEN, 9),
                        (0, 2, 1)).reshape(DEPTH, 9, 1, HIDDEN)    # tap-major
    wpw = jnp.transpose(stack("wpw").reshape(DEPTH, HIDDEN, HIDDEN),
                        (0, 2, 1))                                 # (D, in, out)
    w3 = jnp.transpose(stack("w3"), (0, 2, 1))                     # (D, HIDDEN, DIM)
    b3 = stack("b3").reshape(DEPTH, 1, DIM)

    weights = (ln1g, ln1b, wqkv, wo, bo, ln2g, ln2b, w1, b1, wdw, wpw, w3, b3)
    full = lambda a: pl.BlockSpec(a.shape, lambda bb, nd=a.ndim: (0,) * nd)

    out_tokens = pl.pallas_call(
        _tab_kernel,
        out_shape=jax.ShapeDtypeStruct((b, n, DIM), jnp.float32),
        grid=(b,),
        in_specs=[pl.BlockSpec((1, n, DIM), lambda bb: (bb, 0, 0)),
                  pl.BlockSpec((9 * n, n), lambda bb: (0, 0))]
                 + [full(wt) for wt in weights],
        out_specs=pl.BlockSpec((1, n, DIM), lambda bb: (bb, 0, 0)),
        compiler_params=pltpu.CompilerParams(
            dimension_semantics=("parallel",)),   # both TCs on v7x
    )(xt, shifts.astype(jnp.float32), *weights)

    return jnp.transpose(out_tokens, (0, 2, 1)).reshape(b, c, h, w)


# ---------------------------------------------------------------------------
# Deterministic parameter init (PyTorch layouts: Linear (out,in), Conv OIHW).
# ---------------------------------------------------------------------------
def init_params(key):
    layers = []
    for kl in jax.random.split(key, DEPTH):
        k = jax.random.split(kl, 13)
        lin = lambda kk, fo, fi: (jax.random.normal(kk, (fo, fi), jnp.float32)
                                  / np.sqrt(fi))
        layers.append(dict(
            ln1_g=1.0 + 0.1 * jax.random.normal(k[0], (DIM,), jnp.float32),
            ln1_b=0.05 * jax.random.normal(k[1], (DIM,), jnp.float32),
            wqkv=lin(k[2], 3 * INNER, DIM),
            wo=lin(k[3], DIM, INNER),
            bo=0.02 * jax.random.normal(k[4], (DIM,), jnp.float32),
            ln2_g=1.0 + 0.1 * jax.random.normal(k[5], (DIM,), jnp.float32),
            ln2_b=0.05 * jax.random.normal(k[6], (DIM,), jnp.float32),
            w1=lin(k[7], HIDDEN, DIM),
            b1=0.02 * jax.random.normal(k[8], (HIDDEN,), jnp.float32),
            wdw=jax.random.normal(k[9], (HIDDEN, 1, 3, 3), jnp.float32) / 3.0,
            wpw=lin(k[10], HIDDEN, HIDDEN).reshape(HIDDEN, HIDDEN, 1, 1),
            w3=lin(k[11], DIM, HIDDEN),
            b3=0.02 * jax.random.normal(k[12], (DIM,), jnp.float32),
        ))
    return layers


# ---------------------------------------------------------------------------
# Pure-JAX reference mirroring the PyTorch module (for the sanity check).
# ---------------------------------------------------------------------------
def tab_reference(x, layers):
    hp = jax.lax.Precision.HIGHEST
    b, c, h, w = x.shape
    n = h * w
    xt = jnp.transpose(x.reshape(b, c, n), (0, 2, 1))

    def layer_norm(z, g, bta):
        mu = jnp.mean(z, axis=-1, keepdims=True)
        var = jnp.mean((z - mu) ** 2, axis=-1, keepdims=True)
        return (z - mu) / jnp.sqrt(var + 1e-5) * g + bta

    for lp in layers:
        # MSA
        xn = layer_norm(xt, lp["ln1_g"], lp["ln1_b"])
        qkv = jnp.einsum("bnd,ed->bne", xn, lp["wqkv"], precision=hp)
        q, k, v = jnp.split(qkv, 3, axis=-1)
        sh = lambda t: jnp.transpose(t.reshape(b, n, HEADS, DIM_HEAD), (0, 2, 1, 3))
        q, k, v = sh(q), sh(k), sh(v)
        dots = jnp.einsum("bhnd,bhmd->bhnm", q, k, precision=hp) * SCALE
        attn = jax.nn.softmax(dots, axis=-1)
        out = jnp.einsum("bhnm,bhmd->bhnd", attn, v, precision=hp)
        out = jnp.transpose(out, (0, 2, 1, 3)).reshape(b, n, INNER)
        xt = jnp.einsum("bne,de->bnd", out, lp["wo"], precision=hp) + lp["bo"] + xt
        # FFN
        xn = layer_norm(xt, lp["ln2_g"], lp["ln2_b"])
        h1 = jax.nn.gelu(jnp.einsum("bnd,ed->bne", xn, lp["w1"], precision=hp)
                         + lp["b1"], approximate=False)
        img = jnp.transpose(h1, (0, 2, 1)).reshape(b, HIDDEN, h, w)
        dwc = jax.lax.conv_general_dilated(
            img, lp["wdw"], (1, 1), [(1, 1), (1, 1)],
            dimension_numbers=("NCHW", "OIHW", "NCHW"),
            feature_group_count=HIDDEN, precision=hp)
        pwc = jax.lax.conv_general_dilated(
            dwc, lp["wpw"], (1, 1), [(0, 0), (0, 0)],
            dimension_numbers=("NCHW", "OIHW", "NCHW"), precision=hp)
        g = jax.nn.gelu(pwc, approximate=False)
        g = jnp.transpose(g.reshape(b, HIDDEN, n), (0, 2, 1))
        xt = jnp.einsum("bne,de->bnd", g, lp["w3"], precision=hp) + lp["b3"] + xt

    return jnp.transpose(xt, (0, 2, 1)).reshape(b, c, h, w)


if __name__ == "__main__":
    key = jax.random.PRNGKey(0)
    kx, kp = jax.random.split(key)
    x = jax.random.normal(kx, (B, DIM, H, W), jnp.float32)
    layers = init_params(kp)
    shifts = jnp.asarray(make_shift_matrices(H, W))

    out = tab_pallas(x, layers, shifts)
    out = jax.block_until_ready(out)

    ref = tab_reference(x, layers)
    np.testing.assert_allclose(np.asarray(out), np.asarray(ref), rtol=1e-2, atol=1e-3)
    print("KERNEL_OK")
</pallas_src>

<mosaic_0001>
module attributes {stable_mosaic.version = 11 : i64} {
  func.func @_tab_kernel(%arg0: i32, %arg1: memref<1x64x32xf32, #tpu.memory_space<vmem>>, %arg2: memref<576x64xf32, #tpu.memory_space<vmem>>, %arg3: memref<2x1x32xf32, #tpu.memory_space<vmem>>, %arg4: memref<2x1x32xf32, #tpu.memory_space<vmem>>, %arg5: memref<2x32x96xf32, #tpu.memory_space<vmem>>, %arg6: memref<2x32x32xf32, #tpu.memory_space<vmem>>, %arg7: memref<2x1x32xf32, #tpu.memory_space<vmem>>, %arg8: memref<2x1x32xf32, #tpu.memory_space<vmem>>, %arg9: memref<2x1x32xf32, #tpu.memory_space<vmem>>, %arg10: memref<2x32x32xf32, #tpu.memory_space<vmem>>, %arg11: memref<2x1x32xf32, #tpu.memory_space<vmem>>, %arg12: memref<2x9x1x32xf32, #tpu.memory_space<vmem>>, %arg13: memref<2x32x32xf32, #tpu.memory_space<vmem>>, %arg14: memref<2x32x32xf32, #tpu.memory_space<vmem>>, %arg15: memref<2x1x32xf32, #tpu.memory_space<vmem>>, %arg16: memref<1x64x32xf32, #tpu.memory_space<vmem>>) attributes {dimension_semantics = [#tpu.dimension_semantics<parallel>], iteration_bounds = array<i64: 2>, scalar_prefetch = 0 : i64, scratch_operands = 0 : i64, tpu.core_type = #tpu.core_type<tc>, window_params = [{transform_indices = @transform_0, window_bounds = array<i64: 1, 64, 32>}, {pipeline_mode = #tpu.pipeline_mode<synchronous>, transform_indices = @transform_1, window_bounds = array<i64: 576, 64>}, {pipeline_mode = #tpu.pipeline_mode<synchronous>, transform_indices = @transform_2, window_bounds = array<i64: 2, 1, 32>}, {pipeline_mode = #tpu.pipeline_mode<synchronous>, transform_indices = @transform_3, window_bounds = array<i64: 2, 1, 32>}, {pipeline_mode = #tpu.pipeline_mode<synchronous>, transform_indices = @transform_4, window_bounds = array<i64: 2, 32, 96>}, {pipeline_mode = #tpu.pipeline_mode<synchronous>, transform_indices = @transform_5, window_bounds = array<i64: 2, 32, 32>}, {pipeline_mode = #tpu.pipeline_mode<synchronous>, transform_indices = @transform_6, window_bounds = array<i64: 2, 1, 32>}, {pipeline_mode = #tpu.pipeline_mode<synchronous>, transform_indices = @transform_7, window_bounds = array<i64: 2, 1, 32>}, {pipeline_mode = #tpu.pipeline_mode<synchronous>, transform_indices = @transform_8, window_bounds = array<i64: 2, 1, 32>}, {pipeline_mode = #tpu.pipeline_mode<synchronous>, transform_indices = @transform_9, window_bounds = array<i64: 2, 32, 32>}, {pipeline_mode = #tpu.pipeline_mode<synchronous>, transform_indices = @transform_10, window_bounds = array<i64: 2, 1, 32>}, {pipeline_mode = #tpu.pipeline_mode<synchronous>, transform_indices = @transform_11, window_bounds = array<i64: 2, 9, 1, 32>}, {pipeline_mode = #tpu.pipeline_mode<synchronous>, transform_indices = @transform_12, window_bounds = array<i64: 2, 32, 32>}, {pipeline_mode = #tpu.pipeline_mode<synchronous>, transform_indices = @transform_13, window_bounds = array<i64: 2, 32, 32>}, {pipeline_mode = #tpu.pipeline_mode<synchronous>, transform_indices = @transform_14, window_bounds = array<i64: 2, 1, 32>}, {transform_indices = @transform_15, window_bounds = array<i64: 1, 64, 32>}]} {
    %c0 = arith.constant 0 : index
    %c0_0 = arith.constant 0 : index
    %c0_1 = arith.constant 0 : index
    %0 = vector.load %arg1[%c0, %c0_0, %c0_1] : memref<1x64x32xf32, #tpu.memory_space<vmem>>, vector<1x64x32xf32>
    %1 = vector.shape_cast %0 : vector<1x64x32xf32> to vector<64x32xf32>
    %c0_2 = arith.constant 0 : index
    %c0_3 = arith.constant 0 : index
    %2 = vector.load %arg2[%c0_2, %c0_3] : memref<576x64xf32, #tpu.memory_space<vmem>>, vector<576x64xf32>
    %c0_4 = arith.constant 0 : index
    %c0_5 = arith.constant 0 : index
    %c0_6 = arith.constant 0 : index
    %3 = vector.load %arg3[%c0_4, %c0_5, %c0_6] : memref<2x1x32xf32, #tpu.memory_space<vmem>>, vector<1x1x32xf32>
    %4 = vector.shape_cast %3 : vector<1x1x32xf32> to vector<1x32xf32>
    %c0_7 = arith.constant 0 : index
    %c0_8 = arith.constant 0 : index
    %c0_9 = arith.constant 0 : index
    %5 = vector.load %arg4[%c0_7, %c0_8, %c0_9] : memref<2x1x32xf32, #tpu.memory_space<vmem>>, vector<1x1x32xf32>
    %6 = vector.shape_cast %5 : vector<1x1x32xf32> to vector<1x32xf32>
    %cst = arith.constant dense<0.000000e+00> : vector<64xf32>
    %7 = vector.multi_reduction <add>, %1, %cst [1] : vector<64x32xf32> to vector<64xf32>
    %8 = vector.shape_cast %7 : vector<64xf32> to vector<64x1xf32>
    %cst_10 = arith.constant 3.200000e+01 : f32
    %9 = vector.broadcast %cst_10 : f32 to vector<64x1xf32>
    %10 = arith.divf %8, %9 : vector<64x1xf32>
    %11 = vector.broadcast %10 : vector<64x1xf32> to vector<64x32xf32>
    %12 = arith.subf %1, %11 : vector<64x32xf32>
    %13 = arith.mulf %12, %12 : vector<64x32xf32>
    %cst_11 = arith.constant dense<0.000000e+00> : vector<64xf32>
    %14 = vector.multi_reduction <add>, %13, %cst_11 [1] : vector<64x32xf32> to vector<64xf32>
    %15 = vector.shape_cast %14 : vector<64xf32> to vector<64x1xf32>
    %cst_12 = arith.constant 3.200000e+01 : f32
    %16 = vector.broadcast %cst_12 : f32 to vector<64x1xf32>
    %17 = arith.divf %15, %16 : vector<64x1xf32>
    %cst_13 = arith.constant 9.99999974E-6 : f32
    %18 = vector.broadcast %cst_13 : f32 to vector<64x1xf32>
    %19 = arith.addf %17, %18 : vector<64x1xf32>
    %20 = math.rsqrt %19 : vector<64x1xf32>
    %21 = vector.broadcast %20 : vector<64x1xf32> to vector<64x32xf32>
    %22 = arith.mulf %12, %21 : vector<64x32xf32>
    %23 = vector.broadcast %4 : vector<1x32xf32> to vector<64x32xf32>
    %24 = arith.mulf %22, %23 : vector<64x32xf32>
    %25 = vector.broadcast %6 : vector<1x32xf32> to vector<64x32xf32>
    %26 = arith.addf %24, %25 : vector<64x32xf32>
    %c0_14 = arith.constant 0 : index
    %c0_15 = arith.constant 0 : index
    %c0_16 = arith.constant 0 : index
    %27 = vector.load %arg5[%c0_14, %c0_15, %c0_16] : memref<2x32x96xf32, #tpu.memory_space<vmem>>, vector<1x32x96xf32>
    %28 = vector.shape_cast %27 : vector<1x32x96xf32> to vector<32x96xf32>
    %cst_17 = arith.constant dense<0.000000e+00> : vector<64x96xf32>
    %29 = tpu.matmul %26, %28, %cst_17 {dimension_numbers = #tpu.dot_dimension_numbers<[1], [0], [0], [1], [0, 0, 1, 1], [], []>} : vector<64x32xf32>, vector<32x96xf32>, vector<64x96xf32> -> vector<64x96xf32>
    %c0_18 = arith.constant 0 : index
    %c0_19 = arith.constant 0 : index
    %c0_20 = arith.constant 0 : index
    %30 = vector.load %arg6[%c0_18, %c0_19, %c0_20] : memref<2x32x32xf32, #tpu.memory_space<vmem>>, vector<1x32x32xf32>
    %31 = vector.shape_cast %30 : vector<1x32x32xf32> to vector<32x32xf32>
    %cst_21 = arith.constant 0.000000e+00 : f32
    %32 = vector.broadcast %cst_21 : f32 to vector<64x32xf32>
    %33 = vector.extract_strided_slice %29 {offsets = [0, 0], sizes = [64, 8], strides = [1, 1]} : vector<64x96xf32> to vector<64x8xf32>
    %34 = vector.extract_strided_slice %29 {offsets = [0, 32], sizes = [64, 8], strides = [1, 1]} : vector<64x96xf32> to vector<64x8xf32>
    %35 = vector.extract_strided_slice %29 {offsets = [0, 64], sizes = [64, 8], strides = [1, 1]} : vector<64x96xf32> to vector<64x8xf32>
    %cst_22 = arith.constant dense<0.000000e+00> : vector<64x64xf32>
    %36 = tpu.matmul %33, %34, %cst_22 {dimension_numbers = #tpu.dot_dimension_numbers<[1], [1], [0], [0], [0, 0, 1, 0], [], []>} : vector<64x8xf32>, vector<64x8xf32>, vector<64x64xf32> -> vector<64x64xf32>
    %cst_23 = arith.constant 0.353553385 : f32
    %37 = vector.broadcast %cst_23 : f32 to vector<64x64xf32>
    %38 = arith.mulf %36, %37 : vector<64x64xf32>
    %cst_24 = arith.constant dense<0xFF800000> : vector<64xf32>
    %39 = vector.multi_reduction <maximumf>, %38, %cst_24 [1] : vector<64x64xf32> to vector<64xf32>
    %40 = vector.shape_cast %39 : vector<64xf32> to vector<64x1xf32>
    %41 = vector.broadcast %40 : vector<64x1xf32> to vector<64x64xf32>
    %42 = arith.subf %38, %41 : vector<64x64xf32>
    %43 = math.exp %42 : vector<64x64xf32>
    %cst_25 = arith.constant dense<0.000000e+00> : vector<64xf32>
    %44 = vector.multi_reduction <add>, %43, %cst_25 [1] : vector<64x64xf32> to vector<64xf32>
    %45 = vector.shape_cast %44 : vector<64xf32> to vector<64x1xf32>
    %46 = vector.broadcast %45 : vector<64x1xf32> to vector<64x64xf32>
    %47 = arith.divf %43, %46 : vector<64x64xf32>
    %cst_26 = arith.constant dense<0.000000e+00> : vector<64x8xf32>
    %48 = tpu.matmul %47, %35, %cst_26 {dimension_numbers = #tpu.dot_dimension_numbers<[1], [0], [0], [1], [0, 0, 1, 1], [], []>} : vector<64x64xf32>, vector<64x8xf32>, vector<64x8xf32> -> vector<64x8xf32>
    %49 = vector.extract_strided_slice %31 {offsets = [0, 0], sizes = [8, 32], strides = [1, 1]} : vector<32x32xf32> to vector<8x32xf32>
    %cst_27 = arith.constant dense<0.000000e+00> : vector<64x32xf32>
    %50 = tpu.matmul %48, %49, %cst_27 {dimension_numbers = #tpu.dot_dimension_numbers<[1], [0], [0], [1], [0, 0, 1, 1], [], []>} : vector<64x8xf32>, vector<8x32xf32>, vector<64x32xf32> -> vector<64x32xf32>
    %51 = arith.addf %32, %50 : vector<64x32xf32>
    %52 = vector.extract_strided_slice %29 {offsets = [0, 8], sizes = [64, 8], strides = [1, 1]} : vector<64x96xf32> to vector<64x8xf32>
    %53 = vector.extract_strided_slice %29 {offsets = [0, 40], sizes = [64, 8], strides = [1, 1]} : vector<64x96xf32> to vector<64x8xf32>
    %54 = vector.extract_strided_slice %29 {offsets = [0, 72], sizes = [64, 8], strides = [1, 1]} : vector<64x96xf32> to vector<64x8xf32>
    %cst_28 = arith.constant dense<0.000000e+00> : vector<64x64xf32>
    %55 = tpu.matmul %52, %53, %cst_28 {dimension_numbers = #tpu.dot_dimension_numbers<[1], [1], [0], [0], [0, 0, 1, 0], [], []>} : vector<64x8xf32>, vector<64x8xf32>, vector<64x64xf32> -> vector<64x64xf32>
    %cst_29 = arith.constant 0.353553385 : f32
    %56 = vector.broadcast %cst_29 : f32 to vector<64x64xf32>
    %57 = arith.mulf %55, %56 : vector<64x64xf32>
    %cst_30 = arith.constant dense<0xFF800000> : vector<64xf32>
    %58 = vector.multi_reduction <maximumf>, %57, %cst_30 [1] : vector<64x64xf32> to vector<64xf32>
    %59 = vector.shape_cast %58 : vector<64xf32> to vector<64x1xf32>
    %60 = vector.broadcast %59 : vector<64x1xf32> to vector<64x64xf32>
    %61 = arith.subf %57, %60 : vector<64x64xf32>
    %62 = math.exp %61 : vector<64x64xf32>
    %cst_31 = arith.constant dense<0.000000e+00> : vector<64xf32>
    %63 = vector.multi_reduction <add>, %62, %cst_31 [1] : vector<64x64xf32> to vector<64xf32>
    %64 = vector.shape_cast %63 : vector<64xf32> to vector<64x1xf32>
    %65 = vector.broadcast %64 : vector<64x1xf32> to vector<64x64xf32>
    %66 = arith.divf %62, %65 : vector<64x64xf32>
    %cst_32 = arith.constant dense<0.000000e+00> : vector<64x8xf32>
    %67 = tpu.matmul %66, %54, %cst_32 {dimension_numbers = #tpu.dot_dimension_numbers<[1], [0], [0], [1], [0, 0, 1, 1], [], []>} : vector<64x64xf32>, vector<64x8xf32>, vector<64x8xf32> -> vector<64x8xf32>
    %68 = vector.extract_strided_slice %31 {offsets = [8, 0], sizes = [8, 32], strides = [1, 1]} : vector<32x32xf32> to vector<8x32xf32>
    %cst_33 = arith.constant dense<0.000000e+00> : vector<64x32xf32>
    %69 = tpu.matmul %67, %68, %cst_33 {dimension_numbers = #tpu.dot_dimension_numbers<[1], [0], [0], [1], [0, 0, 1, 1], [], []>} : vector<64x8xf32>, vector<8x32xf32>, vector<64x32xf32> -> vector<64x32xf32>
    %70 = arith.addf %51, %69 : vector<64x32xf32>
    %71 = vector.extract_strided_slice %29 {offsets = [0, 16], sizes = [64, 8], strides = [1, 1]} : vector<64x96xf32> to vector<64x8xf32>
    %72 = vector.extract_strided_slice %29 {offsets = [0, 48], sizes = [64, 8], strides = [1, 1]} : vector<64x96xf32> to vector<64x8xf32>
    %73 = vector.extract_strided_slice %29 {offsets = [0, 80], sizes = [64, 8], strides = [1, 1]} : vector<64x96xf32> to vector<64x8xf32>
    %cst_34 = arith.constant dense<0.000000e+00> : vector<64x64xf32>
    %74 = tpu.matmul %71, %72, %cst_34 {dimension_numbers = #tpu.dot_dimension_numbers<[1], [1], [0], [0], [0, 0, 1, 0], [], []>} : vector<64x8xf32>, vector<64x8xf32>, vector<64x64xf32> -> vector<64x64xf32>
    %cst_35 = arith.constant 0.353553385 : f32
    %75 = vector.broadcast %cst_35 : f32 to vector<64x64xf32>
    %76 = arith.mulf %74, %75 : vector<64x64xf32>
    %cst_36 = arith.constant dense<0xFF800000> : vector<64xf32>
    %77 = vector.multi_reduction <maximumf>, %76, %cst_36 [1] : vector<64x64xf32> to vector<64xf32>
    %78 = vector.shape_cast %77 : vector<64xf32> to vector<64x1xf32>
    %79 = vector.broadcast %78 : vector<64x1xf32> to vector<64x64xf32>
    %80 = arith.subf %76, %79 : vector<64x64xf32>
    %81 = math.exp %80 : vector<64x64xf32>
    %cst_37 = arith.constant dense<0.000000e+00> : vector<64xf32>
    %82 = vector.multi_reduction <add>, %81, %cst_37 [1] : vector<64x64xf32> to vector<64xf32>
    %83 = vector.shape_cast %82 : vector<64xf32> to vector<64x1xf32>
    %84 = vector.broadcast %83 : vector<64x1xf32> to vector<64x64xf32>
    %85 = arith.divf %81, %84 : vector<64x64xf32>
    %cst_38 = arith.constant dense<0.000000e+00> : vector<64x8xf32>
    %86 = tpu.matmul %85, %73, %cst_38 {dimension_numbers = #tpu.dot_dimension_numbers<[1], [0], [0], [1], [0, 0, 1, 1], [], []>} : vector<64x64xf32>, vector<64x8xf32>, vector<64x8xf32> -> vector<64x8xf32>
    %87 = vector.extract_strided_slice %31 {offsets = [16, 0], sizes = [8, 32], strides = [1, 1]} : vector<32x32xf32> to vector<8x32xf32>
    %cst_39 = arith.constant dense<0.000000e+00> : vector<64x32xf32>
    %88 = tpu.matmul %86, %87, %cst_39 {dimension_numbers = #tpu.dot_dimension_numbers<[1], [0], [0], [1], [0, 0, 1, 1], [], []>} : vector<64x8xf32>, vector<8x32xf32>, vector<64x32xf32> -> vector<64x32xf32>
    %89 = arith.addf %70, %88 : vector<64x32xf32>
    %90 = vector.extract_strided_slice %29 {offsets = [0, 24], sizes = [64, 8], strides = [1, 1]} : vector<64x96xf32> to vector<64x8xf32>
    %91 = vector.extract_strided_slice %29 {offsets = [0, 56], sizes = [64, 8], strides = [1, 1]} : vector<64x96xf32> to vector<64x8xf32>
    %92 = vector.extract_strided_slice %29 {offsets = [0, 88], sizes = [64, 8], strides = [1, 1]} : vector<64x96xf32> to vector<64x8xf32>
    %cst_40 = arith.constant dense<0.000000e+00> : vector<64x64xf32>
    %93 = tpu.matmul %90, %91, %cst_40 {dimension_numbers = #tpu.dot_dimension_numbers<[1], [1], [0], [0], [0, 0, 1, 0], [], []>} : vector<64x8xf32>, vector<64x8xf32>, vector<64x64xf32> -> vector<64x64xf32>
    %cst_41 = arith.constant 0.353553385 : f32
    %94 = vector.broadcast %cst_41 : f32 to vector<64x64xf32>
    %95 = arith.mulf %93, %94 : vector<64x64xf32>
    %cst_42 = arith.constant dense<0xFF800000> : vector<64xf32>
    %96 = vector.multi_reduction <maximumf>, %95, %cst_42 [1] : vector<64x64xf32> to vector<64xf32>
    %97 = vector.shape_cast %96 : vector<64xf32> to vector<64x1xf32>
    %98 = vector.broadcast %97 : vector<64x1xf32> to vector<64x64xf32>
    %99 = arith.subf %95, %98 : vector<64x64xf32>
    %100 = math.exp %99 : vector<64x64xf32>
    %cst_43 = arith.constant dense<0.000000e+00> : vector<64xf32>
    %101 = vector.multi_reduction <add>, %100, %cst_43 [1] : vector<64x64xf32> to vector<64xf32>
    %102 = vector.shape_cast %101 : vector<64xf32> to vector<64x1xf32>
    %103 = vector.broadcast %102 : vector<64x1xf32> to vector<64x64xf32>
    %104 = arith.divf %100, %103 : vector<64x64xf32>
    %cst_44 = arith.constant dense<0.000000e+00> : vector<64x8xf32>
    %105 = tpu.matmul %104, %92, %cst_44 {dimension_numbers = #tpu.dot_dimension_numbers<[1], [0], [0], [1], [0, 0, 1, 1], [], []>} : vector<64x64xf32>, vector<64x8xf32>, vector<64x8xf32> -> vector<64x8xf32>
    %106 = vector.extract_strided_slice %31 {offsets = [24, 0], sizes = [8, 32], strides = [1, 1]} : vector<32x32xf32> to vector<8x32xf32>
    %cst_45 = arith.constant dense<0.000000e+00> : vector<64x32xf32>
    %107 = tpu.matmul %105, %106, %cst_45 {dimension_numbers = #tpu.dot_dimension_numbers<[1], [0], [0], [1], [0, 0, 1, 1], [], []>} : vector<64x8xf32>, vector<8x32xf32>, vector<64x32xf32> -> vector<64x32xf32>
    %108 = arith.addf %89, %107 : vector<64x32xf32>
    %109 = arith.addf %1, %108 : vector<64x32xf32>
    %c0_46 = arith.constant 0 : index
    %c0_47 = arith.constant 0 : index
    %c0_48 = arith.constant 0 : index
    %110 = vector.load %arg7[%c0_46, %c0_47, %c0_48] : memref<2x1x32xf32, #tpu.memory_space<vmem>>, vector<1x1x32xf32>
    %111 = vector.shape_cast %110 : vector<1x1x32xf32> to vector<1x32xf32>
    %112 = vector.broadcast %111 : vector<1x32xf32> to vector<64x32xf32>
    %113 = arith.addf %109, %112 : vector<64x32xf32>
    %c0_49 = arith.constant 0 : index
    %c0_50 = arith.constant 0 : index
    %c0_51 = arith.constant 0 : index
    %114 = vector.load %arg8[%c0_49, %c0_50, %c0_51] : memref<2x1x32xf32, #tpu.memory_space<vmem>>, vector<1x1x32xf32>
    %115 = vector.shape_cast %114 : vector<1x1x32xf32> to vector<1x32xf32>
    %c0_52 = arith.constant 0 : index
    %c0_53 = arith.constant 0 : index
    %c0_54 = arith.constant 0 : index
    %116 = vector.load %arg9[%c0_52, %c0_53, %c0_54] : memref<2x1x32xf32, #tpu.memory_space<vmem>>, vector<1x1x32xf32>
    %117 = vector.shape_cast %116 : vector<1x1x32xf32> to vector<1x32xf32>
    %cst_55 = arith.constant dense<0.000000e+00> : vector<64xf32>
    %118 = vector.multi_reduction <add>, %113, %cst_55 [1] : vector<64x32xf32> to vector<64xf32>
    %119 = vector.shape_cast %118 : vector<64xf32> to vector<64x1xf32>
    %cst_56 = arith.constant 3.200000e+01 : f32
    %120 = vector.broadcast %cst_56 : f32 to vector<64x1xf32>
    %121 = arith.divf %119, %120 : vector<64x1xf32>
    %122 = vector.broadcast %121 : vector<64x1xf32> to vector<64x32xf32>
    %123 = arith.subf %113, %122 : vector<64x32xf32>
    %124 = arith.mulf %123, %123 : vector<64x32xf32>
    %cst_57 = arith.constant dense<0.000000e+00> : vector<64xf32>
    %125 = vector.multi_reduction <add>, %124, %cst_57 [1] : vector<64x32xf32> to vector<64xf32>
    %126 = vector.shape_cast %125 : vector<64xf32> to vector<64x1xf32>
    %cst_58 = arith.constant 3.200000e+01 : f32
    %127 = vector.broadcast %cst_58 : f32 to vector<64x1xf32>
    %128 = arith.divf %126, %127 : vector<64x1xf32>
    %cst_59 = arith.constant 9.99999974E-6 : f32
    %129 = vector.broadcast %cst_59 : f32 to vector<64x1xf32>
    %130 = arith.addf %128, %129 : vector<64x1xf32>
    %131 = math.rsqrt %130 : vector<64x1xf32>
    %132 = vector.broadcast %131 : vector<64x1xf32> to vector<64x32xf32>
    %133 = arith.mulf %123, %132 : vector<64x32xf32>
    %134 = vector.broadcast %115 : vector<1x32xf32> to vector<64x32xf32>
    %135 = arith.mulf %133, %134 : vector<64x32xf32>
    %136 = vector.broadcast %117 : vector<1x32xf32> to vector<64x32xf32>
    %137 = arith.addf %135, %136 : vector<64x32xf32>
    %c0_60 = arith.constant 0 : index
    %c0_61 = arith.constant 0 : index
    %c0_62 = arith.constant 0 : index
    %138 = vector.load %arg10[%c0_60, %c0_61, %c0_62] : memref<2x32x32xf32, #tpu.memory_space<vmem>>, vector<1x32x32xf32>
    %139 = vector.shape_cast %138 : vector<1x32x32xf32> to vector<32x32xf32>
    %cst_63 = arith.constant dense<0.000000e+00> : vector<64x32xf32>
    %140 = tpu.matmul %137, %139, %cst_63 {dimension_numbers = #tpu.dot_dimension_numbers<[1], [0], [0], [1], [0, 0, 1, 1], [], []>} : vector<64x32xf32>, vector<32x32xf32>, vector<64x32xf32> -> vector<64x32xf32>
    %c0_64 = arith.constant 0 : index
    %c0_65 = arith.constant 0 : index
    %c0_66 = arith.constant 0 : index
    %141 = vector.load %arg11[%c0_64, %c0_65, %c0_66] : memref<2x1x32xf32, #tpu.memory_space<vmem>>, vector<1x1x32xf32>
    %142 = vector.shape_cast %141 : vector<1x1x32xf32> to vector<1x32xf32>
    %143 = vector.broadcast %142 : vector<1x32xf32> to vector<64x32xf32>
    %144 = arith.addf %140, %143 : vector<64x32xf32>
    %cst_67 = arith.constant 5.000000e-01 : f32
    %145 = vector.broadcast %cst_67 : f32 to vector<64x32xf32>
    %146 = arith.mulf %145, %144 : vector<64x32xf32>
    %cst_68 = arith.constant 0.707106769 : f32
    %147 = vector.broadcast %cst_68 : f32 to vector<64x32xf32>
    %148 = arith.mulf %144, %147 : vector<64x32xf32>
    %149 = math.absf %148 : vector<64x32xf32>
    %cst_69 = arith.constant 0.327591091 : f32
    %150 = vector.broadcast %cst_69 : f32 to vector<64x32xf32>
    %151 = arith.mulf %150, %149 : vector<64x32xf32>
    %cst_70 = arith.constant 1.000000e+00 : f32
    %152 = vector.broadcast %cst_70 : f32 to vector<64x32xf32>
    %153 = arith.addf %152, %151 : vector<64x32xf32>
    %cst_71 = arith.constant 1.000000e+00 : f32
    %154 = vector.broadcast %cst_71 : f32 to vector<64x32xf32>
    %155 = arith.divf %154, %153 : vector<64x32xf32>
    %cst_72 = arith.constant 1.06140542 : f32
    %156 = vector.broadcast %cst_72 : f32 to vector<64x32xf32>
    %157 = arith.mulf %156, %155 : vector<64x32xf32>
    %cst_73 = arith.constant -1.45315206 : f32
    %158 = vector.broadcast %cst_73 : f32 to vector<64x32xf32>
    %159 = arith.addf %157, %158 : vector<64x32xf32>
    %160 = arith.mulf %159, %155 : vector<64x32xf32>
    %cst_74 = arith.constant 1.42141378 : f32
    %161 = vector.broadcast %cst_74 : f32 to vector<64x32xf32>
    %162 = arith.addf %160, %161 : vector<64x32xf32>
    %163 = arith.mulf %162, %155 : vector<64x32xf32>
    %cst_75 = arith.constant -0.284496725 : f32
    %164 = vector.broadcast %cst_75 : f32 to vector<64x32xf32>
    %165 = arith.addf %163, %164 : vector<64x32xf32>
    %166 = arith.mulf %165, %155 : vector<64x32xf32>
    %cst_76 = arith.constant 0.254829586 : f32
    %167 = vector.broadcast %cst_76 : f32 to vector<64x32xf32>
    %168 = arith.addf %166, %167 : vector<64x32xf32>
    %169 = arith.mulf %168, %155 : vector<64x32xf32>
    %cst_77 = arith.constant 0.000000e+00 : f32
    %170 = vector.broadcast %cst_77 : f32 to vector<64x32xf32>
    %171 = arith.subf %170, %149 : vector<64x32xf32>
    %172 = arith.mulf %171, %149 : vector<64x32xf32>
    %173 = math.exp %172 : vector<64x32xf32>
    %174 = arith.mulf %169, %173 : vector<64x32xf32>
    %cst_78 = arith.constant 1.000000e+00 : f32
    %175 = vector.broadcast %cst_78 : f32 to vector<64x32xf32>
    %176 = arith.subf %175, %174 : vector<64x32xf32>
    %cst_79 = arith.constant 0.000000e+00 : f32
    %177 = vector.broadcast %cst_79 : f32 to vector<64x32xf32>
    %178 = arith.cmpf oge, %148, %177 : vector<64x32xf32>
    %cst_80 = arith.constant 0.000000e+00 : f32
    %179 = vector.broadcast %cst_80 : f32 to vector<64x32xf32>
    %180 = arith.subf %179, %176 : vector<64x32xf32>
    %181 = arith.select %178, %176, %180 : vector<64x32xi1>, vector<64x32xf32>
    %cst_81 = arith.constant 1.000000e+00 : f32
    %182 = vector.broadcast %cst_81 : f32 to vector<64x32xf32>
    %183 = arith.addf %182, %181 : vector<64x32xf32>
    %184 = arith.mulf %146, %183 : vector<64x32xf32>
    %cst_82 = arith.constant dense<0.000000e+00> : vector<576x32xf32>
    %185 = tpu.matmul %2, %184, %cst_82 {dimension_numbers = #tpu.dot_dimension_numbers<[1], [0], [0], [1], [0, 0, 1, 1], [], []>} : vector<576x64xf32>, vector<64x32xf32>, vector<576x32xf32> -> vector<576x32xf32>
    %cst_83 = arith.constant 0.000000e+00 : f32
    %186 = vector.broadcast %cst_83 : f32 to vector<64x32xf32>
    %187 = vector.extract_strided_slice %185 {offsets = [0, 0], sizes = [64, 32], strides = [1, 1]} : vector<576x32xf32> to vector<64x32xf32>
    %c0_84 = arith.constant 0 : index
    %c0_85 = arith.constant 0 : index
    %c0_86 = arith.constant 0 : index
    %c0_87 = arith.constant 0 : index
    %188 = vector.load %arg12[%c0_84, %c0_85, %c0_86, %c0_87] : memref<2x9x1x32xf32, #tpu.memory_space<vmem>>, vector<1x1x1x32xf32>
    %189 = vector.shape_cast %188 : vector<1x1x1x32xf32> to vector<1x32xf32>
    %190 = vector.broadcast %189 : vector<1x32xf32> to vector<64x32xf32>
    %191 = arith.mulf %187, %190 : vector<64x32xf32>
    %192 = arith.addf %186, %191 : vector<64x32xf32>
    %193 = vector.extract_strided_slice %185 {offsets = [64, 0], sizes = [64, 32], strides = [1, 1]} : vector<576x32xf32> to vector<64x32xf32>
    %c0_88 = arith.constant 0 : index
    %c1 = arith.constant 1 : index
    %c0_89 = arith.constant 0 : index
    %c0_90 = arith.constant 0 : index
    %194 = vector.load %arg12[%c0_88, %c1, %c0_89, %c0_90] : memref<2x9x1x32xf32, #tpu.memory_space<vmem>>, vector<1x1x1x32xf32>
    %195 = vector.shape_cast %194 : vector<1x1x1x32xf32> to vector<1x32xf32>
    %196 = vector.broadcast %195 : vector<1x32xf32> to vector<64x32xf32>
    %197 = arith.mulf %193, %196 : vector<64x32xf32>
    %198 = arith.addf %192, %197 : vector<64x32xf32>
    %199 = vector.extract_strided_slice %185 {offsets = [128, 0], sizes = [64, 32], strides = [1, 1]} : vector<576x32xf32> to vector<64x32xf32>
    %c0_91 = arith.constant 0 : index
    %c2 = arith.constant 2 : index
    %c0_92 = arith.constant 0 : index
    %c0_93 = arith.constant 0 : index
    %200 = vector.load %arg12[%c0_91, %c2, %c0_92, %c0_93] : memref<2x9x1x32xf32, #tpu.memory_space<vmem>>, vector<1x1x1x32xf32>
    %201 = vector.shape_cast %200 : vector<1x1x1x32xf32> to vector<1x32xf32>
    %202 = vector.broadcast %201 : vector<1x32xf32> to vector<64x32xf32>
    %203 = arith.mulf %199, %202 : vector<64x32xf32>
    %204 = arith.addf %198, %203 : vector<64x32xf32>
    %205 = vector.extract_strided_slice %185 {offsets = [192, 0], sizes = [64, 32], strides = [1, 1]} : vector<576x32xf32> to vector<64x32xf32>
    %c0_94 = arith.constant 0 : index
    %c3 = arith.constant 3 : index
    %c0_95 = arith.constant 0 : index
    %c0_96 = arith.constant 0 : index
    %206 = vector.load %arg12[%c0_94, %c3, %c0_95, %c0_96] : memref<2x9x1x32xf32, #tpu.memory_space<vmem>>, vector<1x1x1x32xf32>
    %207 = vector.shape_cast %206 : vector<1x1x1x32xf32> to vector<1x32xf32>
    %208 = vector.broadcast %207 : vector<1x32xf32> to vector<64x32xf32>
    %209 = arith.mulf %205, %208 : vector<64x32xf32>
    %210 = arith.addf %204, %209 : vector<64x32xf32>
    %211 = vector.extract_strided_slice %185 {offsets = [256, 0], sizes = [64, 32], strides = [1, 1]} : vector<576x32xf32> to vector<64x32xf32>
    %c0_97 = arith.constant 0 : index
    %c4 = arith.constant 4 : index
    %c0_98 = arith.constant 0 : index
    %c0_99 = arith.constant 0 : index
    %212 = vector.load %arg12[%c0_97, %c4, %c0_98, %c0_99] : memref<2x9x1x32xf32, #tpu.memory_space<vmem>>, vector<1x1x1x32xf32>
    %213 = vector.shape_cast %212 : vector<1x1x1x32xf32> to vector<1x32xf32>
    %214 = vector.broadcast %213 : vector<1x32xf32> to vector<64x32xf32>
    %215 = arith.mulf %211, %214 : vector<64x32xf32>
    %216 = arith.addf %210, %215 : vector<64x32xf32>
    %217 = vector.extract_strided_slice %185 {offsets = [320, 0], sizes = [64, 32], strides = [1, 1]} : vector<576x32xf32> to vector<64x32xf32>
    %c0_100 = arith.constant 0 : index
    %c5 = arith.constant 5 : index
    %c0_101 = arith.constant 0 : index
    %c0_102 = arith.constant 0 : index
    %218 = vector.load %arg12[%c0_100, %c5, %c0_101, %c0_102] : memref<2x9x1x32xf32, #tpu.memory_space<vmem>>, vector<1x1x1x32xf32>
    %219 = vector.shape_cast %218 : vector<1x1x1x32xf32> to vector<1x32xf32>
    %220 = vector.broadcast %219 : vector<1x32xf32> to vector<64x32xf32>
    %221 = arith.mulf %217, %220 : vector<64x32xf32>
    %222 = arith.addf %216, %221 : vector<64x32xf32>
    %223 = vector.extract_strided_slice %185 {offsets = [384, 0], sizes = [64, 32], strides = [1, 1]} : vector<576x32xf32> to vector<64x32xf32>
    %c0_103 = arith.constant 0 : index
    %c6 = arith.constant 6 : index
    %c0_104 = arith.constant 0 : index
    %c0_105 = arith.constant 0 : index
    %224 = vector.load %arg12[%c0_103, %c6, %c0_104, %c0_105] : memref<2x9x1x32xf32, #tpu.memory_space<vmem>>, vector<1x1x1x32xf32>
    %225 = vector.shape_cast %224 : vector<1x1x1x32xf32> to vector<1x32xf32>
    %226 = vector.broadcast %225 : vector<1x32xf32> to vector<64x32xf32>
    %227 = arith.mulf %223, %226 : vector<64x32xf32>
    %228 = arith.addf %222, %227 : vector<64x32xf32>
    %229 = vector.extract_strided_slice %185 {offsets = [448, 0], sizes = [64, 32], strides = [1, 1]} : vector<576x32xf32> to vector<64x32xf32>
    %c0_106 = arith.constant 0 : index
    %c7 = arith.constant 7 : index
    %c0_107 = arith.constant 0 : index
    %c0_108 = arith.constant 0 : index
    %230 = vector.load %arg12[%c0_106, %c7, %c0_107, %c0_108] : memref<2x9x1x32xf32, #tpu.memory_space<vmem>>, vector<1x1x1x32xf32>
    %231 = vector.shape_cast %230 : vector<1x1x1x32xf32> to vector<1x32xf32>
    %232 = vector.broadcast %231 : vector<1x32xf32> to vector<64x32xf32>
    %233 = arith.mulf %229, %232 : vector<64x32xf32>
    %234 = arith.addf %228, %233 : vector<64x32xf32>
    %235 = vector.extract_strided_slice %185 {offsets = [512, 0], sizes = [64, 32], strides = [1, 1]} : vector<576x32xf32> to vector<64x32xf32>
    %c0_109 = arith.constant 0 : index
    %c8 = arith.constant 8 : index
    %c0_110 = arith.constant 0 : index
    %c0_111 = arith.constant 0 : index
    %236 = vector.load %arg12[%c0_109, %c8, %c0_110, %c0_111] : memref<2x9x1x32xf32, #tpu.memory_space<vmem>>, vector<1x1x1x32xf32>
    %237 = vector.shape_cast %236 : vector<1x1x1x32xf32> to vector<1x32xf32>
    %238 = vector.broadcast %237 : vector<1x32xf32> to vector<64x32xf32>
    %239 = arith.mulf %235, %238 : vector<64x32xf32>
    %240 = arith.addf %234, %239 : vector<64x32xf32>
    %c0_112 = arith.constant 0 : index
    %c0_113 = arith.constant 0 : index
    %c0_114 = arith.constant 0 : index
    %241 = vector.load %arg13[%c0_112, %c0_113, %c0_114] : memref<2x32x32xf32, #tpu.memory_space<vmem>>, vector<1x32x32xf32>
    %242 = vector.shape_cast %241 : vector<1x32x32xf32> to vector<32x32xf32>
    %cst_115 = arith.constant dense<0.000000e+00> : vector<64x32xf32>
    %243 = tpu.matmul %240, %242, %cst_115 {dimension_numbers = #tpu.dot_dimension_numbers<[1], [0], [0], [1], [0, 0, 1, 1], [], []>} : vector<64x32xf32>, vector<32x32xf32>, vector<64x32xf32> -> vector<64x32xf32>
    %cst_116 = arith.constant 5.000000e-01 : f32
    %244 = vector.broadcast %cst_116 : f32 to vector<64x32xf32>
    %245 = arith.mulf %244, %243 : vector<64x32xf32>
    %cst_117 = arith.constant 0.707106769 : f32
    %246 = vector.broadcast %cst_117 : f32 to vector<64x32xf32>
    %247 = arith.mulf %243, %246 : vector<64x32xf32>
    %248 = math.absf %247 : vector<64x32xf32>
    %cst_118 = arith.constant 0.327591091 : f32
    %249 = vector.broadcast %cst_118 : f32 to vector<64x32xf32>
    %250 = arith.mulf %249, %248 : vector<64x32xf32>
    %cst_119 = arith.constant 1.000000e+00 : f32
    %251 = vector.broadcast %cst_119 : f32 to vector<64x32xf32>
    %252 = arith.addf %251, %250 : vector<64x32xf32>
    %cst_120 = arith.constant 1.000000e+00 : f32
    %253 = vector.broadcast %cst_120 : f32 to vector<64x32xf32>
    %254 = arith.divf %253, %252 : vector<64x32xf32>
    %cst_121 = arith.constant 1.06140542 : f32
    %255 = vector.broadcast %cst_121 : f32 to vector<64x32xf32>
    %256 = arith.mulf %255, %254 : vector<64x32xf32>
    %cst_122 = arith.constant -1.45315206 : f32
    %257 = vector.broadcast %cst_122 : f32 to vector<64x32xf32>
    %258 = arith.addf %256, %257 : vector<64x32xf32>
    %259 = arith.mulf %258, %254 : vector<64x32xf32>
    %cst_123 = arith.constant 1.42141378 : f32
    %260 = vector.broadcast %cst_123 : f32 to vector<64x32xf32>
    %261 = arith.addf %259, %260 : vector<64x32xf32>
    %262 = arith.mulf %261, %254 : vector<64x32xf32>
    %cst_124 = arith.constant -0.284496725 : f32
    %263 = vector.broadcast %cst_124 : f32 to vector<64x32xf32>
    %264 = arith.addf %262, %263 : vector<64x32xf32>
    %265 = arith.mulf %264, %254 : vector<64x32xf32>
    %cst_125 = arith.constant 0.254829586 : f32
    %266 = vector.broadcast %cst_125 : f32 to vector<64x32xf32>
    %267 = arith.addf %265, %266 : vector<64x32xf32>
    %268 = arith.mulf %267, %254 : vector<64x32xf32>
    %cst_126 = arith.constant 0.000000e+00 : f32
    %269 = vector.broadcast %cst_126 : f32 to vector<64x32xf32>
    %270 = arith.subf %269, %248 : vector<64x32xf32>
    %271 = arith.mulf %270, %248 : vector<64x32xf32>
    %272 = math.exp %271 : vector<64x32xf32>
    %273 = arith.mulf %268, %272 : vector<64x32xf32>
    %cst_127 = arith.constant 1.000000e+00 : f32
    %274 = vector.broadcast %cst_127 : f32 to vector<64x32xf32>
    %275 = arith.subf %274, %273 : vector<64x32xf32>
    %cst_128 = arith.constant 0.000000e+00 : f32
    %276 = vector.broadcast %cst_128 : f32 to vector<64x32xf32>
    %277 = arith.cmpf oge, %247, %276 : vector<64x32xf32>
    %cst_129 = arith.constant 0.000000e+00 : f32
    %278 = vector.broadcast %cst_129 : f32 to vector<64x32xf32>
    %279 = arith.subf %278, %275 : vector<64x32xf32>
    %280 = arith.select %277, %275, %279 : vector<64x32xi1>, vector<64x32xf32>
    %cst_130 = arith.constant 1.000000e+00 : f32
    %281 = vector.broadcast %cst_130 : f32 to vector<64x32xf32>
    %282 = arith.addf %281, %280 : vector<64x32xf32>
    %283 = arith.mulf %245, %282 : vector<64x32xf32>
    %c0_131 = arith.constant 0 : index
    %c0_132 = arith.constant 0 : index
    %c0_133 = arith.constant 0 : index
    %284 = vector.load %arg14[%c0_131, %c0_132, %c0_133] : memref<2x32x32xf32, #tpu.memory_space<vmem>>, vector<1x32x32xf32>
    %285 = vector.shape_cast %284 : vector<1x32x32xf32> to vector<32x32xf32>
    %cst_134 = arith.constant dense<0.000000e+00> : vector<64x32xf32>
    %286 = tpu.matmul %283, %285, %cst_134 {dimension_numbers = #tpu.dot_dimension_numbers<[1], [0], [0], [1], [0, 0, 1, 1], [], []>} : vector<64x32xf32>, vector<32x32xf32>, vector<64x32xf32> -> vector<64x32xf32>
    %287 = arith.addf %113, %286 : vector<64x32xf32>
    %c0_135 = arith.constant 0 : index
    %c0_136 = arith.constant 0 : index
    %c0_137 = arith.constant 0 : index
    %288 = vector.load %arg15[%c0_135, %c0_136, %c0_137] : memref<2x1x32xf32, #tpu.memory_space<vmem>>, vector<1x1x32xf32>
    %289 = vector.shape_cast %288 : vector<1x1x32xf32> to vector<1x32xf32>
    %290 = vector.broadcast %289 : vector<1x32xf32> to vector<64x32xf32>
    %291 = arith.addf %287, %290 : vector<64x32xf32>
    %c1_138 = arith.constant 1 : index
    %c0_139 = arith.constant 0 : index
    %c0_140 = arith.constant 0 : index
    %292 = vector.load %arg3[%c1_138, %c0_139, %c0_140] : memref<2x1x32xf32, #tpu.memory_space<vmem>>, vector<1x1x32xf32>
    %293 = vector.shape_cast %292 : vector<1x1x32xf32> to vector<1x32xf32>
    %c1_141 = arith.constant 1 : index
    %c0_142 = arith.constant 0 : index
    %c0_143 = arith.constant 0 : index
    %294 = vector.load %arg4[%c1_141, %c0_142, %c0_143] : memref<2x1x32xf32, #tpu.memory_space<vmem>>, vector<1x1x32xf32>
    %295 = vector.shape_cast %294 : vector<1x1x32xf32> to vector<1x32xf32>
    %cst_144 = arith.constant dense<0.000000e+00> : vector<64xf32>
    %296 = vector.multi_reduction <add>, %291, %cst_144 [1] : vector<64x32xf32> to vector<64xf32>
    %297 = vector.shape_cast %296 : vector<64xf32> to vector<64x1xf32>
    %cst_145 = arith.constant 3.200000e+01 : f32
    %298 = vector.broadcast %cst_145 : f32 to vector<64x1xf32>
    %299 = arith.divf %297, %298 : vector<64x1xf32>
    %300 = vector.broadcast %299 : vector<64x1xf32> to vector<64x32xf32>
    %301 = arith.subf %291, %300 : vector<64x32xf32>
    %302 = arith.mulf %301, %301 : vector<64x32xf32>
    %cst_146 = arith.constant dense<0.000000e+00> : vector<64xf32>
    %303 = vector.multi_reduction <add>, %302, %cst_146 [1] : vector<64x32xf32> to vector<64xf32>
    %304 = vector.shape_cast %303 : vector<64xf32> to vector<64x1xf32>
    %cst_147 = arith.constant 3.200000e+01 : f32
    %305 = vector.broadcast %cst_147 : f32 to vector<64x1xf32>
    %306 = arith.divf %304, %305 : vector<64x1xf32>
    %cst_148 = arith.constant 9.99999974E-6 : f32
    %307 = vector.broadcast %cst_148 : f32 to vector<64x1xf32>
    %308 = arith.addf %306, %307 : vector<64x1xf32>
    %309 = math.rsqrt %308 : vector<64x1xf32>
    %310 = vector.broadcast %309 : vector<64x1xf32> to vector<64x32xf32>
    %311 = arith.mulf %301, %310 : vector<64x32xf32>
    %312 = vector.broadcast %293 : vector<1x32xf32> to vector<64x32xf32>
    %313 = arith.mulf %311, %312 : vector<64x32xf32>
    %314 = vector.broadcast %295 : vector<1x32xf32> to vector<64x32xf32>
    %315 = arith.addf %313, %314 : vector<64x32xf32>
    %c1_149 = arith.constant 1 : index
    %c0_150 = arith.constant 0 : index
    %c0_151 = arith.constant 0 : index
    %316 = vector.load %arg5[%c1_149, %c0_150, %c0_151] : memref<2x32x96xf32, #tpu.memory_space<vmem>>, vector<1x32x96xf32>
    %317 = vector.shape_cast %316 : vector<1x32x96xf32> to vector<32x96xf32>
    %cst_152 = arith.constant dense<0.000000e+00> : vector<64x96xf32>
    %318 = tpu.matmul %315, %317, %cst_152 {dimension_numbers = #tpu.dot_dimension_numbers<[1], [0], [0], [1], [0, 0, 1, 1], [], []>} : vector<64x32xf32>, vector<32x96xf32>, vector<64x96xf32> -> vector<64x96xf32>
    %c1_153 = arith.constant 1 : index
    %c0_154 = arith.constant 0 : index
    %c0_155 = arith.constant 0 : index
    %319 = vector.load %arg6[%c1_153, %c0_154, %c0_155] : memref<2x32x32xf32, #tpu.memory_space<vmem>>, vector<1x32x32xf32>
    %320 = vector.shape_cast %319 : vector<1x32x32xf32> to vector<32x32xf32>
    %cst_156 = arith.constant 0.000000e+00 : f32
    %321 = vector.broadcast %cst_156 : f32 to vector<64x32xf32>
    %322 = vector.extract_strided_slice %318 {offsets = [0, 0], sizes = [64, 8], strides = [1, 1]} : vector<64x96xf32> to vector<64x8xf32>
    %323 = vector.extract_strided_slice %318 {offsets = [0, 32], sizes = [64, 8], strides = [1, 1]} : vector<64x96xf32> to vector<64x8xf32>
    %324 = vector.extract_strided_slice %318 {offsets = [0, 64], sizes = [64, 8], strides = [1, 1]} : vector<64x96xf32> to vector<64x8xf32>
    %cst_157 = arith.constant dense<0.000000e+00> : vector<64x64xf32>
    %325 = tpu.matmul %322, %323, %cst_157 {dimension_numbers = #tpu.dot_dimension_numbers<[1], [1], [0], [0], [0, 0, 1, 0], [], []>} : vector<64x8xf32>, vector<64x8xf32>, vector<64x64xf32> -> vector<64x64xf32>
    %cst_158 = arith.constant 0.353553385 : f32
    %326 = vector.broadcast %cst_158 : f32 to vector<64x64xf32>
    %327 = arith.mulf %325, %326 : vector<64x64xf32>
    %cst_159 = arith.constant dense<0xFF800000> : vector<64xf32>
    %328 = vector.multi_reduction <maximumf>, %327, %cst_159 [1] : vector<64x64xf32> to vector<64xf32>
    %329 = vector.shape_cast %328 : vector<64xf32> to vector<64x1xf32>
    %330 = vector.broadcast %329 : vector<64x1xf32> to vector<64x64xf32>
    %331 = arith.subf %327, %330 : vector<64x64xf32>
    %332 = math.exp %331 : vector<64x64xf32>
    %cst_160 = arith.constant dense<0.000000e+00> : vector<64xf32>
    %333 = vector.multi_reduction <add>, %332, %cst_160 [1] : vector<64x64xf32> to vector<64xf32>
    %334 = vector.shape_cast %333 : vector<64xf32> to vector<64x1xf32>
    %335 = vector.broadcast %334 : vector<64x1xf32> to vector<64x64xf32>
    %336 = arith.divf %332, %335 : vector<64x64xf32>
    %cst_161 = arith.constant dense<0.000000e+00> : vector<64x8xf32>
    %337 = tpu.matmul %336, %324, %cst_161 {dimension_numbers = #tpu.dot_dimension_numbers<[1], [0], [0], [1], [0, 0, 1, 1], [], []>} : vector<64x64xf32>, vector<64x8xf32>, vector<64x8xf32> -> vector<64x8xf32>
    %338 = vector.extract_strided_slice %320 {offsets = [0, 0], sizes = [8, 32], strides = [1, 1]} : vector<32x32xf32> to vector<8x32xf32>
    %cst_162 = arith.constant dense<0.000000e+00> : vector<64x32xf32>
    %339 = tpu.matmul %337, %338, %cst_162 {dimension_numbers = #tpu.dot_dimension_numbers<[1], [0], [0], [1], [0, 0, 1, 1], [], []>} : vector<64x8xf32>, vector<8x32xf32>, vector<64x32xf32> -> vector<64x32xf32>
    %340 = arith.addf %321, %339 : vector<64x32xf32>
    %341 = vector.extract_strided_slice %318 {offsets = [0, 8], sizes = [64, 8], strides = [1, 1]} : vector<64x96xf32> to vector<64x8xf32>
    %342 = vector.extract_strided_slice %318 {offsets = [0, 40], sizes = [64, 8], strides = [1, 1]} : vector<64x96xf32> to vector<64x8xf32>
    %343 = vector.extract_strided_slice %318 {offsets = [0, 72], sizes = [64, 8], strides = [1, 1]} : vector<64x96xf32> to vector<64x8xf32>
    %cst_163 = arith.constant dense<0.000000e+00> : vector<64x64xf32>
    %344 = tpu.matmul %341, %342, %cst_163 {dimension_numbers = #tpu.dot_dimension_numbers<[1], [1], [0], [0], [0, 0, 1, 0], [], []>} : vector<64x8xf32>, vector<64x8xf32>, vector<64x64xf32> -> vector<64x64xf32>
    %cst_164 = arith.constant 0.353553385 : f32
    %345 = vector.broadcast %cst_164 : f32 to vector<64x64xf32>
    %346 = arith.mulf %344, %345 : vector<64x64xf32>
    %cst_165 = arith.constant dense<0xFF800000> : vector<64xf32>
    %347 = vector.multi_reduction <maximumf>, %346, %cst_165 [1] : vector<64x64xf32> to vector<64xf32>
    %348 = vector.shape_cast %347 : vector<64xf32> to vector<64x1xf32>
    %349 = vector.broadcast %348 : vector<64x1xf32> to vector<64x64xf32>
    %350 = arith.subf %346, %349 : vector<64x64xf32>
    %351 = math.exp %350 : vector<64x64xf32>
    %cst_166 = arith.constant dense<0.000000e+00> : vector<64xf32>
    %352 = vector.multi_reduction <add>, %351, %cst_166 [1] : vector<64x64xf32> to vector<64xf32>
    %353 = vector.shape_cast %352 : vector<64xf32> to vector<64x1xf32>
    %354 = vector.broadcast %353 : vector<64x1xf32> to vector<64x64xf32>
    %355 = arith.divf %351, %354 : vector<64x64xf32>
    %cst_167 = arith.constant dense<0.000000e+00> : vector<64x8xf32>
    %356 = tpu.matmul %355, %343, %cst_167 {dimension_numbers = #tpu.dot_dimension_numbers<[1], [0], [0], [1], [0, 0, 1, 1], [], []>} : vector<64x64xf32>, vector<64x8xf32>, vector<64x8xf32> -> vector<64x8xf32>
    %357 = vector.extract_strided_slice %320 {offsets = [8, 0], sizes = [8, 32], strides = [1, 1]} : vector<32x32xf32> to vector<8x32xf32>
    %cst_168 = arith.constant dense<0.000000e+00> : vector<64x32xf32>
    %358 = tpu.matmul %356, %357, %cst_168 {dimension_numbers = #tpu.dot_dimension_numbers<[1], [0], [0], [1], [0, 0, 1, 1], [], []>} : vector<64x8xf32>, vector<8x32xf32>, vector<64x32xf32> -> vector<64x32xf32>
    %359 = arith.addf %340, %358 : vector<64x32xf32>
    %360 = vector.extract_strided_slice %318 {offsets = [0, 16], sizes = [64, 8], strides = [1, 1]} : vector<64x96xf32> to vector<64x8xf32>
    %361 = vector.extract_strided_slice %318 {offsets = [0, 48], sizes = [64, 8], strides = [1, 1]} : vector<64x96xf32> to vector<64x8xf32>
    %362 = vector.extract_strided_slice %318 {offsets = [0, 80], sizes = [64, 8], strides = [1, 1]} : vector<64x96xf32> to vector<64x8xf32>
    %cst_169 = arith.constant dense<0.000000e+00> : vector<64x64xf32>
    %363 = tpu.matmul %360, %361, %cst_169 {dimension_numbers = #tpu.dot_dimension_numbers<[1], [1], [0], [0], [0, 0, 1, 0], [], []>} : vector<64x8xf32>, vector<64x8xf32>, vector<64x64xf32> -> vector<64x64xf32>
    %cst_170 = arith.constant 0.353553385 : f32
    %364 = vector.broadcast %cst_170 : f32 to vector<64x64xf32>
    %365 = arith.mulf %363, %364 : vector<64x64xf32>
    %cst_171 = arith.constant dense<0xFF800000> : vector<64xf32>
    %366 = vector.multi_reduction <maximumf>, %365, %cst_171 [1] : vector<64x64xf32> to vector<64xf32>
    %367 = vector.shape_cast %366 : vector<64xf32> to vector<64x1xf32>
    %368 = vector.broadcast %367 : vector<64x1xf32> to vector<64x64xf32>
    %369 = arith.subf %365, %368 : vector<64x64xf32>
    %370 = math.exp %369 : vector<64x64xf32>
    %cst_172 = arith.constant dense<0.000000e+00> : vector<64xf32>
    %371 = vector.multi_reduction <add>, %370, %cst_172 [1] : vector<64x64xf32> to vector<64xf32>
    %372 = vector.shape_cast %371 : vector<64xf32> to vector<64x1xf32>
    %373 = vector.broadcast %372 : vector<64x1xf32> to vector<64x64xf32>
    %374 = arith.divf %370, %373 : vector<64x64xf32>
    %cst_173 = arith.constant dense<0.000000e+00> : vector<64x8xf32>
    %375 = tpu.matmul %374, %362, %cst_173 {dimension_numbers = #tpu.dot_dimension_numbers<[1], [0], [0], [1], [0, 0, 1, 1], [], []>} : vector<64x64xf32>, vector<64x8xf32>, vector<64x8xf32> -> vector<64x8xf32>
    %376 = vector.extract_strided_slice %320 {offsets = [16, 0], sizes = [8, 32], strides = [1, 1]} : vector<32x32xf32> to vector<8x32xf32>
    %cst_174 = arith.constant dense<0.000000e+00> : vector<64x32xf32>
    %377 = tpu.matmul %375, %376, %cst_174 {dimension_numbers = #tpu.dot_dimension_numbers<[1], [0], [0], [1], [0, 0, 1, 1], [], []>} : vector<64x8xf32>, vector<8x32xf32>, vector<64x32xf32> -> vector<64x32xf32>
    %378 = arith.addf %359, %377 : vector<64x32xf32>
    %379 = vector.extract_strided_slice %318 {offsets = [0, 24], sizes = [64, 8], strides = [1, 1]} : vector<64x96xf32> to vector<64x8xf32>
    %380 = vector.extract_strided_slice %318 {offsets = [0, 56], sizes = [64, 8], strides = [1, 1]} : vector<64x96xf32> to vector<64x8xf32>
    %381 = vector.extract_strided_slice %318 {offsets = [0, 88], sizes = [64, 8], strides = [1, 1]} : vector<64x96xf32> to vector<64x8xf32>
    %cst_175 = arith.constant dense<0.000000e+00> : vector<64x64xf32>
    %382 = tpu.matmul %379, %380, %cst_175 {dimension_numbers = #tpu.dot_dimension_numbers<[1], [1], [0], [0], [0, 0, 1, 0], [], []>} : vector<64x8xf32>, vector<64x8xf32>, vector<64x64xf32> -> vector<64x64xf32>
    %cst_176 = arith.constant 0.353553385 : f32
    %383 = vector.broadcast %cst_176 : f32 to vector<64x64xf32>
    %384 = arith.mulf %382, %383 : vector<64x64xf32>
    %cst_177 = arith.constant dense<0xFF800000> : vector<64xf32>
    %385 = vector.multi_reduction <maximumf>, %384, %cst_177 [1] : vector<64x64xf32> to vector<64xf32>
    %386 = vector.shape_cast %385 : vector<64xf32> to vector<64x1xf32>
    %387 = vector.broadcast %386 : vector<64x1xf32> to vector<64x64xf32>
    %388 = arith.subf %384, %387 : vector<64x64xf32>
    %389 = math.exp %388 : vector<64x64xf32>
    %cst_178 = arith.constant dense<0.000000e+00> : vector<64xf32>
    %390 = vector.multi_reduction <add>, %389, %cst_178 [1] : vector<64x64xf32> to vector<64xf32>
    %391 = vector.shape_cast %390 : vector<64xf32> to vector<64x1xf32>
    %392 = vector.broadcast %391 : vector<64x1xf32> to vector<64x64xf32>
    %393 = arith.divf %389, %392 : vector<64x64xf32>
    %cst_179 = arith.constant dense<0.000000e+00> : vector<64x8xf32>
    %394 = tpu.matmul %393, %381, %cst_179 {dimension_numbers = #tpu.dot_dimension_numbers<[1], [0], [0], [1], [0, 0, 1, 1], [], []>} : vector<64x64xf32>, vector<64x8xf32>, vector<64x8xf32> -> vector<64x8xf32>
    %395 = vector.extract_strided_slice %320 {offsets = [24, 0], sizes = [8, 32], strides = [1, 1]} : vector<32x32xf32> to vector<8x32xf32>
    %cst_180 = arith.constant dense<0.000000e+00> : vector<64x32xf32>
    %396 = tpu.matmul %394, %395, %cst_180 {dimension_numbers = #tpu.dot_dimension_numbers<[1], [0], [0], [1], [0, 0, 1, 1], [], []>} : vector<64x8xf32>, vector<8x32xf32>, vector<64x32xf32> -> vector<64x32xf32>
    %397 = arith.addf %378, %396 : vector<64x32xf32>
    %398 = arith.addf %291, %397 : vector<64x32xf32>
    %c1_181 = arith.constant 1 : index
    %c0_182 = arith.constant 0 : index
    %c0_183 = arith.constant 0 : index
    %399 = vector.load %arg7[%c1_181, %c0_182, %c0_183] : memref<2x1x32xf32, #tpu.memory_space<vmem>>, vector<1x1x32xf32>
    %400 = vector.shape_cast %399 : vector<1x1x32xf32> to vector<1x32xf32>
    %401 = vector.broadcast %400 : vector<1x32xf32> to vector<64x32xf32>
    %402 = arith.addf %398, %401 : vector<64x32xf32>
    %c1_184 = arith.constant 1 : index
    %c0_185 = arith.constant 0 : index
    %c0_186 = arith.constant 0 : index
    %403 = vector.load %arg8[%c1_184, %c0_185, %c0_186] : memref<2x1x32xf32, #tpu.memory_space<vmem>>, vector<1x1x32xf32>
    %404 = vector.shape_cast %403 : vector<1x1x32xf32> to vector<1x32xf32>
    %c1_187 = arith.constant 1 : index
    %c0_188 = arith.constant 0 : index
    %c0_189 = arith.constant 0 : index
    %405 = vector.load %arg9[%c1_187, %c0_188, %c0_189] : memref<2x1x32xf32, #tpu.memory_space<vmem>>, vector<1x1x32xf32>
    %406 = vector.shape_cast %405 : vector<1x1x32xf32> to vector<1x32xf32>
    %cst_190 = arith.constant dense<0.000000e+00> : vector<64xf32>
    %407 = vector.multi_reduction <add>, %402, %cst_190 [1] : vector<64x32xf32> to vector<64xf32>
    %408 = vector.shape_cast %407 : vector<64xf32> to vector<64x1xf32>
    %cst_191 = arith.constant 3.200000e+01 : f32
    %409 = vector.broadcast %cst_191 : f32 to vector<64x1xf32>
    %410 = arith.divf %408, %409 : vector<64x1xf32>
    %411 = vector.broadcast %410 : vector<64x1xf32> to vector<64x32xf32>
    %412 = arith.subf %402, %411 : vector<64x32xf32>
    %413 = arith.mulf %412, %412 : vector<64x32xf32>
    %cst_192 = arith.constant dense<0.000000e+00> : vector<64xf32>
    %414 = vector.multi_reduction <add>, %413, %cst_192 [1] : vector<64x32xf32> to vector<64xf32>
    %415 = vector.shape_cast %414 : vector<64xf32> to vector<64x1xf32>
    %cst_193 = arith.constant 3.200000e+01 : f32
    %416 = vector.broadcast %cst_193 : f32 to vector<64x1xf32>
    %417 = arith.divf %415, %416 : vector<64x1xf32>
    %cst_194 = arith.constant 9.99999974E-6 : f32
    %418 = vector.broadcast %cst_194 : f32 to vector<64x1xf32>
    %419 = arith.addf %417, %418 : vector<64x1xf32>
    %420 = math.rsqrt %419 : vector<64x1xf32>
    %421 = vector.broadcast %420 : vector<64x1xf32> to vector<64x32xf32>
    %422 = arith.mulf %412, %421 : vector<64x32xf32>
    %423 = vector.broadcast %404 : vector<1x32xf32> to vector<64x32xf32>
    %424 = arith.mulf %422, %423 : vector<64x32xf32>
    %425 = vector.broadcast %406 : vector<1x32xf32> to vector<64x32xf32>
    %426 = arith.addf %424, %425 : vector<64x32xf32>
    %c1_195 = arith.constant 1 : index
    %c0_196 = arith.constant 0 : index
    %c0_197 = arith.constant 0 : index
    %427 = vector.load %arg10[%c1_195, %c0_196, %c0_197] : memref<2x32x32xf32, #tpu.memory_space<vmem>>, vector<1x32x32xf32>
    %428 = vector.shape_cast %427 : vector<1x32x32xf32> to vector<32x32xf32>
    %cst_198 = arith.constant dense<0.000000e+00> : vector<64x32xf32>
    %429 = tpu.matmul %426, %428, %cst_198 {dimension_numbers = #tpu.dot_dimension_numbers<[1], [0], [0], [1], [0, 0, 1, 1], [], []>} : vector<64x32xf32>, vector<32x32xf32>, vector<64x32xf32> -> vector<64x32xf32>
    %c1_199 = arith.constant 1 : index
    %c0_200 = arith.constant 0 : index
    %c0_201 = arith.constant 0 : index
    %430 = vector.load %arg11[%c1_199, %c0_200, %c0_201] : memref<2x1x32xf32, #tpu.memory_space<vmem>>, vector<1x1x32xf32>
    %431 = vector.shape_cast %430 : vector<1x1x32xf32> to vector<1x32xf32>
    %432 = vector.broadcast %431 : vector<1x32xf32> to vector<64x32xf32>
    %433 = arith.addf %429, %432 : vector<64x32xf32>
    %cst_202 = arith.constant 5.000000e-01 : f32
    %434 = vector.broadcast %cst_202 : f32 to vector<64x32xf32>
    %435 = arith.mulf %434, %433 : vector<64x32xf32>
    %cst_203 = arith.constant 0.707106769 : f32
    %436 = vector.broadcast %cst_203 : f32 to vector<64x32xf32>
    %437 = arith.mulf %433, %436 : vector<64x32xf32>
    %438 = math.absf %437 : vector<64x32xf32>
    %cst_204 = arith.constant 0.327591091 : f32
    %439 = vector.broadcast %cst_204 : f32 to vector<64x32xf32>
    %440 = arith.mulf %439, %438 : vector<64x32xf32>
    %cst_205 = arith.constant 1.000000e+00 : f32
    %441 = vector.broadcast %cst_205 : f32 to vector<64x32xf32>
    %442 = arith.addf %441, %440 : vector<64x32xf32>
    %cst_206 = arith.constant 1.000000e+00 : f32
    %443 = vector.broadcast %cst_206 : f32 to vector<64x32xf32>
    %444 = arith.divf %443, %442 : vector<64x32xf32>
    %cst_207 = arith.constant 1.06140542 : f32
    %445 = vector.broadcast %cst_207 : f32 to vector<64x32xf32>
    %446 = arith.mulf %445, %444 : vector<64x32xf32>
    %cst_208 = arith.constant -1.45315206 : f32
    %447 = vector.broadcast %cst_208 : f32 to vector<64x32xf32>
    %448 = arith.addf %446, %447 : vector<64x32xf32>
    %449 = arith.mulf %448, %444 : vector<64x32xf32>
    %cst_209 = arith.constant 1.42141378 : f32
    %450 = vector.broadcast %cst_209 : f32 to vector<64x32xf32>
    %451 = arith.addf %449, %450 : vector<64x32xf32>
    %452 = arith.mulf %451, %444 : vector<64x32xf32>
    %cst_210 = arith.constant -0.284496725 : f32
    %453 = vector.broadcast %cst_210 : f32 to vector<64x32xf32>
    %454 = arith.addf %452, %453 : vector<64x32xf32>
    %455 = arith.mulf %454, %444 : vector<64x32xf32>
    %cst_211 = arith.constant 0.254829586 : f32
    %456 = vector.broadcast %cst_211 : f32 to vector<64x32xf32>
    %457 = arith.addf %455, %456 : vector<64x32xf32>
    %458 = arith.mulf %457, %444 : vector<64x32xf32>
    %cst_212 = arith.constant 0.000000e+00 : f32
    %459 = vector.broadcast %cst_212 : f32 to vector<64x32xf32>
    %460 = arith.subf %459, %438 : vector<64x32xf32>
    %461 = arith.mulf %460, %438 : vector<64x32xf32>
    %462 = math.exp %461 : vector<64x32xf32>
    %463 = arith.mulf %458, %462 : vector<64x32xf32>
    %cst_213 = arith.constant 1.000000e+00 : f32
    %464 = vector.broadcast %cst_213 : f32 to vector<64x32xf32>
    %465 = arith.subf %464, %463 : vector<64x32xf32>
    %cst_214 = arith.constant 0.000000e+00 : f32
    %466 = vector.broadcast %cst_214 : f32 to vector<64x32xf32>
    %467 = arith.cmpf oge, %437, %466 : vector<64x32xf32>
    %cst_215 = arith.constant 0.000000e+00 : f32
    %468 = vector.broadcast %cst_215 : f32 to vector<64x32xf32>
    %469 = arith.subf %468, %465 : vector<64x32xf32>
    %470 = arith.select %467, %465, %469 : vector<64x32xi1>, vector<64x32xf32>
    %cst_216 = arith.constant 1.000000e+00 : f32
    %471 = vector.broadcast %cst_216 : f32 to vector<64x32xf32>
    %472 = arith.addf %471, %470 : vector<64x32xf32>
    %473 = arith.mulf %435, %472 : vector<64x32xf32>
    %cst_217 = arith.constant dense<0.000000e+00> : vector<576x32xf32>
    %474 = tpu.matmul %2, %473, %cst_217 {dimension_numbers = #tpu.dot_dimension_numbers<[1], [0], [0], [1], [0, 0, 1, 1], [], []>} : vector<576x64xf32>, vector<64x32xf32>, vector<576x32xf32> -> vector<576x32xf32>
    %cst_218 = arith.constant 0.000000e+00 : f32
    %475 = vector.broadcast %cst_218 : f32 to vector<64x32xf32>
    %476 = vector.extract_strided_slice %474 {offsets = [0, 0], sizes = [64, 32], strides = [1, 1]} : vector<576x32xf32> to vector<64x32xf32>
    %c1_219 = arith.constant 1 : index
    %c0_220 = arith.constant 0 : index
    %c0_221 = arith.constant 0 : index
    %c0_222 = arith.constant 0 : index
    %477 = vector.load %arg12[%c1_219, %c0_220, %c0_221, %c0_222] : memref<2x9x1x32xf32, #tpu.memory_space<vmem>>, vector<1x1x1x32xf32>
    %478 = vector.shape_cast %477 : vector<1x1x1x32xf32> to vector<1x32xf32>
    %479 = vector.broadcast %478 : vector<1x32xf32> to vector<64x32xf32>
    %480 = arith.mulf %476, %479 : vector<64x32xf32>
    %481 = arith.addf %475, %480 : vector<64x32xf32>
    %482 = vector.extract_strided_slice %474 {offsets = [64, 0], sizes = [64, 32], strides = [1, 1]} : vector<576x32xf32> to vector<64x32xf32>
    %c1_223 = arith.constant 1 : index
    %c1_224 = arith.constant 1 : index
    %c0_225 = arith.constant 0 : index
    %c0_226 = arith.constant 0 : index
    %483 = vector.load %arg12[%c1_223, %c1_224, %c0_225, %c0_226] : memref<2x9x1x32xf32, #tpu.memory_space<vmem>>, vector<1x1x1x32xf32>
    %484 = vector.shape_cast %483 : vector<1x1x1x32xf32> to vector<1x32xf32>
    %485 = vector.broadcast %484 : vector<1x32xf32> to vector<64x32xf32>
    %486 = arith.mulf %482, %485 : vector<64x32xf32>
    %487 = arith.addf %481, %486 : vector<64x32xf32>
    %488 = vector.extract_strided_slice %474 {offsets = [128, 0], sizes = [64, 32], strides = [1, 1]} : vector<576x32xf32> to vector<64x32xf32>
    %c1_227 = arith.constant 1 : index
    %c2_228 = arith.constant 2 : index
    %c0_229 = arith.constant 0 : index
    %c0_230 = arith.constant 0 : index
    %489 = vector.load %arg12[%c1_227, %c2_228, %c0_229, %c0_230] : memref<2x9x1x32xf32, #tpu.memory_space<vmem>>, vector<1x1x1x32xf32>
    %490 = vector.shape_cast %489 : vector<1x1x1x32xf32> to vector<1x32xf32>
    %491 = vector.broadcast %490 : vector<1x32xf32> to vector<64x32xf32>
    %492 = arith.mulf %488, %491 : vector<64x32xf32>
    %493 = arith.addf %487, %492 : vector<64x32xf32>
    %494 = vector.extract_strided_slice %474 {offsets = [192, 0], sizes = [64, 32], strides = [1, 1]} : vector<576x32xf32> to vector<64x32xf32>
    %c1_231 = arith.constant 1 : index
    %c3_232 = arith.constant 3 : index
    %c0_233 = arith.constant 0 : index
    %c0_234 = arith.constant 0 : index
    %495 = vector.load %arg12[%c1_231, %c3_232, %c0_233, %c0_234] : memref<2x9x1x32xf32, #tpu.memory_space<vmem>>, vector<1x1x1x32xf32>
    %496 = vector.shape_cast %495 : vector<1x1x1x32xf32> to vector<1x32xf32>
    %497 = vector.broadcast %496 : vector<1x32xf32> to vector<64x32xf32>
    %498 = arith.mulf %494, %497 : vector<64x32xf32>
    %499 = arith.addf %493, %498 : vector<64x32xf32>
    %500 = vector.extract_strided_slice %474 {offsets = [256, 0], sizes = [64, 32], strides = [1, 1]} : vector<576x32xf32> to vector<64x32xf32>
    %c1_235 = arith.constant 1 : index
    %c4_236 = arith.constant 4 : index
    %c0_237 = arith.constant 0 : index
    %c0_238 = arith.constant 0 : index
    %501 = vector.load %arg12[%c1_235, %c4_236, %c0_237, %c0_238] : memref<2x9x1x32xf32, #tpu.memory_space<vmem>>, vector<1x1x1x32xf32>
    %502 = vector.shape_cast %501 : vector<1x1x1x32xf32> to vector<1x32xf32>
    %503 = vector.broadcast %502 : vector<1x32xf32> to vector<64x32xf32>
    %504 = arith.mulf %500, %503 : vector<64x32xf32>
    %505 = arith.addf %499, %504 : vector<64x32xf32>
    %506 = vector.extract_strided_slice %474 {offsets = [320, 0], sizes = [64, 32], strides = [1, 1]} : vector<576x32xf32> to vector<64x32xf32>
    %c1_239 = arith.constant 1 : index
    %c5_240 = arith.constant 5 : index
    %c0_241 = arith.constant 0 : index
    %c0_242 = arith.constant 0 : index
    %507 = vector.load %arg12[%c1_239, %c5_240, %c0_241, %c0_242] : memref<2x9x1x32xf32, #tpu.memory_space<vmem>>, vector<1x1x1x32xf32>
    %508 = vector.shape_cast %507 : vector<1x1x1x32xf32> to vector<1x32xf32>
    %509 = vector.broadcast %508 : vector<1x32xf32> to vector<64x32xf32>
    %510 = arith.mulf %506, %509 : vector<64x32xf32>
    %511 = arith.addf %505, %510 : vector<64x32xf32>
    %512 = vector.extract_strided_slice %474 {offsets = [384, 0], sizes = [64, 32], strides = [1, 1]} : vector<576x32xf32> to vector<64x32xf32>
    %c1_243 = arith.constant 1 : index
    %c6_244 = arith.constant 6 : index
    %c0_245 = arith.constant 0 : index
    %c0_246 = arith.constant 0 : index
    %513 = vector.load %arg12[%c1_243, %c6_244, %c0_245, %c0_246] : memref<2x9x1x32xf32, #tpu.memory_space<vmem>>, vector<1x1x1x32xf32>
    %514 = vector.shape_cast %513 : vector<1x1x1x32xf32> to vector<1x32xf32>
    %515 = vector.broadcast %514 : vector<1x32xf32> to vector<64x32xf32>
    %516 = arith.mulf %512, %515 : vector<64x32xf32>
    %517 = arith.addf %511, %516 : vector<64x32xf32>
    %518 = vector.extract_strided_slice %474 {offsets = [448, 0], sizes = [64, 32], strides = [1, 1]} : vector<576x32xf32> to vector<64x32xf32>
    %c1_247 = arith.constant 1 : index
    %c7_248 = arith.constant 7 : index
    %c0_249 = arith.constant 0 : index
    %c0_250 = arith.constant 0 : index
    %519 = vector.load %arg12[%c1_247, %c7_248, %c0_249, %c0_250] : memref<2x9x1x32xf32, #tpu.memory_space<vmem>>, vector<1x1x1x32xf32>
    %520 = vector.shape_cast %519 : vector<1x1x1x32xf32> to vector<1x32xf32>
    %521 = vector.broadcast %520 : vector<1x32xf32> to vector<64x32xf32>
    %522 = arith.mulf %518, %521 : vector<64x32xf32>
    %523 = arith.addf %517, %522 : vector<64x32xf32>
    %524 = vector.extract_strided_slice %474 {offsets = [512, 0], sizes = [64, 32], strides = [1, 1]} : vector<576x32xf32> to vector<64x32xf32>
    %c1_251 = arith.constant 1 : index
    %c8_252 = arith.constant 8 : index
    %c0_253 = arith.constant 0 : index
    %c0_254 = arith.constant 0 : index
    %525 = vector.load %arg12[%c1_251, %c8_252, %c0_253, %c0_254] : memref<2x9x1x32xf32, #tpu.memory_space<vmem>>, vector<1x1x1x32xf32>
    %526 = vector.shape_cast %525 : vector<1x1x1x32xf32> to vector<1x32xf32>
    %527 = vector.broadcast %526 : vector<1x32xf32> to vector<64x32xf32>
    %528 = arith.mulf %524, %527 : vector<64x32xf32>
    %529 = arith.addf %523, %528 : vector<64x32xf32>
    %c1_255 = arith.constant 1 : index
    %c0_256 = arith.constant 0 : index
    %c0_257 = arith.constant 0 : index
    %530 = vector.load %arg13[%c1_255, %c0_256, %c0_257] : memref<2x32x32xf32, #tpu.memory_space<vmem>>, vector<1x32x32xf32>
    %531 = vector.shape_cast %530 : vector<1x32x32xf32> to vector<32x32xf32>
    %cst_258 = arith.constant dense<0.000000e+00> : vector<64x32xf32>
    %532 = tpu.matmul %529, %531, %cst_258 {dimension_numbers = #tpu.dot_dimension_numbers<[1], [0], [0], [1], [0, 0, 1, 1], [], []>} : vector<64x32xf32>, vector<32x32xf32>, vector<64x32xf32> -> vector<64x32xf32>
    %cst_259 = arith.constant 5.000000e-01 : f32
    %533 = vector.broadcast %cst_259 : f32 to vector<64x32xf32>
    %534 = arith.mulf %533, %532 : vector<64x32xf32>
    %cst_260 = arith.constant 0.707106769 : f32
    %535 = vector.broadcast %cst_260 : f32 to vector<64x32xf32>
    %536 = arith.mulf %532, %535 : vector<64x32xf32>
    %537 = math.absf %536 : vector<64x32xf32>
    %cst_261 = arith.constant 0.327591091 : f32
    %538 = vector.broadcast %cst_261 : f32 to vector<64x32xf32>
    %539 = arith.mulf %538, %537 : vector<64x32xf32>
    %cst_262 = arith.constant 1.000000e+00 : f32
    %540 = vector.broadcast %cst_262 : f32 to vector<64x32xf32>
    %541 = arith.addf %540, %539 : vector<64x32xf32>
    %cst_263 = arith.constant 1.000000e+00 : f32
    %542 = vector.broadcast %cst_263 : f32 to vector<64x32xf32>
    %543 = arith.divf %542, %541 : vector<64x32xf32>
    %cst_264 = arith.constant 1.06140542 : f32
    %544 = vector.broadcast %cst_264 : f32 to vector<64x32xf32>
    %545 = arith.mulf %544, %543 : vector<64x32xf32>
    %cst_265 = arith.constant -1.45315206 : f32
    %546 = vector.broadcast %cst_265 : f32 to vector<64x32xf32>
    %547 = arith.addf %545, %546 : vector<64x32xf32>
    %548 = arith.mulf %547, %543 : vector<64x32xf32>
    %cst_266 = arith.constant 1.42141378 : f32
    %549 = vector.broadcast %cst_266 : f32 to vector<64x32xf32>
    %550 = arith.addf %548, %549 : vector<64x32xf32>
    %551 = arith.mulf %550, %543 : vector<64x32xf32>
    %cst_267 = arith.constant -0.284496725 : f32
    %552 = vector.broadcast %cst_267 : f32 to vector<64x32xf32>
    %553 = arith.addf %551, %552 : vector<64x32xf32>
    %554 = arith.mulf %553, %543 : vector<64x32xf32>
    %cst_268 = arith.constant 0.254829586 : f32
    %555 = vector.broadcast %cst_268 : f32 to vector<64x32xf32>
    %556 = arith.addf %554, %555 : vector<64x32xf32>
    %557 = arith.mulf %556, %543 : vector<64x32xf32>
    %cst_269 = arith.constant 0.000000e+00 : f32
    %558 = vector.broadcast %cst_269 : f32 to vector<64x32xf32>
    %559 = arith.subf %558, %537 : vector<64x32xf32>
    %560 = arith.mulf %559, %537 : vector<64x32xf32>
    %561 = math.exp %560 : vector<64x32xf32>
    %562 = arith.mulf %557, %561 : vector<64x32xf32>
    %cst_270 = arith.constant 1.000000e+00 : f32
    %563 = vector.broadcast %cst_270 : f32 to vector<64x32xf32>
    %564 = arith.subf %563, %562 : vector<64x32xf32>
    %cst_271 = arith.constant 0.000000e+00 : f32
    %565 = vector.broadcast %cst_271 : f32 to vector<64x32xf32>
    %566 = arith.cmpf oge, %536, %565 : vector<64x32xf32>
    %cst_272 = arith.constant 0.000000e+00 : f32
    %567 = vector.broadcast %cst_272 : f32 to vector<64x32xf32>
    %568 = arith.subf %567, %564 : vector<64x32xf32>
    %569 = arith.select %566, %564, %568 : vector<64x32xi1>, vector<64x32xf32>
    %cst_273 = arith.constant 1.000000e+00 : f32
    %570 = vector.broadcast %cst_273 : f32 to vector<64x32xf32>
    %571 = arith.addf %570, %569 : vector<64x32xf32>
    %572 = arith.mulf %534, %571 : vector<64x32xf32>
    %c1_274 = arith.constant 1 : index
    %c0_275 = arith.constant 0 : index
    %c0_276 = arith.constant 0 : index
    %573 = vector.load %arg14[%c1_274, %c0_275, %c0_276] : memref<2x32x32xf32, #tpu.memory_space<vmem>>, vector<1x32x32xf32>
    %574 = vector.shape_cast %573 : vector<1x32x32xf32> to vector<32x32xf32>
    %cst_277 = arith.constant dense<0.000000e+00> : vector<64x32xf32>
    %575 = tpu.matmul %572, %574, %cst_277 {dimension_numbers = #tpu.dot_dimension_numbers<[1], [0], [0], [1], [0, 0, 1, 1], [], []>} : vector<64x32xf32>, vector<32x32xf32>, vector<64x32xf32> -> vector<64x32xf32>
    %576 = arith.addf %402, %575 : vector<64x32xf32>
    %c1_278 = arith.constant 1 : index
    %c0_279 = arith.constant 0 : index
    %c0_280 = arith.constant 0 : index
    %577 = vector.load %arg15[%c1_278, %c0_279, %c0_280] : memref<2x1x32xf32, #tpu.memory_space<vmem>>, vector<1x1x32xf32>
    %578 = vector.shape_cast %577 : vector<1x1x32xf32> to vector<1x32xf32>
    %579 = vector.broadcast %578 : vector<1x32xf32> to vector<64x32xf32>
    %580 = arith.addf %576, %579 : vector<64x32xf32>
    %c0_281 = arith.constant 0 : index
    %c0_282 = arith.constant 0 : index
    %c0_283 = arith.constant 0 : index
    %581 = vector.load %arg16[%c0_281, %c0_282, %c0_283] : memref<1x64x32xf32, #tpu.memory_space<vmem>>, vector<1x64x32xf32>
    %582 = vector.shape_cast %581 : vector<1x64x32xf32> to vector<64x32xf32>
    %583 = vector.shape_cast %580 : vector<64x32xf32> to vector<1x64x32xf32>
    tpu.vector_store %arg16[%c0_281, %c0_282, %c0_283], %583 {strides = array<i32>} : memref<1x64x32xf32, #tpu.memory_space<vmem>>, vector<1x64x32xf32>,
    return
  }
  func.func @transform_0(%arg0: i32) -> (i32, i32, i32) {
    %c0_i32 = arith.constant 0 : i32
    %c0_i32_0 = arith.constant 0 : i32
    %c0_i32_1 = arith.constant 0 : i32
    return %arg0, %c0_i32, %c0_i32_0 : i32, i32, i32
  }
  func.func @transform_1(%arg0: i32) -> (i32, i32) {
    %c0_i32 = arith.constant 0 : i32
    %c0_i32_0 = arith.constant 0 : i32
    %c0_i32_1 = arith.constant 0 : i32
    return %c0_i32, %c0_i32_0 : i32, i32
  }
  func.func @transform_2(%arg0: i32) -> (i32, i32, i32) {
    %c0_i32 = arith.constant 0 : i32
    %c0_i32_0 = arith.constant 0 : i32
    %c0_i32_1 = arith.constant 0 : i32
    %c0_i32_2 = arith.constant 0 : i32
    return %c0_i32, %c0_i32_0, %c0_i32_1 : i32, i32, i32
  }
  func.func @transform_3(%arg0: i32) -> (i32, i32, i32) {
    %c0_i32 = arith.constant 0 : i32
    %c0_i32_0 = arith.constant 0 : i32
    %c0_i32_1 = arith.constant 0 : i32
    %c0_i32_2 = arith.constant 0 : i32
    return %c0_i32, %c0_i32_0, %c0_i32_1 : i32, i32, i32
  }
  func.func @transform_4(%arg0: i32) -> (i32, i32, i32) {
    %c0_i32 = arith.constant 0 : i32
    %c0_i32_0 = arith.constant 0 : i32
    %c0_i32_1 = arith.constant 0 : i32
    %c0_i32_2 = arith.constant 0 : i32
    return %c0_i32, %c0_i32_0, %c0_i32_1 : i32, i32, i32
  }
  func.func @transform_5(%arg0: i32) -> (i32, i32, i32) {
    %c0_i32 = arith.constant 0 : i32
    %c0_i32_0 = arith.constant 0 : i32
    %c0_i32_1 = arith.constant 0 : i32
    %c0_i32_2 = arith.constant 0 : i32
    return %c0_i32, %c0_i32_0, %c0_i32_1 : i32, i32, i32
  }
  func.func @transform_6(%arg0: i32) -> (i32, i32, i32) {
    %c0_i32 = arith.constant 0 : i32
    %c0_i32_0 = arith.constant 0 : i32
    %c0_i32_1 = arith.constant 0 : i32
    %c0_i32_2 = arith.constant 0 : i32
    return %c0_i32, %c0_i32_0, %c0_i32_1 : i32, i32, i32
  }
  func.func @transform_7(%arg0: i32) -> (i32, i32, i32) {
    %c0_i32 = arith.constant 0 : i32
    %c0_i32_0 = arith.constant 0 : i32
    %c0_i32_1 = arith.constant 0 : i32
    %c0_i32_2 = arith.constant 0 : i32
    return %c0_i32, %c0_i32_0, %c0_i32_1 : i32, i32, i32
  }
  func.func @transform_8(%arg0: i32) -> (i32, i32, i32) {
    %c0_i32 = arith.constant 0 : i32
    %c0_i32_0 = arith.constant 0 : i32
    %c0_i32_1 = arith.constant 0 : i32
    %c0_i32_2 = arith.constant 0 : i32
    return %c0_i32, %c0_i32_0, %c0_i32_1 : i32, i32, i32
  }
  func.func @transform_9(%arg0: i32) -> (i32, i32, i32) {
    %c0_i32 = arith.constant 0 : i32
    %c0_i32_0 = arith.constant 0 : i32
    %c0_i32_1 = arith.constant 0 : i32
    %c0_i32_2 = arith.constant 0 : i32
    return %c0_i32, %c0_i32_0, %c0_i32_1 : i32, i32, i32
  }
  func.func @transform_10(%arg0: i32) -> (i32, i32, i32) {
    %c0_i32 = arith.constant 0 : i32
    %c0_i32_0 = arith.constant 0 : i32
    %c0_i32_1 = arith.constant 0 : i32
    %c0_i32_2 = arith.constant 0 : i32
    return %c0_i32, %c0_i32_0, %c0_i32_1 : i32, i32, i32
  }
  func.func @transform_11(%arg0: i32) -> (i32, i32, i32, i32) {
    %c0_i32 = arith.constant 0 : i32
    %c0_i32_0 = arith.constant 0 : i32
    %c0_i32_1 = arith.constant 0 : i32
    %c0_i32_2 = arith.constant 0 : i32
    %c0_i32_3 = arith.constant 0 : i32
    return %c0_i32, %c0_i32_0, %c0_i32_1, %c0_i32_2 : i32, i32, i32, i32
  }
  func.func @transform_12(%arg0: i32) -> (i32, i32, i32) {
    %c0_i32 = arith.constant 0 : i32
    %c0_i32_0 = arith.constant 0 : i32
    %c0_i32_1 = arith.constant 0 : i32
    %c0_i32_2 = arith.constant 0 : i32
    return %c0_i32, %c0_i32_0, %c0_i32_1 : i32, i32, i32
  }
  func.func @transform_13(%arg0: i32) -> (i32, i32, i32) {
    %c0_i32 = arith.constant 0 : i32
    %c0_i32_0 = arith.constant 0 : i32
    %c0_i32_1 = arith.constant 0 : i32
    %c0_i32_2 = arith.constant 0 : i32
    return %c0_i32, %c0_i32_0, %c0_i32_1 : i32, i32, i32
  }
  func.func @transform_14(%arg0: i32) -> (i32, i32, i32) {
    %c0_i32 = arith.constant 0 : i32
    %c0_i32_0 = arith.constant 0 : i32
    %c0_i32_1 = arith.constant 0 : i32
    %c0_i32_2 = arith.constant 0 : i32
    return %c0_i32, %c0_i32_0, %c0_i32_1 : i32, i32, i32
  }
  func.func @transform_15(%arg0: i32) -> (i32, i32, i32) {
    %c0_i32 = arith.constant 0 : i32
    %c0_i32_0 = arith.constant 0 : i32
    %c0_i32_1 = arith.constant 0 : i32
    return %arg0, %c0_i32, %c0_i32_0 : i32, i32, i32
  }
}

</mosaic_0001>

<bundles_post_ra>
// kernel: tpu_custom_call.1
= control target key start
LH: loop header
LB: loop body
LE: loop exit
PB: predicated region body
PF: predicated region fallthrough
CT: control target
= control target key end

     0   :  { %s9522_s18 = smov 0   ;;  %s14209_s0 = inlined_call_operand.vmem [shape: f32[2,64,32], index: 0, kind: input, shape index: {}]   ;;  %s14210_s1 = inlined_call_operand.vmem [shape: f32[576,64], index: 1, kind: input, shape index: {}]   ;;  %s14211_s2 = inlined_call_operand.vmem [shape: f32[2,1,32], index: 2, kind: input, shape index: {}]   ;;  %s14212_s3 = inlined_call_operand.vmem [shape: f32[2,1,32], index: 3, kind: input, shape index: {}]   ;;  %s14213_s4 = inlined_call_operand.vmem [shape: f32[2,32,96], index: 4, kind: input, shape index: {}]   ;;  %s14214_s5 = inlined_call_operand.vmem [shape: f32[2,32,32], index: 5, kind: input, shape index: {}]   ;;  %s14215_s6 = inlined_call_operand.vmem [shape: f32[2,1,32], index: 6, kind: input, shape index: {}]   ;;  %s14216_s7 = inlined_call_operand.vmem [shape: f32[2,1,32], index: 7, kind: input, shape index: {}]   ;;  %s14217_s8 = inlined_call_operand.vmem [shape: f32[2,1,32], index: 8, kind: input, shape index: {}]   ;;  %s14218_s9 = inlined_call_operand.vmem [shape: f32[2,32,32], index: 9, kind: input, shape index: {}]   ;;  %s14219_s10 = inlined_call_operand.vmem [shape: f32[2,1,32], index: 10, kind: input, shape index: {}]   ;;  %s14220_s11 = inlined_call_operand.vmem [shape: f32[2,9,1,32], index: 11, kind: input, shape index: {}]   ;;  %s14221_s12 = inlined_call_operand.vmem [shape: f32[2,32,32], index: 12, kind: input, shape index: {}]   ;;  %s14222_s13 = inlined_call_operand.vmem [shape: f32[2,32,32], index: 13, kind: input, shape index: {}]   ;;  %s14223_s14 = inlined_call_operand.vmem [shape: f32[2,1,32], index: 14, kind: input, shape index: {}]   ;;  %s14224_s15 = inlined_call_operand.vmem [shape: f32[2,64,32], index: 15, kind: output, shape index: {}]  }
   0x1 LB: > { %s8135_s19 = sadd.s32 4294967295, %s9428_s18   ;;  %p8139_p0 = scmp.ge.s32.totalorder %s9428_s18, 1  ;;  %s9428_s18 = sphi %s9522_s18, %s25_s18  }
   0x2   : > { %p437_p1 = scmp.lt.s32.totalorder %s9428_s18, 3 }
   0x4   : > { %p438_p2 = pnand %p8139_p0, %p437_p1 }
   0x6   : > { %441 = sbr.rel (%p438_p2) target bundleno = 6982 (0x1b46), region = 80 }
   0xb   : > { %p485_p3 = scmp.lt.s32.totalorder %s8135_s19, 1  ;;  %vm577_vm0 = vcmask 261120   ;;  %v9430_v14 = vmov 32.0   ;;  %v786_v58 = vld [vmem:[%s14213_s4 + $0x18] sm:$0xff]  ;;  %v785_v59 = vld [vmem:[%s14213_s4 + $0x10] sm:$0xff]  ;;  %v784_v60 = vld [vmem:[%s14213_s4 + $0x8] sm:$0xff] }
   0xc   : > { %8892 = vrcp.f32 %v9430_v14  ;;  %823 = vmatpush.msra.mxu0 %v786_v58  ;;  %v783_v61 = vld [vmem:[%s14213_s4] sm:$0xff]  ;;  %s9431_s25 = smov 96   ;;  %s9432_s26 = smov 88  }
   0xd   : > { %s14480_s19 = smov (!%p485_p3, %s8135_s19), 1  ;;  %s9433_s27 = smov 120  }
   0xe   : > { %s14227_s20 = sshll.u32 %s14480_s19, 6  ;;  %824 = vmatpush.msra.mxu0 %v785_v59  ;;  %s14232_s28 = smov 64  }
   0xf   : > { %s9538_s23 = scalar_lea.vmem %s14209_s0, %s14227_s20  ;;  %s9435_s29 = smov 80  }
  0x10   : > { %v499_v0 = vld [vmem:[%s9538_s23 + $0x20] sm:$0xff]  ;;  %v497_v1 = vld [vmem:[%s9538_s23 + $0x10] sm:$0xff]  ;;  %v500_v6 = vld [vmem:[%s9538_s23 + $0x28] sm:$0xff]  ;;  %825 = vmatpush.msra.mxu0 %v784_v60  ;;  %s14236_s30 = smov 72   ;;  %s14234_s16 = smov 104  }
  0x11   : > { %v495_v2 = vld [vmem:[%s9538_s23] sm:$0xff]  ;;  %v590_v3 = vsel %vm577_vm0, %v499_v0, 0.0  ;;  %v584_v4 = vsel %vm577_vm0, %v497_v1, 0.0  ;;  %v496_v7 = vld [vmem:[%s9538_s23 + $0x8] sm:$0xff]  ;;  %v498_v8 = vld [vmem:[%s9538_s23 + $0x18] sm:$0xff]  ;;  %v593_v9 = vsel %vm577_vm0, %v500_v6, 0.0 }
  0x12   : > { %v578_v5 = vsel %vm577_vm0, %v495_v2, 0.0  ;;  %591 = vadd.xlane.f32.xlu2 %v590_v3  ;;  %585 = vadd.xlane.f32.xlu1 %v584_v4  ;;  %v581_v10 = vsel %vm577_vm0, %v496_v7, 0.0  ;;  %v587_v11 = vsel %vm577_vm0, %v498_v8, 0.0  ;;  %v501_v12 = vld [vmem:[%s9538_s23 + $0x30] sm:$0xff]  ;;  %v8893_v15 = vpop.eup %8892  ;;  %v502_v40 = vld [vmem:[%s9538_s23 + $0x38] sm:$0xff]  ;;  %s14238_s17 = smov 112  }
  0x13   : > { %579 = vadd.xlane.f32.xlu0 %v578_v5  ;;  %v596_v13 = vsel %vm577_vm0, %v501_v12, 0.0  ;;  %v603_v16 = vmul.f32 32.0, %v8893_v15  ;;  %vm607_vm1 = vweird.f32 %v8893_v15  ;;  %v599_v45 = vsel %vm577_vm0, %v502_v40, 0.0  ;;  %826 = vmatpush.msra.mxu0 %v783_v61  ;;  %s9439_s24 = smov 56   ;;  %s14228_s21 = smov 40  }
  0x14   : > { %s14230_s22 = smov 48   ;;  %s14337_s20 = smov 112  }
  0x15   : > { %v604_v17 = vsub.f32 1.0, %v603_v16 }
  0x17   : > { %v605_v18 = vmul.f32 %v8893_v15, %v604_v17 }
  0x19   : > { %v606_v19 = vadd.f32 %v8893_v15, %v605_v18 }
  0x1a   : > { %594 = vadd.xlane.f32.xlu2 %v593_v9  ;;  %588 = vadd.xlane.f32.xlu1 %v587_v11 }
  0x1b   : > { %582 = vadd.xlane.f32.xlu0 %v581_v10  ;;  %v9554_v20 = vsel %vm607_vm1, %v8893_v15, %v606_v19 }
  0x1c   : > { %14258 = vst [vmem:[#allocation2_spill] sm:$0xff] %v9554_v20 }
  0x22   : > { %597 = vadd.xlane.f32.xlu1 %v596_v13 }
  0x85   : > { %v592_v21 = vpop.xlane.xlu2 %591  ;;  %v586_v22 = vpop.xlane.xlu1 %585 }
  0x86   : > { %v611_v23 = vmul.f32 %v9554_v20, %v586_v22  ;;  %v580_v24 = vpop.xlane.xlu0 %579  ;;  %v613_v36 = vmul.f32 %v9554_v20, %v592_v21 }
  0x87   : > { %v609_v25 = vmul.f32 %v9554_v20, %v580_v24 }
  0x88   : > { %v9558_v26 = vsub.f32 %v497_v1, %v611_v23  ;;  %v9579_v43 = vsub.f32 %v499_v0, %v613_v36 }
  0x89   : > { %v9560_v27 = vsub.f32 %v495_v2, %v609_v25 }
  0x8a   : > { %v627_v28 = vmul.f32 %v9558_v26, %v9558_v26  ;;  %v629_v51 = vmul.f32 %v9579_v43, %v9579_v43 }
  0x8b   : > { %v625_v29 = vmul.f32 %v9560_v27, %v9560_v27 }
  0x8c   : > { %v639_v30 = vsel %vm577_vm0, %v627_v28, 0.0  ;;  %v645_v54 = vsel %vm577_vm0, %v629_v51, 0.0 }
  0x8d   : > { %v595_v31 = vpop.xlane.xlu2 %594  ;;  %640 = vadd.xlane.f32.xlu1 %v639_v30  ;;  %v633_v32 = vsel %vm577_vm0, %v625_v29, 0.0  ;;  %v589_v33 = vpop.xlane.xlu1 %588 }
  0x8e   : > { %v614_v34 = vmul.f32 %v9554_v20, %v595_v31  ;;  %634 = vadd.xlane.f32.xlu0 %v633_v32  ;;  %v583_v35 = vpop.xlane.xlu0 %582  ;;  %v612_v38 = vmul.f32 %v9554_v20, %v589_v33 }
  0x8f   : > { %v610_v37 = vmul.f32 %v9554_v20, %v583_v35  ;;  %v9637_v35 = vld [vmem:[%s14211_s2] ss:$0 sm:$0xff] }
  0x90   : > { %v9572_v39 = vsub.f32 %v500_v6, %v614_v34  ;;  %v9581_v44 = vsub.f32 %v498_v8, %v612_v38 }
  0x91   : > { %v9575_v41 = vsub.f32 %v496_v7, %v610_v37 }
  0x92   : > { %v630_v42 = vmul.f32 %v9572_v39, %v9572_v39  ;;  %v628_v52 = vmul.f32 %v9581_v44, %v9581_v44 }
  0x93   : > { %v626_v46 = vmul.f32 %v9575_v41, %v9575_v41 }
  0x94   : > { %v648_v47 = vsel %vm577_vm0, %v630_v42, 0.0  ;;  %v642_v55 = vsel %vm577_vm0, %v628_v52, 0.0  ;;  %v9646_v42 = vld [vmem:[%s14212_s3] ss:$0 sm:$0xff] }
  0x95   : > { %649 = vadd.xlane.f32.xlu1 %v648_v47  ;;  %v636_v48 = vsel %vm577_vm0, %v626_v46, 0.0  ;;  %v598_v49 = vpop.xlane.xlu1 %597 }
  0x96   : > { %600 = vadd.xlane.f32.xlu0 %v599_v45  ;;  %637 = vadd.xlane.f32.xlu2 %v636_v48  ;;  %v615_v50 = vmul.f32 %v9554_v20, %v598_v49 }
  0x98   : > { %v9593_v53 = vsub.f32 %v501_v12, %v615_v50 }
  0x9a   : > { %v631_v56 = vmul.f32 %v9593_v53, %v9593_v53 }
  0x9c   : > { %v651_v57 = vsel %vm577_vm0, %v631_v56, 0.0 }
  0x9e   : > { %646 = vadd.xlane.f32.xlu0 %v645_v54  ;;  %643 = vadd.xlane.f32.xlu2 %v642_v55 }
  0xa6   : > { %652 = vadd.xlane.f32.xlu2 %v651_v57 }
 0x100   : > { %v641_v62 = vpop.xlane.xlu1 %640 }
 0x101   : > { %v659_v63 = vmul.f32 %v641_v62, %v9554_v20  ;;  %v635_v0 = vpop.xlane.xlu0 %634 }
 0x102   : > { %v657_v1 = vmul.f32 %v635_v0, %v9554_v20 }
 0x103   : > { %v9614_v2 = vadd.f32 1e-05, %v659_v63 }
 0x104   : > { %v665_v3 = vadd.f32 1e-05, %v657_v1 }
 0x105   : > { %8894 = vrsqrt.f32 %v9614_v2  ;;  %vm699_vm7 = vweird.f32 %v9614_v2 }
 0x106   : > { %8896 = vrsqrt.f32 %v665_v3  ;;  %vm679_vm3 = vweird.f32 %v665_v3 }
 0x108   : > { %v650_v16 = vpop.xlane.xlu1 %649 }
 0x109   : > { %v638_v4 = vpop.xlane.xlu2 %637  ;;  %v601_v5 = vpop.xlane.xlu0 %600  ;;  %v662_v29 = vmul.f32 %v650_v16, %v9554_v20 }
 0x10a   : > { %v658_v6 = vmul.f32 %v638_v4, %v9554_v20  ;;  %v616_v7 = vmul.f32 %v9554_v20, %v601_v5 }
 0x10b   : > { %v9619_v8 = vpop.eup %8894  ;;  %v9640_v38 = vadd.f32 1e-05, %v662_v29 }
 0x10c   : > { %v8897_v9 = vpop.eup %8896  ;;  %v666_v10 = vadd.f32 1e-05, %v658_v6  ;;  %v9621_v11 = vsub.f32 %v502_v40, %v616_v7  ;;  %v694_v12 = vmul.f32 %v9619_v8, %v9614_v2  ;;  %vm700_vm8 = vweird.f32 %v9619_v8 }
 0x10d   : > { %v674_v13 = vmul.f32 %v8897_v9, %v665_v3  ;;  %vm680_vm2 = vweird.f32 %v8897_v9  ;;  %vm9655_vm10 = vmor %vm699_vm7, %vm700_vm8 }
 0x10e   : > { %8898 = vrsqrt.f32 %v666_v10  ;;  %v632_v14 = vmul.f32 %v9621_v11, %v9621_v11  ;;  %v695_v18 = vmul.f32 %v9619_v8, %v694_v12  ;;  %vm681_vm4 = vmor %vm679_vm3, %vm680_vm2  ;;  %vm689_vm5 = vweird.f32 %v666_v10 }
 0x10f   : > { %v675_v15 = vmul.f32 %v8897_v9, %v674_v13  ;;  %vm729_vm2 = vweird.f32 %v9640_v38 }
 0x110   : > { %v654_v17 = vsel %vm577_vm0, %v632_v14, 0.0  ;;  %v696_v31 = vmul.f32 0.5, %v695_v18 }
 0x111   : > { %v676_v19 = vmul.f32 0.5, %v675_v15  ;;  %v644_v21 = vpop.xlane.xlu2 %643  ;;  %655 = vadd.xlane.f32.xlu0 %v654_v17  ;;  %v647_v22 = vpop.xlane.xlu0 %646 }
 0x112   : > { %v660_v23 = vmul.f32 %v644_v21, %v9554_v20  ;;  %v661_v24 = vmul.f32 %v647_v22, %v9554_v20  ;;  %v697_v45 = vsub.f32 1.5, %v696_v31 }
 0x113   : > { %v677_v25 = vsub.f32 1.5, %v676_v19 }
 0x114   : > { %v8899_v28 = vpop.eup %8898  ;;  %v668_v30 = vadd.f32 1e-05, %v660_v23  ;;  %v9632_v34 = vadd.f32 1e-05, %v661_v24  ;;  %v698_v54 = vmul.f32 %v9619_v8, %v697_v45 }
 0x115   : > { %v678_v32 = vmul.f32 %v8897_v9, %v677_v25  ;;  %v684_v33 = vmul.f32 %v8899_v28, %v666_v10  ;;  %vm690_vm6 = vweird.f32 %v8899_v28 }
 0x116   : > { %8900 = vrsqrt.f32 %v668_v30  ;;  %vm691_vm9 = vmor %vm689_vm5, %vm690_vm6  ;;  %v702_v1 = vsel %vm9655_vm10, %v9619_v8, %v698_v54  ;;  %vm709_vm11 = vweird.f32 %v668_v30  ;;  %vm719_vm14 = vweird.f32 %v9632_v34 }
 0x117   : > { %v685_v36 = vmul.f32 %v8899_v28, %v684_v33  ;;  %8902 = vrsqrt.f32 %v9632_v34  ;;  %v682_v37 = vsel %vm681_vm4, %v8897_v9, %v678_v32  ;;  %v755_v6 = vmul.f32 %v702_v1, %v9558_v26 }
 0x118   : > { %v753_v40 = vmul.f32 %v682_v37, %v9560_v27  ;;  %8904 = vrsqrt.f32 %v9640_v38 }
 0x119   : > { %v686_v46 = vmul.f32 0.5, %v685_v36  ;;  %v653_v47 = vpop.xlane.xlu2 %652  ;;  %v766_v8 = vmul.f32 %v9637_v35, %v755_v6 }
 0x11a   : > { %v764_v48 = vmul.f32 %v9637_v35, %v753_v40  ;;  %v663_v27 = vmul.f32 %v653_v47, %v9554_v20 }
 0x11b   : > { %v687_v49 = vsub.f32 1.5, %v686_v46  ;;  %v777_v15 = vadd.f32 %v9646_v42, %v766_v8 }
 0x11c   : > { %v8901_v50 = vpop.eup %8900  ;;  %v775_v51 = vadd.f32 %v9646_v42, %v764_v48  ;;  %v671_v61 = vadd.f32 1e-05, %v663_v27 }
 0x11d   : > { %v8903_v52 = vpop.eup %8902  ;;  %v688_v55 = vmul.f32 %v8899_v28, %v687_v49  ;;  %v704_v56 = vmul.f32 %v8901_v50, %v668_v30  ;;  %vm710_vm12 = vweird.f32 %v8901_v50 }
 0x11e   : > { %v714_v58 = vmul.f32 %v8903_v52, %v9632_v34  ;;  %8144 = vmatmul.msk.f32.vlgmr.msra.gmra.mxu0 %vm577_vm0, %v775_v51  ;;  %v8905_v2 = vpop.eup %8904  ;;  %8906 = vrsqrt.f32 %v671_v61  ;;  %vm711_vm13 = vmor %vm709_vm11, %vm710_vm12  ;;  %vm720_vm15 = vweird.f32 %v8903_v52  ;;  %vm739_vm5 = vweird.f32 %v671_v61 }
 0x11f   : > { %v705_v59 = vmul.f32 %v8901_v50, %v704_v56  ;;  %v692_v60 = vsel %vm691_vm9, %v8899_v28, %v688_v55  ;;  %v724_v7 = vmul.f32 %v8905_v2, %v9640_v38  ;;  %vm721_vm1 = vmor %vm719_vm14, %vm720_vm15  ;;  %vm730_vm3 = vweird.f32 %v8905_v2 }
 0x120   : > { %v754_v62 = vmul.f32 %v692_v60, %v9575_v41  ;;  %v715_v0 = vmul.f32 %v8903_v52, %v714_v58  ;;  %vm731_vm4 = vmor %vm729_vm2, %vm730_vm3  ;;  %vm14241_vm11 = vcmask 64512   ;;  %vm962_vm12 = vcmask 523264  }
 0x121   : > { %v706_v63 = vmul.f32 0.5, %v705_v59  ;;  %v725_v10 = vmul.f32 %v8905_v2, %v724_v7 }
 0x122   : > { %v765_v3 = vmul.f32 %v9637_v35, %v754_v62  ;;  %v716_v9 = vmul.f32 0.5, %v715_v0 }
 0x123   : > { %v707_v4 = vsub.f32 1.5, %v706_v63  ;;  %v726_v16 = vmul.f32 0.5, %v725_v10 }
 0x124   : > { %v776_v5 = vadd.f32 %v9646_v42, %v765_v3  ;;  %v717_v12 = vsub.f32 1.5, %v716_v9  ;;  %v8907_v14 = vpop.eup %8906 }
 0x125   : > { %v708_v41 = vmul.f32 %v8901_v50, %v707_v4  ;;  %v734_v18 = vmul.f32 %v8907_v14, %v671_v61  ;;  %v727_v21 = vsub.f32 1.5, %v726_v16  ;;  %vm740_vm6 = vweird.f32 %v8907_v14 }
 0x126   : > { %8145 = vmatmul.msk.f32.gmra.mxu0 %vm577_vm0, %v776_v5  ;;  %v718_v17 = vmul.f32 %v8903_v52, %v717_v12  ;;  %vm741_vm7 = vmor %vm739_vm5, %vm740_vm6 }
 0x127   : > { %v712_v13 = vsel %vm711_vm13, %v8901_v50, %v708_v41  ;;  %v735_v22 = vmul.f32 %v8907_v14, %v734_v18  ;;  %v728_v28 = vmul.f32 %v8905_v2, %v727_v21 }
 0x128   : > { %v756_v26 = vmul.f32 %v712_v13, %v9581_v44  ;;  %v722_v23 = vsel %vm721_vm1, %v8903_v52, %v718_v17 }
 0x129   : > { %v757_v25 = vmul.f32 %v722_v23, %v9579_v43  ;;  %v736_v44 = vmul.f32 0.5, %v735_v22  ;;  %v732_v31 = vsel %vm731_vm4, %v8905_v2, %v728_v28 }
 0x12a   : > { %v767_v19 = vmul.f32 %v9637_v35, %v756_v26  ;;  %v758_v33 = vmul.f32 %v732_v31, %v9572_v39 }
 0x12b   : > { %v768_v29 = vmul.f32 %v9637_v35, %v757_v25  ;;  %v737_v30 = vsub.f32 1.5, %v736_v44 }
 0x12c   : > { %v778_v24 = vadd.f32 %v9646_v42, %v767_v19  ;;  %v769_v43 = vmul.f32 %v9637_v35, %v758_v33 }
 0x12d   : > { %v779_v32 = vadd.f32 %v9646_v42, %v768_v29  ;;  %v738_v34 = vmul.f32 %v8907_v14, %v737_v30 }
 0x12e   : > { %8146 = vmatmul.msk.f32.gmra.mxu0 %vm577_vm0, %v777_v15  ;;  %v780_v37 = vadd.f32 %v9646_v42, %v769_v43 }
 0x12f   : > { %v742_v36 = vsel %vm741_vm7, %v8907_v14, %v738_v34 }
 0x130   : > { %v759_v38 = vmul.f32 %v742_v36, %v9593_v53 }
 0x132   : > { %v770_v40 = vmul.f32 %v9637_v35, %v759_v38 }
 0x134   : > { %v781_v45 = vadd.f32 %v9646_v42, %v770_v40 }
 0x136   : > { %8147 = vmatmul.msk.f32.gmra.mxu0 %vm577_vm0, %v778_v24 }
 0x13e   : > { %8148 = vmatmul.msk.f32.gmra.mxu0 %vm577_vm0, %v779_v32 }
 0x146   : > { %8149 = vmatmul.msk.f32.gmra.mxu0 %vm577_vm0, %v780_v37 }
 0x14e   : > { %8150 = vmatmul.msk.f32.gmra.mxu0 %vm577_vm0, %v781_v45 }
 0x184   : > { %v656_v39 = vpop.xlane.xlu0 %655 }
 0x185   : > { %v664_v46 = vmul.f32 %v656_v39, %v9554_v20 }
 0x187   : > { %v672_v47 = vadd.f32 1e-05, %v664_v46 }
 0x189   : > { %8908 = vrsqrt.f32 %v672_v47  ;;  %vm749_vm9 = vweird.f32 %v672_v47 }
 0x18f   : > { %v8909_v48 = vpop.eup %8908 }
 0x190   : > { %v744_v49 = vmul.f32 %v8909_v48, %v672_v47  ;;  %vm750_vm8 = vweird.f32 %v8909_v48 }
 0x191   : > { %vm751_vm10 = vmor %vm749_vm9, %vm750_vm8 }
 0x192   : > { %v745_v50 = vmul.f32 %v8909_v48, %v744_v49 }
 0x194   : > { %v746_v27 = vmul.f32 0.5, %v745_v50 }
 0x196   : > { %v747_v51 = vsub.f32 1.5, %v746_v27 }
 0x198   : > { %v748_v53 = vmul.f32 %v8909_v48, %v747_v51 }
 0x19a   : > { %v752_v52 = vsel %vm751_vm10, %v8909_v48, %v748_v53 }
 0x19b   : > { %v9692_v54 = vpop.f32.mrf.mxu0  ;;  %v760_v55 = vmul.f32 %v752_v52, %v9621_v11 }
 0x19d   : > { %v771_v56 = vmul.f32 %v9637_v35, %v760_v55 }
 0x19f   : > { %v782_v57 = vadd.f32 %v9646_v42, %v771_v56 }
 0x1a1   : > { %8151 = vmatmul.msk.f32.gmra.mxu0 %vm577_vm0, %v782_v57 }
 0x1a3   : > { %v9698_v58 = vpop.f32.mrf.mxu0 }
 0x1a4   : > { %v9762_v1 = vpack.i.bf16 %v9692_v54, %v9698_v58 }
 0x1ab   : > { %v9700_v59 = vpop.f32.mrf.mxu0 }
 0x1b3   : > { %v9702_v60 = vpop.f32.mrf.mxu0 }
 0x1b4   : > { %v9726_v35 = vpack.i.bf16 %v9700_v59, %v9702_v60 }
 0x1bb   : > { %v9704_v61 = vpop.f32.mrf.mxu0 }
 0x1c3   : > { %v9706_v62 = vpop.f32.mrf.mxu0 }
 0x1c4   : > { %874 = vrot.lane.b32.xlu0 %v9706_v62, %s9431_s25  ;;  %v9756_v0 = vpack.i.bf16 %v9704_v61, %v9706_v62 }
 0x1cb   : > { %v9710_v11 = vpop.f32.mrf.mxu0 }
 0x1cc   : > { %868 = vrot.lane.b32.xlu0 %v9700_v59, %s9431_s25  ;;  %876 = vrot.lane.b32.xlu2 %v9710_v11, %s9431_s25 }
 0x1d4   : > { %1268 = vrot.lane.b32.xlu0 %v9704_v61, %s9432_s26  ;;  %872 = vrot.lane.b32.xlu2 %v9704_v61, %s9431_s25 }
 0x1dc   : > { %1264 = vrot.lane.b32.xlu0 %v9700_v59, %s9432_s26  ;;  %866 = vrot.lane.b32.xlu2 %v9698_v58, %s9431_s25 }
 0x1e4   : > { %1244 = vrot.lane.b32.xlu0 %v9692_v54, %s9433_s27  ;;  %8706 = vrot.lane.b32.xlu2 %v9726_v35, %s14232_s28 }
 0x1ec   : > { %1270 = vrot.lane.b32.xlu2 %v9706_v62, %s9432_s26 }
 0x1f4   : > { %1262 = vrot.lane.b32.xlu2 %v9698_v58, %s9432_s26 }
 0x1fc   : > { %1246 = vrot.lane.b32.xlu2 %v9698_v58, %s9433_s27 }
 0x21e   : > { %v9738_v42 = vpop.f32.mrf.mxu0 }
 0x21f   : > { %878 = vrot.lane.b32.xlu1 %v9738_v42, %s9431_s25  ;;  %v9744_v63 = vpack.i.bf16 %v9710_v11, %v9738_v42 }
 0x221   : > { %8716 = vrot.lane.b32.xlu0 %v9744_v63, %s14232_s28 }
 0x226   : > { %v877_v7 = vpop.permute.xlu2 %876 }
 0x227   : > { %870 = vrot.lane.b32.xlu1 %v9702_v60, %s9431_s25 }
 0x229   : > { %1274 = vrot.lane.b32.xlu0 %v9738_v42, %s9432_s26 }
 0x22e   : > { %v873_v12 = vpop.permute.xlu2 %872 }
 0x22f   : > { %864 = vrot.lane.b32.xlu1 %v9692_v54, %s9431_s25 }
 0x236   : > { %v875_v2 = vpop.permute.xlu0 %874  ;;  %v867_v15 = vpop.permute.xlu2 %866 }
 0x237   : > { %8701 = vrot.lane.b32.xlu1 %v9756_v0, %s14232_s28 }
 0x23e   : > { %v869_v3 = vpop.permute.xlu0 %868  ;;  %v8707_v18 = vpop.permute.xlu2 %8706 }
 0x23f   : > { %8711 = vrot.lane.b32.xlu1 %v9762_v1, %s14232_s28  ;;  %v8708_v21 = vunpack.i.l.bf16 %v8707_v18  ;;  %v8709_v22 = vunpack.i.h.bf16 %v8707_v18 }
 0x246   : > { %v1269_v4 = vpop.permute.xlu0 %1268  ;;  %v1271_v44 = vpop.permute.xlu2 %1270 }
 0x247   : > { %1272 = vrot.lane.b32.xlu1 %v9710_v11, %s9432_s26 }
 0x24e   : > { %v1265_v5 = vpop.permute.xlu0 %1264  ;;  %v1263_v31 = vpop.permute.xlu2 %1262 }
 0x24f   : > { %1266 = vrot.lane.b32.xlu1 %v9702_v60, %s9432_s26 }
 0x256   : > { %v9774_v6 = vpop.permute.xlu0 %1244  ;;  %v1247_v33 = vpop.permute.xlu2 %1246 }
 0x257   : > { %1260 = vrot.lane.b32.xlu1 %v9692_v54, %s9432_s26 }
 0x25f   : > { %1248 = vrot.lane.b32.xlu1 %v9700_v59, %s9433_s27 }
 0x291   : > { %v879_v41 = vpop.permute.xlu1 %878 }
 0x292   : > { %8152 = vmatpush.xpose.msk.msra.mxu1 %vm14241_vm11, %v879_v41 }
 0x293   : > { %v8717_v9 = vpop.permute.xlu0 %8716 }
 0x294   : > { %v8718_v8 = vunpack.i.l.bf16 %v8717_v9  ;;  %v8719_v10 = vunpack.i.h.bf16 %v8717_v9 }
 0x296   : > { %8153 = vmatpush.xpose.msk.msra.mxu1 %vm14241_vm11, %v877_v7  ;;  %1211 = vmatpush.msra.mxu2 %v8718_v8 }
 0x298   : > { %1212 = vmatpush.msra.mxu2 %v8719_v10 }
 0x299   : > { %v871_v13 = vpop.permute.xlu1 %870 }
 0x29a   : > { %8154 = vmatpush.xpose.msk.msra.mxu1 %vm14241_vm11, %v875_v2 }
 0x29b   : > { %v1275_v14 = vpop.permute.xlu0 %1274 }
 0x29c   : > { %8656 = vmatpush.xpose.msk.msra.mxu3 %vm14241_vm11, %v1275_v14 }
 0x29e   : > { %8155 = vmatpush.xpose.msk.msra.mxu1 %vm14241_vm11, %v873_v12 }
 0x2a1   : > { %v865_v26 = vpop.permute.xlu1 %864 }
 0x2a2   : > { %8156 = vmatpush.xpose.msk.msra.mxu1 %vm14241_vm11, %v871_v13 }
 0x2a6   : > { %8157 = vmatpush.xpose.msk.msra.mxu1 %vm14241_vm11, %v869_v3 }
 0x2a9   : > { %v8702_v16 = vpop.permute.xlu1 %8701 }
 0x2aa   : > { %8158 = vmatpush.xpose.msk.msra.mxu1 %vm14241_vm11, %v867_v15  ;;  %v8703_v17 = vunpack.i.l.bf16 %v8702_v16  ;;  %v8704_v19 = vunpack.i.h.bf16 %v8702_v16 }
 0x2ac   : > { %1213 = vmatpush.msra.mxu2 %v8703_v17 }
 0x2ae   : > { %8159 = vmatpush.xpose.msk.msra.mxu1 %vm14241_vm11, %v865_v26  ;;  %1214 = vmatpush.msra.mxu2 %v8704_v19 }
 0x2b0   : > { %1215 = vmatpush.msra.mxu2 %v8708_v21 }
 0x2b1   : > { %v8712_v23 = vpop.permute.xlu1 %8711  ;;  %8160 = vmatmul.msk.f32.vlgmr.msra.gmra.mxu1 %vm14241_vm11, %v9692_v54 }
 0x2b2   : > { %8176 = vmatpush.xpose.msk.msrb.mxu1 %vm14241_vm11, %v1275_v14  ;;  %1216 = vmatpush.msra.mxu2 %v8709_v22  ;;  %v8713_v24 = vunpack.i.l.bf16 %v8712_v23  ;;  %v8714_v25 = vunpack.i.h.bf16 %v8712_v23 }
 0x2b4   : > { %1217 = vmatpush.msra.mxu2 %v8713_v24 }
 0x2b6   : > { %1218 = vmatpush.msra.mxu2 %v8714_v25 }
 0x2b9   : > { %v1273_v28 = vpop.permute.xlu1 %1272  ;;  %8161 = vmatmul.msk.f32.gmra.mxu1 %vm14241_vm11, %v9698_v58 }
 0x2ba   : > { %8177 = vmatpush.xpose.msk.msrb.mxu1 %vm14241_vm11, %v1273_v28  ;;  %8657 = vmatpush.xpose.msk.msra.mxu3 %vm14241_vm11, %v1273_v28 }
 0x2be   : > { %8178 = vmatpush.xpose.msk.msrb.mxu1 %vm14241_vm11, %v1271_v44  ;;  %8658 = vmatpush.xpose.msk.msra.mxu3 %vm14241_vm11, %v1271_v44 }
 0x2c1   : > { %v1267_v29 = vpop.permute.xlu1 %1266  ;;  %8162 = vmatmul.msk.f32.gmra.mxu1 %vm14241_vm11, %v9700_v59 }
 0x2c2   : > { %8179 = vmatpush.xpose.msk.msrb.mxu1 %vm14241_vm11, %v1269_v4  ;;  %8659 = vmatpush.xpose.msk.msra.mxu3 %vm14241_vm11, %v1269_v4 }
 0x2c6   : > { %8180 = vmatpush.xpose.msk.msrb.mxu1 %vm14241_vm11, %v1267_v29  ;;  %8660 = vmatpush.xpose.msk.msra.mxu3 %vm14241_vm11, %v1267_v29 }
 0x2c9   : > { %8163 = vmatmul.msk.f32.gmra.mxu1 %vm14241_vm11, %v9702_v60  ;;  %v1261_v30 = vpop.permute.xlu1 %1260 }
 0x2ca   : > { %8181 = vmatpush.xpose.msk.msrb.mxu1 %vm14241_vm11, %v1265_v5  ;;  %8661 = vmatpush.xpose.msk.msra.mxu3 %vm14241_vm11, %v1265_v5 }
 0x2ce   : > { %8182 = vmatpush.xpose.msk.msrb.mxu1 %vm14241_vm11, %v1263_v31  ;;  %8662 = vmatpush.xpose.msk.msra.mxu3 %vm14241_vm11, %v1263_v31 }
 0x2d1   : > { %8164 = vmatmul.msk.f32.gmra.mxu1 %vm14241_vm11, %v9704_v61  ;;  %v1249_v32 = vpop.permute.xlu1 %1248 }
 0x2d2   : > { %8183 = vmatpush.xpose.msk.msrb.mxu1 %vm14241_vm11, %v1261_v30  ;;  %8663 = vmatpush.xpose.msk.msra.mxu3 %vm14241_vm11, %v1261_v30 }
 0x2d5   : > { %8186 = vmatmul.msk.f32.vlgmr.msra.gmra.mxu3 %vm14241_vm11, %v1249_v32 }
 0x2d9   : > { %8165 = vmatmul.msk.f32.gmra.mxu1 %vm14241_vm11, %v9706_v62 }
 0x2e1   : > { %8166 = vmatmul.msk.f32.gmra.mxu1 %vm14241_vm11, %v9710_v11 }
 0x2e9   : > { %8167 = vmatmul.msk.f32.gmra.mxu1 %vm14241_vm11, %v9738_v42 }
 0x2f1   : > { %8184 = vmatmul.msk.f32.vlgmr.msrb.gmra.mxu1 %vm14241_vm11, %v9774_v6 }
 0x2f9   : > { %8185 = vmatmul.msk.f32.gmra.mxu1 %vm14241_vm11, %v1247_v33 }
 0x32e   : > { %v930_v34 = vpop.f32.mrf.mxu1 }
 0x32f   : > { %v954_v43 = vmul.f32 0.35355338, %v930_v34 }
 0x331   : > { %v963_v36 = vsel %vm962_vm12, %v954_v43, -inf }
 0x332   : > { %964 = vmax.xlane.f32.xlu0 %v963_v36 }
 0x336   : > { %v933_v37 = vpop.f32.mrf.mxu1 }
 0x337   : > { %v955_v38 = vmul.f32 0.35355338, %v933_v37 }
 0x339   : > { %v966_v40 = vsel %vm962_vm12, %v955_v38, -inf }
 0x33a   : > { %967 = vmax.xlane.f32.xlu2 %v966_v40 }
 0x33e   : > { %v936_v45 = vpop.f32.mrf.mxu1 }
 0x33f   : > { %v956_v39 = vmul.f32 0.35355338, %v936_v45 }
 0x341   : > { %v969_v46 = vsel %vm962_vm12, %v956_v39, -inf }
 0x342   : > { %970 = vmax.xlane.f32.xlu1 %v969_v46 }
 0x346   : > { %v939_v47 = vpop.f32.mrf.mxu1 }
 0x347   : > { %v957_v48 = vmul.f32 0.35355338, %v939_v47 }
 0x349   : > { %v972_v49 = vsel %vm962_vm12, %v957_v48, -inf }
 0x34a   : > { %973 = vmax.xlane.f32.xlu0 %v972_v49 }
 0x34e   : > { %v942_v50 = vpop.f32.mrf.mxu1 }
 0x34f   : > { %v958_v27 = vmul.f32 0.35355338, %v942_v50 }
 0x351   : > { %v975_v51 = vsel %vm962_vm12, %v958_v27, -inf }
 0x352   : > { %976 = vmax.xlane.f32.xlu2 %v975_v51 }
 0x356   : > { %v945_v53 = vpop.f32.mrf.mxu1 }
 0x357   : > { %v959_v52 = vmul.f32 0.35355338, %v945_v53 }
 0x359   : > { %v978_v55 = vsel %vm962_vm12, %v959_v52, -inf }
 0x35a   : > { %979 = vmax.xlane.f32.xlu1 %v978_v55 }
 0x35e   : > { %v948_v56 = vpop.f32.mrf.mxu1 }
 0x35f   : > { %v960_v57 = vmul.f32 0.35355338, %v948_v56 }
 0x361   : > { %v981_v2 = vsel %vm962_vm12, %v960_v57, -inf }
 0x362   : > { %982 = vmax.xlane.f32.xlu0 %v981_v2 }
 0x366   : > { %v951_v3 = vpop.f32.mrf.mxu1 }
 0x367   : > { %v9827_v4 = vmul.f32 0.35355338, %v951_v3 }
 0x369   : > { %v984_v5 = vsel %vm962_vm12, %v9827_v4, -inf }
 0x36a   : > { %985 = vmax.xlane.f32.xlu1 %v984_v5 }
 0x383   : > { %1798 = vrot.lane.b32.xlu1 %v9738_v42, %s9435_s29 }
 0x3a5   : > { %v965_v6 = vpop.xlane.xlu0 %964 }
 0x3a6   : > { %v987_v7 = vsub.f32 %v954_v43, %v965_v6 }
 0x3a8   : > { %v995_v41 = vmul.f32 1.442695, %v987_v7 }
 0x3aa   : > { %8910 = vpow2.f32 %v995_v41 }
 0x3ad   : > { %v968_v9 = vpop.xlane.xlu2 %967 }
 0x3ae   : > { %v988_v8 = vsub.f32 %v955_v38, %v968_v9 }
 0x3b0   : > { %v9833_v10 = vpop.eup %8910  ;;  %v997_v12 = vmul.f32 1.442695, %v988_v8 }
 0x3b1   : > { %v1011_v13 = vsel %vm962_vm12, %v9833_v10, 0.0 }
 0x3b2   : > { %8912 = vpow2.f32 %v997_v12  ;;  %1012 = vadd.xlane.f32.xlu2 %v1011_v13 }
 0x3b5   : > { %v971_v14 = vpop.xlane.xlu1 %970 }
 0x3b6   : > { %v989_v15 = vsub.f32 %v956_v39, %v971_v14 }
 0x3b8   : > { %v9837_v26 = vpop.eup %8912  ;;  %v999_v16 = vmul.f32 1.442695, %v989_v15 }
 0x3b9   : > { %v1014_v17 = vsel %vm962_vm12, %v9837_v26, 0.0 }
 0x3ba   : > { %8914 = vpow2.f32 %v999_v16  ;;  %1015 = vadd.xlane.f32.xlu2 %v1014_v17 }
 0x3bd   : > { %v974_v44 = vpop.xlane.xlu0 %973 }
 0x3be   : > { %v990_v29 = vsub.f32 %v957_v48, %v974_v44 }
 0x3c0   : > { %v9841_v18 = vpop.eup %8914  ;;  %v1001_v30 = vmul.f32 1.442695, %v990_v29 }
 0x3c1   : > { %v1017_v19 = vsel %vm962_vm12, %v9841_v18, 0.0 }
 0x3c2   : > { %1018 = vadd.xlane.f32.xlu0 %v1017_v19 }
 0x3c5   : > { %v977_v21 = vpop.xlane.xlu2 %976 }
 0x3c6   : > { %v991_v22 = vsub.f32 %v958_v27, %v977_v21 }
 0x3c8   : > { %v1003_v23 = vmul.f32 1.442695, %v991_v22 }
 0x3ca   : > { %8916 = vpow2.f32 %v1003_v23 }
 0x3cb   : > { %8918 = vpow2.f32 %v1001_v30 }
 0x3cd   : > { %v980_v28 = vpop.xlane.xlu1 %979 }
 0x3ce   : > { %v992_v32 = vsub.f32 %v959_v52, %v980_v28 }
 0x3d0   : > { %v9845_v24 = vpop.eup %8916  ;;  %v1005_v33 = vmul.f32 1.442695, %v992_v32 }
 0x3d1   : > { %v1023_v25 = vsel %vm962_vm12, %v9845_v24, 0.0  ;;  %v9860_v37 = vpop.eup %8918 }
 0x3d2   : > { %1024 = vadd.xlane.f32.xlu1 %v1023_v25  ;;  %1252 = vrot.lane.b32.xlu2 %v9704_v61, %s9433_s27  ;;  %8920 = vpow2.f32 %v1005_v33  ;;  %v1020_v40 = vsel %vm962_vm12, %v9860_v37, 0.0  ;;  %v9928_v33 = vpop.f32.mrf.mxu1 }
 0x3d5   : > { %v983_v34 = vpop.xlane.xlu0 %982 }
 0x3d6   : > { %1250 = vrot.lane.b32.xlu0 %v9702_v60, %s9433_s27  ;;  %v993_v36 = vsub.f32 %v960_v57, %v983_v34 }
 0x3d8   : > { %v1007_v38 = vmul.f32 1.442695, %v993_v36  ;;  %v9866_v45 = vpop.eup %8920 }
 0x3d9   : > { %v1026_v39 = vsel %vm962_vm12, %v9866_v45, 0.0 }
 0x3da   : > { %8922 = vpow2.f32 %v1007_v38 }
 0x3dd   : > { %v9855_v31 = vpop.xlane.xlu1 %985 }
 0x3e0   : > { %v9872_v46 = vpop.eup %8922 }
 0x3e1   : > { %v1029_v47 = vsel %vm962_vm12, %v9872_v46, 0.0 }
 0x3eb   : > { %1794 = vrot.lane.b32.xlu1 %v9706_v62, %s9435_s29 }
 0x3f3   : > { %2263 = vrot.lane.b32.xlu1 %v9710_v11, %s14236_s30 }
 0x3f5   : > { %v1799_v43 = vpop.permute.xlu1 %1798 }
 0x3f6   : > { %8216 = vmatpush.xpose.msk.msrb.mxu3 %vm14241_vm11, %v1799_v43  ;;  %v994_v43 = vsub.f32 %v9827_v4, %v9855_v31 }
 0x3f8   : > { %v1009_v36 = vmul.f32 1.442695, %v994_v43 }
 0x3fb   : > { %2261 = vrot.lane.b32.xlu1 %v9706_v62, %s14236_s30  ;;  %1021 = vadd.xlane.f32.xlu2 %v1020_v40 }
 0x400   : > { %1027 = vadd.xlane.f32.xlu0 %v1026_v39 }
 0x403   : > { %1258 = vrot.lane.b32.xlu1 %v9738_v42, %s9433_s27 }
 0x408   : > { %1030 = vadd.xlane.f32.xlu0 %v1029_v47 }
 0x40b   : > { %1784 = vrot.lane.b32.xlu1 %v9692_v54, %s9435_s29 }
 0x413   : > { %2253 = vrot.lane.b32.xlu1 %v9698_v58, %s14236_s30  ;;  %1254 = vrot.lane.b32.xlu2 %v9706_v62, %s9433_s27 }
 0x41b   : > { %2235 = vrot.lane.b32.xlu1 %v9692_v54, %s14234_s16  ;;  %1792 = vrot.lane.b32.xlu2 %v9704_v61, %s9435_s29 }
 0x41c   : > { %1796 = vrot.lane.b32.xlu0 %v9710_v11, %s9435_s29 }
 0x423   : > { %1774 = vrot.lane.b32.xlu1 %v9702_v60, %s14238_s17  ;;  %1790 = vrot.lane.b32.xlu2 %v9702_v60, %s9435_s29 }
 0x424   : > { %2265 = vrot.lane.b32.xlu0 %v9738_v42, %s14236_s30 }
 0x425   : > { %v1013_v48 = vpop.xlane.xlu2 %1012 }
 0x426   : > { %8924 = vrcp.f32 %v1013_v48  ;;  %v1046_v53 = vand.u32 2147483648, %v1013_v48  ;;  %v1044_v55 = vand.u32 2147483647, %v1013_v48  ;;  %vm1040_vm14 = vweird.f32 %v1013_v48 }
 0x428   : > { %v1047_v2 = vor.u32 1.1754944e-38, %v1046_v53  ;;  %vm1045_vm1 = vcmp.eq.f32.partialorder %v1044_v55, 8.507059e+37 }
 0x42b   : > { %2241 = vrot.lane.b32.xlu1 %v9702_v60, %s14234_s16  ;;  %2259 = vrot.lane.b32.xlu2 %v9704_v61, %s14236_s30 }
 0x42c   : > { %v8925_v49 = vpop.eup %8924  ;;  %1256 = vrot.lane.b32.xlu0 %v9710_v11, %s9433_s27 }
 0x42d   : > { %v1036_v50 = vmul.f32 %v8925_v49, %v1013_v48  ;;  %v1016_v27 = vpop.xlane.xlu2 %1015  ;;  %vm1041_vm13 = vweird.f32 %v8925_v49  ;;  %v852_v48 = vld [vmem:[%s14214_s5] sm:$0xff] }
 0x42e   : > { %8926 = vrcp.f32 %v1016_v27  ;;  %vm1042_vm15 = vmor %vm1040_vm14, %vm1041_vm13  ;;  %v1061_v8 = vand.u32 2147483648, %v1016_v27  ;;  %v1059_v12 = vand.u32 2147483647, %v1016_v27  ;;  %vm1055_vm3 = vweird.f32 %v1016_v27  ;;  %1742 = vmatpush.msra.mxu1 %v852_v48 }
 0x42f   : > { %v1037_v51 = vsub.f32 1.0, %v1036_v50 }
 0x430   : > { %vm1060_vm5 = vcmp.eq.f32.partialorder %v1059_v12, 8.507059e+37 }
 0x431   : > { %v1038_v52 = vmul.f32 %v8925_v49, %v1037_v51 }
 0x433   : > { %1780 = vrot.lane.b32.xlu1 %v9710_v11, %s14238_s17  ;;  %2257 = vrot.lane.b32.xlu2 %v9702_v60, %s14236_s30  ;;  %v1039_v56 = vadd.f32 %v8925_v49, %v1038_v52 }
 0x434   : > { %v8927_v57 = vpop.eup %8926  ;;  %1788 = vrot.lane.b32.xlu0 %v9700_v59, %s9435_s29 }
 0x435   : > { %v1051_v3 = vmul.f32 %v8927_v57, %v1016_v27  ;;  %v1019_v5 = vpop.xlane.xlu0 %1018  ;;  %v1043_v6 = vsel %vm1042_vm15, %v8925_v49, %v1039_v56  ;;  %vm1056_vm2 = vweird.f32 %v8927_v57  ;;  %v1253_v32 = vpop.permute.xlu2 %1252 }
 0x436   : > { %8928 = vrcp.f32 %v1019_v5  ;;  %v1048_v7 = vsel %vm1045_vm1, %v1047_v2, %v1043_v6  ;;  %vm1057_vm4 = vmor %vm1055_vm3, %vm1056_vm2  ;;  %v1076_v22 = vand.u32 2147483648, %v1019_v5  ;;  %v1074_v23 = vand.u32 2147483647, %v1019_v5 }
 0x437   : > { %v1052_v41 = vsub.f32 1.0, %v1051_v3  ;;  %v1049_v9 = vmul.f32 %v9833_v10, %v1048_v7  ;;  %v1062_v10 = vor.u32 1.1754944e-38, %v1061_v8  ;;  %vm1070_vm7 = vweird.f32 %v1019_v5 }
 0x438   : > { %v1077_v28 = vor.u32 1.1754944e-38, %v1076_v22  ;;  %vm1075_vm9 = vcmp.eq.f32.partialorder %v1074_v23, 8.507059e+37 }
 0x439   : > { %8168 = vmatmul.msk.f32.vlgmr.msra.gmra.mxu2 %vm962_vm12, %v1049_v9  ;;  %v1053_v60 = vmul.f32 %v8927_v57, %v1052_v41 }
 0x43b   : > { %2247 = vrot.lane.b32.xlu1 %v9710_v11, %s14234_s16  ;;  %1768 = vrot.lane.b32.xlu2 %v9692_v54, %s14238_s17  ;;  %v1054_v13 = vadd.f32 %v8927_v57, %v1053_v60 }
 0x43c   : > { %v8929_v14 = vpop.eup %8928  ;;  %1786 = vrot.lane.b32.xlu0 %v9698_v58, %s9435_s29 }
 0x43d   : > { %v1066_v15 = vmul.f32 %v8929_v14, %v1019_v5  ;;  %v1058_v16 = vsel %vm1057_vm4, %v8927_v57, %v1054_v13  ;;  %vm1071_vm6 = vweird.f32 %v8929_v14 }
 0x43e   : > { %v1063_v17 = vsel %vm1060_vm5, %v1062_v10, %v1058_v16  ;;  %vm1072_vm8 = vmor %vm1070_vm7, %vm1071_vm6 }
 0x43f   : > { %v1067_v19 = vsub.f32 1.0, %v1066_v15  ;;  %v1064_v21 = vmul.f32 %v9837_v26, %v1063_v17 }
 0x441   : > { %8169 = vmatmul.msk.f32.gmra.mxu2 %vm962_vm12, %v1064_v21  ;;  %v1068_v11 = vmul.f32 %v8929_v14, %v1067_v19 }
 0x443   : > { %1770 = vrot.lane.b32.xlu2 %v9698_v58, %s14238_s17  ;;  %v1069_v25 = vadd.f32 %v8929_v14, %v1068_v11 }
 0x444   : > { %2255 = vrot.lane.b32.xlu0 %v9700_v59, %s14236_s30 }
 0x445   : > { %v1073_v44 = vsel %vm1072_vm8, %v8929_v14, %v1069_v25 }
 0x446   : > { %v1078_v29 = vsel %vm1075_vm9, %v1077_v28, %v1073_v44 }
 0x447   : > { %v1079_v26 = vmul.f32 %v9841_v18, %v1078_v29  ;;  %v1328_v18 = vpop.f32.mrf.mxu1 }
 0x448   : > { %v1251_v30 = vpop.permute.xlu0 %1250  ;;  %v9936_v34 = vmul.f32 0.35355338, %v1328_v18 }
 0x449   : > { %8170 = vmatmul.msk.f32.gmra.mxu2 %vm962_vm12, %v1079_v26  ;;  %8187 = vmatmul.msk.f32.gmra.mxu3 %vm14241_vm11, %v1251_v30 }
 0x44b   : > { %2237 = vrot.lane.b32.xlu2 %v9698_v58, %s14234_s16  ;;  %v1025_v58 = vpop.xlane.xlu1 %1024 }
 0x44c   : > { %2251 = vrot.lane.b32.xlu0 %v9692_v54, %s14236_s30  ;;  %v1360_v54 = vsel %vm962_vm12, %v9936_v34, -inf  ;;  %8930 = vrcp.f32 %v1025_v58  ;;  %v1106_v8 = vand.u32 2147483648, %v1025_v58  ;;  %vm1100_vm2 = vweird.f32 %v1025_v58 }
 0x44d   : > { %v1104_v12 = vand.u32 2147483647, %v1025_v58 }
 0x44e   : > { %v1107_v16 = vor.u32 1.1754944e-38, %v1106_v8 }
 0x44f   : > { %vm1105_vm4 = vcmp.eq.f32.partialorder %v1104_v12, 8.507059e+37 }
 0x451   : > { %8188 = vmatmul.msk.f32.gmra.mxu3 %vm14241_vm11, %v1253_v32 }
 0x452   : > { %v8931_v38 = vpop.eup %8930 }
 0x453   : > { %1776 = vrot.lane.b32.xlu2 %v9704_v61, %s14238_s17  ;;  %v1096_v40 = vmul.f32 %v8931_v38, %v1025_v58  ;;  %vm1101_vm15 = vweird.f32 %v8931_v38 }
 0x454   : > { %1772 = vrot.lane.b32.xlu0 %v9700_v59, %s14238_s17  ;;  %vm1102_vm3 = vmor %vm1100_vm2, %vm1101_vm15 }
 0x455   : > { %v1097_v4 = vsub.f32 1.0, %v1096_v40  ;;  %v1331_v40 = vpop.f32.mrf.mxu3 }
 0x457   : > { %v1098_v55 = vmul.f32 %v8931_v38, %v1097_v4 }
 0x459   : > { %v1099_v41 = vadd.f32 %v8931_v38, %v1098_v55 }
 0x45b   : > { %v1103_v14 = vsel %vm1102_vm3, %v8931_v38, %v1099_v41 }
 0x45c   : > { %2239 = vrot.lane.b32.xlu0 %v9700_v59, %s14234_s16  ;;  %v1108_v17 = vsel %vm1105_vm4, %v1107_v16, %v1103_v14 }
 0x45d   : > { %v1795_v22 = vpop.permute.xlu1 %1794 }
 0x464   : > { %1778 = vrot.lane.b32.xlu0 %v9706_v62, %s14238_s17 }
 0x465   : > { %1361 = vmax.xlane.f32.xlu1 %v1360_v54  ;;  %v2264_v58 = vpop.permute.xlu1 %2263 }
 0x46c   : > { %2245 = vrot.lane.b32.xlu0 %v9706_v62, %s14234_s16 }
 0x46d   : > { %v2262_v48 = vpop.permute.xlu1 %2261 }
 0x46e   : > { %v1022_v59 = vpop.xlane.xlu2 %1021 }
 0x46f   : > { %8932 = vrcp.f32 %v1022_v59  ;;  %v1091_v27 = vand.u32 2147483648, %v1022_v59  ;;  %v1089_v52 = vand.u32 2147483647, %v1022_v59  ;;  %vm1085_vm13 = vweird.f32 %v1022_v59 }
 0x470   : > { %8934 = vpow2.f32 %v1009_v36 }
 0x471   : > { %v1092_v5 = vor.u32 1.1754944e-38, %v1091_v27  ;;  %vm1090_vm1 = vcmp.eq.f32.partialorder %v1089_v52, 8.507059e+37 }
 0x473   : > { %v1028_v39 = vpop.xlane.xlu0 %1027 }
 0x474   : > { %8936 = vrcp.f32 %v1028_v39  ;;  %2249 = vrot.lane.b32.xlu0 %v9738_v42, %s14234_s16  ;;  %v1121_v11 = vand.u32 2147483648, %v1028_v39  ;;  %vm1115_vm6 = vweird.f32 %v1028_v39  ;;  %v1119_v25 = vand.u32 2147483647, %v1028_v39 }
 0x475   : > { %v8933_v47 = vpop.eup %8932 }
 0x476   : > { %v1081_v31 = vmul.f32 %v8933_v47, %v1022_v59  ;;  %v1255_v49 = vpop.permute.xlu2 %1254  ;;  %v9952_v62 = vpop.eup %8934  ;;  %vm1086_vm10 = vweird.f32 %v8933_v47  ;;  %v1122_v29 = vor.u32 1.1754944e-38, %v1121_v11  ;;  %vm1120_vm8 = vcmp.eq.f32.partialorder %v1119_v25, 8.507059e+37 }
 0x477   : > { %8189 = vmatmul.msk.f32.gmra.mxu3 %vm14241_vm11, %v1255_v49  ;;  %v1032_v2 = vsel %vm962_vm12, %v9952_v62, 0.0  ;;  %vm1087_vm14 = vmor %vm1085_vm13, %vm1086_vm10 }
 0x478   : > { %v1082_v50 = vsub.f32 1.0, %v1081_v31 }
 0x47a   : > { %v8937_v51 = vpop.eup %8936  ;;  %v1083_v53 = vmul.f32 %v8933_v47, %v1082_v50 }
 0x47b   : > { %v1111_v56 = vmul.f32 %v8937_v51, %v1028_v39  ;;  %v1031_v57 = vpop.xlane.xlu0 %1030  ;;  %vm1116_vm5 = vweird.f32 %v8937_v51 }
 0x47c   : > { %8938 = vrcp.f32 %v1031_v57  ;;  %1033 = vadd.xlane.f32.xlu2 %v1032_v2  ;;  %v1084_v3 = vadd.f32 %v8933_v47, %v1083_v53  ;;  %vm1117_vm7 = vmor %vm1115_vm6, %vm1116_vm5  ;;  %v1136_v18 = vand.u32 2147483648, %v1031_v57  ;;  %vm1130_vm10 = vweird.f32 %v1031_v57 }
 0x47d   : > { %v1112_v6 = vsub.f32 1.0, %v1111_v56  ;;  %v9993_v2 = vmul.f32 0.35355338, %v9928_v33 }
 0x47e   : > { %v1088_v7 = vsel %vm1087_vm14, %v8933_v47, %v1084_v3  ;;  %v1793_v23 = vpop.permute.xlu2 %1792  ;;  %v1137_v59 = vor.u32 1.1754944e-38, %v1136_v18  ;;  %v9969_v47 = vmul.f32 0.35355338, %v1331_v40 }
 0x47f   : > { %v1093_v9 = vsel %vm1090_vm1, %v1092_v5, %v1088_v7  ;;  %v1113_v10 = vmul.f32 %v8937_v51, %v1112_v6  ;;  %v1357_v6 = vsel %vm962_vm12, %v9993_v2, -inf }
 0x480   : > { %v1094_v60 = vmul.f32 %v9860_v37, %v1093_v9  ;;  %v1109_v37 = vmul.f32 %v9845_v24, %v1108_v17  ;;  %v1134_v24 = vand.u32 2147483647, %v1031_v57  ;;  %v1363_v4 = vsel %vm962_vm12, %v9969_v47, -inf }
 0x481   : > { %v1114_v21 = vadd.f32 %v8937_v51, %v1113_v10 }
 0x482   : > { %v8939_v13 = vpop.eup %8938  ;;  %8171 = vmatmul.msk.f32.gmra.mxu2 %vm962_vm12, %v1094_v60  ;;  %vm1135_vm14 = vcmp.eq.f32.partialorder %v1134_v24, 8.507059e+37 }
 0x483   : > { %v1126_v15 = vmul.f32 %v8939_v13, %v1031_v57  ;;  %v1118_v28 = vsel %vm1117_vm7, %v8937_v51, %v1114_v21  ;;  %vm1131_vm9 = vweird.f32 %v8939_v13 }
 0x484   : > { %v1123_v26 = vsel %vm1120_vm8, %v1122_v29, %v1118_v28  ;;  %vm1132_vm13 = vmor %vm1130_vm10, %vm1131_vm9 }
 0x485   : > { %v1127_v19 = vsub.f32 1.0, %v1126_v15  ;;  %v1124_v54 = vmul.f32 %v9866_v45, %v1123_v26 }
 0x486   : > { %v1791_v43 = vpop.permute.xlu2 %1790 }
 0x487   : > { %v1128_v44 = vmul.f32 %v8939_v13, %v1127_v19 }
 0x489   : > { %v1129_v32 = vadd.f32 %v8939_v13, %v1128_v44 }
 0x48a   : > { %8172 = vmatmul.msk.f32.gmra.mxu2 %vm962_vm12, %v1109_v37 }
 0x48b   : > { %v1133_v36 = vsel %vm1132_vm13, %v8939_v13, %v1129_v32 }
 0x48c   : > { %v1138_v38 = vsel %vm1135_vm14, %v1137_v59, %v1133_v36 }
 0x48d   : > { %v1139_v45 = vmul.f32 %v9872_v46, %v1138_v38  ;;  %v1259_v46 = vpop.permute.xlu1 %1258 }
 0x48e   : > { %v1797_v30 = vpop.permute.xlu0 %1796 }
 0x48f   : > { %8217 = vmatpush.xpose.msk.msrb.mxu3 %vm14241_vm11, %v1797_v30 }
 0x492   : > { %8173 = vmatmul.msk.f32.gmra.mxu2 %vm962_vm12, %v1124_v54 }
 0x493   : > { %8218 = vmatpush.xpose.msk.msrb.mxu3 %vm14241_vm11, %v1795_v22 }
 0x494   : > { %2243 = vrot.lane.b32.xlu2 %v9704_v61, %s14234_s16  ;;  %v2260_v61 = vpop.permute.xlu2 %2259  ;;  %s14419_s16 = smov 40  }
 0x495   : > { %v1785_v27 = vpop.permute.xlu1 %1784 }
 0x496   : > { %v2266_v39 = vpop.permute.xlu0 %2265 }
 0x497   : > { %8219 = vmatpush.xpose.msk.msrb.mxu3 %vm14241_vm11, %v1793_v23  ;;  %8248 = vmatpush.xpose.msk.msrb.mxu1 %vm14241_vm11, %v2266_v39 }
 0x49a   : > { %8174 = vmatmul.msk.f32.gmra.mxu2 %vm962_vm12, %v1139_v45 }
 0x49b   : > { %8220 = vmatpush.xpose.msk.msrb.mxu3 %vm14241_vm11, %v1791_v43  ;;  %8249 = vmatpush.xpose.msk.msrb.mxu1 %vm14241_vm11, %v2264_v58 }
 0x49c   : > { %1782 = vrot.lane.b32.xlu2 %v9738_v42, %s14238_s17  ;;  %v2258_v49 = vpop.permute.xlu2 %2257 }
 0x49d   : > { %v2254_v52 = vpop.permute.xlu1 %2253 }
 0x49e   : > { %1364 = vmax.xlane.f32.xlu0 %v1363_v4  ;;  %v1257_v31 = vpop.permute.xlu0 %1256 }
 0x49f   : > { %8190 = vmatmul.msk.f32.gmra.mxu3 %vm14241_vm11, %v1257_v31  ;;  %8250 = vmatpush.xpose.msk.msrb.mxu1 %vm14241_vm11, %v2262_v48 }
 0x4a3   : > { %8251 = vmatpush.xpose.msk.msrb.mxu1 %vm14241_vm11, %v2260_v61 }
 0x4a4   : > { %v1769_v51 = vpop.permute.xlu2 %1768 }
 0x4a5   : > { %v9995_v3 = vpop.permute.xlu1 %2235 }
 0x4a6   : > { %v1789_v50 = vpop.permute.xlu0 %1788 }
 0x4a7   : > { %8191 = vmatmul.msk.f32.gmra.mxu3 %vm14241_vm11, %v1259_v46  ;;  %8252 = vmatpush.xpose.msk.msrb.mxu1 %vm14241_vm11, %v2258_v49 }
 0x4a8   : > { %8221 = vmatpush.xpose.msk.msrb.mxu3 %vm14241_vm11, %v1789_v50 }
 0x4ac   : > { %v1771_v56 = vpop.permute.xlu2 %1770 }
 0x4ad   : > { %v1775_v33 = vpop.permute.xlu1 %1774 }
 0x4ae   : > { %v1787_v42 = vpop.permute.xlu0 %1786 }
 0x4af   : > { %8222 = vmatpush.xpose.msk.msrb.mxu3 %vm14241_vm11, %v1787_v42 }
 0x4b3   : > { %8223 = vmatpush.xpose.msk.msrb.mxu3 %vm14241_vm11, %v1785_v27 }
 0x4b4   : > { %v10001_v41 = vpop.permute.xlu2 %2237 }
 0x4b5   : > { %v10016_v17 = vpop.permute.xlu1 %2241 }
 0x4b6   : > { %8224 = vmatmul.msk.f32.vlgmr.msrb.gmra.mxu3 %vm14241_vm11, %v1769_v51  ;;  %v2256_v53 = vpop.permute.xlu0 %2255 }
 0x4b7   : > { %8253 = vmatpush.xpose.msk.msrb.mxu1 %vm14241_vm11, %v2256_v53 }
 0x4bb   : > { %8254 = vmatpush.xpose.msk.msrb.mxu1 %vm14241_vm11, %v2254_v52 }
 0x4bc   : > { %v1220_v55 = vpop.f32.mrf.mxu2  ;;  %v1777_v15 = vpop.permute.xlu2 %1776 }
 0x4bd   : > { %8208 = vmatmul.msk.f32.vlgmr.msra.gmra.mxu1 %vm14241_vm11, %v1220_v55  ;;  %v1781_v21 = vpop.permute.xlu1 %1780 }
 0x4be   : > { %8225 = vmatmul.msk.f32.gmra.mxu3 %vm14241_vm11, %v1771_v56  ;;  %v2252_v57 = vpop.permute.xlu0 %2251 }
 0x4bf   : > { %8255 = vmatpush.xpose.msk.msrb.mxu1 %vm14241_vm11, %v2252_v57 }
 0x4c4   : > { %v1223_v5 = vpop.f32.mrf.mxu2 }
 0x4c5   : > { %1358 = vmax.xlane.f32.xlu2 %v1357_v6  ;;  %8209 = vmatmul.msk.f32.gmra.mxu1 %vm14241_vm11, %v1223_v5  ;;  %v10051_v51 = vpop.permute.xlu1 %2247 }
 0x4c6   : > { %v1773_v7 = vpop.permute.xlu0 %1772 }
 0x4c7   : > { %8226 = vmatmul.msk.f32.gmra.mxu3 %vm14241_vm11, %v1773_v7 }
 0x4cc   : > { %v1226_v9 = vpop.f32.mrf.mxu2  ;;  %v1334_v8 = vpop.f32.mrf.mxu3 }
 0x4cd   : > { %v10003_v60 = vmul.f32 0.35355338, %v1334_v8  ;;  %8210 = vmatmul.msk.f32.gmra.mxu1 %vm14241_vm11, %v1226_v9 }
 0x4ce   : > { %v10009_v13 = vpop.permute.xlu0 %2239 }
 0x4cf   : > { %8227 = vmatmul.msk.f32.gmra.mxu3 %vm14241_vm11, %v1775_v33  ;;  %v1366_v12 = vsel %vm962_vm12, %v10003_v60, -inf }
 0x4d0   : > { %1367 = vmax.xlane.f32.xlu2 %v1366_v12 }
 0x4d4   : > { %v1337_v14 = vpop.f32.mrf.mxu3 }
 0x4d5   : > { %v10011_v10 = vmul.f32 0.35355338, %v1337_v14 }
 0x4d6   : > { %v1779_v19 = vpop.permute.xlu0 %1778 }
 0x4d7   : > { %8228 = vmatmul.msk.f32.gmra.mxu3 %vm14241_vm11, %v1777_v15  ;;  %v1369_v16 = vsel %vm962_vm12, %v10011_v10, -inf }
 0x4d8   : > { %1370 = vmax.xlane.f32.xlu1 %v1369_v16  ;;  %v10055_v52 = vpop.xlane.xlu1 %1361 }
 0x4de   : > { %v10049_v42 = vpop.permute.xlu0 %2245 }
 0x4df   : > { %8229 = vmatmul.msk.f32.gmra.mxu3 %vm14241_vm11, %v1779_v19 }
 0x4e6   : > { %v10053_v53 = vpop.permute.xlu0 %2249 }
 0x4e7   : > { %8230 = vmatmul.msk.f32.gmra.mxu3 %vm14241_vm11, %v1781_v21 }
 0x4ef   : > { %v1034_v22 = vpop.xlane.xlu2 %1033 }
 0x4f0   : > { %8940 = vrcp.f32 %v1034_v22  ;;  %v1151_v44 = vand.u32 2147483648, %v1034_v22  ;;  %v1149_v30 = vand.u32 2147483647, %v1034_v22  ;;  %vm1145_vm1 = vweird.f32 %v1034_v22 }
 0x4f2   : > { %v1152_v54 = vor.u32 1.1754944e-38, %v1151_v44  ;;  %vm1150_vm3 = vcmp.eq.f32.partialorder %v1149_v30, 8.507059e+37 }
 0x4f6   : > { %v8941_v11 = vpop.eup %8940 }
 0x4f7   : > { %v1141_v23 = vmul.f32 %v8941_v11, %v1034_v22  ;;  %v10020_v37 = vpop.permute.xlu2 %2243  ;;  %vm1146_vm15 = vweird.f32 %v8941_v11 }
 0x4f8   : > { %vm1147_vm2 = vmor %vm1145_vm1, %vm1146_vm15 }
 0x4f9   : > { %v1142_v25 = vsub.f32 1.0, %v1141_v23 }
 0x4fa   : > { %v1340_v28 = vpop.f32.mrf.mxu3 }
 0x4fb   : > { %v10022_v29 = vmul.f32 0.35355338, %v1340_v28  ;;  %v1143_v26 = vmul.f32 %v8941_v11, %v1142_v25 }
 0x4fd   : > { %v1372_v32 = vsel %vm962_vm12, %v10022_v29, -inf  ;;  %v1144_v18 = vadd.f32 %v8941_v11, %v1143_v26 }
 0x4fe   : > { %1373 = vmax.xlane.f32.xlu0 %v1372_v32 }
 0x4ff   : > { %v1783_v24 = vpop.permute.xlu2 %1782  ;;  %v1148_v58 = vsel %vm1147_vm2, %v8941_v11, %v1144_v18 }
 0x500   : > { %8231 = vmatmul.msk.f32.gmra.mxu3 %vm14241_vm11, %v1783_v24  ;;  %v1153_v43 = vsel %vm1150_vm3, %v1152_v54, %v1148_v58 }
 0x501   : > { %v1154_v36 = vmul.f32 %v9952_v62, %v1153_v43 }
 0x503   : > { %8175 = vmatmul.msk.f32.gmra.mxu2 %vm962_vm12, %v1154_v36 }
 0x505   : > { %v1229_v59 = vpop.f32.mrf.mxu2 }
 0x506   : > { %8211 = vmatmul.msk.f32.gmra.mxu1 %vm14241_vm11, %v1229_v59 }
 0x50d   : > { %v1232_v38 = vpop.f32.mrf.mxu2 }
 0x50e   : > { %8212 = vmatmul.msk.f32.gmra.mxu1 %vm14241_vm11, %v1232_v38 }
 0x511   : > { %v1365_v56 = vpop.xlane.xlu0 %1364 }
 0x512   : > { %v1383_v5 = vsub.f32 %v9969_v47, %v1365_v56 }
 0x514   : > { %v1393_v8 = vmul.f32 1.442695, %v1383_v5 }
 0x515   : > { %v1235_v40 = vpop.f32.mrf.mxu2 }
 0x516   : > { %8213 = vmatmul.msk.f32.gmra.mxu1 %vm14241_vm11, %v1235_v40  ;;  %8942 = vpow2.f32 %v1393_v8 }
 0x51d   : > { %v1238_v39 = vpop.f32.mrf.mxu2 }
 0x51e   : > { %8214 = vmatmul.msk.f32.gmra.mxu1 %vm14241_vm11, %v1238_v39 }
 0x522   : > { %v1343_v45 = vpop.f32.mrf.mxu3 }
 0x523   : > { %v10033_v48 = vmul.f32 0.35355338, %v1343_v45 }
 0x525   : > { %v1375_v62 = vsel %vm962_vm12, %v10033_v48, -inf }
 0x526   : > { %1376 = vmax.xlane.f32.xlu2 %v1375_v62 }
 0x52a   : > { %v1346_v61 = vpop.f32.mrf.mxu3 }
 0x52b   : > { %v10037_v4 = vmul.f32 0.35355338, %v1346_v61 }
 0x52d   : > { %v1378_v31 = vsel %vm962_vm12, %v10037_v4, -inf }
 0x52e   : > { %1379 = vmax.xlane.f32.xlu0 %v1378_v31 }
 0x538   : > { %v10059_v57 = vpop.xlane.xlu2 %1358 }
 0x539   : > { %v1849_v46 = vpop.f32.mrf.mxu3 }
 0x53a   : > { %v10041_v49 = vmul.f32 0.35355338, %v1849_v46 }
 0x53c   : > { %v1881_v50 = vsel %vm962_vm12, %v10041_v49, -inf }
 0x53d   : > { %1882 = vmax.xlane.f32.xlu1 %v1881_v50 }
 0x53e   : > { %8721 = vrot.lane.b32.xlu2 %v9744_v63, %s9439_s24 }
 0x541   : > { %v1852_v27 = vpop.f32.mrf.mxu3 }
 0x542   : > { %8726 = vrot.lane.b32.xlu0 %v9756_v0, %s9439_s24  ;;  %v10089_v24 = vmul.f32 0.35355338, %v1852_v27 }
 0x543   : > { %v1368_v33 = vpop.xlane.xlu2 %1367 }
 0x544   : > { %v1384_v14 = vsub.f32 %v10003_v60, %v1368_v33  ;;  %v1884_v38 = vsel %vm962_vm12, %v10089_v24, -inf }
 0x546   : > { %v1395_v16 = vmul.f32 1.442695, %v1384_v14 }
 0x54a   : > { %v1855_v55 = vpop.f32.mrf.mxu3 }
 0x54b   : > { %v1371_v6 = vpop.xlane.xlu1 %1370  ;;  %v10066_v15 = vmul.f32 0.35355338, %v1855_v55 }
 0x54c   : > { %v1385_v7 = vsub.f32 %v10011_v10, %v1371_v6  ;;  %v10070_v10 = vpop.eup %8942 }
 0x54d   : > { %v1887_v47 = vsel %vm962_vm12, %v10066_v15, -inf  ;;  %v1411_v22 = vsel %vm962_vm12, %v10070_v10, 0.0 }
 0x54e   : > { %v1397_v12 = vmul.f32 1.442695, %v1385_v7 }
 0x550   : > { %8944 = vpow2.f32 %v1397_v12 }
 0x551   : > { %8946 = vpow2.f32 %v1395_v16 }
 0x552   : > { %v1858_v9 = vpop.f32.mrf.mxu3 }
 0x553   : > { %v10083_v30 = vmul.f32 0.35355338, %v1858_v9 }
 0x555   : > { %v1890_v18 = vsel %vm962_vm12, %v10083_v30, -inf }
 0x556   : > { %8731 = vrot.lane.b32.xlu1 %v9726_v35, %s9439_s24  ;;  %v10072_v21 = vpop.eup %8944 }
 0x557   : > { %v1417_v60 = vsel %vm962_vm12, %v10072_v21, 0.0  ;;  %v10078_v11 = vpop.eup %8946 }
 0x558   : > { %v1414_v44 = vsel %vm962_vm12, %v10078_v11, 0.0 }
 0x55a   : > { %v1861_v19 = vpop.f32.mrf.mxu3 }
 0x55b   : > { %v10100_v40 = vmul.f32 0.35355338, %v1861_v19 }
 0x55d   : > { %v1893_v39 = vsel %vm962_vm12, %v10100_v40, -inf }
 0x55e   : > { %8736 = vrot.lane.b32.xlu1 %v9762_v1, %s9439_s24 }
 0x562   : > { %v1864_v23 = vpop.f32.mrf.mxu3 }
 0x563   : > { %v10106_v45 = vmul.f32 0.35355338, %v1864_v23 }
 0x565   : > { %v1896_v62 = vsel %vm962_vm12, %v10106_v45, -inf }
 0x567   : > { %1888 = vmax.xlane.f32.xlu2 %v1887_v47 }
 0x56a   : > { %v1867_v32 = vpop.f32.mrf.mxu3 }
 0x56b   : > { %v10113_v46 = vmul.f32 0.35355338, %v1867_v32 }
 0x56c   : > { %1412 = vadd.xlane.f32.xlu0 %v1411_v22 }
 0x56f   : > { %1418 = vadd.xlane.f32.xlu2 %v1417_v60 }
 0x571   : > { %v1374_v25 = vpop.xlane.xlu0 %1373 }
 0x572   : > { %v1386_v28 = vsub.f32 %v10022_v29, %v1374_v25 }
 0x574   : > { %1415 = vadd.xlane.f32.xlu0 %v1414_v44  ;;  %v1399_v26 = vmul.f32 1.442695, %v1386_v28 }
 0x576   : > { %8948 = vpow2.f32 %v1399_v26 }
 0x57c   : > { %1891 = vmax.xlane.f32.xlu0 %v1890_v18  ;;  %v10087_v54 = vpop.eup %8948 }
 0x57d   : > { %v1420_v29 = vsel %vm962_vm12, %v10087_v54, 0.0 }
 0x583   : > { %v1870_v58 = vpop.f32.mrf.mxu3 }
 0x584   : > { %v10093_v43 = vmul.f32 0.35355338, %v1870_v58  ;;  %1421 = vadd.xlane.f32.xlu0 %v1420_v29 }
 0x586   : > { %v1241_v36 = vpop.f32.mrf.mxu2  ;;  %v1902_v59 = vsel %vm962_vm12, %v10093_v43, -inf }
 0x587   : > { %1903 = vmax.xlane.f32.xlu2 %v1902_v59  ;;  %8215 = vmatmul.msk.f32.gmra.mxu1 %vm14241_vm11, %v1241_v36  ;;  %v1381_v36 = vsub.f32 %v9993_v2, %v10059_v57 }
 0x588   : > { %1885 = vmax.xlane.f32.xlu1 %v1884_v38 }
 0x589   : > { %v1389_v38 = vmul.f32 1.442695, %v1381_v36 }
 0x58f   : > { %8256 = vmatmul.msk.f32.vlgmr.msrb.gmra.mxu1 %vm14241_vm11, %v9995_v3  ;;  %v1899_v3 = vsel %vm962_vm12, %v10113_v46, -inf }
 0x590   : > { %1894 = vmax.xlane.f32.xlu1 %v1893_v39 }
 0x597   : > { %8257 = vmatmul.msk.f32.gmra.mxu1 %vm14241_vm11, %v10001_v41 }
 0x598   : > { %1897 = vmax.xlane.f32.xlu1 %v1896_v62 }
 0x599   : > { %v1377_v61 = vpop.xlane.xlu2 %1376 }
 0x59a   : > { %v1387_v31 = vsub.f32 %v10033_v48, %v1377_v61 }
 0x59c   : > { %v1401_v50 = vmul.f32 1.442695, %v1387_v31 }
 0x59e   : > { %8950 = vpow2.f32 %v1401_v50 }
 0x59f   : > { %8746 = vrot.lane.b32.xlu2 %v9744_v63, %s14228_s21  ;;  %8258 = vmatmul.msk.f32.gmra.mxu1 %vm14241_vm11, %v10009_v13 }
 0x5a0   : > { %1900 = vmax.xlane.f32.xlu1 %v1899_v3 }
 0x5a1   : > { %v8722_v41 = vpop.permute.xlu2 %8721  ;;  %v1380_v27 = vpop.xlane.xlu0 %1379 }
 0x5a2   : > { %v1388_v55 = vsub.f32 %v10037_v4, %v1380_v27  ;;  %v8723_v48 = vunpack.i.l.bf16 %v8722_v41  ;;  %v8724_v6 = vunpack.i.h.bf16 %v8722_v41  ;;  %v1382_v41 = vsub.f32 %v9936_v34, %v10055_v52 }
 0x5a4   : > { %v10122_v56 = vpop.eup %8950  ;;  %v1403_v5 = vmul.f32 1.442695, %v1388_v55  ;;  %1605 = vmatpush.msrb.mxu0 %v8723_v48  ;;  %v1391_v57 = vmul.f32 1.442695, %v1382_v41 }
 0x5a5   : > { %v1423_v7 = vsel %vm962_vm12, %v10122_v56, 0.0 }
 0x5a6   : > { %8952 = vpow2.f32 %v1403_v5  ;;  %1606 = vmatpush.msrb.mxu0 %v8724_v6  ;;  %1424 = vadd.xlane.f32.xlu0 %v1423_v7 }
 0x5a7   : > { %8259 = vmatmul.msk.f32.gmra.mxu1 %vm14241_vm11, %v10016_v17 }
 0x5ac   : > { %v10128_v13 = vpop.eup %8952 }
 0x5ad   : > { %v1426_v4 = vsel %vm962_vm12, %v10128_v13, 0.0 }
 0x5ae   : > { %1427 = vadd.xlane.f32.xlu0 %v1426_v4 }
 0x5af   : > { %8260 = vmatmul.msk.f32.gmra.mxu1 %vm14241_vm11, %v10020_v37  ;;  %v10143_v37 = vpop.f32.mrf.mxu1 }
 0x5b0   : > { %v1883_v9 = vpop.xlane.xlu1 %1882 }
 0x5b1   : > { %v1905_v8 = vsub.f32 %v10041_v49, %v1883_v9 }
 0x5b3   : > { %v1913_v33 = vmul.f32 1.442695, %v1905_v8 }
 0x5b4   : > { %v8727_v12 = vpop.permute.xlu0 %8726 }
 0x5b5   : > { %8954 = vpow2.f32 %v1913_v33  ;;  %v8728_v14 = vunpack.i.l.bf16 %v8727_v12  ;;  %v8729_v17 = vunpack.i.h.bf16 %v8727_v12 }
 0x5b7   : > { %1607 = vmatpush.msrb.mxu0 %v8728_v14  ;;  %8261 = vmatmul.msk.f32.gmra.mxu1 %vm14241_vm11, %v10049_v42  ;;  %v10147_v22 = vpop.f32.mrf.mxu1 }
 0x5b9   : > { %1608 = vmatpush.msrb.mxu0 %v8729_v17 }
 0x5bb   : > { %v10137_v16 = vpop.eup %8954 }
 0x5bc   : > { %v1929_v47 = vsel %vm962_vm12, %v10137_v16, 0.0 }
 0x5bd   : > { %1930 = vadd.xlane.f32.xlu0 %v1929_v47 }
 0x5bf   : > { %8262 = vmatmul.msk.f32.gmra.mxu1 %vm14241_vm11, %v10051_v51  ;;  %v10151_v25 = vpop.f32.mrf.mxu1 }
 0x5c7   : > { %8263 = vmatmul.msk.f32.gmra.mxu1 %vm14241_vm11, %v10053_v53  ;;  %v10155_v53 = vpop.f32.mrf.mxu1 }
 0x5c8   : > { %v8732_v49 = vpop.permute.xlu1 %8731 }
 0x5c9   : > { %v8733_v19 = vunpack.i.l.bf16 %v8732_v49  ;;  %v8734_v42 = vunpack.i.h.bf16 %v8732_v49 }
 0x5cb   : > { %1609 = vmatpush.msrb.mxu0 %v8733_v19 }
 0x5cd   : > { %1610 = vmatpush.msrb.mxu0 %v8734_v42 }
 0x5cf   : > { %v10157_v28 = vpop.f32.mrf.mxu1 }
 0x5d0   : > { %v8737_v60 = vpop.permute.xlu1 %8736 }
 0x5d1   : > { %8741 = vrot.lane.b32.xlu0 %v9744_v63, %s14230_s22  ;;  %v8738_v23 = vunpack.i.l.bf16 %v8737_v60  ;;  %v8739_v51 = vunpack.i.h.bf16 %v8737_v60 }
 0x5d3   : > { %1611 = vmatpush.msrb.mxu0 %v8738_v23 }
 0x5d5   : > { %1612 = vmatpush.msrb.mxu0 %v8739_v51 }
 0x5d7   : > { %v10161_v26 = vpop.f32.mrf.mxu1 }
 0x5d9   : > { %8751 = vrot.lane.b32.xlu0 %v9756_v0, %s14230_s22 }
 0x5da   : > { %v10159_v44 = vpop.xlane.xlu2 %1888 }
 0x5df   : > { %v10167_v58 = vpop.f32.mrf.mxu1  ;;  %v10172_v62 = vpop.xlane.xlu0 %1412 }
 0x5e0   : > { %14261 = vst [vmem:[#allocation3_spill] sm:$0xff] %v10167_v58  ;;  %vm1464_vm15 = vweird.f32 %v10172_v62 }
 0x5e2   : > { %v10163_v32 = vpop.xlane.xlu2 %1418 }
 0x5e7   : > { %v10184_v55 = vpop.xlane.xlu0 %1415 }
 0x5ef   : > { %v10196_v4 = vpop.xlane.xlu0 %1891 }
 0x5f7   : > { %v10206_v17 = vpop.xlane.xlu0 %1421 }
 0x5fa   : > { %v10165_v63 = vpop.xlane.xlu2 %1903 }
 0x5fb   : > { %v1886_v18 = vpop.xlane.xlu1 %1885 }
 0x5fc   : > { %v1906_v29 = vsub.f32 %v10089_v24, %v1886_v18 }
 0x5fe   : > { %v1915_v59 = vmul.f32 1.442695, %v1906_v29 }
 0x600   : > { %8956 = vpow2.f32 %v1915_v59 }
 0x601   : > { %8958 = vpow2.f32 %v1389_v38  ;;  %v1907_v38 = vsub.f32 %v10066_v15, %v10159_v44 }
 0x602   : > { %v8747_v39 = vpop.permute.xlu2 %8746  ;;  %8960 = vpow2.f32 %v1391_v57 }
 0x603   : > { %v8748_v61 = vunpack.i.l.bf16 %v8747_v39  ;;  %v8749_v50 = vunpack.i.h.bf16 %v8747_v39 }
 0x604   : > { %v10174_v31 = vpop.f32.mrf.mxu1 }
 0x605   : > { %14262 = vst [vmem:[#allocation4_spill] sm:$0xff] %v10174_v31  ;;  %2596 = vmatpush.msra.mxu3 %v8748_v61  ;;  %v1917_v61 = vmul.f32 1.442695, %v1907_v38 }
 0x606   : > { %v10176_v3 = vpop.eup %8956 }
 0x607   : > { %2597 = vmatpush.msra.mxu3 %v8749_v50  ;;  %v1932_v2 = vsel %vm962_vm12, %v10176_v3, 0.0  ;;  %v10182_v24 = vpop.eup %8958  ;;  %8962 = vpow2.f32 %v1917_v61 }
 0x608   : > { %1933 = vadd.xlane.f32.xlu1 %v1932_v2  ;;  %v1405_v5 = vsel %vm962_vm12, %v10182_v24, 0.0  ;;  %v10192_v52 = vpop.eup %8960 }
 0x609   : > { %v1408_v9 = vsel %vm962_vm12, %v10192_v52, 0.0 }
 0x60c   : > { %v2316_v27 = vpop.f32.mrf.mxu1 }
 0x60d   : > { %v10186_v48 = vmul.f32 0.35355338, %v2316_v27  ;;  %v10228_v57 = vpop.eup %8962 }
 0x60e   : > { %v1935_v27 = vsel %vm962_vm12, %v10228_v57, 0.0 }
 0x60f   : > { %v2348_v34 = vsel %vm962_vm12, %v10186_v48, -inf }
 0x610   : > { %1406 = vadd.xlane.f32.xlu1 %v1405_v5  ;;  %2349 = vmax.xlane.f32.xlu2 %v2348_v34  ;;  %v10236_v5 = vpop.xlane.xlu1 %1894 }
 0x614   : > { %v2319_v6 = vpop.f32.mrf.mxu1 }
 0x615   : > { %v10194_v7 = vmul.f32 0.35355338, %v2319_v6 }
 0x617   : > { %v2351_v8 = vsel %vm962_vm12, %v10194_v7, -inf }
 0x618   : > { %1409 = vadd.xlane.f32.xlu1 %v1408_v9  ;;  %2352 = vmax.xlane.f32.xlu2 %v2351_v8  ;;  %v10244_v8 = vpop.xlane.xlu1 %1897 }
 0x619   : > { %v10208_v47 = vpop.xlane.xlu0 %1424 }
 0x61c   : > { %v2322_v33 = vpop.f32.mrf.mxu1 }
 0x61d   : > { %v10202_v12 = vmul.f32 0.35355338, %v2322_v33 }
 0x61f   : > { %v2354_v14 = vsel %vm962_vm12, %v10202_v12, -inf }
 0x620   : > { %2355 = vmax.xlane.f32.xlu0 %v2354_v14 }
 0x621   : > { %v10214_v19 = vpop.xlane.xlu0 %1427 }
 0x624   : > { %v2325_v49 = vpop.f32.mrf.mxu1 }
 0x625   : > { %v10222_v50 = vmul.f32 0.35355338, %v2325_v49  ;;  %v10250_v49 = vpop.xlane.xlu1 %1900 }
 0x627   : > { %v2357_v2 = vsel %vm962_vm12, %v10222_v50, -inf }
 0x62c   : > { %v2328_v42 = vpop.f32.mrf.mxu1 }
 0x62d   : > { %v10232_v44 = vmul.f32 0.35355338, %v2328_v42 }
 0x62f   : > { %v2360_v34 = vsel %vm962_vm12, %v10232_v44, -inf }
 0x630   : > { %8766 = vrot.lane.b32.xlu2 %v9726_v35, %s14228_s21  ;;  %v10218_v60 = vpop.xlane.xlu0 %1930 }
 0x631   : > { %8761 = vrot.lane.b32.xlu1 %v9726_v35, %s14230_s22 }
 0x634   : > { %8756 = vrot.lane.b32.xlu0 %v9756_v0, %s14228_s21  ;;  %v2331_v23 = vpop.f32.mrf.mxu1 }
 0x635   : > { %v10240_v6 = vmul.f32 0.35355338, %v2331_v23 }
 0x637   : > { %v2363_v9 = vsel %vm962_vm12, %v10240_v6, -inf }
 0x63c   : > { %v2334_v36 = vpop.f32.mrf.mxu1 }
 0x63d   : > { %v10246_v33 = vmul.f32 0.35355338, %v2334_v36 }
 0x63f   : > { %v2366_v14 = vsel %vm962_vm12, %v10246_v33, -inf }
 0x643   : > { %v8742_v51 = vpop.permute.xlu0 %8741 }
 0x644   : > { %v8743_v18 = vunpack.i.l.bf16 %v8742_v51  ;;  %v8744_v29 = vunpack.i.h.bf16 %v8742_v51  ;;  %v2337_v0 = vpop.f32.mrf.mxu1 }
 0x645   : > { %v10224_v41 = vmul.f32 0.35355338, %v2337_v0 }
 0x646   : > { %2129 = vmatpush.msra.mxu0 %v8743_v18 }
 0x647   : > { %v2369_v15 = vsel %vm962_vm12, %v10224_v41, -inf }
 0x648   : > { %2130 = vmatpush.msra.mxu0 %v8744_v29 }
 0x64b   : > { %v8752_v59 = vpop.permute.xlu0 %8751 }
 0x64c   : > { %v8753_v35 = vunpack.i.l.bf16 %v8752_v59  ;;  %v8754_v39 = vunpack.i.h.bf16 %v8752_v59 }
 0x64e   : > { %2131 = vmatpush.msra.mxu0 %v8753_v35 }
 0x650   : > { %2132 = vmatpush.msra.mxu0 %v8754_v39 }
 0x659   : > { %2358 = vmax.xlane.f32.xlu2 %v2357_v2 }
 0x65b   : > { %2370 = vmax.xlane.f32.xlu1 %v2369_v15 }
 0x65e   : > { %1936 = vadd.xlane.f32.xlu0 %v1935_v27 }
 0x661   : > { %2361 = vmax.xlane.f32.xlu2 %v2360_v34 }
 0x669   : > { %2364 = vmax.xlane.f32.xlu2 %v2363_v9 }
 0x671   : > { %2367 = vmax.xlane.f32.xlu2 %v2366_v14 }
 0x67b   : > { %v10252_v42 = vpop.xlane.xlu1 %1933 }
 0x683   : > { %v1407_v51 = vpop.xlane.xlu1 %1406  ;;  %v2350_v18 = vpop.xlane.xlu2 %2349 }
 0x684   : > { %8964 = vrcp.f32 %v1407_v51  ;;  %v2372_v23 = vsub.f32 %v10186_v48, %v2350_v18  ;;  %v1440_v15 = vand.u32 2147483648, %v1407_v51  ;;  %v1438_v14 = vand.u32 2147483647, %v1407_v51 }
 0x685   : > { %8966 = vrcp.f32 %v10172_v62  ;;  %vm1434_vm5 = vweird.f32 %v1407_v51 }
 0x686   : > { %v2380_v29 = vmul.f32 1.442695, %v2372_v23  ;;  %vm1439_vm7 = vcmp.eq.f32.partialorder %v1438_v14, 8.507059e+37 }
 0x688   : > { %8968 = vpow2.f32 %v2380_v29  ;;  %v1441_v29 = vor.u32 1.1754944e-38, %v1440_v15 }
 0x689   : > { %8771 = vrot.lane.b32.xlu2 %v9762_v1, %s14230_s22 }
 0x68a   : > { %v8965_v36 = vpop.eup %8964 }
 0x68b   : > { %v10258_v59 = vpop.eup %8966  ;;  %v1430_v38 = vmul.f32 %v8965_v36, %v1407_v51  ;;  %v1410_v35 = vpop.xlane.xlu1 %1409  ;;  %vm1435_vm4 = vweird.f32 %v8965_v36 }
 0x68c   : > { %v2353_v39 = vpop.xlane.xlu2 %2352  ;;  %8970 = vrcp.f32 %v1410_v35  ;;  %v1460_v2 = vmul.f32 %v10258_v59, %v10172_v62  ;;  %vm1436_vm6 = vmor %vm1434_vm5, %vm1435_vm4  ;;  %vm1449_vm9 = vweird.f32 %v1410_v35  ;;  %vm1465_vm13 = vweird.f32 %v10258_v59 }
 0x68d   : > { %v2373_v61 = vsub.f32 %v10194_v7, %v2353_v39  ;;  %8972 = vrcp.f32 %v10184_v55  ;;  %v1431_v0 = vsub.f32 1.0, %v1430_v38  ;;  %vm1466_vm1 = vmor %vm1464_vm15, %vm1465_vm13  ;;  %vm1479_vm4 = vweird.f32 %v10184_v55 }
 0x68e   : > { %v10262_v48 = vpop.eup %8968  ;;  %v1461_v23 = vsub.f32 1.0, %v1460_v2 }
 0x68f   : > { %v2382_v27 = vmul.f32 1.442695, %v2373_v61  ;;  %v1432_v34 = vmul.f32 %v8965_v36, %v1431_v0  ;;  %v2396_v9 = vsel %vm962_vm12, %v10262_v48, 0.0 }
 0x690   : > { %2397 = vadd.xlane.f32.xlu1 %v2396_v9  ;;  %v1462_v2 = vmul.f32 %v10258_v59, %v1461_v23 }
 0x691   : > { %8974 = vpow2.f32 %v2382_v27  ;;  %v1433_v7 = vadd.f32 %v8965_v36, %v1432_v34  ;;  %v1455_v27 = vand.u32 2147483648, %v1410_v35 }
 0x692   : > { %v8971_v18 = vpop.eup %8970  ;;  %8976 = vrcp.f32 %v10163_v32 }
 0x693   : > { %v10268_v38 = vpop.eup %8972  ;;  %v1445_v39 = vmul.f32 %v8971_v18, %v1410_v35  ;;  %v1437_v20 = vsel %vm1436_vm6, %v8965_v36, %v1433_v7  ;;  %vm1450_vm8 = vweird.f32 %v8971_v18  ;;  %v1456_v34 = vor.u32 1.1754944e-38, %v1455_v27 }
 0x694   : > { %v1442_v61 = vsel %vm1439_vm7, %v1441_v29, %v1437_v20  ;;  %v1475_v51 = vmul.f32 %v10268_v38, %v10184_v55  ;;  %v1453_v20 = vand.u32 2147483647, %v1410_v35  ;;  %vm1451_vm10 = vmor %vm1449_vm9, %vm1450_vm8  ;;  %v1463_v7 = vadd.f32 %v10258_v59, %v1462_v2 }
 0x695   : > { %v1446_v0 = vsub.f32 1.0, %v1445_v39  ;;  %v1443_v31 = vmul.f32 %v10182_v24, %v1442_v61  ;;  %v1470_v29 = vand.u32 2147483648, %v10172_v62  ;;  %v2356_v39 = vpop.xlane.xlu0 %2355  ;;  %v1468_v35 = vand.u32 2147483647, %v10172_v62 }
 0x696   : > { %v1476_v9 = vsub.f32 1.0, %v1475_v51  ;;  %vm1454_vm14 = vcmp.eq.f32.partialorder %v1453_v20, 8.507059e+37  ;;  %8978 = vrcp.f32 %v10206_v17  ;;  %v2374_v27 = vsub.f32 %v10202_v12, %v2356_v39 }
 0x697   : > { %v10271_v58 = vpop.eup %8974  ;;  %8192 = vmatmul.msk.f32.vlgmr.msrb.gmra.mxu0 %vm962_vm12, %v1443_v31  ;;  %v1447_v15 = vmul.f32 %v8971_v18, %v1446_v0  ;;  %v1467_v0 = vsel %vm1466_vm1, %v10258_v59, %v1463_v7  ;;  %v1471_v2 = vor.u32 1.1754944e-38, %v1470_v29  ;;  %vm1469_vm2 = vcmp.eq.f32.partialorder %v1468_v35, 8.507059e+37 }
 0x698   : > { %v2399_v36 = vsel %vm962_vm12, %v10271_v58, 0.0  ;;  %v10282_v23 = vpop.eup %8976  ;;  %v1477_v51 = vmul.f32 %v10268_v38, %v1476_v9  ;;  %vm1480_vm3 = vweird.f32 %v10268_v38  ;;  %v1483_v12 = vand.u32 2147483647, %v10184_v55 }
 0x699   : > { %2400 = vadd.xlane.f32.xlu1 %v2399_v36  ;;  %v1448_v24 = vadd.f32 %v8971_v18, %v1447_v15  ;;  %8980 = vrcp.f32 %v10208_v47  ;;  %vm1481_vm5 = vmor %vm1479_vm4, %vm1480_vm3  ;;  %vm1495_vm7 = vweird.f32 %v10282_v23  ;;  %vm1494_vm8 = vweird.f32 %v10163_v32 }
 0x69a   : > { %v1478_v62 = vadd.f32 %v10268_v38, %v1477_v51  ;;  %vm1484_vm6 = vcmp.eq.f32.partialorder %v1483_v12, 8.507059e+37  ;;  %vm1496_vm9 = vmor %vm1494_vm8, %vm1495_vm7  ;;  %vm1524_vm3 = vweird.f32 %v10208_v47  ;;  %vm1539_vm7 = vweird.f32 %v10214_v19 }
 0x69b   : > { %v1452_v14 = vsel %vm1451_vm10, %v8971_v18, %v1448_v24  ;;  %v1490_v18 = vmul.f32 %v10282_v23, %v10163_v32  ;;  %v2384_v24 = vmul.f32 1.442695, %v2374_v27 }
 0x69c   : > { %v1457_v31 = vsel %vm1454_vm14, %v1456_v34, %v1452_v14  ;;  %v10297_v20 = vpop.eup %8978  ;;  %v1485_v14 = vand.u32 2147483648, %v10184_v55  ;;  %v1482_v39 = vsel %vm1481_vm5, %v10268_v38, %v1478_v62  ;;  %v8767_v55 = vpop.permute.xlu2 %8766  ;;  %vm1509_vm14 = vweird.f32 %v10206_v17 }
 0x69d   : > { %v1458_v61 = vmul.f32 %v10192_v52, %v1457_v31  ;;  %v1472_v52 = vsel %vm1469_vm2, %v1471_v2, %v1467_v0  ;;  %v1491_v36 = vsub.f32 1.0, %v1490_v18  ;;  %v1505_v31 = vmul.f32 %v10297_v20, %v10206_v17 }
 0x69e   : > { %v1473_v59 = vmul.f32 %v10070_v10, %v1472_v52  ;;  %8982 = vpow2.f32 %v2384_v24  ;;  %v1486_v35 = vor.u32 1.1754944e-38, %v1485_v14  ;;  %v8768_v27 = vunpack.i.l.bf16 %v8767_v55 }
 0x69f   : > { %8193 = vmatmul.msk.f32.gmra.mxu0 %vm962_vm12, %v1458_v61  ;;  %v1492_v10 = vmul.f32 %v10282_v23, %v1491_v36  ;;  %v1909_v61 = vsub.f32 %v10100_v40, %v10236_v5  ;;  %v1506_v51 = vsub.f32 1.0, %v1505_v31  ;;  %v10313_v38 = vpop.eup %8980  ;;  %v1500_v40 = vand.u32 2147483648, %v10163_v32 }
 0x6a0   : > { %v1487_v0 = vsel %vm1484_vm6, %v1486_v35, %v1482_v39  ;;  %v8769_v5 = vunpack.i.h.bf16 %v8767_v55  ;;  %8984 = vrcp.f32 %v10214_v19  ;;  %v1520_v24 = vmul.f32 %v10313_v38, %v10208_v47 }
 0x6a1   : > { %v1493_v2 = vadd.f32 %v10282_v23, %v1492_v10  ;;  %v1921_v52 = vmul.f32 1.442695, %v1909_v61  ;;  %v1488_v36 = vmul.f32 %v10078_v11, %v1487_v0  ;;  %v1507_v14 = vmul.f32 %v10297_v20, %v1506_v51 }
 0x6a2   : > { %v1910_v11 = vsub.f32 %v10106_v45, %v10244_v8  ;;  %vm1510_vm13 = vweird.f32 %v10297_v20  ;;  %v1911_v55 = vsub.f32 %v10113_v46, %v10250_v49  ;;  %vm1525_vm2 = vweird.f32 %v10313_v38 }
 0x6a3   : > { %v8762_v15 = vpop.permute.xlu1 %8761  ;;  %8986 = vpow2.f32 %v1921_v52  ;;  %vm1511_vm15 = vmor %vm1509_vm14, %vm1510_vm13  ;;  %v1528_v46 = vand.u32 2147483647, %v10208_v47  ;;  %vm1958_vm13 = vweird.f32 %v10218_v60 }
 0x6a4   : > { %v8763_v34 = vunpack.i.l.bf16 %v8762_v15  ;;  %v8764_v9 = vunpack.i.h.bf16 %v8762_v15  ;;  %v1498_v15 = vand.u32 2147483647, %v10163_v32  ;;  %v10319_v62 = vpop.eup %8982  ;;  %v1501_v32 = vor.u32 1.1754944e-38, %v1500_v40  ;;  %vm1526_vm4 = vmor %vm1524_vm3, %vm1525_vm2 }
 0x6a5   : > { %v1923_v31 = vmul.f32 1.442695, %v1910_v11  ;;  %v1925_v51 = vmul.f32 1.442695, %v1911_v55  ;;  %vm1529_vm5 = vcmp.eq.f32.partialorder %v1528_v46, 8.507059e+37  ;;  %vm1973_vm2 = vweird.f32 %v10252_v42 }
 0x6a6   : > { %2133 = vmatpush.msra.mxu0 %v8763_v34  ;;  %v8757_v7 = vpop.permute.xlu0 %8756  ;;  %v1497_v34 = vsel %vm1496_vm9, %v10282_v23, %v1493_v2  ;;  %vm1499_vm10 = vcmp.eq.f32.partialorder %v1498_v15, 8.507059e+37  ;;  %v8985_v23 = vpop.eup %8984 }
 0x6a7   : > { %v8758_v29 = vunpack.i.l.bf16 %v8757_v7  ;;  %8194 = vmatmul.msk.f32.gmra.mxu0 %vm962_vm12, %v1473_v59  ;;  %v8759_v18 = vunpack.i.h.bf16 %v8757_v7  ;;  %v2402_v59 = vsel %vm962_vm12, %v10319_v62, 0.0  ;;  %v1502_v12 = vsel %vm1499_vm10, %v1501_v32, %v1497_v34 }
 0x6a8   : > { %2134 = vmatpush.msra.mxu0 %v8764_v9  ;;  %v1521_v9 = vsub.f32 1.0, %v1520_v24  ;;  %v1508_v7 = vadd.f32 %v10297_v20, %v1507_v14  ;;  %v1503_v45 = vmul.f32 %v10072_v21, %v1502_v12  ;;  %v1535_v39 = vmul.f32 %v8985_v23, %v10214_v19 }
 0x6a9   : > { %2598 = vmatpush.msra.mxu3 %v8758_v29  ;;  %v1515_v29 = vand.u32 2147483648, %v10206_v17  ;;  %v10339_v8 = vpop.eup %8986  ;;  %8988 = vpow2.f32 %v1923_v31  ;;  %vm1540_vm6 = vweird.f32 %v8985_v23  ;;  %v1543_v24 = vand.u32 2147483647, %v10214_v19 }
 0x6aa   : > { %v1512_v10 = vsel %vm1511_vm15, %v10297_v20, %v1508_v7  ;;  %v1522_v61 = vmul.f32 %v10313_v38, %v1521_v9  ;;  %v1941_v35 = vsel %vm962_vm12, %v10339_v8, 0.0  ;;  %v1530_v20 = vand.u32 2147483648, %v10208_v47  ;;  %vm1541_vm8 = vmor %vm1539_vm7, %vm1540_vm6 }
 0x6ab   : > { %2599 = vmatpush.msra.mxu3 %v8759_v18  ;;  %v1516_v21 = vor.u32 1.1754944e-38, %v1515_v29  ;;  %v1536_v18 = vsub.f32 1.0, %v1535_v39  ;;  %8990 = vpow2.f32 %v1925_v51  ;;  %v1545_v47 = vand.u32 2147483648, %v10214_v19 }
 0x6ac   : > { %v1523_v0 = vadd.f32 %v10313_v38, %v1522_v61  ;;  %v1531_v40 = vor.u32 1.1754944e-38, %v1530_v20  ;;  %v1908_v34 = vsub.f32 %v10083_v30, %v10196_v4  ;;  %vm1544_vm9 = vcmp.eq.f32.partialorder %v1543_v24, 8.507059e+37 }
 0x6ad   : > { %2600 = vmatpush.msra.mxu3 %v8768_v27  ;;  %v1537_v52 = vmul.f32 %v8985_v23, %v1536_v18  ;;  %v1546_v11 = vor.u32 1.1754944e-38, %v1545_v47  ;;  %v1912_v30 = vsub.f32 %v10093_v43, %v10165_v63 }
 0x6ae   : > { %v1527_v2 = vsel %vm1526_vm4, %v10313_v38, %v1523_v0 }
 0x6af   : > { %8195 = vmatmul.msk.f32.gmra.mxu0 %vm962_vm12, %v1488_v36  ;;  %2601 = vmatpush.msra.mxu3 %v8769_v5  ;;  %v10355_v49 = vpop.eup %8988  ;;  %v1538_v36 = vadd.f32 %v8985_v23, %v1537_v52  ;;  %v1927_v29 = vmul.f32 1.442695, %v1912_v30 }
 0x6b0   : > { %v1944_v5 = vsel %vm962_vm12, %v10355_v49, 0.0 }
 0x6b1   : > { %v10365_v38 = vpop.eup %8990  ;;  %v1542_v14 = vsel %vm1541_vm8, %v8985_v23, %v1538_v36 }
 0x6b2   : > { %8776 = vrot.lane.b32.xlu1 %v9762_v1, %s14228_s21  ;;  %2403 = vadd.xlane.f32.xlu2 %v2402_v59  ;;  %v1513_v1 = vand.u32 2147483647, %v10206_v17  ;;  %v1947_v32 = vsel %vm962_vm12, %v10365_v38, 0.0  ;;  %v1919_v59 = vmul.f32 1.442695, %v1908_v34  ;;  %s14338_s21 = smov 72  }
 0x6b3   : > { %v1962_v34 = vand.u32 2147483647, %v10218_v60 }
 0x6b4   : > { %vm1514_vm1 = vcmp.eq.f32.partialorder %v1513_v1, 8.507059e+37  ;;  %8992 = vpow2.f32 %v1919_v59 }
 0x6b5   : > { %v1517_v17 = vsel %vm1514_vm1, %v1516_v21, %v1512_v10  ;;  %8994 = vrcp.f32 %v10218_v60  ;;  %vm1963_vm15 = vcmp.eq.f32.partialorder %v1962_v34, 8.507059e+37 }
 0x6b6   : > { %v1518_v27 = vmul.f32 %v10087_v54, %v1517_v17  ;;  %v1532_v54 = vsel %vm1529_vm5, %v1531_v40, %v1527_v2 }
 0x6b7   : > { %8196 = vmatmul.msk.f32.gmra.mxu0 %vm962_vm12, %v1503_v45  ;;  %v1533_v15 = vmul.f32 %v10122_v56, %v1532_v54  ;;  %v1547_v56 = vsel %vm1544_vm9, %v1546_v11, %v1542_v14 }
 0x6b8   : > { %v1548_v9 = vmul.f32 %v10128_v13, %v1547_v56 }
 0x6ba   : > { %1942 = vadd.xlane.f32.xlu2 %v1941_v35 }
 0x6bf   : > { %8197 = vmatmul.msk.f32.gmra.mxu0 %vm962_vm12, %v1518_v27 }
 0x6c2   : > { %1945 = vadd.xlane.f32.xlu2 %v1944_v5 }
 0x6c7   : > { %8198 = vmatmul.msk.f32.gmra.mxu0 %vm962_vm12, %v1533_v15  ;;  %v1964_v15 = vand.u32 2147483648, %v10218_v60 }
 0x6c9   : > { %v1965_v56 = vor.u32 1.1754944e-38, %v1964_v15 }
 0x6ca   : > { %1948 = vadd.xlane.f32.xlu2 %v1947_v32 }
 0x6cc   : > { %v2359_v12 = vpop.xlane.xlu2 %2358 }
 0x6cd   : > { %v2375_v19 = vsub.f32 %v10222_v50, %v2359_v12  ;;  %v10379_v50 = vpop.eup %8992 }
 0x6ce   : > { %v2371_v7 = vpop.xlane.xlu1 %2370  ;;  %v8995_v1 = vpop.eup %8994  ;;  %v1938_v61 = vsel %vm962_vm12, %v10379_v50, 0.0 }
 0x6cf   : > { %v2386_v4 = vmul.f32 1.442695, %v2375_v19  ;;  %v2379_v23 = vsub.f32 %v10224_v41, %v2371_v7  ;;  %8199 = vmatmul.msk.f32.gmra.mxu0 %vm962_vm12, %v1548_v9  ;;  %v1954_v10 = vmul.f32 %v8995_v1, %v10218_v60  ;;  %vm1959_vm10 = vweird.f32 %v8995_v1 }
 0x6d0   : > { %vm1960_vm14 = vmor %vm1958_vm13, %vm1959_vm10 }
 0x6d1   : > { %8996 = vpow2.f32 %v2386_v4  ;;  %v2394_v31 = vmul.f32 1.442695, %v2379_v23  ;;  %v10396_v35 = vpop.xlane.xlu0 %1936  ;;  %v1955_v0 = vsub.f32 1.0, %v1954_v10  ;;  %v1979_v4 = vand.u32 2147483648, %v10252_v42 }
 0x6d2   : > { %v1994_v10 = vand.u32 2147483648, %v10396_v35  ;;  %vm1988_vm6 = vweird.f32 %v10396_v35 }
 0x6d3   : > { %8998 = vpow2.f32 %v2394_v31  ;;  %v1956_v46 = vmul.f32 %v8995_v1, %v1955_v0 }
 0x6d4   : > { %v2362_v45 = vpop.xlane.xlu2 %2361  ;;  %9000 = vpow2.f32 %v1927_v29  ;;  %v1977_v29 = vand.u32 2147483647, %v10252_v42 }
 0x6d5   : > { %v2376_v13 = vsub.f32 %v10232_v44, %v2362_v45  ;;  %9002 = vrcp.f32 %v10252_v42  ;;  %v1957_v54 = vadd.f32 %v8995_v1, %v1956_v46 }
 0x6d6   : > { %vm1978_vm4 = vcmp.eq.f32.partialorder %v1977_v29, 8.507059e+37 }
 0x6d7   : > { %v10382_v39 = vpop.eup %8996  ;;  %v2388_v43 = vmul.f32 1.442695, %v2376_v13 }
 0x6d8   : > { %v2405_v63 = vsel %vm962_vm12, %v10382_v39, 0.0 }
 0x6d9   : > { %v10387_v41 = vpop.eup %8998  ;;  %9004 = vpow2.f32 %v2388_v43  ;;  %2406 = vadd.xlane.f32.xlu0 %v2405_v63  ;;  %v853_v43 = vld [vmem:[%s14214_s5 + $0x8] sm:$0xff] }
 0x6da   : > { %v2417_v44 = vsel %vm962_vm12, %v10387_v41, 0.0  ;;  %v10394_v21 = vpop.eup %9000  ;;  %9006 = vrcp.f32 %v10396_v35  ;;  %1677 = vmatpush.msrb.mxu2 %v853_v43 }
 0x6db   : > { %2418 = vadd.xlane.f32.xlu2 %v2417_v44  ;;  %v9003_v18 = vpop.eup %9002  ;;  %v1950_v52 = vsel %vm962_vm12, %v10394_v21, 0.0 }
 0x6dc   : > { %1939 = vadd.xlane.f32.xlu1 %v1938_v61  ;;  %v2365_v55 = vpop.xlane.xlu2 %2364  ;;  %v1969_v2 = vmul.f32 %v9003_v18, %v10252_v42  ;;  %vm1974_vm1 = vweird.f32 %v9003_v18  ;;  %v1992_v61 = vand.u32 2147483647, %v10396_v35 }
 0x6dd   : > { %v2377_v17 = vsub.f32 %v10240_v6, %v2365_v55  ;;  %vm1975_vm3 = vmor %vm1973_vm2, %vm1974_vm1  ;;  %v1995_v55 = vor.u32 1.1754944e-38, %v1994_v10 }
 0x6de   : > { %v1970_v36 = vsub.f32 1.0, %v1969_v2  ;;  %vm1993_vm8 = vcmp.eq.f32.partialorder %v1992_v61, 8.507059e+37 }
 0x6df   : > { %v10399_v51 = vpop.eup %9004  ;;  %v2390_v20 = vmul.f32 1.442695, %v2377_v17 }
 0x6e0   : > { %v2408_v27 = vsel %vm962_vm12, %v10399_v51, 0.0  ;;  %v9007_v5 = vpop.eup %9006  ;;  %v1971_v32 = vmul.f32 %v9003_v18, %v1970_v36 }
 0x6e1   : > { %9008 = vpow2.f32 %v2390_v20  ;;  %2409 = vadd.xlane.f32.xlu0 %v2408_v27  ;;  %v1984_v11 = vmul.f32 %v9007_v5, %v10396_v35  ;;  %vm1989_vm5 = vweird.f32 %v9007_v5 }
 0x6e2   : > { %v1972_v7 = vadd.f32 %v9003_v18, %v1971_v32  ;;  %vm1990_vm7 = vmor %vm1988_vm6, %vm1989_vm5 }
 0x6e3   : > { %v1985_v9 = vsub.f32 1.0, %v1984_v11 }
 0x6e4   : > { %1951 = vadd.xlane.f32.xlu1 %v1950_v52  ;;  %v2368_v6 = vpop.xlane.xlu2 %2367  ;;  %v1976_v45 = vsel %vm1975_vm3, %v9003_v18, %v1972_v7 }
 0x6e5   : > { %v2378_v40 = vsub.f32 %v10246_v33, %v2368_v6  ;;  %v1961_v33 = vsel %vm1960_vm14, %v8995_v1, %v1957_v54  ;;  %v1986_v13 = vmul.f32 %v9007_v5, %v1985_v9  ;;  %v1980_v1 = vor.u32 1.1754944e-38, %v1979_v4 }
 0x6e6   : > { %v1966_v19 = vsel %vm1963_vm15, %v1965_v56, %v1961_v33 }
 0x6e7   : > { %v10408_v47 = vpop.eup %9008  ;;  %v2392_v24 = vmul.f32 1.442695, %v2378_v40  ;;  %v1967_v31 = vmul.f32 %v10137_v16, %v1966_v19  ;;  %v1981_v63 = vsel %vm1978_vm4, %v1980_v1, %v1976_v45  ;;  %v1987_v16 = vadd.f32 %v9007_v5, %v1986_v13 }
 0x6e8   : > { %v2411_v14 = vsel %vm962_vm12, %v10408_v47, 0.0  ;;  %v1982_v42 = vmul.f32 %v10176_v3, %v1981_v63 }
 0x6e9   : > { %9010 = vpow2.f32 %v2392_v24  ;;  %2412 = vadd.xlane.f32.xlu0 %v2411_v14  ;;  %v1991_v44 = vsel %vm1990_vm7, %v9007_v5, %v1987_v16 }
 0x6ea   : > { %v1996_v17 = vsel %vm1993_vm8, %v1995_v55, %v1991_v44 }
 0x6eb   : > { %v1997_v18 = vmul.f32 %v10228_v57, %v1996_v17 }
 0x6ec   : > { %v8772_v59 = vpop.permute.xlu2 %8771 }
 0x6ed   : > { %v8773_v12 = vunpack.i.l.bf16 %v8772_v59  ;;  %v8774_v60 = vunpack.i.h.bf16 %v8772_v59 }
 0x6ef   : > { %v10416_v30 = vpop.eup %9010  ;;  %2135 = vmatpush.msra.mxu0 %v8773_v12 }
 0x6f0   : > { %v2414_v23 = vsel %vm962_vm12, %v10416_v30, 0.0 }
 0x6f1   : > { %2415 = vadd.xlane.f32.xlu0 %v2414_v23  ;;  %2136 = vmatpush.msra.mxu0 %v8774_v60 }
 0x6f2   : > { %8232 = vmatmul.msk.f32.vlgmr.msra.gmra.mxu0 %vm962_vm12, %v1967_v31 }
 0x6fa   : > { %8233 = vmatmul.msk.f32.gmra.mxu0 %vm962_vm12, %v1982_v42 }
 0x702   : > { %8234 = vmatmul.msk.f32.gmra.mxu0 %vm962_vm12, %v1997_v18 }
 0x703   : > { %v2398_v0 = vpop.xlane.xlu1 %2397 }
 0x704   : > { %9012 = vrcp.f32 %v2398_v0  ;;  %v2431_v57 = vand.u32 2147483648, %v2398_v0  ;;  %vm2425_vm10 = vweird.f32 %v2398_v0  ;;  %v2429_v36 = vand.u32 2147483647, %v2398_v0 }
 0x706   : > { %v2432_v34 = vor.u32 1.1754944e-38, %v2431_v57  ;;  %vm2430_vm14 = vcmp.eq.f32.partialorder %v2429_v36, 8.507059e+37 }
 0x70a   : > { %v9013_v27 = vpop.eup %9012 }
 0x70b   : > { %v2421_v3 = vmul.f32 %v9013_v27, %v2398_v0  ;;  %vm2426_vm9 = vweird.f32 %v9013_v27 }
 0x70c   : > { %v2401_v20 = vpop.xlane.xlu1 %2400  ;;  %vm2427_vm13 = vmor %vm2425_vm10, %vm2426_vm9 }
 0x70d   : > { %9014 = vrcp.f32 %v2401_v20  ;;  %v2422_v2 = vsub.f32 1.0, %v2421_v3  ;;  %v2446_v19 = vand.u32 2147483648, %v2401_v20  ;;  %vm2440_vm1 = vweird.f32 %v2401_v20 }
 0x70e   : > { %v2444_v7 = vand.u32 2147483647, %v2401_v20 }
 0x70f   : > { %v2423_v52 = vmul.f32 %v9013_v27, %v2422_v2  ;;  %v2447_v4 = vor.u32 1.1754944e-38, %v2446_v19 }
 0x710   : > { %vm2445_vm3 = vcmp.eq.f32.partialorder %v2444_v7, 8.507059e+37 }
 0x711   : > { %v2424_v5 = vadd.f32 %v9013_v27, %v2423_v52 }
 0x713   : > { %v9015_v35 = vpop.eup %9014  ;;  %v2428_v15 = vsel %vm2427_vm13, %v9013_v27, %v2424_v5 }
 0x714   : > { %v1614_v46 = vpop.f32.mrf.mxu0  ;;  %v2436_v6 = vmul.f32 %v9015_v35, %v2401_v20  ;;  %v2433_v32 = vsel %vm2430_vm14, %v2432_v34, %v2428_v15  ;;  %vm2441_vm15 = vweird.f32 %v9015_v35 }
 0x715   : > { %8200 = vmatmul.msk.f32.vlgmr.msrb.gmra.mxu2 %vm14241_vm11, %v1614_v46  ;;  %v2434_v9 = vmul.f32 %v10262_v48, %v2433_v32  ;;  %vm2442_vm2 = vmor %vm2440_vm1, %vm2441_vm15  ;;  %v854_v46 = vld [vmem:[%s14214_s5 + $0x10] sm:$0xff] }
 0x716   : > { %v2437_v54 = vsub.f32 1.0, %v2436_v6  ;;  %2201 = vmatpush.msra.mxu2 %v854_v46 }
 0x718   : > { %v2438_v24 = vmul.f32 %v9015_v35, %v2437_v54 }
 0x71a   : > { %v2439_v59 = vadd.f32 %v9015_v35, %v2438_v24 }
 0x71c   : > { %v1617_v40 = vpop.f32.mrf.mxu0  ;;  %v2443_v60 = vsel %vm2442_vm2, %v9015_v35, %v2439_v59 }
 0x71d   : > { %8201 = vmatmul.msk.f32.gmra.mxu2 %vm14241_vm11, %v1617_v40  ;;  %v2448_v29 = vsel %vm2445_vm3, %v2447_v4, %v2443_v60 }
 0x71e   : > { %v2449_v1 = vmul.f32 %v10271_v58, %v2448_v29 }
 0x724   : > { %v8777_v14 = vpop.permute.xlu1 %8776  ;;  %v1620_v11 = vpop.f32.mrf.mxu0 }
 0x725   : > { %v8778_v33 = vunpack.i.l.bf16 %v8777_v14  ;;  %8202 = vmatmul.msk.f32.gmra.mxu2 %vm14241_vm11, %v1620_v11  ;;  %v2404_v56 = vpop.xlane.xlu2 %2403  ;;  %v8779_v12 = vunpack.i.h.bf16 %v8777_v14 }
 0x726   : > { %9016 = vrcp.f32 %v2404_v56  ;;  %v2461_v43 = vand.u32 2147483648, %v2404_v56  ;;  %v2459_v63 = vand.u32 2147483647, %v2404_v56  ;;  %vm2455_vm5 = vweird.f32 %v2404_v56 }
 0x727   : > { %2602 = vmatpush.msra.mxu3 %v8778_v33 }
 0x728   : > { %v2462_v42 = vor.u32 1.1754944e-38, %v2461_v43  ;;  %vm2460_vm7 = vcmp.eq.f32.partialorder %v2459_v63, 8.507059e+37 }
 0x729   : > { %2603 = vmatpush.msra.mxu3 %v8779_v12 }
 0x72a   : > { %8264 = vmatmul.msk.f32.vlgmr.msra.gmra.mxu3 %vm962_vm12, %v2434_v9 }
 0x72c   : > { %v9017_v23 = vpop.eup %9016  ;;  %v1623_v31 = vpop.f32.mrf.mxu0 }
 0x72d   : > { %v2451_v45 = vmul.f32 %v9017_v23, %v2404_v56  ;;  %8203 = vmatmul.msk.f32.gmra.mxu2 %vm14241_vm11, %v1623_v31  ;;  %vm2456_vm4 = vweird.f32 %v9017_v23  ;;  %v10447_v17 = vpop.xlane.xlu2 %1942 }
 0x72e   : > { %vm2457_vm6 = vmor %vm2455_vm5, %vm2456_vm4  ;;  %9018 = vrcp.f32 %v10447_v17  ;;  %v2024_v56 = vand.u32 2147483648, %v10447_v17  ;;  %vm2018_vm5 = vweird.f32 %v10447_v17 }
 0x72f   : > { %v2452_v13 = vsub.f32 1.0, %v2451_v45 }
 0x731   : > { %v2453_v48 = vmul.f32 %v9017_v23, %v2452_v13 }
 0x732   : > { %8265 = vmatmul.msk.f32.gmra.mxu3 %vm962_vm12, %v2449_v1 }
 0x733   : > { %v2454_v16 = vadd.f32 %v9017_v23, %v2453_v48 }
 0x734   : > { %v1626_v10 = vpop.f32.mrf.mxu0  ;;  %v10453_v3 = vpop.eup %9018 }
 0x735   : > { %8204 = vmatmul.msk.f32.gmra.mxu2 %vm14241_vm11, %v1626_v10  ;;  %v2458_v61 = vsel %vm2457_vm6, %v9017_v23, %v2454_v16  ;;  %v10451_v0 = vpop.xlane.xlu2 %1945  ;;  %v2014_v2 = vmul.f32 %v10453_v3, %v10447_v17  ;;  %vm2019_vm9 = vweird.f32 %v10453_v3 }
 0x736   : > { %v2463_v44 = vsel %vm2460_vm7, %v2462_v42, %v2458_v61  ;;  %vm10499_vm7 = vmor %vm2018_vm5, %vm2019_vm9 }
 0x737   : > { %v2464_v55 = vmul.f32 %v10319_v62, %v2463_v44  ;;  %v2015_v52 = vsub.f32 1.0, %v2014_v2 }
 0x739   : > { %v2016_v33 = vmul.f32 %v10453_v3, %v2015_v52 }
 0x73a   : > { %8266 = vmatmul.msk.f32.gmra.mxu3 %vm962_vm12, %v2464_v55 }
 0x73b   : > { %v2017_v45 = vadd.f32 %v10453_v3, %v2016_v33 }
 0x73c   : > { %v1629_v58 = vpop.f32.mrf.mxu0 }
 0x73d   : > { %8205 = vmatmul.msk.f32.gmra.mxu2 %vm14241_vm11, %v1629_v58  ;;  %v10462_v6 = vpop.xlane.xlu2 %1948 }
 0x744   : > { %v1632_v18 = vpop.f32.mrf.mxu0 }
 0x745   : > { %8206 = vmatmul.msk.f32.gmra.mxu2 %vm14241_vm11, %v1632_v18 }
 0x74c   : > { %v1635_v20 = vpop.f32.mrf.mxu0  ;;  %v2407_v27 = vpop.xlane.xlu0 %2406 }
 0x74d   : > { %9020 = vrcp.f32 %v2407_v27  ;;  %8207 = vmatmul.msk.f32.gmra.mxu2 %vm14241_vm11, %v1635_v20  ;;  %v2476_v24 = vand.u32 2147483648, %v2407_v27  ;;  %v2474_v14 = vand.u32 2147483647, %v2407_v27  ;;  %vm2470_vm10 = vweird.f32 %v2407_v27 }
 0x74e   : > { %9022 = vrcp.f32 %v10451_v0  ;;  %v10475_v4 = vpop.xlane.xlu2 %2418  ;;  %v2022_v20 = vand.u32 2147483647, %v10447_v17  ;;  %v2021_v17 = vsel %vm10499_vm7, %v10453_v3, %v2017_v45  ;;  %v2039_v3 = vand.u32 2147483648, %v10451_v0 }
 0x74f   : > { %v1940_v62 = vpop.xlane.xlu1 %1939  ;;  %v2477_v9 = vor.u32 1.1754944e-38, %v2476_v24  ;;  %vm2475_vm15 = vcmp.eq.f32.partialorder %v2474_v14, 8.507059e+37 }
 0x750   : > { %9024 = vrcp.f32 %v1940_v62  ;;  %v2009_v12 = vand.u32 2147483648, %v1940_v62  ;;  %v2007_v60 = vand.u32 2147483647, %v1940_v62  ;;  %vm2003_vm1 = vweird.f32 %v1940_v62 }
 0x752   : > { %v2010_v16 = vor.u32 1.1754944e-38, %v2009_v12  ;;  %vm2008_vm3 = vcmp.eq.f32.partialorder %v2007_v60, 8.507059e+37 }
 0x753   : > { %v9021_v35 = vpop.eup %9020 }
 0x754   : > { %v2466_v40 = vmul.f32 %v9021_v35, %v2407_v27  ;;  %v10464_v5 = vpop.xlane.xlu0 %2409  ;;  %v10466_v54 = vpop.eup %9022  ;;  %vm2471_vm8 = vweird.f32 %v9021_v35 }
 0x755   : > { %9026 = vrcp.f32 %v10464_v5  ;;  %v2029_v11 = vmul.f32 %v10466_v54, %v10451_v0  ;;  %vm2472_vm13 = vmor %vm2470_vm10, %vm2471_vm8  ;;  %v2491_v61 = vand.u32 2147483648, %v10464_v5  ;;  %vm2485_vm6 = vweird.f32 %v10464_v5 }
 0x756   : > { %v9025_v57 = vpop.eup %9024  ;;  %v2467_v36 = vsub.f32 1.0, %v2466_v40  ;;  %9028 = vrcp.f32 %v10462_v6  ;;  %vm2023_vm10 = vcmp.eq.f32.partialorder %v2022_v20, 8.507059e+37 }
 0x757   : > { %v1999_v15 = vmul.f32 %v9025_v57, %v1940_v62  ;;  %vm2004_vm14 = vweird.f32 %v9025_v57  ;;  %v2030_v43 = vsub.f32 1.0, %v2029_v11  ;;  %v10485_v10 = vpop.xlane.xlu1 %1951  ;;  %v2052_v62 = vand.u32 2147483647, %v10462_v6 }
 0x758   : > { %v2468_v34 = vmul.f32 %v9021_v35, %v2467_v36  ;;  %vm2005_vm2 = vmor %vm2003_vm1, %vm2004_vm14 }
 0x759   : > { %v2000_v32 = vsub.f32 1.0, %v1999_v15 }
 0x75a   : > { %v2469_v59 = vadd.f32 %v9021_v35, %v2468_v34 }
 0x75b   : > { %v9027_v19 = vpop.eup %9026  ;;  %v2001_v7 = vmul.f32 %v9025_v57, %v2000_v32 }
 0x75c   : > { %v2481_v23 = vmul.f32 %v9027_v19, %v10464_v5  ;;  %v10478_v31 = vpop.xlane.xlu0 %2412  ;;  %v2473_v29 = vsel %vm2472_vm13, %v9021_v35, %v2469_v59  ;;  %v10488_v44 = vpop.eup %9028  ;;  %vm2486_vm4 = vweird.f32 %v9027_v19  ;;  %v2031_v35 = vmul.f32 %v10466_v54, %v2030_v43 }
 0x75d   : > { %9030 = vrcp.f32 %v10478_v31  ;;  %v2478_v13 = vsel %vm2475_vm15, %v2477_v9, %v2473_v29  ;;  %v2002_v1 = vadd.f32 %v9025_v57, %v2001_v7  ;;  %v2044_v2 = vmul.f32 %v10488_v44, %v10462_v6  ;;  %vm2487_vm8 = vmor %vm2485_vm6, %vm2486_vm4 }
 0x75e   : > { %v2482_v48 = vsub.f32 1.0, %v2481_v23  ;;  %v2479_v63 = vmul.f32 %v10382_v39, %v2478_v13  ;;  %9032 = vrcp.f32 %v10475_v4  ;;  %v2489_v39 = vand.u32 2147483647, %v10464_v5 }
 0x75f   : > { %v2006_v42 = vsel %vm2005_vm2, %v9025_v57, %v2002_v1  ;;  %9034 = vrcp.f32 %v10485_v10  ;;  %v2025_v57 = vor.u32 1.1754944e-38, %v2024_v56  ;;  %v2045_v33 = vsub.f32 1.0, %v2044_v2 }
 0x760   : > { %8267 = vmatmul.msk.f32.gmra.mxu3 %vm962_vm12, %v2479_v63  ;;  %v2011_v55 = vsel %vm2008_vm3, %v2010_v16, %v2006_v42  ;;  %v2483_v58 = vmul.f32 %v9027_v19, %v2482_v48  ;;  %vm2490_vm9 = vcmp.eq.f32.partialorder %v2489_v39, 8.507059e+37  ;;  %v2506_v11 = vand.u32 2147483648, %v10478_v31 }
 0x761   : > { %v2012_v18 = vmul.f32 %v10379_v50, %v2011_v55  ;;  %v2492_v50 = vor.u32 1.1754944e-38, %v2491_v61  ;;  %v2026_v14 = vsel %vm2023_vm10, %v2025_v57, %v2021_v17  ;;  %v2032_v32 = vadd.f32 %v10466_v54, %v2031_v35 }
 0x762   : > { %v2484_v27 = vadd.f32 %v9027_v19, %v2483_v58  ;;  %vm2034_vm13 = vweird.f32 %v10466_v54  ;;  %vm2033_vm15 = vweird.f32 %v10451_v0  ;;  %v2037_v9 = vand.u32 2147483647, %v10451_v0 }
 0x763   : > { %v9031_v46 = vpop.eup %9030  ;;  %8235 = vmatmul.msk.f32.gmra.mxu0 %vm962_vm12, %v2012_v18  ;;  %vm2500_vm1 = vweird.f32 %v10478_v31  ;;  %vm10531_vm2 = vmor %vm2033_vm15, %vm2034_vm13  ;;  %v2040_v23 = vor.u32 1.1754944e-38, %v2039_v3  ;;  %v2046_v13 = vmul.f32 %v10488_v44, %v2045_v33  ;;  %v2054_v61 = vand.u32 2147483648, %v10462_v6 }
 0x764   : > { %v2496_v52 = vmul.f32 %v9031_v46, %v10478_v31  ;;  %v10511_v40 = vpop.xlane.xlu0 %2415  ;;  %v2488_v5 = vsel %vm2487_vm8, %v9027_v19, %v2484_v27  ;;  %v10513_v36 = vpop.eup %9032  ;;  %vm2501_vm14 = vweird.f32 %v9031_v46  ;;  %v2027_v19 = vmul.f32 %v10339_v8, %v2026_v14 }
 0x765   : > { %9036 = vrcp.f32 %v10511_v40  ;;  %v2493_v15 = vsel %vm2490_vm9, %v2492_v50, %v2488_v5  ;;  %v10521_v56 = vpop.eup %9034  ;;  %v2526_v59 = vmul.f32 %v10513_v36, %v10475_v4  ;;  %vm2502_vm3 = vmor %vm2500_vm1, %vm2501_vm14  ;;  %v2507_v8 = vor.u32 1.1754944e-38, %v2506_v11 }
 0x766   : > { %v2497_v24 = vsub.f32 1.0, %v2496_v52  ;;  %v2494_v34 = vmul.f32 %v10399_v51, %v2493_v15  ;;  %v2504_v51 = vand.u32 2147483647, %v10478_v31  ;;  %v2059_v45 = vmul.f32 %v10521_v56, %v10485_v10 }
 0x767   : > { %v2036_v0 = vsel %vm10531_vm2, %v10466_v54, %v2032_v32  ;;  %v2527_v31 = vsub.f32 1.0, %v2526_v59  ;;  %vm2038_vm5 = vcmp.eq.f32.partialorder %v2037_v9, 8.507059e+37  ;;  %v2521_v39 = vand.u32 2147483648, %v10511_v40  ;;  %v855_v32 = vld [vmem:[%s14214_s5 + $0x18] sm:$0xff] }
 0x768   : > { %8268 = vmatmul.msk.f32.gmra.mxu3 %vm962_vm12, %v2494_v34  ;;  %v2498_v12 = vmul.f32 %v9031_v46, %v2497_v24  ;;  %vm2505_vm4 = vcmp.eq.f32.partialorder %v2504_v51, 8.507059e+37  ;;  %v2041_v42 = vsel %vm2038_vm5, %v2040_v23, %v2036_v0  ;;  %v2060_v55 = vsub.f32 1.0, %v2059_v45  ;;  %2668 = vmatpush.msrb.mxu0 %v855_v32  ;;  %v9344_v34 = vld [vmem:[%s9538_s23 + $0x10] sm:$0xff] }
 0x769   : > { %v2047_v54 = vadd.f32 %v10488_v44, %v2046_v13  ;;  %vm2049_vm6 = vweird.f32 %v10488_v44  ;;  %v2519_v20 = vand.u32 2147483647, %v10511_v40  ;;  %v2042_v27 = vmul.f32 %v10355_v49, %v2041_v42 }
 0x76a   : > { %v2499_v7 = vadd.f32 %v9031_v46, %v2498_v12  ;;  %vm2048_vm8 = vweird.f32 %v10462_v6  ;;  %vm2515_vm9 = vweird.f32 %v10511_v40  ;;  %v2522_v50 = vor.u32 1.1754944e-38, %v2521_v39 }
 0x76b   : > { %v9037_v29 = vpop.eup %9036  ;;  %8236 = vmatmul.msk.f32.gmra.mxu0 %vm962_vm12, %v2027_v19  ;;  %vm10556_vm10 = vmor %vm2048_vm8, %vm2049_vm6  ;;  %v2055_v49 = vor.u32 1.1754944e-38, %v2054_v61  ;;  %v2061_v35 = vmul.f32 %v10521_v56, %v2060_v55  ;;  %vm2520_vm14 = vcmp.eq.f32.partialorder %v2519_v20, 8.507059e+37  ;;  %vm2531_vm15 = vweird.f32 %v10513_v36 }
 0x76c   : > { %v2511_v1 = vmul.f32 %v9037_v29, %v10511_v40  ;;  %v2503_v43 = vsel %vm2502_vm3, %v9031_v46, %v2499_v7  ;;  %vm2516_vm7 = vweird.f32 %v9037_v29  ;;  %v2051_v17 = vsel %vm10556_vm10, %v10488_v44, %v2047_v54 }
 0x76d   : > { %v2508_v48 = vsel %vm2505_vm4, %v2507_v8, %v2503_v43  ;;  %vm2517_vm13 = vmor %vm2515_vm9, %vm2516_vm7  ;;  %vm2053_vm1 = vcmp.eq.f32.partialorder %v2052_v62, 8.507059e+37  ;;  %v2536_v5 = vand.u32 2147483648, %v10475_v4  ;;  %vm2530_vm2 = vweird.f32 %v10475_v4  ;;  %v9342_v62 = vld [vmem:[%s9538_s23] sm:$0xff] }
 0x76e   : > { %v2512_v63 = vsub.f32 1.0, %v2511_v1  ;;  %v2509_v16 = vmul.f32 %v10408_v47, %v2508_v48  ;;  %v2528_v47 = vmul.f32 %v10513_v36, %v2527_v31  ;;  %v2056_v15 = vsel %vm2053_vm1, %v2055_v49, %v2051_v17  ;;  %vm10571_vm3 = vmor %vm2530_vm2, %vm2531_vm15 }
 0x76f   : > { %v2138_v58 = vpop.f32.mrf.mxu0  ;;  %v2534_v44 = vand.u32 2147483647, %v10475_v4  ;;  %v2062_v14 = vadd.f32 %v10521_v56, %v2061_v35  ;;  %vm2064_vm4 = vweird.f32 %v10521_v56  ;;  %v2069_v3 = vand.u32 2147483648, %v10485_v10 }
 0x770   : > { %8240 = vmatmul.msk.f32.vlgmr.msra.gmra.mxu2 %vm14241_vm11, %v2138_v58  ;;  %8269 = vmatmul.msk.f32.gmra.mxu3 %vm962_vm12, %v2509_v16  ;;  %v2513_v18 = vmul.f32 %v9037_v29, %v2512_v63  ;;  %v2529_v6 = vadd.f32 %v10513_v36, %v2528_v47  ;;  %v2057_v4 = vmul.f32 %v10365_v38, %v2056_v15  ;;  %v2537_v33 = vor.u32 1.1754944e-38, %v2536_v5  ;;  %v10615_v47 = vld [vmem:[%s14215_s6] ss:$0 sm:$0xff] }
 0x771   : > { %vm2063_vm5 = vweird.f32 %v10485_v10  ;;  %v2067_v11 = vand.u32 2147483647, %v10485_v10  ;;  %vm2535_vm6 = vcmp.eq.f32.partialorder %v2534_v44, 8.507059e+37  ;;  %v2070_v12 = vor.u32 1.1754944e-38, %v2069_v3 }
 0x772   : > { %v2514_v46 = vadd.f32 %v9037_v29, %v2513_v18  ;;  %vm2065_vm7 = vmor %vm2063_vm5, %vm2064_vm4 }
 0x773   : > { %8237 = vmatmul.msk.f32.gmra.mxu0 %vm962_vm12, %v2042_v27  ;;  %vm2068_vm8 = vcmp.eq.f32.partialorder %v2067_v11, 8.507059e+37 }
 0x774   : > { %v2518_v52 = vsel %vm2517_vm13, %v9037_v29, %v2514_v46 }
 0x775   : > { %v2523_v40 = vsel %vm2520_vm14, %v2522_v50, %v2518_v52  ;;  %v9343_v52 = vld [vmem:[%s9538_s23 + $0x8] sm:$0xff] }
 0x776   : > { %v2524_v57 = vmul.f32 %v10416_v30, %v2523_v40  ;;  %v2533_v30 = vsel %vm10571_vm3, %v10513_v36, %v2529_v6  ;;  %v2066_v36 = vsel %vm2065_vm7, %v10521_v56, %v2062_v14 }
 0x777   : > { %v2141_v24 = vpop.f32.mrf.mxu0  ;;  %v2538_v59 = vsel %vm2535_vm6, %v2537_v33, %v2533_v30  ;;  %v2071_v51 = vsel %vm2068_vm8, %v2070_v12, %v2066_v36 }
 0x778   : > { %8241 = vmatmul.msk.f32.gmra.mxu2 %vm14241_vm11, %v2141_v24  ;;  %8270 = vmatmul.msk.f32.gmra.mxu3 %vm962_vm12, %v2524_v57  ;;  %v2539_v38 = vmul.f32 %v10387_v41, %v2538_v59  ;;  %v2072_v10 = vmul.f32 %v10394_v21, %v2071_v51  ;;  %v9345_v59 = vld [vmem:[%s9538_s23 + $0x18] sm:$0xff] }
 0x77b   : > { %8238 = vmatmul.msk.f32.gmra.mxu0 %vm962_vm12, %v2057_v4 }
 0x77f   : > { %v2144_v19 = vpop.f32.mrf.mxu0 }
 0x780   : > { %8242 = vmatmul.msk.f32.gmra.mxu2 %vm14241_vm11, %v2144_v19  ;;  %8271 = vmatmul.msk.f32.gmra.mxu3 %vm962_vm12, %v2539_v38 }
 0x783   : > { %8239 = vmatmul.msk.f32.gmra.mxu0 %vm962_vm12, %v2072_v10 }
 0x798   : > { %v1679_v41 = vpop.f32.mrf.mxu2 }
 0x799   : > { %v1745_v39 = vadd.f32 %v10143_v37, %v1679_v41 }
 0x7a0   : > { %v1682_v60 = vpop.f32.mrf.mxu2 }
 0x7a1   : > { %v1748_v2 = vadd.f32 %v10147_v22, %v1682_v60 }
 0x7a8   : > { %v1685_v21 = vpop.f32.mrf.mxu2 }
 0x7a9   : > { %v1751_v5 = vadd.f32 %v10151_v25, %v1685_v21 }
 0x7ad   : > { %v2605_v9 = vpop.f32.mrf.mxu3 }
 0x7ae   : > { %8272 = vmatmul.msk.f32.vlgmr.msrb.gmra.mxu0 %vm14241_vm11, %v2605_v9 }
 0x7b0   : > { %v1688_v13 = vpop.f32.mrf.mxu2 }
 0x7b1   : > { %v1754_v4 = vadd.f32 %v10155_v53, %v1688_v13  ;;  %v9346_v53 = vld [vmem:[%s9538_s23 + $0x20] sm:$0xff]  ;;  %v14276_v13 = vld [vmem:[#allocation3_spill] sm:$0xff] }
 0x7b5   : > { %v2608_v7 = vpop.f32.mrf.mxu3 }
 0x7b6   : > { %8273 = vmatmul.msk.f32.gmra.mxu0 %vm14241_vm11, %v2608_v7 }
 0x7b8   : > { %v1691_v48 = vpop.f32.mrf.mxu2 }
 0x7b9   : > { %v1757_v38 = vadd.f32 %v10157_v28, %v1691_v48 }
 0x7bd   : > { %v2611_v56 = vpop.f32.mrf.mxu3 }
 0x7be   : > { %8274 = vmatmul.msk.f32.gmra.mxu0 %vm14241_vm11, %v2611_v56 }
 0x7c0   : > { %v1694_v42 = vpop.f32.mrf.mxu2 }
 0x7c1   : > { %v1760_v41 = vadd.f32 %v10161_v26, %v1694_v42  ;;  %v9348_v42 = vld [vmem:[%s9538_s23 + $0x30] sm:$0xff] }
 0x7c8   : > { %v1697_v61 = vpop.f32.mrf.mxu2 }
 0x7d0   : > { %v10609_v55 = vpop.f32.mrf.mxu2 }
 0x7e0   : > { %v2147_v23 = vpop.f32.mrf.mxu0 }
 0x7e1   : > { %8243 = vmatmul.msk.f32.gmra.mxu2 %vm14241_vm11, %v2147_v23 }
 0x7e3   : > { %v2614_v29 = vpop.f32.mrf.mxu3 }
 0x7e4   : > { %8275 = vmatmul.msk.f32.gmra.mxu0 %vm14241_vm11, %v2614_v29 }
 0x7e8   : > { %v2150_v45 = vpop.f32.mrf.mxu0 }
 0x7e9   : > { %8244 = vmatmul.msk.f32.gmra.mxu2 %vm14241_vm11, %v2150_v45 }
 0x7eb   : > { %v2617_v8 = vpop.f32.mrf.mxu3 }
 0x7ec   : > { %8276 = vmatmul.msk.f32.gmra.mxu0 %vm14241_vm11, %v2617_v8  ;;  %v9347_v8 = vld [vmem:[%s9538_s23 + $0x28] sm:$0xff] }
 0x7f0   : > { %v2153_v0 = vpop.f32.mrf.mxu0 }
 0x7f1   : > { %8245 = vmatmul.msk.f32.gmra.mxu2 %vm14241_vm11, %v2153_v0 }
 0x7f3   : > { %v2620_v31 = vpop.f32.mrf.mxu3  ;;  %v2203_v58 = vpop.f32.mrf.mxu2 }
 0x7f4   : > { %8277 = vmatmul.msk.f32.gmra.mxu0 %vm14241_vm11, %v2620_v31  ;;  %v2227_v54 = vadd.f32 %v2203_v58, %v1745_v39  ;;  %v1763_v31 = vadd.f32 %v14276_v13, %v1697_v61  ;;  %v2924_v13 = vld [vmem:[%s14218_s9 + $0x10] sm:$0xff] }
 0x7f8   : > { %v2156_v1 = vpop.f32.mrf.mxu0 }
 0x7f9   : > { %8246 = vmatmul.msk.f32.gmra.mxu2 %vm14241_vm11, %v2156_v1 }
 0x7fb   : > { %v2623_v43 = vpop.f32.mrf.mxu3  ;;  %v2206_v27 = vpop.f32.mrf.mxu2 }
 0x7fc   : > { %8278 = vmatmul.msk.f32.gmra.mxu0 %vm14241_vm11, %v2623_v43  ;;  %v2228_v17 = vadd.f32 %v2206_v27, %v1748_v2 }
 0x800   : > { %v2159_v63 = vpop.f32.mrf.mxu0 }
 0x801   : > { %8247 = vmatmul.msk.f32.gmra.mxu2 %vm14241_vm11, %v2159_v63 }
 0x803   : > { %v2626_v16 = vpop.f32.mrf.mxu3  ;;  %v2209_v40 = vpop.f32.mrf.mxu2 }
 0x804   : > { %8279 = vmatmul.msk.f32.gmra.mxu0 %vm14241_vm11, %v2626_v16  ;;  %v2229_v22 = vadd.f32 %v2209_v40, %v1751_v5 }
 0x82b   : > { %v2670_v18 = vpop.f32.mrf.mxu0 }
 0x82c   : > { %v2694_v20 = vadd.f32 %v2670_v18, %v2227_v54  ;;  %v14279_v18 = vld [vmem:[#allocation4_spill] sm:$0xff] }
 0x82e   : > { %v2702_v46 = vadd.f32 %v9342_v62, %v2694_v20  ;;  %v1766_v20 = vadd.f32 %v14279_v18, %v10609_v55 }
 0x830   : > { %v10620_v50 = vadd.f32 %v10615_v47, %v2702_v46  ;;  %v14280_v46 = vld [vmem:[#allocation2_spill] sm:$0xff] }
 0x832   : > { %14271 = vst [vmem:[#allocation5_spill] sm:$0xff] %v10620_v50  ;;  %v2724_v37 = vsel %vm577_vm0, %v10620_v50, 0.0 }
 0x833   : > { %v2673_v49 = vpop.f32.mrf.mxu0  ;;  %2725 = vadd.xlane.f32.xlu0 %v2724_v37 }
 0x834   : > { %v2695_v35 = vadd.f32 %v2673_v49, %v2228_v17 }
 0x836   : > { %v2703_v6 = vadd.f32 %v9343_v52, %v2695_v35  ;;  %v9349_v52 = vld [vmem:[%s9538_s23 + $0x38] sm:$0xff] }
 0x838   : > { %v10627_v57 = vadd.f32 %v10615_v47, %v2703_v6 }
 0x83a   : > { %14272 = vst [vmem:[#allocation6_spill] sm:$0xff] %v10627_v57  ;;  %v2727_v15 = vsel %vm577_vm0, %v10627_v57, 0.0 }
 0x83b   : > { %v2676_v44 = vpop.f32.mrf.mxu0  ;;  %2728 = vadd.xlane.f32.xlu1 %v2727_v15 }
 0x83c   : > { %v2696_v24 = vadd.f32 %v2676_v44, %v2229_v22 }
 0x83e   : > { %v2704_v14 = vadd.f32 %v9344_v34, %v2696_v24 }
 0x840   : > { %v10633_v30 = vadd.f32 %v10615_v47, %v2704_v14 }
 0x842   : > { %14273 = vst [vmem:[#allocation7_spill] sm:$0xff] %v10633_v30  ;;  %v2730_v3 = vsel %vm577_vm0, %v10633_v30, 0.0 }
 0x843   : > { %2731 = vadd.xlane.f32.xlu2 %v2730_v3 }
 0x861   : > { %v2679_v25 = vpop.f32.mrf.mxu0 }
 0x864   : > { %v2212_v33 = vpop.f32.mrf.mxu2 }
 0x865   : > { %v2230_v11 = vadd.f32 %v2212_v33, %v1754_v4 }
 0x867   : > { %v2697_v32 = vadd.f32 %v2679_v25, %v2230_v11 }
 0x869   : > { %v2705_v36 = vadd.f32 %v9345_v59, %v2697_v32  ;;  %v2682_v12 = vpop.f32.mrf.mxu0 }
 0x86b   : > { %v10641_v51 = vadd.f32 %v10615_v47, %v2705_v36 }
 0x86c   : > { %v2215_v19 = vpop.f32.mrf.mxu2 }
 0x86d   : > { %14274 = vst [vmem:[#allocation8_spill] sm:$0xff] %v10641_v51  ;;  %v2231_v10 = vadd.f32 %v2215_v19, %v1757_v38  ;;  %v2733_v9 = vsel %vm577_vm0, %v10641_v51, 0.0 }
 0x86e   : > { %2734 = vadd.xlane.f32.xlu0 %v2733_v9 }
 0x86f   : > { %v2698_v7 = vadd.f32 %v2682_v12, %v2231_v10 }
 0x871   : > { %v2706_v56 = vadd.f32 %v9346_v53, %v2698_v7  ;;  %v2685_v23 = vpop.f32.mrf.mxu0 }
 0x873   : > { %v10648_v60 = vadd.f32 %v10615_v47, %v2706_v56 }
 0x874   : > { %v2218_v28 = vpop.f32.mrf.mxu2 }
 0x875   : > { %14275 = vst [vmem:[#allocation9_spill] sm:$0xff] %v10648_v60  ;;  %v2232_v29 = vadd.f32 %v2218_v28, %v1760_v41  ;;  %v2736_v21 = vsel %vm577_vm0, %v10648_v60, 0.0 }
 0x876   : > { %2737 = vadd.xlane.f32.xlu1 %v2736_v21 }
 0x877   : > { %v2699_v45 = vadd.f32 %v2685_v23, %v2232_v29 }
 0x879   : > { %v2707_v0 = vadd.f32 %v9347_v8, %v2699_v45  ;;  %v2688_v63 = vpop.f32.mrf.mxu0 }
 0x87b   : > { %v10655_v1 = vadd.f32 %v10615_v47, %v2707_v0  ;;  %v2925_v0 = vld [vmem:[%s14218_s9 + $0x18] sm:$0xff] }
 0x87c   : > { %v2221_v26 = vpop.f32.mrf.mxu2  ;;  %2966 = vmatpush.msrb.mxu2 %v2925_v0 }
 0x87d   : > { %14277 = vst [vmem:[#allocation3_spill] sm:$0xff] %v10655_v1  ;;  %v2233_v43 = vadd.f32 %v2221_v26, %v1763_v31  ;;  %v2739_v48 = vsel %vm577_vm0, %v10655_v1, 0.0  ;;  %v2923_v31 = vld [vmem:[%s14218_s9 + $0x8] sm:$0xff]  ;;  %v2922_v26 = vld [vmem:[%s14218_s9] sm:$0xff] }
 0x87e   : > { %2740 = vadd.xlane.f32.xlu2 %v2739_v48  ;;  %2967 = vmatpush.msrb.mxu2 %v2924_v13 }
 0x87f   : > { %v2700_v16 = vadd.f32 %v2688_v63, %v2233_v43 }
 0x880   : > { %2968 = vmatpush.msrb.mxu2 %v2923_v31 }
 0x881   : > { %v2708_v58 = vadd.f32 %v9348_v42, %v2700_v16  ;;  %v2691_v17 = vpop.f32.mrf.mxu0 }
 0x882   : > { %2969 = vmatpush.msrb.mxu2 %v2922_v26 }
 0x883   : > { %v10661_v39 = vadd.f32 %v10615_v47, %v2708_v58 }
 0x884   : > { %v2224_v54 = vpop.f32.mrf.mxu2 }
 0x885   : > { %14278 = vst [vmem:[#allocation10_spill] sm:$0xff] %v10661_v39  ;;  %v2742_v61 = vsel %vm577_vm0, %v10661_v39, 0.0  ;;  %v2234_v27 = vadd.f32 %v2224_v54, %v1766_v20 }
 0x886   : > { %2743 = vadd.xlane.f32.xlu1 %v2742_v61 }
 0x887   : > { %v2701_v37 = vadd.f32 %v2691_v17, %v2234_v27 }
 0x889   : > { %v2709_v6 = vadd.f32 %v9349_v52, %v2701_v37 }
 0x88b   : > { %v10680_v15 = vadd.f32 %v10615_v47, %v2709_v6 }
 0x88d   : > { %14281 = vst [vmem:[#allocation4_spill] sm:$0xff] %v10680_v15  ;;  %v2745_v34 = vsel %vm577_vm0, %v10680_v15, 0.0 }
 0x8a6   : > { %v2726_v62 = vpop.xlane.xlu0 %2725 }
 0x8a7   : > { %v2748_v2 = vmul.f32 %v2726_v62, %v14280_v46 }
 0x8a9   : > { %v10669_v49 = vsub.f32 %v10620_v50, %v2748_v2  ;;  %v3954_v50 = vld [vmem:[%s14221_s12 + $0x10] sm:$0xff] }
 0x8ab   : > { %v2764_v35 = vmul.f32 %v10669_v49, %v10669_v49 }
 0x8ad   : > { %v2772_v40 = vsel %vm577_vm0, %v2764_v35, 0.0 }
 0x8ae   : > { %v2729_v5 = vpop.xlane.xlu1 %2728  ;;  %2773 = vadd.xlane.f32.xlu0 %v2772_v40 }
 0x8af   : > { %v2749_v55 = vmul.f32 %v2729_v5, %v14280_v46 }
 0x8b1   : > { %v10677_v22 = vsub.f32 %v10627_v57, %v2749_v55 }
 0x8b3   : > { %v2765_v44 = vmul.f32 %v10677_v22, %v10677_v22 }
 0x8b5   : > { %v2775_v24 = vsel %vm577_vm0, %v2765_v44, 0.0 }
 0x8b6   : > { %v2732_v14 = vpop.xlane.xlu2 %2731  ;;  %2776 = vadd.xlane.f32.xlu2 %v2775_v24  ;;  %2746 = vadd.xlane.f32.xlu0 %v2745_v34  ;;  %v10747_v24 = vld [vmem:[%s14216_s7] ss:$0 sm:$0xff] }
 0x8b7   : > { %v2750_v3 = vmul.f32 %v2732_v14, %v14280_v46 }
 0x8b9   : > { %v10689_v25 = vsub.f32 %v10633_v30, %v2750_v3  ;;  %v10752_v3 = vld [vmem:[%s14217_s8] ss:$0 sm:$0xff] }
 0x8bb   : > { %v2766_v47 = vmul.f32 %v10689_v25, %v10689_v25 }
 0x8bd   : > { %v2778_v4 = vsel %vm577_vm0, %v2766_v47, 0.0 }
 0x8be   : > { %2779 = vadd.xlane.f32.xlu1 %v2778_v4 }
 0x8e1   : > { %v2735_v33 = vpop.xlane.xlu0 %2734 }
 0x8e2   : > { %v2751_v11 = vmul.f32 %v2735_v33, %v14280_v46 }
 0x8e4   : > { %v10696_v32 = vsub.f32 %v10641_v51, %v2751_v11 }
 0x8e6   : > { %v2767_v59 = vmul.f32 %v10696_v32, %v10696_v32 }
 0x8e8   : > { %v2781_v36 = vsel %vm577_vm0, %v2767_v59, 0.0 }
 0x8e9   : > { %v2738_v12 = vpop.xlane.xlu1 %2737  ;;  %2782 = vadd.xlane.f32.xlu2 %v2781_v36 }
 0x8ea   : > { %v2752_v38 = vmul.f32 %v2738_v12, %v14280_v46 }
 0x8ec   : > { %v10703_v19 = vsub.f32 %v10648_v60, %v2752_v38 }
 0x8ee   : > { %v2768_v10 = vmul.f32 %v10703_v19, %v10703_v19 }
 0x8f0   : > { %v2784_v9 = vsel %vm577_vm0, %v2768_v10, 0.0 }
 0x8f1   : > { %v2741_v7 = vpop.xlane.xlu2 %2740  ;;  %2785 = vadd.xlane.f32.xlu0 %v2784_v9 }
 0x8f2   : > { %v2753_v53 = vmul.f32 %v2741_v7, %v14280_v46 }
 0x8f4   : > { %v10710_v56 = vsub.f32 %v10655_v1, %v2753_v53 }
 0x8f6   : > { %v2769_v41 = vmul.f32 %v10710_v56, %v10710_v56 }
 0x8f8   : > { %v2787_v23 = vsel %vm577_vm0, %v2769_v41, 0.0 }
 0x8f9   : > { %2788 = vadd.xlane.f32.xlu1 %v2787_v23  ;;  %v2744_v28 = vpop.xlane.xlu1 %2743 }
 0x8fa   : > { %v2754_v29 = vmul.f32 %v2744_v28, %v14280_v46 }
 0x8fc   : > { %v10717_v21 = vsub.f32 %v10661_v39, %v2754_v29 }
 0x8fe   : > { %v2770_v45 = vmul.f32 %v10717_v21, %v10717_v21 }
 0x900   : > { %v2790_v8 = vsel %vm577_vm0, %v2770_v45, 0.0 }
 0x901   : > { %2791 = vadd.xlane.f32.xlu2 %v2790_v8 }
 0x921   : > { %v2774_v43 = vpop.xlane.xlu0 %2773 }
 0x922   : > { %v2796_v48 = vmul.f32 %v2774_v43, %v14280_v46 }
 0x924   : > { %v2804_v63 = vadd.f32 1e-05, %v2796_v48 }
 0x926   : > { %9038 = vrsqrt.f32 %v2804_v63  ;;  %vm2818_vm10 = vweird.f32 %v2804_v63 }
 0x929   : > { %v2777_v16 = vpop.xlane.xlu2 %2776  ;;  %v2747_v42 = vpop.xlane.xlu0 %2746 }
 0x92a   : > { %v2797_v58 = vmul.f32 %v2777_v16, %v14280_v46  ;;  %v2755_v61 = vmul.f32 %v2747_v42, %v14280_v46 }
 0x92c   : > { %v9039_v54 = vpop.eup %9038  ;;  %v2805_v18 = vadd.f32 1e-05, %v2797_v58  ;;  %v10738_v20 = vsub.f32 %v10680_v15, %v2755_v61 }
 0x92d   : > { %v2813_v27 = vmul.f32 %v9039_v54, %v2804_v63  ;;  %vm2819_vm9 = vweird.f32 %v9039_v54 }
 0x92e   : > { %9040 = vrsqrt.f32 %v2805_v18  ;;  %v2771_v62 = vmul.f32 %v10738_v20, %v10738_v20  ;;  %vm2820_vm13 = vmor %vm2818_vm10, %vm2819_vm9  ;;  %vm2828_vm15 = vweird.f32 %v2805_v18 }
 0x92f   : > { %v2814_v2 = vmul.f32 %v9039_v54, %v2813_v27 }
 0x930   : > { %v2793_v17 = vsel %vm577_vm0, %v2771_v62, 0.0 }
 0x931   : > { %v2815_v37 = vmul.f32 0.5, %v2814_v2  ;;  %v2780_v35 = vpop.xlane.xlu1 %2779  ;;  %2794 = vadd.xlane.f32.xlu0 %v2793_v17 }
 0x932   : > { %v2798_v52 = vmul.f32 %v2780_v35, %v14280_v46 }
 0x933   : > { %v2816_v6 = vsub.f32 1.5, %v2815_v37 }
 0x934   : > { %v9041_v40 = vpop.eup %9040  ;;  %v2806_v5 = vadd.f32 1e-05, %v2798_v52 }
 0x935   : > { %v2817_v55 = vmul.f32 %v9039_v54, %v2816_v6  ;;  %v2823_v44 = vmul.f32 %v9041_v40, %v2805_v18  ;;  %vm2829_vm14 = vweird.f32 %v9041_v40 }
 0x936   : > { %9042 = vrsqrt.f32 %v2806_v5  ;;  %vm2830_vm1 = vmor %vm2828_vm15, %vm2829_vm14  ;;  %vm2838_vm3 = vweird.f32 %v2806_v5 }
 0x937   : > { %v2821_v34 = vsel %vm2820_vm13, %v9039_v54, %v2817_v55  ;;  %v2824_v14 = vmul.f32 %v9041_v40, %v2823_v44 }
 0x938   : > { %v2892_v47 = vmul.f32 %v2821_v34, %v10669_v49 }
 0x939   : > { %v2825_v4 = vmul.f32 0.5, %v2824_v14 }
 0x93a   : > { %v2903_v33 = vmul.f32 %v10747_v24, %v2892_v47 }
 0x93b   : > { %v2826_v11 = vsub.f32 1.5, %v2825_v4 }
 0x93c   : > { %v9043_v59 = vpop.eup %9042  ;;  %v2914_v36 = vadd.f32 %v10752_v3, %v2903_v33 }
 0x93d   : > { %v2827_v12 = vmul.f32 %v9041_v40, %v2826_v11  ;;  %v2833_v38 = vmul.f32 %v9043_v59, %v2806_v5  ;;  %vm2839_vm2 = vweird.f32 %v9043_v59 }
 0x93e   : > { %8280 = vmatmul.msk.f32.vlgmr.msrb.gmra.mxu2 %vm577_vm0, %v2914_v36  ;;  %vm2840_vm4 = vmor %vm2838_vm3, %vm2839_vm2 }
 0x93f   : > { %v2831_v10 = vsel %vm2830_vm1, %v9041_v40, %v2827_v12  ;;  %v2834_v9 = vmul.f32 %v9043_v59, %v2833_v38 }
 0x940   : > { %v2893_v7 = vmul.f32 %v2831_v10, %v10677_v22 }
 0x941   : > { %v2835_v53 = vmul.f32 0.5, %v2834_v9 }
 0x942   : > { %v2904_v49 = vmul.f32 %v10747_v24, %v2893_v7 }
 0x943   : > { %v2836_v41 = vsub.f32 1.5, %v2835_v53 }
 0x944   : > { %v2915_v23 = vadd.f32 %v10752_v3, %v2904_v49 }
 0x945   : > { %v2837_v28 = vmul.f32 %v9043_v59, %v2836_v41 }
 0x946   : > { %8281 = vmatmul.msk.f32.gmra.mxu2 %vm577_vm0, %v2915_v23 }
 0x947   : > { %v2841_v29 = vsel %vm2840_vm4, %v9043_v59, %v2837_v28 }
 0x948   : > { %v2894_v45 = vmul.f32 %v2841_v29, %v10689_v25 }
 0x94a   : > { %v2905_v8 = vmul.f32 %v10747_v24, %v2894_v45 }
 0x94c   : > { %v2916_v0 = vadd.f32 %v10752_v3, %v2905_v8 }
 0x94e   : > { %8282 = vmatmul.msk.f32.gmra.mxu2 %vm577_vm0, %v2916_v0 }
 0x95c   : > { %v2783_v22 = vpop.xlane.xlu2 %2782 }
 0x95d   : > { %v2799_v13 = vmul.f32 %v2783_v22, %v14280_v46 }
 0x95f   : > { %v2807_v31 = vadd.f32 1e-05, %v2799_v13 }
 0x961   : > { %9044 = vrsqrt.f32 %v2807_v31  ;;  %vm2848_vm6 = vweird.f32 %v2807_v31 }
 0x964   : > { %v2786_v26 = vpop.xlane.xlu0 %2785 }
 0x965   : > { %v2800_v43 = vmul.f32 %v2786_v26, %v14280_v46 }
 0x967   : > { %v9045_v48 = vpop.eup %9044  ;;  %v2808_v63 = vadd.f32 1e-05, %v2800_v43 }
 0x968   : > { %v2843_v16 = vmul.f32 %v9045_v48, %v2807_v31  ;;  %vm2849_vm5 = vweird.f32 %v9045_v48 }
 0x969   : > { %9046 = vrsqrt.f32 %v2808_v63  ;;  %vm2850_vm7 = vmor %vm2848_vm6, %vm2849_vm5  ;;  %vm2858_vm9 = vweird.f32 %v2808_v63 }
 0x96a   : > { %v2844_v42 = vmul.f32 %v9045_v48, %v2843_v16 }
 0x96c   : > { %v2845_v25 = vmul.f32 0.5, %v2844_v42  ;;  %v2789_v58 = vpop.xlane.xlu1 %2788 }
 0x96d   : > { %v2801_v61 = vmul.f32 %v2789_v58, %v14280_v46 }
 0x96e   : > { %v2846_v54 = vsub.f32 1.5, %v2845_v25 }
 0x96f   : > { %v9047_v18 = vpop.eup %9046  ;;  %v2809_v27 = vadd.f32 1e-05, %v2801_v61 }
 0x970   : > { %v2847_v62 = vmul.f32 %v9045_v48, %v2846_v54  ;;  %v2853_v2 = vmul.f32 %v9047_v18, %v2808_v63  ;;  %vm2859_vm8 = vweird.f32 %v9047_v18 }
 0x971   : > { %9048 = vrsqrt.f32 %v2809_v27  ;;  %vm2860_vm10 = vmor %vm2858_vm9, %vm2859_vm8  ;;  %vm2868_vm14 = vweird.f32 %v2809_v27 }
 0x972   : > { %v2851_v17 = vsel %vm2850_vm7, %v9045_v48, %v2847_v62  ;;  %v2854_v37 = vmul.f32 %v9047_v18, %v2853_v2 }
 0x973   : > { %v2895_v35 = vmul.f32 %v2851_v17, %v10696_v32 }
 0x974   : > { %v2855_v52 = vmul.f32 0.5, %v2854_v37  ;;  %v2792_v6 = vpop.xlane.xlu2 %2791 }
 0x975   : > { %v2802_v40 = vmul.f32 %v2792_v6, %v14280_v46  ;;  %v2906_v5 = vmul.f32 %v10747_v24, %v2895_v35  ;;  %v10794_v35 = vld [vmem:[%s14219_s10] ss:$0 sm:$0xff] }
 0x976   : > { %v2856_v55 = vsub.f32 1.5, %v2855_v52 }
 0x977   : > { %v9049_v44 = vpop.eup %9048  ;;  %v2810_v34 = vadd.f32 1e-05, %v2802_v40  ;;  %v2917_v14 = vadd.f32 %v10752_v3, %v2906_v5 }
 0x978   : > { %v2857_v47 = vmul.f32 %v9047_v18, %v2856_v55  ;;  %v2863_v4 = vmul.f32 %v9049_v44, %v2809_v27  ;;  %vm2869_vm13 = vweird.f32 %v9049_v44 }
 0x979   : > { %9050 = vrsqrt.f32 %v2810_v34  ;;  %8283 = vmatmul.msk.f32.gmra.mxu2 %vm577_vm0, %v2917_v14  ;;  %vm2870_vm15 = vmor %vm2868_vm14, %vm2869_vm13  ;;  %vm2878_vm2 = vweird.f32 %v2810_v34 }
 0x97a   : > { %v2861_v32 = vsel %vm2860_vm10, %v9047_v18, %v2857_v47  ;;  %v2864_v33 = vmul.f32 %v9049_v44, %v2863_v4 }
 0x97b   : > { %v2896_v11 = vmul.f32 %v2861_v32, %v10703_v19 }
 0x97c   : > { %v2865_v59 = vmul.f32 0.5, %v2864_v33 }
 0x97d   : > { %v2907_v36 = vmul.f32 %v10747_v24, %v2896_v11 }
 0x97e   : > { %v2866_v12 = vsub.f32 1.5, %v2865_v59 }
 0x97f   : > { %v9051_v38 = vpop.eup %9050  ;;  %v2918_v10 = vadd.f32 %v10752_v3, %v2907_v36 }
 0x980   : > { %v2867_v9 = vmul.f32 %v9049_v44, %v2866_v12  ;;  %v2873_v7 = vmul.f32 %v9051_v38, %v2810_v34  ;;  %vm2879_vm1 = vweird.f32 %v9051_v38 }
 0x981   : > { %8284 = vmatmul.msk.f32.gmra.mxu2 %vm577_vm0, %v2918_v10  ;;  %vm2880_vm3 = vmor %vm2878_vm2, %vm2879_vm1 }
 0x982   : > { %v2871_v53 = vsel %vm2870_vm15, %v9049_v44, %v2867_v9  ;;  %v2874_v49 = vmul.f32 %v9051_v38, %v2873_v7 }
 0x983   : > { %v2897_v41 = vmul.f32 %v2871_v53, %v10710_v56 }
 0x984   : > { %v2875_v23 = vmul.f32 0.5, %v2874_v49 }
 0x985   : > { %v2908_v19 = vmul.f32 %v10747_v24, %v2897_v41 }
 0x986   : > { %v2876_v28 = vsub.f32 1.5, %v2875_v23 }
 0x987   : > { %v2919_v29 = vadd.f32 %v10752_v3, %v2908_v19 }
 0x988   : > { %v2877_v45 = vmul.f32 %v9051_v38, %v2876_v28 }
 0x989   : > { %8285 = vmatmul.msk.f32.gmra.mxu2 %vm577_vm0, %v2919_v29 }
 0x98a   : > { %v2881_v8 = vsel %vm2880_vm3, %v9051_v38, %v2877_v45 }
 0x98b   : > { %v2898_v0 = vmul.f32 %v2881_v8, %v10717_v21 }
 0x98d   : > { %v2909_v22 = vmul.f32 %v10747_v24, %v2898_v0 }
 0x98f   : > { %v2920_v13 = vadd.f32 %v10752_v3, %v2909_v22 }
 0x991   : > { %8286 = vmatmul.msk.f32.gmra.mxu2 %vm577_vm0, %v2920_v13 }
 0x9a4   : > { %v2795_v56 = vpop.xlane.xlu0 %2794 }
 0x9a5   : > { %v2803_v31 = vmul.f32 %v2795_v56, %v14280_v46 }
 0x9a7   : > { %v2811_v26 = vadd.f32 1e-05, %v2803_v31 }
 0x9a9   : > { %9052 = vrsqrt.f32 %v2811_v26  ;;  %vm2888_vm5 = vweird.f32 %v2811_v26 }
 0x9af   : > { %v9053_v43 = vpop.eup %9052 }
 0x9b0   : > { %v2883_v48 = vmul.f32 %v9053_v43, %v2811_v26  ;;  %vm2889_vm4 = vweird.f32 %v9053_v43 }
 0x9b1   : > { %vm2890_vm6 = vmor %vm2888_vm5, %vm2889_vm4 }
 0x9b2   : > { %v2884_v63 = vmul.f32 %v9053_v43, %v2883_v48 }
 0x9b4   : > { %v2885_v16 = vmul.f32 0.5, %v2884_v63 }
 0x9b6   : > { %v2886_v42 = vsub.f32 1.5, %v2885_v16 }
 0x9b8   : > { %v2887_v25 = vmul.f32 %v9053_v43, %v2886_v42 }
 0x9ba   : > { %v2891_v21 = vsel %vm2890_vm6, %v9053_v43, %v2887_v25 }
 0x9bb   : > { %v2899_v58 = vmul.f32 %v2891_v21, %v10738_v20 }
 0x9bd   : > { %v2910_v61 = vmul.f32 %v10747_v24, %v2899_v58 }
 0x9bf   : > { %v2921_v54 = vadd.f32 %v10752_v3, %v2910_v61 }
 0x9c1   : > { %8287 = vmatmul.msk.f32.gmra.mxu2 %vm577_vm0, %v2921_v54  ;;  %v2971_v18 = vpop.f32.mrf.mxu2 }
 0x9c2   : > { %v10797_v52 = vadd.f32 %v10794_v35, %v2971_v18 }
 0x9c4   : > { %v10806_v6 = vmul.f32 0.70710677, %v10797_v52 }
 0x9c6   : > { %v10830_v4 = vand.u32 2147483647, %v10806_v6 }
 0x9c8   : > { %v3019_v38 = vmul.f32 0.3275911, %v10830_v4 }
 0x9c9   : > { %v2974_v27 = vpop.f32.mrf.mxu2 }
 0x9ca   : > { %v10800_v20 = vadd.f32 %v10794_v35, %v2974_v27  ;;  %v10863_v23 = vadd.f32 1.0, %v3019_v38 }
 0x9cc   : > { %v10818_v44 = vmul.f32 0.70710677, %v10800_v20  ;;  %9054 = vrcp.f32 %v10863_v23  ;;  %vm3040_vm7 = vweird.f32 %v10863_v23 }
 0x9ce   : > { %v10842_v59 = vand.u32 2147483647, %v10818_v44 }
 0x9d0   : > { %v3020_v53 = vmul.f32 0.3275911, %v10842_v59 }
 0x9d1   : > { %v2977_v62 = vpop.f32.mrf.mxu2 }
 0x9d2   : > { %v10815_v55 = vadd.f32 %v10794_v35, %v2977_v62  ;;  %v10869_v45 = vadd.f32 1.0, %v3020_v53  ;;  %v10886_v31 = vpop.eup %9054 }
 0x9d3   : > { %v3036_v63 = vmul.f32 %v10886_v31, %v10863_v23  ;;  %vm3041_vm8 = vweird.f32 %v10886_v31 }
 0x9d4   : > { %v10836_v33 = vmul.f32 0.70710677, %v10815_v55  ;;  %vm3055_vm1 = vweird.f32 %v10869_v45 }
 0x9d5   : > { %v3037_v61 = vsub.f32 1.0, %v3036_v63 }
 0x9d6   : > { %v10855_v9 = vand.u32 2147483647, %v10836_v33 }
 0x9d8   : > { %v3021_v28 = vmul.f32 0.3275911, %v10855_v9 }
 0x9da   : > { %v10877_v13 = vadd.f32 1.0, %v3021_v28 }
 0x9dc   : > { %vm3070_vm10 = vweird.f32 %v10877_v13 }
 0x9fc   : > { %v2980_v2 = vpop.f32.mrf.mxu2 }
 0x9fd   : > { %v10821_v34 = vadd.f32 %v10794_v35, %v2980_v2 }
 0x9ff   : > { %v10845_v36 = vmul.f32 0.70710677, %v10821_v34 }
 0xa01   : > { %v10860_v49 = vand.u32 2147483647, %v10845_v36 }
 0xa03   : > { %v3022_v8 = vmul.f32 0.3275911, %v10860_v49 }
 0xa04   : > { %v2983_v17 = vpop.f32.mrf.mxu2 }
 0xa05   : > { %v10809_v40 = vadd.f32 %v10794_v35, %v2983_v17  ;;  %v10881_v56 = vadd.f32 1.0, %v3022_v8 }
 0xa07   : > { %v10833_v32 = vmul.f32 0.70710677, %v10809_v40 }
 0xa09   : > { %v10852_v10 = vand.u32 2147483647, %v10833_v32 }
 0xa0b   : > { %v3023_v19 = vmul.f32 0.3275911, %v10852_v10 }
 0xa0c   : > { %v2986_v37 = vpop.f32.mrf.mxu2 }
 0xa0d   : > { %v10803_v24 = vadd.f32 %v10794_v35, %v2986_v37  ;;  %v10875_v22 = vadd.f32 1.0, %v3023_v19  ;;  %v3038_v37 = vmul.f32 %v10886_v31, %v3037_v61 }
 0xa0f   : > { %v10824_v14 = vmul.f32 0.70710677, %v10803_v24  ;;  %v10925_v61 = vadd.f32 %v10886_v31, %v3038_v37  ;;  %vm3100_vm6 = vweird.f32 %v10875_v22 }
 0xa11   : > { %v10848_v12 = vand.u32 2147483647, %v10824_v14 }
 0xa13   : > { %v3024_v41 = vmul.f32 0.3275911, %v10848_v12 }
 0xa14   : > { %v2989_v3 = vpop.f32.mrf.mxu2 }
 0xa15   : > { %v10812_v5 = vadd.f32 %v10794_v35, %v2989_v3  ;;  %v10872_v0 = vadd.f32 1.0, %v3024_v41 }
 0xa17   : > { %v10827_v47 = vmul.f32 0.70710677, %v10812_v5  ;;  %vm3115_vm5 = vweird.f32 %v10872_v0  ;;  %v3119_v28 = vand.u32 2147483647, %v10872_v0 }
 0xa19   : > { %v10839_v11 = vand.u32 2147483647, %v10827_v47 }
 0xa1b   : > { %v3025_v7 = vmul.f32 0.3275911, %v10839_v11 }
 0xa1d   : > { %v10867_v29 = vadd.f32 1.0, %v3025_v7 }
 0xa1f   : > { %9056 = vrcp.f32 %v10867_v29  ;;  %v3136_v37 = vand.u32 2147483648, %v10867_v29  ;;  %vm3130_vm14 = vweird.f32 %v10867_v29 }
 0xa20   : > { %9058 = vrcp.f32 %v10869_v45 }
 0xa21   : > { %9060 = vrcp.f32 %v10872_v0  ;;  %v3137_v63 = vor.u32 1.1754944e-38, %v3136_v37 }
 0xa22   : > { %9062 = vrcp.f32 %v10875_v22 }
 0xa23   : > { %9064 = vrcp.f32 %v10877_v13 }
 0xa24   : > { %9066 = vrcp.f32 %v10881_v56 }
 0xa25   : > { %v10889_v26 = vpop.eup %9056 }
 0xa26   : > { %v10891_v43 = vpop.eup %9058  ;;  %v3126_v42 = vmul.f32 %v10889_v26, %v10867_v29  ;;  %vm3131_vm9 = vweird.f32 %v10889_v26 }
 0xa27   : > { %v10893_v48 = vpop.eup %9060  ;;  %v3051_v27 = vmul.f32 %v10891_v43, %v10869_v45  ;;  %vm3056_vm13 = vweird.f32 %v10891_v43  ;;  %vm10944_vm2 = vmor %vm3130_vm14, %vm3131_vm9 }
 0xa28   : > { %v10897_v16 = vpop.eup %9062  ;;  %v3111_v58 = vmul.f32 %v10893_v48, %v10872_v0  ;;  %v3127_v18 = vsub.f32 1.0, %v3126_v42  ;;  %vm3116_vm15 = vweird.f32 %v10893_v48 }
 0xa29   : > { %v10901_v25 = vpop.eup %9064  ;;  %v3096_v54 = vmul.f32 %v10897_v16, %v10875_v22  ;;  %v3052_v7 = vsub.f32 1.0, %v3051_v27  ;;  %v3074_v27 = vand.u32 2147483647, %v10877_v13  ;;  %vm3101_vm3 = vweird.f32 %v10897_v16  ;;  %vm10958_vm9 = vmor %vm3115_vm5, %vm3116_vm15 }
 0xa2a   : > { %v10903_v21 = vpop.eup %9066  ;;  %v3066_v62 = vmul.f32 %v10901_v25, %v10877_v13  ;;  %v3112_v17 = vsub.f32 1.0, %v3111_v58  ;;  %v3128_v38 = vmul.f32 %v10889_v26, %v3127_v18  ;;  %vm3071_vm4 = vweird.f32 %v10901_v25  ;;  %vm10967_vm11 = vmor %vm3100_vm6, %vm3101_vm3 }
 0xa2b   : > { %v3081_v2 = vmul.f32 %v10903_v21, %v10881_v56  ;;  %v3097_v3 = vsub.f32 1.0, %v3096_v54  ;;  %v3076_v54 = vand.u32 2147483648, %v10877_v13  ;;  %vm3086_vm15 = vweird.f32 %v10903_v21  ;;  %vm10985_vm5 = vmor %vm3040_vm7, %vm3041_vm8 }
 0xa2c   : > { %v3067_v53 = vsub.f32 1.0, %v3066_v62  ;;  %v3113_v8 = vmul.f32 %v10893_v48, %v3112_v17  ;;  %v3129_v18 = vadd.f32 %v10889_v26, %v3128_v38  ;;  %v3053_v62 = vmul.f32 %v10891_v43, %v3052_v7  ;;  %vm11009_vm7 = vmor %vm3070_vm10, %vm3071_vm4 }
 0xa2d   : > { %v3082_v41 = vsub.f32 1.0, %v3081_v2  ;;  %v3098_v58 = vmul.f32 %v10897_v16, %v3097_v3  ;;  %v3134_v3 = vand.u32 2147483647, %v10867_v29  ;;  %v3121_v7 = vand.u32 2147483648, %v10872_v0  ;;  %vm3057_vm4 = vmor %vm3055_vm1, %vm3056_vm13 }
 0xa2e   : > { %v3068_v2 = vmul.f32 %v10901_v25, %v3067_v53  ;;  %v3114_v38 = vadd.f32 %v10893_v48, %v3113_v8  ;;  %v3106_v29 = vand.u32 2147483648, %v10875_v22  ;;  %v3133_v8 = vsel %vm10944_vm2, %v10889_v26, %v3129_v18 }
 0xa2f   : > { %v3083_v17 = vmul.f32 %v10903_v21, %v3082_v41  ;;  %v3099_v41 = vadd.f32 %v10897_v16, %v3098_v58  ;;  %v3104_v58 = vand.u32 2147483647, %v10875_v22  ;;  %vm3135_vm14 = vcmp.eq.f32.partialorder %v3134_v3, 8.507059e+37 }
 0xa30   : > { %v3069_v19 = vadd.f32 %v10901_v25, %v3068_v2  ;;  %v3118_v15 = vsel %vm10958_vm9, %v10893_v48, %v3114_v38  ;;  %v3091_v18 = vand.u32 2147483648, %v10881_v56  ;;  %v3122_v37 = vor.u32 1.1754944e-38, %v3121_v7 }
 0xa31   : > { %v3084_v0 = vadd.f32 %v10903_v21, %v3083_v17  ;;  %v10974_v53 = vsel %vm3135_vm14, %v3137_v63, %v3133_v8  ;;  %v3103_v22 = vsel %vm10967_vm11, %v10897_v16, %v3099_v41  ;;  %vm3085_vm2 = vweird.f32 %v10881_v56 }
 0xa32   : > { %v3107_v48 = vor.u32 1.1754944e-38, %v3106_v29  ;;  %vm3120_vm3 = vcmp.eq.f32.partialorder %v3119_v28, 8.507059e+37  ;;  %v3089_v2 = vand.u32 2147483647, %v10881_v56  ;;  %vm3105_vm11 = vcmp.eq.f32.partialorder %v3104_v58, 8.507059e+37  ;;  %vm10994_vm6 = vmor %vm3085_vm2, %vm3086_vm15 }
 0xa33   : > { %v10992_v3 = vsel %vm3120_vm3, %v3122_v37, %v3118_v15  ;;  %v3054_v56 = vadd.f32 %v10891_v43, %v3053_v62  ;;  %v3161_v28 = vmul.f32 1.0614054, %v10974_v53  ;;  %v3088_v7 = vsel %vm10994_vm6, %v10903_v21, %v3084_v0 }
 0xa34   : > { %v11000_v38 = vsel %vm3105_vm11, %v3107_v48, %v3103_v22  ;;  %v3092_v41 = vor.u32 1.1754944e-38, %v3091_v18  ;;  %v3073_v29 = vsel %vm11009_vm7, %v10901_v25, %v3069_v19  ;;  %v3043_v21 = vsel %vm10985_vm5, %v10886_v31, %v10925_v61 }
 0xa35   : > { %v3077_v13 = vor.u32 1.1754944e-38, %v3076_v54  ;;  %v3160_v8 = vmul.f32 1.0614054, %v10992_v3  ;;  %vm3090_vm8 = vcmp.eq.f32.partialorder %v3089_v2, 8.507059e+37  ;;  %vm3075_vm10 = vcmp.eq.f32.partialorder %v3074_v27, 8.507059e+37 }
 0xa36   : > { %v3159_v25 = vmul.f32 1.0614054, %v11000_v38  ;;  %v11033_v19 = vsel %vm3090_vm8, %v3092_v41, %v3088_v7  ;;  %v3058_v26 = vsel %vm3057_vm4, %v10891_v43, %v3054_v56  ;;  %v14294_v31 = vand.u32 2147483648, %v10863_v23 }
 0xa37   : > { %v14295_v54 = vand.u32 2147483648, %v10869_v45  ;;  %v3169_v0 = vadd.f32 -1.4531521, %v3161_v28  ;;  %v11040_v18 = vsel %vm3075_vm10, %v3077_v13, %v3073_v29  ;;  %v14296_v22 = vand.u32 2147483647, %v10863_v23 }
 0xa38   : > { %v3047_v61 = vor.u32 1.1754944e-38, %v14294_v31  ;;  %v3168_v48 = vadd.f32 -1.4531521, %v3160_v8  ;;  %v3167_v16 = vadd.f32 -1.4531521, %v3159_v25  ;;  %v14297_v56 = vsub.f32 0.0, %v10830_v4 }
 0xa39   : > { %v3062_v27 = vor.u32 1.1754944e-38, %v14295_v54  ;;  %vm3045_vm1 = vcmp.eq.f32.partialorder %v14296_v22, 8.507059e+37  ;;  %v3177_v7 = vmul.f32 %v3169_v0, %v10974_v53  ;;  %vm3281_vm3 = vcmp.ge.f32.partialorder %v10827_v47, 0.0 }
 0xa3a   : > { %v11048_v43 = vsel %vm3045_vm1, %v3047_v61, %v3043_v21  ;;  %v3235_v28 = vmul.f32 %v14297_v56, %v10830_v4  ;;  %v3176_v41 = vmul.f32 %v3168_v48, %v10992_v3  ;;  %v3175_v21 = vmul.f32 %v3167_v16, %v11000_v38 }
 0xa3b   : > { %v3155_v15 = vmul.f32 1.0614054, %v11048_v43  ;;  %v3185_v25 = vadd.f32 1.4214138, %v3177_v7  ;;  %v3233_v16 = vsub.f32 0.0, %v10839_v11  ;;  %vm3280_vm5 = vcmp.ge.f32.partialorder %v10824_v14, 0.0 }
 0xa3c   : > { %v3243_v8 = vmul.f32 1.442695, %v3235_v28  ;;  %v3184_v61 = vadd.f32 1.4214138, %v3176_v41  ;;  %v3183_v0 = vadd.f32 1.4214138, %v3175_v21 }
 0xa3d   : > { %v3163_v31 = vadd.f32 -1.4531521, %v3155_v15  ;;  %v3193_v48 = vmul.f32 %v3185_v25, %v10974_v53  ;;  %v3232_v15 = vsub.f32 0.0, %v10848_v12  ;;  %v3231_v25 = vsub.f32 0.0, %v10852_v10 }
 0xa3e   : > { %v3192_v7 = vmul.f32 %v3184_v61, %v10992_v3  ;;  %v3191_v41 = vmul.f32 %v3183_v0, %v11000_v38  ;;  %v3230_v0 = vsub.f32 0.0, %v10860_v49  ;;  %vm3279_vm6 = vcmp.ge.f32.partialorder %v10833_v32, 0.0 }
 0xa3f   : > { %v3171_v56 = vmul.f32 %v3163_v31, %v11048_v43  ;;  %vm3278_vm7 = vcmp.ge.f32.partialorder %v10845_v36, 0.0  ;;  %vm3277_vm8 = vcmp.ge.f32.partialorder %v10836_v33, 0.0  ;;  %vm3276_vm10 = vcmp.ge.f32.partialorder %v10818_v44, 0.0 }
 0xa40   : > { %vm3275_vm4 = vcmp.ge.f32.partialorder %v10806_v6, 0.0  ;;  %v2996_v44 = vmul.f32 0.5, %v10800_v20  ;;  %v504_v20 = vld [vmem:[%s14210_s1 + $0x8] sm:$0xff] }
 0xa44   : > { %v2992_v42 = vpop.f32.mrf.mxu2 }
 0xa45   : > { %v10990_v63 = vadd.f32 %v10794_v35, %v2992_v42  ;;  %v3059_v35 = vand.u32 2147483647, %v10869_v45  ;;  %v3158_v42 = vmul.f32 1.0614054, %v11033_v19  ;;  %v3157_v45 = vmul.f32 1.0614054, %v11040_v18 }
 0xa47   : > { %v11015_v62 = vmul.f32 0.70710677, %v10990_v63  ;;  %vm3060_vm13 = vcmp.eq.f32.partialorder %v3059_v35, 8.507059e+37  ;;  %v3229_v35 = vsub.f32 0.0, %v10855_v9  ;;  %v3166_v29 = vadd.f32 -1.4531521, %v3158_v42 }
 0xa48   : > { %v11046_v2 = vsel %vm3060_vm13, %v3062_v27, %v3058_v26  ;;  %v3165_v13 = vadd.f32 -1.4531521, %v3157_v45  ;;  %v3228_v42 = vsub.f32 0.0, %v10842_v59 }
 0xa49   : > { %v11030_v58 = vand.u32 2147483647, %v11015_v62  ;;  %v3156_v23 = vmul.f32 1.0614054, %v11046_v2  ;;  %v3237_v4 = vmul.f32 %v3229_v35, %v10855_v9  ;;  %v3174_v54 = vmul.f32 %v3166_v29, %v11033_v19 }
 0xa4a   : > { %vm3282_vm11 = vcmp.ge.f32.partialorder %v11015_v62, 0.0 }
 0xa4b   : > { %v3026_v37 = vmul.f32 0.3275911, %v11030_v58  ;;  %v3164_v26 = vadd.f32 -1.4531521, %v3156_v23  ;;  %v3247_v9 = vmul.f32 1.442695, %v3237_v4 }
 0xa4c   : > { %v3182_v23 = vadd.f32 1.4214138, %v3174_v54  ;;  %v3179_v4 = vadd.f32 1.4214138, %v3171_v56  ;;  %v3200_v54 = vadd.f32 -0.28449672, %v3192_v7 }
 0xa4d   : > { %v3034_v17 = vadd.f32 1.0, %v3026_v37  ;;  %v3173_v37 = vmul.f32 %v3165_v13, %v11040_v18  ;;  %v3172_v45 = vmul.f32 %v3164_v26, %v11046_v2  ;;  %v3241_v26 = vmul.f32 %v3233_v16, %v10839_v11 }
 0xa4e   : > { %v3190_v46 = vmul.f32 %v3182_v23, %v11033_v19  ;;  %v3199_v16 = vadd.f32 -0.28449672, %v3191_v41  ;;  %v3234_v7 = vsub.f32 0.0, %v11030_v58 }
 0xa4f   : > { %9068 = vrcp.f32 %v3034_v17  ;;  %v3151_v35 = vand.u32 2147483648, %v3034_v17  ;;  %v3181_v29 = vadd.f32 1.4214138, %v3173_v37  ;;  %v3149_v13 = vand.u32 2147483647, %v3034_v17 }
 0xa50   : > { %9070 = vpow2.f32 %v3243_v8  ;;  %v3201_v8 = vadd.f32 -0.28449672, %v3193_v48  ;;  %v3180_v31 = vadd.f32 1.4214138, %v3172_v45  ;;  %vm3145_vm14 = vweird.f32 %v3034_v17 }
 0xa51   : > { %v3240_v37 = vmul.f32 %v3232_v15, %v10848_v12  ;;  %v3189_v48 = vmul.f32 %v3181_v29, %v11040_v18  ;;  %vm3150_vm2 = vcmp.eq.f32.partialorder %v3149_v13, 8.507059e+37  ;;  %v3239_v45 = vmul.f32 %v3231_v25, %v10852_v10 }
 0xa52   : > { %v3209_v11 = vmul.f32 %v3201_v8, %v10974_v53  ;;  %v3255_v56 = vmul.f32 1.442695, %v3241_v26  ;;  %v3198_v1 = vadd.f32 -0.28449672, %v3190_v46  ;;  %v3188_v12 = vmul.f32 %v3180_v31, %v11046_v2 }
 0xa53   : > { %9072 = vpow2.f32 %v3247_v9  ;;  %v3238_v15 = vmul.f32 %v3230_v0, %v10860_v49  ;;  %v3207_v10 = vmul.f32 %v3199_v16, %v11000_v38  ;;  %v3197_v13 = vadd.f32 -0.28449672, %v3189_v48 }
 0xa54   : > { %v3217_v41 = vadd.f32 0.2548296, %v3209_v11  ;;  %9074 = vpow2.f32 %v3255_v56  ;;  %v3242_v8 = vmul.f32 %v3234_v7, %v11030_v58  ;;  %v3206_v46 = vmul.f32 %v3198_v1, %v11033_v19 }
 0xa55   : > { %v9069_v27 = vpop.eup %9068  ;;  %v3196_v31 = vadd.f32 -0.28449672, %v3188_v12  ;;  %v3236_v9 = vmul.f32 %v3228_v42, %v10842_v59  ;;  %v3249_v49 = vmul.f32 1.442695, %v3238_v15  ;;  %v3215_v0 = vadd.f32 0.2548296, %v3207_v10 }
 0xa56   : > { %v3141_v22 = vmul.f32 %v9069_v27, %v3034_v17  ;;  %vm3146_vm9 = vweird.f32 %v9069_v27  ;;  %v3257_v48 = vmul.f32 1.442695, %v3242_v8  ;;  %v3214_v16 = vadd.f32 0.2548296, %v3206_v46 }
 0xa57   : > { %vm3147_vm15 = vmor %vm3145_vm14, %vm3146_vm9  ;;  %v3204_v1 = vmul.f32 %v3196_v31, %v11046_v2  ;;  %v3245_v59 = vmul.f32 1.442695, %v3236_v9 }
 0xa58   : > { %v3142_v28 = vsub.f32 1.0, %v3141_v22  ;;  %v11073_v22 = vpop.eup %9070 }
 0xa5a   : > { %v3143_v21 = vmul.f32 %v9069_v27, %v3142_v28  ;;  %v3152_v28 = vor.u32 1.1754944e-38, %v3151_v35  ;;  %v3187_v35 = vmul.f32 %v3179_v4, %v11048_v43 }
 0xa5c   : > { %v3144_v61 = vadd.f32 %v9069_v27, %v3143_v21  ;;  %v3208_v21 = vmul.f32 %v3200_v54, %v10992_v3  ;;  %v3225_v54 = vmul.f32 %v3217_v41, %v10974_v53  ;;  %v3223_v53 = vmul.f32 %v3215_v0, %v11000_v38 }
 0xa5e   : > { %v3148_v39 = vsel %vm3147_vm15, %v9069_v27, %v3144_v61  ;;  %v3253_v27 = vmul.f32 1.442695, %v3240_v37  ;;  %v3216_v26 = vadd.f32 0.2548296, %v3208_v21  ;;  %v3195_v61 = vadd.f32 -0.28449672, %v3187_v35 }
 0xa5f   : > { %v3153_v17 = vsel %vm3150_vm2, %v3152_v28, %v3148_v39  ;;  %v3251_v39 = vmul.f32 1.442695, %v3239_v45  ;;  %v3205_v37 = vmul.f32 %v3197_v13, %v11040_v18  ;;  %v9073_v28 = vpop.eup %9072 }
 0xa60   : > { %v3162_v23 = vmul.f32 1.0614054, %v3153_v17  ;;  %9076 = vpow2.f32 %v3253_v27  ;;  %v3224_v11 = vmul.f32 %v3216_v26, %v10992_v3  ;;  %v9075_v45 = vpop.eup %9074  ;;  %v3203_v42 = vmul.f32 %v3195_v61, %v11048_v43 }
 0xa61   : > { %9078 = vpow2.f32 %v3251_v39  ;;  %v3265_v7 = vmul.f32 %v9075_v45, %v3225_v54  ;;  %v3222_v27 = vmul.f32 %v3214_v16, %v11033_v19  ;;  %v3212_v3 = vadd.f32 0.2548296, %v3204_v1 }
 0xa62   : > { %v3170_v29 = vadd.f32 -1.4531521, %v3162_v23  ;;  %9080 = vpow2.f32 %v3249_v49  ;;  %v3213_v23 = vadd.f32 0.2548296, %v3205_v37 }
 0xa63   : > { %9082 = vpow2.f32 %v3257_v48  ;;  %v3273_v10 = vsub.f32 1.0, %v3265_v7  ;;  %v3220_v46 = vmul.f32 %v3212_v3, %v11046_v2  ;;  %v2999_v3 = vmul.f32 0.5, %v10809_v40 }
 0xa64   : > { %v3178_v25 = vmul.f32 %v3170_v29, %v3153_v17  ;;  %9084 = vpow2.f32 %v3245_v59  ;;  %v3211_v29 = vadd.f32 0.2548296, %v3203_v42  ;;  %v3221_v39 = vmul.f32 %v3213_v23, %v11040_v18 }
 0xa65   : > { %v3289_v19 = vsub.f32 0.0, %v3273_v10  ;;  %v3002_v59 = vmul.f32 0.5, %v10990_v63 }
 0xa66   : > { %v3186_v4 = vadd.f32 1.4214138, %v3178_v25  ;;  %v9077_v21 = vpop.eup %9076  ;;  %v3219_v9 = vmul.f32 %v3211_v29, %v11048_v43  ;;  %v2998_v29 = vmul.f32 0.5, %v10821_v34 }
 0xa67   : > { %v3264_v15 = vmul.f32 %v9077_v21, %v3224_v11  ;;  %v9079_v35 = vpop.eup %9078  ;;  %v3297_v11 = vsel %vm3281_vm3, %v3273_v10, %v3289_v19  ;;  %v2997_v10 = vmul.f32 0.5, %v10815_v55  ;;  %v506_v55 = vld [vmem:[%s14210_s1 + $0x18] sm:$0xff]  ;;  %v512_v19 = vld [vmem:[%s14210_s1 + $0x48] sm:$0xff] }
 0xa68   : > { %v3194_v58 = vmul.f32 %v3186_v4, %v3153_v17  ;;  %v3263_v13 = vmul.f32 %v9079_v35, %v3223_v53  ;;  %v9081_v8 = vpop.eup %9080  ;;  %v3261_v4 = vmul.f32 %v9073_v28, %v3221_v39  ;;  %v3259_v18 = vmul.f32 %v11073_v22, %v3219_v9  ;;  %v510_v9 = vld [vmem:[%s14210_s1 + $0x38] sm:$0xff] }
 0xa69   : > { %v3272_v26 = vsub.f32 1.0, %v3264_v15  ;;  %v3262_v38 = vmul.f32 %v9081_v8, %v3222_v27  ;;  %v9083_v31 = vpop.eup %9082  ;;  %v3305_v47 = vadd.f32 1.0, %v3297_v11  ;;  %v3001_v53 = vmul.f32 0.5, %v10812_v5  ;;  %v520_v11 = vld [vmem:[%s14210_s1 + $0x88] sm:$0xff] }
 0xa6a   : > { %v3202_v56 = vadd.f32 -0.28449672, %v3194_v58  ;;  %v3271_v61 = vsub.f32 1.0, %v3263_v13  ;;  %v9085_v54 = vpop.eup %9084  ;;  %v3269_v2 = vsub.f32 1.0, %v3261_v4  ;;  %v3267_v7 = vsub.f32 1.0, %v3259_v18  ;;  %v514_v4 = vld [vmem:[%s14210_s1 + $0x58] sm:$0xff] }
 0xa6b   : > { %v3288_v37 = vsub.f32 0.0, %v3272_v26  ;;  %v3270_v48 = vsub.f32 1.0, %v3262_v38  ;;  %v3260_v58 = vmul.f32 %v9085_v54, %v3220_v46  ;;  %v3313_v32 = vmul.f32 %v3305_v47, %v3001_v53  ;;  %v507_v38 = vld [vmem:[%s14210_s1 + $0x20] sm:$0xff]  ;;  %v508_v46 = vld [vmem:[%s14210_s1 + $0x28] sm:$0xff] }
 0xa6c   : > { %v3210_v12 = vmul.f32 %v3202_v56, %v3153_v17  ;;  %v3287_v16 = vsub.f32 0.0, %v3271_v61  ;;  %v3285_v22 = vsub.f32 0.0, %v3269_v2  ;;  %v3283_v27 = vsub.f32 0.0, %v3267_v7  ;;  %v515_v54 = vld [vmem:[%s14210_s1 + $0x60] sm:$0xff] }
 0xa6d   : > { %v3296_v1 = vsel %vm3280_vm5, %v3272_v26, %v3288_v37  ;;  %v3286_v28 = vsub.f32 0.0, %v3270_v48  ;;  %v3268_v45 = vsub.f32 1.0, %v3260_v58  ;;  %v503_v26 = vld [vmem:[%s14210_s1] sm:$0xff]  ;;  %v517_v37 = vld [vmem:[%s14210_s1 + $0x70] sm:$0xff] }
 0xa6e   : > { %v3218_v41 = vadd.f32 0.2548296, %v3210_v12  ;;  %v3295_v56 = vsel %vm3279_vm6, %v3271_v61, %v3287_v16  ;;  %v3304_v23 = vadd.f32 1.0, %v3296_v1  ;;  %v3000_v12 = vmul.f32 0.5, %v10803_v24  ;;  %v513_v61 = vld [vmem:[%s14210_s1 + $0x50] sm:$0xff]  ;;  %v519_v18 = vld [vmem:[%s14210_s1 + $0x80] sm:$0xff] }
 0xa6f   : > { %v3294_v62 = vsel %vm3278_vm7, %v3270_v48, %v3286_v28  ;;  %v3284_v21 = vsub.f32 0.0, %v3268_v45  ;;  %v3303_v63 = vadd.f32 1.0, %v3295_v56  ;;  %v3293_v15 = vsel %vm3277_vm8, %v3269_v2, %v3285_v22  ;;  %v518_v48 = vld [vmem:[%s14210_s1 + $0x78] sm:$0xff]  ;;  %v521_v2 = vld [vmem:[%s14210_s1 + $0x90] sm:$0xff] }
 0xa70   : > { %v3226_v25 = vmul.f32 %v3218_v41, %v3153_v17  ;;  %v3312_v36 = vmul.f32 %v3304_v23, %v3000_v12  ;;  %v3302_v5 = vadd.f32 1.0, %v3294_v62  ;;  %v3301_v24 = vadd.f32 1.0, %v3293_v15  ;;  %v522_v1 = vld [vmem:[%s14210_s1 + $0x98] sm:$0xff]  ;;  %v525_v56 = vld [vmem:[%s14210_s1 + $0xb0] sm:$0xff]  ;;  %v528_v62 = vld [vmem:[%s14210_s1 + $0xc8] sm:$0xff] }
 0xa71   : > { %v3292_v35 = vsel %vm3276_vm10, %v3268_v45, %v3284_v21  ;;  %v3311_v33 = vmul.f32 %v3303_v63, %v2999_v3  ;;  %v3291_v41 = vsel %vm3275_vm4, %v3267_v7, %v3283_v27  ;;  %v523_v45 = vld [vmem:[%s14210_s1 + $0xa0] sm:$0xff]  ;;  %v526_v7 = vld [vmem:[%s14210_s1 + $0xb8] sm:$0xff]  ;;  %v529_v12 = vld [vmem:[%s14210_s1 + $0xd0] sm:$0xff] }
 0xa72   : > { %v3266_v49 = vmul.f32 %v9083_v31, %v3226_v25  ;;  %v3310_v13 = vmul.f32 %v3302_v5, %v2998_v29  ;;  %v3300_v39 = vadd.f32 1.0, %v3292_v35  ;;  %v3309_v40 = vmul.f32 %v3301_v24, %v2997_v10  ;;  %v509_v31 = vld [vmem:[%s14210_s1 + $0x30] sm:$0xff]  ;;  %v530_v63 = vld [vmem:[%s14210_s1 + $0xd8] sm:$0xff]  ;;  %v531_v27 = vld [vmem:[%s14210_s1 + $0xe0] sm:$0xff] }
 0xa73   : > { %v3299_v8 = vadd.f32 1.0, %v3291_v41  ;;  %v2995_v25 = vmul.f32 0.5, %v10797_v52  ;;  %v505_v52 = vld [vmem:[%s14210_s1 + $0x10] sm:$0xff]  ;;  %v535_v41 = vld [vmem:[%s14210_s1 + $0x100] sm:$0xff] }
 0xa74   : > { %v3274_v0 = vsub.f32 1.0, %v3266_v49  ;;  %v3308_v6 = vmul.f32 %v3300_v39, %v2996_v44  ;;  %v511_v49 = vld [vmem:[%s14210_s1 + $0x40] sm:$0xff]  ;;  %v533_v35 = vld [vmem:[%s14210_s1 + $0xf0] sm:$0xff] }
 0xa75   : > { %v3307_v34 = vmul.f32 %v3299_v8, %v2995_v25  ;;  %v537_v44 = vld [vmem:[%s14210_s1 + $0x110] sm:$0xff]  ;;  %v538_v8 = vld [vmem:[%s14210_s1 + $0x118] sm:$0xff] }
 0xa76   : > { %v3290_v17 = vsub.f32 0.0, %v3274_v0 }
 0xa78   : > { %v3298_v43 = vsel %vm3282_vm11, %v3274_v0, %v3290_v17  ;;  %v516_v0 = vld [vmem:[%s14210_s1 + $0x68] sm:$0xff] }
 0xa79   : > { %v3306_v42 = vadd.f32 1.0, %v3298_v43 }
 0xa7b   : > { %v3314_v14 = vmul.f32 %v3306_v42, %v3002_v59  ;;  %v524_v42 = vld [vmem:[%s14210_s1 + $0xa8] sm:$0xff] }
 0xa7d   : > { %3539 = vmatpush.msra.mxu1 %v3314_v14  ;;  %v527_v14 = vld [vmem:[%s14210_s1 + $0xc0] sm:$0xff] }
 0xa7f   : > { %3540 = vmatpush.msra.mxu1 %v3313_v32 }
 0xa81   : > { %3541 = vmatpush.msra.mxu1 %v3312_v36  ;;  %v532_v36 = vld [vmem:[%s14210_s1 + $0xe8] sm:$0xff] }
 0xa83   : > { %3542 = vmatpush.msra.mxu1 %v3311_v33  ;;  %v534_v33 = vld [vmem:[%s14210_s1 + $0xf8] sm:$0xff] }
 0xa85   : > { %3543 = vmatpush.msra.mxu1 %v3310_v13  ;;  %v536_v13 = vld [vmem:[%s14210_s1 + $0x108] sm:$0xff] }
 0xa87   : > { %3544 = vmatpush.msra.mxu1 %v3309_v40 }
 0xa89   : > { %3545 = vmatpush.msra.mxu1 %v3308_v6  ;;  %v539_v6 = vld [vmem:[%s14210_s1 + $0x120] sm:$0xff] }
 0xa8b   : > { %3546 = vmatpush.msra.mxu1 %v3307_v34 }
 0xa8c   : > { %8288 = vmatmul.msk.f32.vlgmr.msra.gmra.mxu1 %vm962_vm12, %v503_v26  ;;  %v540_v26 = vld [vmem:[%s14210_s1 + $0x128] sm:$0xff] }
 0xa94   : > { %8289 = vmatmul.msk.f32.gmra.mxu1 %vm962_vm12, %v504_v20 }
 0xa9c   : > { %8290 = vmatmul.msk.f32.gmra.mxu1 %vm962_vm12, %v505_v52  ;;  %v541_v52 = vld [vmem:[%s14210_s1 + $0x130] sm:$0xff] }
 0xaa4   : > { %8291 = vmatmul.msk.f32.gmra.mxu1 %vm962_vm12, %v506_v55 }
 0xaac   : > { %8292 = vmatmul.msk.f32.gmra.mxu1 %vm962_vm12, %v507_v38  ;;  %v542_v38 = vld [vmem:[%s14210_s1 + $0x138] sm:$0xff] }
 0xab4   : > { %8293 = vmatmul.msk.f32.gmra.mxu1 %vm962_vm12, %v508_v46 }
 0xabc   : > { %8294 = vmatmul.msk.f32.gmra.mxu1 %vm962_vm12, %v509_v31  ;;  %v543_v31 = vld [vmem:[%s14210_s1 + $0x140] sm:$0xff] }
 0xac4   : > { %8295 = vmatmul.msk.f32.gmra.mxu1 %vm962_vm12, %v510_v9 }
 0xacc   : > { %8296 = vmatmul.msk.f32.gmra.mxu1 %vm962_vm12, %v511_v49  ;;  %v544_v49 = vld [vmem:[%s14210_s1 + $0x148] sm:$0xff] }
 0xad4   : > { %8297 = vmatmul.msk.f32.gmra.mxu1 %vm962_vm12, %v512_v19 }
 0xadc   : > { %8298 = vmatmul.msk.f32.gmra.mxu1 %vm962_vm12, %v513_v61  ;;  %v545_v61 = vld [vmem:[%s14210_s1 + $0x150] sm:$0xff] }
 0xae4   : > { %8299 = vmatmul.msk.f32.gmra.mxu1 %vm962_vm12, %v514_v4 }
 0xaec   : > { %8300 = vmatmul.msk.f32.gmra.mxu1 %vm962_vm12, %v515_v54  ;;  %v546_v54 = vld [vmem:[%s14210_s1 + $0x158] sm:$0xff] }
 0xaf4   : > { %8301 = vmatmul.msk.f32.gmra.mxu1 %vm962_vm12, %v516_v0 }
 0xafc   : > { %8302 = vmatmul.msk.f32.gmra.mxu1 %vm962_vm12, %v517_v37  ;;  %v547_v37 = vld [vmem:[%s14210_s1 + $0x160] sm:$0xff] }
 0xb04   : > { %8303 = vmatmul.msk.f32.gmra.mxu1 %vm962_vm12, %v518_v48 }
 0xb09   : > { %v11181_v58 = vpop.f32.mrf.mxu1 }
 0xb0c   : > { %8304 = vmatmul.msk.f32.gmra.mxu1 %vm962_vm12, %v519_v18  ;;  %v548_v18 = vld [vmem:[%s14210_s1 + $0x168] sm:$0xff] }
 0xb11   : > { %v11187_v17 = vpop.f32.mrf.mxu1 }
 0xb14   : > { %8305 = vmatmul.msk.f32.gmra.mxu1 %vm962_vm12, %v520_v11 }
 0xb19   : > { %v11193_v16 = vpop.f32.mrf.mxu1 }
 0xb1c   : > { %8306 = vmatmul.msk.f32.gmra.mxu1 %vm962_vm12, %v521_v2  ;;  %v549_v2 = vld [vmem:[%s14210_s1 + $0x170] sm:$0xff] }
 0xb21   : > { %v11199_v43 = vpop.f32.mrf.mxu1 }
 0xb24   : > { %8307 = vmatmul.msk.f32.gmra.mxu1 %vm962_vm12, %v522_v1 }
 0xb29   : > { %v11205_v28 = vpop.f32.mrf.mxu1 }
 0xb2c   : > { %8308 = vmatmul.msk.f32.gmra.mxu1 %vm962_vm12, %v523_v45  ;;  %v550_v45 = vld [vmem:[%s14210_s1 + $0x178] sm:$0xff] }
 0xb31   : > { %v11211_v59 = vpop.f32.mrf.mxu1 }
 0xb34   : > { %8309 = vmatmul.msk.f32.gmra.mxu1 %vm962_vm12, %v524_v42 }
 0xb39   : > { %v11217_v47 = vpop.f32.mrf.mxu1 }
 0xb3c   : > { %8310 = vmatmul.msk.f32.gmra.mxu1 %vm962_vm12, %v525_v56  ;;  %v551_v56 = vld [vmem:[%s14210_s1 + $0x180] sm:$0xff] }
 0xb41   : > { %v11223_v22 = vpop.f32.mrf.mxu1 }
 0xb42   : > { %14298 = vst [vmem:[#allocation11_spill] sm:$0xff] %v11223_v22  ;;  %v11566_v22 = vld [vmem:[%s14220_s11 + $0x4] ss:$0 sm:$0xff] }
 0xb44   : > { %8311 = vmatmul.msk.f32.gmra.mxu1 %vm962_vm12, %v526_v7 }
 0xb49   : > { %v11229_v53 = vpop.f32.mrf.mxu1 }
 0xb4c   : > { %8312 = vmatmul.msk.f32.gmra.mxu1 %vm962_vm12, %v527_v14  ;;  %v552_v14 = vld [vmem:[%s14210_s1 + $0x188] sm:$0xff] }
 0xb51   : > { %v11235_v23 = vpop.f32.mrf.mxu1 }
 0xb54   : > { %8313 = vmatmul.msk.f32.gmra.mxu1 %vm962_vm12, %v528_v62 }
 0xb59   : > { %v11241_v21 = vpop.f32.mrf.mxu1 }
 0xb5c   : > { %8314 = vmatmul.msk.f32.gmra.mxu1 %vm962_vm12, %v529_v12  ;;  %v553_v12 = vld [vmem:[%s14210_s1 + $0x190] sm:$0xff] }
 0xb61   : > { %v11247_v32 = vpop.f32.mrf.mxu1 }
 0xb64   : > { %8315 = vmatmul.msk.f32.gmra.mxu1 %vm962_vm12, %v530_v63 }
 0xb69   : > { %v11253_v15 = vpop.f32.mrf.mxu1 }
 0xb6c   : > { %8316 = vmatmul.msk.f32.gmra.mxu1 %vm962_vm12, %v531_v27  ;;  %v554_v27 = vld [vmem:[%s14210_s1 + $0x198] sm:$0xff] }
 0xb71   : > { %v11259_v3 = vpop.f32.mrf.mxu1 }
 0xb74   : > { %8317 = vmatmul.msk.f32.gmra.mxu1 %vm962_vm12, %v532_v36 }
 0xb79   : > { %v11265_v5 = vpop.f32.mrf.mxu1 }
 0xb7c   : > { %8318 = vmatmul.msk.f32.gmra.mxu1 %vm962_vm12, %v533_v35  ;;  %v555_v35 = vld [vmem:[%s14210_s1 + $0x1a0] sm:$0xff] }
 0xb81   : > { %v11271_v29 = vpop.f32.mrf.mxu1 }
 0xb82   : > { %14299 = vst [vmem:[#allocation12_spill] sm:$0xff] %v11271_v29 }
 0xb84   : > { %8319 = vmatmul.msk.f32.gmra.mxu1 %vm962_vm12, %v534_v33 }
 0xb89   : > { %v11277_v24 = vpop.f32.mrf.mxu1 }
 0xb8c   : > { %8320 = vmatmul.msk.f32.gmra.mxu1 %vm962_vm12, %v535_v41  ;;  %v556_v41 = vld [vmem:[%s14210_s1 + $0x1a8] sm:$0xff] }
 0xb91   : > { %v11283_v10 = vpop.f32.mrf.mxu1 }
 0xb94   : > { %8321 = vmatmul.msk.f32.gmra.mxu1 %vm962_vm12, %v536_v13 }
 0xb99   : > { %v11289_v39 = vpop.f32.mrf.mxu1 }
 0xb9c   : > { %8322 = vmatmul.msk.f32.gmra.mxu1 %vm962_vm12, %v537_v44  ;;  %v557_v44 = vld [vmem:[%s14210_s1 + $0x1b0] sm:$0xff] }
 0xba1   : > { %v11295_v40 = vpop.f32.mrf.mxu1 }
 0xba4   : > { %8323 = vmatmul.msk.f32.gmra.mxu1 %vm962_vm12, %v538_v8 }
 0xba9   : > { %v11301_v25 = vpop.f32.mrf.mxu1 }
 0xbac   : > { %8324 = vmatmul.msk.f32.gmra.mxu1 %vm962_vm12, %v539_v6  ;;  %v558_v6 = vld [vmem:[%s14210_s1 + $0x1b8] sm:$0xff] }
 0xbb1   : > { %v11307_v34 = vpop.f32.mrf.mxu1 }
 0xbb4   : > { %8325 = vmatmul.msk.f32.gmra.mxu1 %vm962_vm12, %v540_v26 }
 0xbb9   : > { %v11313_v20 = vpop.f32.mrf.mxu1 }
 0xbbc   : > { %8326 = vmatmul.msk.f32.gmra.mxu1 %vm962_vm12, %v541_v52  ;;  %v559_v52 = vld [vmem:[%s14210_s1 + $0x1c0] sm:$0xff] }
 0xbc1   : > { %v11319_v55 = vpop.f32.mrf.mxu1 }
 0xbc2   : > { %14300 = vst [vmem:[#allocation13_spill] sm:$0xff] %v11319_v55 }
 0xbc4   : > { %8327 = vmatmul.msk.f32.gmra.mxu1 %vm962_vm12, %v542_v38 }
 0xbc9   : > { %v11325_v46 = vpop.f32.mrf.mxu1 }
 0xbcc   : > { %8328 = vmatmul.msk.f32.gmra.mxu1 %vm962_vm12, %v543_v31  ;;  %v560_v31 = vld [vmem:[%s14210_s1 + $0x1c8] sm:$0xff] }
 0xbd1   : > { %v11331_v9 = vpop.f32.mrf.mxu1 }
 0xbd4   : > { %8329 = vmatmul.msk.f32.gmra.mxu1 %vm962_vm12, %v544_v49 }
 0xbd9   : > { %v11337_v19 = vpop.f32.mrf.mxu1 }
 0xbdc   : > { %8330 = vmatmul.msk.f32.gmra.mxu1 %vm962_vm12, %v545_v61  ;;  %v561_v61 = vld [vmem:[%s14210_s1 + $0x1d0] sm:$0xff] }
 0xbe1   : > { %v11343_v4 = vpop.f32.mrf.mxu1 }
 0xbe4   : > { %8331 = vmatmul.msk.f32.gmra.mxu1 %vm962_vm12, %v546_v54 }
 0xbe9   : > { %v11349_v0 = vpop.f32.mrf.mxu1 }
 0xbec   : > { %8332 = vmatmul.msk.f32.gmra.mxu1 %vm962_vm12, %v547_v37  ;;  %v562_v37 = vld [vmem:[%s14210_s1 + $0x1d8] sm:$0xff] }
 0xbf1   : > { %v11355_v48 = vpop.f32.mrf.mxu1 }
 0xbf4   : > { %8333 = vmatmul.msk.f32.gmra.mxu1 %vm962_vm12, %v548_v18 }
 0xbf9   : > { %v11361_v11 = vpop.f32.mrf.mxu1 }
 0xbfa   : > { %14301 = vst [vmem:[#allocation14_spill] sm:$0xff] %v11361_v11 }
 0xbfc   : > { %8334 = vmatmul.msk.f32.gmra.mxu1 %vm962_vm12, %v549_v2  ;;  %v563_v2 = vld [vmem:[%s14210_s1 + $0x1e0] sm:$0xff] }
 0xc01   : > { %v11367_v1 = vpop.f32.mrf.mxu1 }
 0xc02   : > { %14302 = vst [vmem:[#allocation15_spill] sm:$0xff] %v11367_v1 }
 0xc04   : > { %8335 = vmatmul.msk.f32.gmra.mxu1 %vm962_vm12, %v550_v45 }
 0xc09   : > { %v11373_v42 = vpop.f32.mrf.mxu1 }
 0xc0c   : > { %8336 = vmatmul.msk.f32.gmra.mxu1 %vm962_vm12, %v551_v56  ;;  %v564_v56 = vld [vmem:[%s14210_s1 + $0x1e8] sm:$0xff] }
 0xc11   : > { %v11379_v7 = vpop.f32.mrf.mxu1 }
 0xc14   : > { %8337 = vmatmul.msk.f32.gmra.mxu1 %vm962_vm12, %v552_v14 }
 0xc19   : > { %v11385_v62 = vpop.f32.mrf.mxu1 }
 0xc1c   : > { %8338 = vmatmul.msk.f32.gmra.mxu1 %vm962_vm12, %v553_v12  ;;  %v565_v12 = vld [vmem:[%s14210_s1 + $0x1f0] sm:$0xff] }
 0xc21   : > { %v11391_v63 = vpop.f32.mrf.mxu1 }
 0xc24   : > { %8339 = vmatmul.msk.f32.gmra.mxu1 %vm962_vm12, %v554_v27 }
 0xc29   : > { %v11397_v36 = vpop.f32.mrf.mxu1 }
 0xc2c   : > { %8340 = vmatmul.msk.f32.gmra.mxu1 %vm962_vm12, %v555_v35  ;;  %v566_v35 = vld [vmem:[%s14210_s1 + $0x1f8] sm:$0xff] }
 0xc31   : > { %v11403_v33 = vpop.f32.mrf.mxu1 }
 0xc34   : > { %8341 = vmatmul.msk.f32.gmra.mxu1 %vm962_vm12, %v556_v41 }
 0xc39   : > { %v11409_v13 = vpop.f32.mrf.mxu1 }
 0xc3a   : > { %14303 = vst [vmem:[#allocation16_spill] sm:$0xff] %v11409_v13 }
 0xc3c   : > { %8342 = vmatmul.msk.f32.gmra.mxu1 %vm962_vm12, %v557_v44  ;;  %v567_v44 = vld [vmem:[%s14210_s1 + $0x200] sm:$0xff] }
 0xc41   : > { %v11415_v8 = vpop.f32.mrf.mxu1 }
 0xc42   : > { %14304 = vst [vmem:[#allocation17_spill] sm:$0xff] %v11415_v8  ;;  %v11543_v8 = vld [vmem:[%s14220_s11] ss:$0 sm:$0xff] }
 0xc44   : > { %8343 = vmatmul.msk.f32.gmra.mxu1 %vm962_vm12, %v558_v6 }
 0xc49   : > { %v11421_v26 = vpop.f32.mrf.mxu1 }
 0xc4c   : > { %8344 = vmatmul.msk.f32.gmra.mxu1 %vm962_vm12, %v559_v52  ;;  %v568_v52 = vld [vmem:[%s14210_s1 + $0x208] sm:$0xff] }
 0xc51   : > { %v11427_v38 = vpop.f32.mrf.mxu1 }
 0xc54   : > { %8345 = vmatmul.msk.f32.gmra.mxu1 %vm962_vm12, %v560_v31 }
 0xc59   : > { %v11433_v49 = vpop.f32.mrf.mxu1 }
 0xc5c   : > { %8346 = vmatmul.msk.f32.gmra.mxu1 %vm962_vm12, %v561_v61  ;;  %v569_v61 = vld [vmem:[%s14210_s1 + $0x210] sm:$0xff] }
 0xc61   : > { %v11439_v54 = vpop.f32.mrf.mxu1 }
 0xc64   : > { %8347 = vmatmul.msk.f32.gmra.mxu1 %vm962_vm12, %v562_v37 }
 0xc69   : > { %v11445_v18 = vpop.f32.mrf.mxu1 }
 0xc6c   : > { %8348 = vmatmul.msk.f32.gmra.mxu1 %vm962_vm12, %v563_v2  ;;  %v570_v2 = vld [vmem:[%s14210_s1 + $0x218] sm:$0xff] }
 0xc71   : > { %v11451_v45 = vpop.f32.mrf.mxu1 }
 0xc74   : > { %8349 = vmatmul.msk.f32.gmra.mxu1 %vm962_vm12, %v564_v56 }
 0xc79   : > { %v11457_v14 = vpop.f32.mrf.mxu1 }
 0xc7a   : > { %14305 = vst [vmem:[#allocation18_spill] sm:$0xff] %v11457_v14  ;;  %v11573_v14 = vld [vmem:[%s14220_s11 + $0x5] ss:$0 sm:$0xff] }
 0xc7c   : > { %8350 = vmatmul.msk.f32.gmra.mxu1 %vm962_vm12, %v565_v12  ;;  %v571_v12 = vld [vmem:[%s14210_s1 + $0x220] sm:$0xff] }
 0xc81   : > { %v11463_v27 = vpop.f32.mrf.mxu1 }
 0xc82   : > { %14306 = vst [vmem:[#allocation19_spill] sm:$0xff] %v11463_v27 }
 0xc84   : > { %8351 = vmatmul.msk.f32.gmra.mxu1 %vm962_vm12, %v566_v35 }
 0xc89   : > { %v3692_v41 = vpop.f32.mrf.mxu1 }
 0xc8c   : > { %8352 = vmatmul.msk.f32.gmra.mxu1 %vm962_vm12, %v567_v44  ;;  %v572_v44 = vld [vmem:[%s14210_s1 + $0x228] sm:$0xff] }
 0xc91   : > { %v11473_v6 = vpop.f32.mrf.mxu1 }
 0xc94   : > { %8353 = vmatmul.msk.f32.gmra.mxu1 %vm962_vm12, %v568_v52 }
 0xc99   : > { %v11479_v31 = vpop.f32.mrf.mxu1 }
 0xc9c   : > { %8354 = vmatmul.msk.f32.gmra.mxu1 %vm962_vm12, %v569_v61  ;;  %v573_v61 = vld [vmem:[%s14210_s1 + $0x230] sm:$0xff] }
 0xca1   : > { %v11485_v37 = vpop.f32.mrf.mxu1 }
 0xca4   : > { %8355 = vmatmul.msk.f32.gmra.mxu1 %vm962_vm12, %v570_v2 }
 0xca9   : > { %v11491_v56 = vpop.f32.mrf.mxu1 }
 0xcac   : > { %8356 = vmatmul.msk.f32.gmra.mxu1 %vm962_vm12, %v571_v12  ;;  %v574_v12 = vld [vmem:[%s14210_s1 + $0x238] sm:$0xff] }
 0xcb1   : > { %v11497_v35 = vpop.f32.mrf.mxu1 }
 0xcb2   : > { %14307 = vst [vmem:[#allocation20_spill] sm:$0xff] %v11497_v35 }
 0xcb4   : > { %8357 = vmatmul.msk.f32.gmra.mxu1 %vm962_vm12, %v572_v44  ;;  %v3955_v44 = vld [vmem:[%s14221_s12 + $0x18] sm:$0xff] }
 0xcb5   : > { %3992 = vmatpush.msrb.mxu3 %v3955_v44  ;;  %v11538_v44 = vld [vmem:[%s14220_s11 + $0x1] ss:$0 sm:$0xff] }
 0xcb7   : > { %3993 = vmatpush.msrb.mxu3 %v3954_v50  ;;  %v11548_v50 = vld [vmem:[%s14220_s11 + $0x2] ss:$0 sm:$0xff] }
 0xcb8   : > { %v3810_v55 = vmul.f32 %v11548_v50, %v11277_v24  ;;  %v11580_v24 = vld [vmem:[%s14220_s11 + $0x6] ss:$0 sm:$0xff] }
 0xcb9   : > { %v11503_v52 = vpop.f32.mrf.mxu1 }
 0xcba   : > { %14308 = vst [vmem:[#allocation21_spill] sm:$0xff] %v11503_v52  ;;  %v3768_v52 = vmul.f32 %v11543_v8, %v11181_v58  ;;  %v3852_v58 = vmul.f32 %v11566_v22, %v11373_v42  ;;  %v3811_v42 = vmul.f32 %v11548_v50, %v11283_v10 }
 0xcbc   : > { %8358 = vmatmul.msk.f32.gmra.mxu1 %vm962_vm12, %v573_v61 }
 0xcc1   : > { %v11509_v2 = vpop.f32.mrf.mxu1 }
 0xcc2   : > { %14309 = vst [vmem:[#allocation22_spill] sm:$0xff] %v11509_v2  ;;  %v3952_v2 = vld [vmem:[%s14221_s12] sm:$0xff] }
 0xcc4   : > { %8359 = vmatmul.msk.f32.gmra.mxu1 %vm962_vm12, %v574_v12  ;;  %v3953_v12 = vld [vmem:[%s14221_s12 + $0x8] sm:$0xff] }
 0xcc5   : > { %3994 = vmatpush.msrb.mxu3 %v3953_v12  ;;  %v11557_v12 = vld [vmem:[%s14220_s11 + $0x3] ss:$0 sm:$0xff] }
 0xcc7   : > { %3995 = vmatpush.msrb.mxu3 %v3952_v2  ;;  %v3789_v2 = vmul.f32 %v11538_v44, %v11229_v53  ;;  %v3831_v53 = vmul.f32 %v11557_v12, %v11325_v46 }
 0xcc9   : > { %v3716_v60 = vpop.f32.mrf.mxu1 }
 0xcd1   : > { %v3719_v51 = vpop.f32.mrf.mxu1 }
 0xcd9   : > { %v11515_v30 = vpop.f32.mrf.mxu1 }
 0xce1   : > { %v11520_v57 = vpop.f32.mrf.mxu1 }
 0xce9   : > { %v11522_v61 = vpop.f32.mrf.mxu1 }
 0xcf1   : > { %v11533_v27 = vpop.f32.mrf.mxu1 }
 0xcf2   : > { %14310 = vst [vmem:[#allocation23_spill] sm:$0xff] %v11533_v27 }
 0xcf9   : > { %v11550_v1 = vpop.f32.mrf.mxu1 }
 0xcfa   : > { %14311 = vst [vmem:[#allocation24_spill] sm:$0xff] %v11550_v1  ;;  %v3797_v1 = vadd.f32 %v3789_v2, %v3768_v52  ;;  %v3790_v52 = vmul.f32 %v11538_v44, %v11235_v23  ;;  %v3873_v2 = vmul.f32 %v11573_v14, %v11421_v26  ;;  %v3832_v23 = vmul.f32 %v11557_v12, %v11331_v9 }
 0xcfb   : > { %v3874_v9 = vmul.f32 %v11573_v14, %v11427_v38 }
 0xcfc   : > { %v3818_v29 = vadd.f32 %v3810_v55, %v3797_v1  ;;  %v11591_v55 = vld [vmem:[%s14220_s11 + $0x7] ss:$0 sm:$0xff]  ;;  %v3769_v1 = vmul.f32 %v11543_v8, %v11187_v17  ;;  %v3853_v17 = vmul.f32 %v11566_v22, %v11379_v7  ;;  %v3895_v7 = vmul.f32 %v11580_v24, %v11473_v6 }
 0xcfd   : > { %v3915_v26 = vmul.f32 %v11591_v55, %v3716_v60  ;;  %v3916_v38 = vmul.f32 %v11591_v55, %v3719_v51  ;;  %v3771_v51 = vmul.f32 %v11543_v8, %v11199_v43  ;;  %v3855_v43 = vmul.f32 %v11566_v22, %v11391_v63 }
 0xcfe   : > { %v3839_v46 = vadd.f32 %v3831_v53, %v3818_v29  ;;  %v3798_v11 = vadd.f32 %v3790_v52, %v3769_v1  ;;  %v11604_v53 = vld [vmem:[%s14220_s11 + $0x8] ss:$0 sm:$0xff]  ;;  %v3897_v63 = vmul.f32 %v11580_v24, %v11485_v37 }
 0xd00   : > { %v3860_v27 = vadd.f32 %v3852_v58, %v3839_v46  ;;  %v3819_v35 = vadd.f32 %v3811_v42, %v3798_v11  ;;  %v3770_v46 = vmul.f32 %v11543_v8, %v11193_v16  ;;  %v3812_v11 = vmul.f32 %v11548_v50, %v11289_v39 }
 0xd01   : > { %v11582_v13 = vpop.f32.mrf.mxu1  ;;  %v3854_v16 = vmul.f32 %v11566_v22, %v11385_v62  ;;  %v3792_v39 = vmul.f32 %v11538_v44, %v11247_v32  ;;  %v3896_v62 = vmul.f32 %v11580_v24, %v11479_v31 }
 0xd02   : > { %14312 = vst [vmem:[#allocation25_spill] sm:$0xff] %v11582_v13  ;;  %v3894_v13 = vmul.f32 %v11580_v24, %v3692_v41  ;;  %v3881_v29 = vadd.f32 %v3873_v2, %v3860_v27  ;;  %v3791_v41 = vmul.f32 %v11538_v44, %v11241_v21  ;;  %v3840_v52 = vadd.f32 %v3832_v23, %v3819_v35 }
 0xd03   : > { %v3833_v35 = vmul.f32 %v11557_v12, %v11337_v19  ;;  %v3800_v32 = vadd.f32 %v3792_v39, %v3771_v51 }
 0xd04   : > { %v3902_v10 = vadd.f32 %v3894_v13, %v3881_v29  ;;  %v3861_v2 = vadd.f32 %v3853_v17, %v3840_v52  ;;  %v3799_v21 = vadd.f32 %v3791_v41, %v3770_v46  ;;  %v3834_v52 = vmul.f32 %v11557_v12, %v11343_v4 }
 0xd06   : > { %v3923_v27 = vadd.f32 %v3915_v26, %v3902_v10  ;;  %v3882_v1 = vadd.f32 %v3874_v9, %v3861_v2  ;;  %v3820_v42 = vadd.f32 %v3812_v11, %v3799_v21  ;;  %v3875_v26 = vmul.f32 %v11573_v14, %v11433_v49 }
 0xd07   : > { %v3813_v10 = vmul.f32 %v11548_v50, %v11295_v40  ;;  %v3917_v49 = vmul.f32 %v11591_v55, %v11515_v30  ;;  %v3876_v11 = vmul.f32 %v11573_v14, %v11439_v54  ;;  %v3772_v30 = vmul.f32 %v11543_v8, %v11205_v28 }
 0xd08   : > { %v3903_v23 = vadd.f32 %v3895_v7, %v3882_v1  ;;  %v3841_v6 = vadd.f32 %v3833_v35, %v3820_v42  ;;  %v3814_v7 = vmul.f32 %v11548_v50, %v11301_v25  ;;  %v3835_v35 = vmul.f32 %v11557_v12, %v11349_v0 }
 0xd09   : > { %v3740_v58 = vpop.f32.mrf.mxu1  ;;  %v3918_v54 = vmul.f32 %v11591_v55, %v11520_v57  ;;  %v3856_v28 = vmul.f32 %v11566_v22, %v11397_v36  ;;  %v3794_v42 = vmul.f32 %v11538_v44, %v11259_v3  ;;  %v3773_v57 = vmul.f32 %v11543_v8, %v11211_v59 }
 0xd0a   : > { %v3936_v60 = vmul.f32 %v11604_v53, %v3740_v58  ;;  %v3924_v17 = vadd.f32 %v3916_v38, %v3903_v23  ;;  %v3862_v41 = vadd.f32 %v3854_v16, %v3841_v6  ;;  %v3877_v23 = vmul.f32 %v11573_v14, %v11445_v18 }
 0xd0b   : > { %v3898_v36 = vmul.f32 %v11580_v24, %v11491_v56  ;;  %v3802_v3 = vadd.f32 %v3794_v42, %v3773_v57  ;;  %v3919_v18 = vmul.f32 %v11591_v55, %v11522_v61  ;;  %v3857_v59 = vmul.f32 %v11566_v22, %v11403_v33  ;;  %v14313_v33 = vld [vmem:[#allocation20_spill] sm:$0xff] }
 0xd0c   : > { %v3944_v13 = vadd.f32 %v3936_v60, %v3923_v27  ;;  %v3883_v9 = vadd.f32 %v3875_v26, %v3862_v41  ;;  %v3821_v27 = vadd.f32 %v3813_v10, %v3800_v32  ;;  %v3793_v60 = vmul.f32 %v11538_v44, %v11253_v15 }
 0xd0d   : > { %v3795_v10 = vmul.f32 %v11538_v44, %v11265_v5  ;;  %v3774_v61 = vmul.f32 %v11543_v8, %v11217_v47  ;;  %v3816_v32 = vmul.f32 %v11548_v50, %v11313_v20  ;;  %v14316_v47 = vld [vmem:[#allocation16_spill] sm:$0xff] }
 0xd0e   : > { %8368 = vmatmul.msk.f32.vlgmr.msrb.gmra.mxu3 %vm577_vm0, %v3944_v13  ;;  %v3904_v40 = vadd.f32 %v3896_v62, %v3883_v9  ;;  %v3842_v46 = vadd.f32 %v3834_v52, %v3821_v27  ;;  %v3801_v15 = vadd.f32 %v3793_v60, %v3772_v30  ;;  %v3878_v62 = vmul.f32 %v11573_v14, %v11451_v45  ;;  %v14314_v27 = vld [vmem:[#allocation14_spill] sm:$0xff]  ;;  %v14315_v45 = vld [vmem:[#allocation23_spill] sm:$0xff] }
 0xd0f   : > { %v3899_v9 = vmul.f32 %v11580_v24, %v14313_v33  ;;  %v3803_v5 = vadd.f32 %v3795_v10, %v3774_v61  ;;  %v3920_v60 = vmul.f32 %v11591_v55, %v14315_v45  ;;  %v14327_v10 = vld [vmem:[#allocation25_spill] sm:$0xff] }
 0xd10   : > { %v3925_v4 = vadd.f32 %v3917_v49, %v3904_v40  ;;  %v3863_v13 = vadd.f32 %v3855_v43, %v3842_v46  ;;  %v3822_v38 = vadd.f32 %v3814_v7, %v3801_v15  ;;  %v3837_v43 = vmul.f32 %v11557_v12, %v14314_v27  ;;  %v14318_v7 = vld [vmem:[#allocation18_spill] sm:$0xff]  ;;  %v14319_v15 = vld [vmem:[#allocation11_spill] sm:$0xff] }
 0xd11   : > { %v3743_v29 = vpop.f32.mrf.mxu1  ;;  %v3858_v46 = vmul.f32 %v11566_v22, %v14316_v47 }
 0xd12   : > { %v3937_v19 = vmul.f32 %v11604_v53, %v3743_v29  ;;  %v3884_v1 = vadd.f32 %v3876_v11, %v3863_v13  ;;  %v3843_v16 = vadd.f32 %v3835_v35, %v3822_v38  ;;  %v3815_v29 = vmul.f32 %v11548_v50, %v11307_v34  ;;  %v14317_v11 = vld [vmem:[#allocation12_spill] sm:$0xff] }
 0xd13   : > { %v3879_v13 = vmul.f32 %v11573_v14, %v14318_v7  ;;  %v3775_v35 = vmul.f32 %v11543_v8, %v14319_v15  ;;  %v14324_v8 = vld [vmem:[#allocation17_spill] sm:$0xff] }
 0xd14   : > { %v3945_v58 = vadd.f32 %v3937_v19, %v3924_v17  ;;  %v3905_v25 = vadd.f32 %v3897_v63, %v3884_v1  ;;  %v3864_v6 = vadd.f32 %v3856_v28, %v3843_v16  ;;  %v3836_v17 = vmul.f32 %v11557_v12, %v11355_v48  ;;  %v14320_v1 = vld [vmem:[#allocation13_spill] sm:$0xff] }
 0xd15   : > { %v3823_v51 = vadd.f32 %v3815_v29, %v3802_v3  ;;  %v14321_v28 = vld [vmem:[#allocation21_spill] sm:$0xff]  ;;  %v3859_v29 = vmul.f32 %v11566_v22, %v14324_v8 }
 0xd16   : > { %8369 = vmatmul.msk.f32.gmra.mxu3 %vm577_vm0, %v3945_v58  ;;  %v3926_v0 = vadd.f32 %v3918_v54, %v3905_v25  ;;  %v3885_v19 = vadd.f32 %v3877_v23, %v3864_v6  ;;  %v3817_v54 = vmul.f32 %v11548_v50, %v14320_v1  ;;  %v3900_v25 = vmul.f32 %v11580_v24, %v14321_v28 }
 0xd17   : > { %v3844_v41 = vadd.f32 %v3836_v17, %v3823_v51 }
 0xd18   : > { %v3906_v34 = vadd.f32 %v3898_v36, %v3885_v19 }
 0xd19   : > { %v3746_v31 = vpop.f32.mrf.mxu1  ;;  %v3865_v52 = vadd.f32 %v3857_v59, %v3844_v41 }
 0xd1a   : > { %v3938_v2 = vmul.f32 %v11604_v53, %v3746_v31  ;;  %v3927_v48 = vadd.f32 %v3919_v18, %v3906_v34  ;;  %v3824_v31 = vadd.f32 %v3816_v32, %v3803_v5  ;;  %v14326_v18 = vld [vmem:[#allocation22_spill] sm:$0xff] }
 0xd1b   : > { %v3886_v40 = vadd.f32 %v3878_v62, %v3865_v52  ;;  %v3901_v51 = vmul.f32 %v11580_v24, %v14326_v18 }
 0xd1c   : > { %v3946_v21 = vadd.f32 %v3938_v2, %v3925_v4  ;;  %v3796_v4 = vmul.f32 %v11538_v44, %v14317_v11  ;;  %v3845_v30 = vadd.f32 %v3837_v43, %v3824_v31 }
 0xd1d   : > { %v3907_v20 = vadd.f32 %v3899_v9, %v3886_v40 }
 0xd1e   : > { %8370 = vmatmul.msk.f32.gmra.mxu3 %vm577_vm0, %v3946_v21  ;;  %v3866_v38 = vadd.f32 %v3858_v46, %v3845_v30  ;;  %v3804_v44 = vadd.f32 %v3796_v4, %v3775_v35  ;;  %v4344_v35 = vld [vmem:[%s14222_s13 + $0x18] sm:$0xff] }
 0xd1f   : > { %v3928_v63 = vadd.f32 %v3920_v60, %v3907_v20  ;;  %4381 = vmatpush.msra.mxu0 %v4344_v35 }
 0xd20   : > { %v3887_v23 = vadd.f32 %v3879_v13, %v3866_v38  ;;  %v3825_v57 = vadd.f32 %v3817_v54, %v3804_v44  ;;  %v4343_v44 = vld [vmem:[%s14222_s13 + $0x10] sm:$0xff] }
 0xd21   : > { %v3749_v37 = vpop.f32.mrf.mxu1  ;;  %4382 = vmatpush.msra.mxu0 %v4343_v44 }
 0xd22   : > { %v3939_v39 = vmul.f32 %v11604_v53, %v3749_v37  ;;  %v14322_v37 = vld [vmem:[#allocation15_spill] sm:$0xff]  ;;  %v3908_v50 = vadd.f32 %v3900_v25, %v3887_v23 }
 0xd23   : > { %v3838_v16 = vmul.f32 %v11557_v12, %v14322_v37 }
 0xd24   : > { %v3947_v26 = vadd.f32 %v3939_v39, %v3926_v0  ;;  %v14323_v0 = vld [vmem:[#allocation24_spill] sm:$0xff] }
 0xd25   : > { %v3921_v39 = vmul.f32 %v11591_v55, %v14323_v0  ;;  %v3846_v36 = vadd.f32 %v3838_v16, %v3825_v57  ;;  %v4342_v0 = vld [vmem:[%s14222_s13 + $0x8] sm:$0xff] }
 0xd26   : > { %8371 = vmatmul.msk.f32.gmra.mxu3 %vm577_vm0, %v3947_v26  ;;  %v14325_v26 = vld [vmem:[#allocation19_spill] sm:$0xff]  ;;  %4383 = vmatpush.msra.mxu0 %v4342_v0 }
 0xd27   : > { %v3880_v3 = vmul.f32 %v11573_v14, %v14325_v26  ;;  %v3929_v17 = vadd.f32 %v3921_v39, %v3908_v50  ;;  %v3867_v12 = vadd.f32 %v3859_v29, %v3846_v36  ;;  %v4341_v50 = vld [vmem:[%s14222_s13] sm:$0xff] }
 0xd28   : > { %4384 = vmatpush.msra.mxu0 %v4341_v50 }
 0xd29   : > { %v3752_v56 = vpop.f32.mrf.mxu1  ;;  %v3888_v34 = vadd.f32 %v3880_v3, %v3867_v12 }
 0xd2a   : > { %v3940_v58 = vmul.f32 %v11604_v53, %v3752_v56  ;;  %v3922_v56 = vmul.f32 %v11591_v55, %v14327_v10 }
 0xd2b   : > { %v3909_v22 = vadd.f32 %v3901_v51, %v3888_v34 }
 0xd2c   : > { %v3948_v49 = vadd.f32 %v3940_v58, %v3927_v48 }
 0xd2d   : > { %v3930_v62 = vadd.f32 %v3922_v56, %v3909_v22 }
 0xd2e   : > { %8372 = vmatmul.msk.f32.gmra.mxu3 %vm577_vm0, %v3948_v49 }
 0xd31   : > { %v3755_v2 = vpop.f32.mrf.mxu1 }
 0xd32   : > { %v3941_v21 = vmul.f32 %v11604_v53, %v3755_v2 }
 0xd34   : > { %v3949_v42 = vadd.f32 %v3941_v21, %v3928_v63 }
 0xd36   : > { %8373 = vmatmul.msk.f32.gmra.mxu3 %vm577_vm0, %v3949_v42 }
 0xd39   : > { %v3758_v6 = vpop.f32.mrf.mxu1 }
 0xd3a   : > { %v3942_v19 = vmul.f32 %v11604_v53, %v3758_v6 }
 0xd3c   : > { %v3950_v59 = vadd.f32 %v3942_v19, %v3929_v17 }
 0xd3e   : > { %8374 = vmatmul.msk.f32.gmra.mxu3 %vm577_vm0, %v3950_v59 }
 0xd41   : > { %v3761_v41 = vpop.f32.mrf.mxu1 }
 0xd42   : > { %v3943_v48 = vmul.f32 %v11604_v53, %v3761_v41 }
 0xd44   : > { %v3951_v14 = vadd.f32 %v3943_v48, %v3930_v62 }
 0xd46   : > { %8375 = vmatmul.msk.f32.gmra.mxu3 %vm577_vm0, %v3951_v14 }
 0xd91   : > { %v11725_v58 = vpop.f32.mrf.mxu3 }
 0xd92   : > { %v11728_v61 = vmul.f32 0.70710677, %v11725_v58  ;;  %v4021_v35 = vmul.f32 0.5, %v11725_v58 }
 0xd94   : > { %v4037_v24 = vand.u32 2147483647, %v11728_v61  ;;  %vm4301_vm10 = vcmp.ge.f32.partialorder %v11728_v61, 0.0 }
 0xd96   : > { %v4045_v32 = vmul.f32 0.3275911, %v4037_v24  ;;  %v4253_v13 = vsub.f32 0.0, %v4037_v24 }
 0xd98   : > { %v4053_v52 = vadd.f32 1.0, %v4045_v32  ;;  %v4261_v25 = vmul.f32 %v4253_v13, %v4037_v24 }
 0xd99   : > { %v11731_v55 = vpop.f32.mrf.mxu3 }
 0xd9a   : > { %9086 = vrcp.f32 %v4053_v52  ;;  %v11734_v33 = vmul.f32 0.70710677, %v11731_v55  ;;  %v4072_v60 = vand.u32 2147483648, %v4053_v52  ;;  %v4070_v46 = vand.u32 2147483647, %v4053_v52 }
 0xd9b   : > { %vm4066_vm1 = vweird.f32 %v4053_v52  ;;  %v4269_v36 = vmul.f32 1.442695, %v4261_v25 }
 0xd9c   : > { %v11737_v53 = vand.u32 2147483647, %v11734_v33  ;;  %v4073_v4 = vor.u32 1.1754944e-38, %v4072_v60  ;;  %vm4071_vm14 = vcmp.eq.f32.partialorder %v4070_v46, 8.507059e+37 }
 0xd9e   : > { %v4046_v9 = vmul.f32 0.3275911, %v11737_v53  ;;  %v4254_v12 = vsub.f32 0.0, %v11737_v53 }
 0xda0   : > { %v9087_v49 = vpop.eup %9086  ;;  %v4054_v27 = vadd.f32 1.0, %v4046_v9  ;;  %v4262_v32 = vmul.f32 %v4254_v12, %v11737_v53 }
 0xda1   : > { %v4062_v5 = vmul.f32 %v9087_v49, %v4053_v52  ;;  %v11740_v43 = vpop.f32.mrf.mxu3  ;;  %vm4067_vm13 = vweird.f32 %v9087_v49 }
 0xda2   : > { %v11743_v40 = vmul.f32 0.70710677, %v11740_v43  ;;  %9088 = vrcp.f32 %v4054_v27  ;;  %vm4068_vm9 = vmor %vm4066_vm1, %vm4067_vm13  ;;  %v4087_v42 = vand.u32 2147483648, %v4054_v27  ;;  %v4085_v16 = vand.u32 2147483647, %v4054_v27 }
 0xda3   : > { %v4063_v45 = vsub.f32 1.0, %v4062_v5  ;;  %vm4081_vm2 = vweird.f32 %v4054_v27 }
 0xda4   : > { %v11746_v31 = vand.u32 2147483647, %v11743_v40  ;;  %v4088_v26 = vor.u32 1.1754944e-38, %v4087_v42  ;;  %vm4086_vm5 = vcmp.eq.f32.partialorder %v4085_v16, 8.507059e+37 }
 0xda5   : > { %v4064_v47 = vmul.f32 %v9087_v49, %v4063_v45 }
 0xda6   : > { %v4047_v20 = vmul.f32 0.3275911, %v11746_v31  ;;  %v4255_v41 = vsub.f32 0.0, %v11746_v31 }
 0xda7   : > { %v4065_v11 = vadd.f32 %v9087_v49, %v4064_v47 }
 0xda8   : > { %v11749_v2 = vadd.f32 1.0, %v4047_v20  ;;  %v9089_v30 = vpop.eup %9088  ;;  %v4263_v45 = vmul.f32 %v4255_v41, %v11746_v31 }
 0xda9   : > { %v4069_v7 = vsel %vm4068_vm9, %v9087_v49, %v4065_v11  ;;  %v11751_v63 = vpop.f32.mrf.mxu3  ;;  %v4077_v15 = vmul.f32 %v9089_v30, %v4054_v27  ;;  %vm4082_vm15 = vweird.f32 %v9089_v30 }
 0xdaa   : > { %v11753_v21 = vsel %vm4071_vm14, %v4073_v4, %v4069_v7  ;;  %9090 = vrcp.f32 %v11749_v2  ;;  %v11761_v38 = vmul.f32 0.70710677, %v11751_v63  ;;  %vm4083_vm3 = vmor %vm4081_vm2, %vm4082_vm15  ;;  %v4102_v22 = vand.u32 2147483648, %v11749_v2 }
 0xdab   : > { %v4181_v1 = vmul.f32 1.0614054, %v11753_v21  ;;  %v4078_v54 = vsub.f32 1.0, %v4077_v15  ;;  %v4100_v14 = vand.u32 2147483647, %v11749_v2  ;;  %vm4096_vm6 = vweird.f32 %v11749_v2 }
 0xdac   : > { %v11767_v23 = vand.u32 2147483647, %v11761_v38  ;;  %v4103_v27 = vor.u32 1.1754944e-38, %v4102_v22  ;;  %v4271_v4 = vmul.f32 1.442695, %v4262_v32  ;;  %vm4302_vm14 = vcmp.ge.f32.partialorder %v11734_v33, 0.0 }
 0xdad   : > { %v4189_v28 = vadd.f32 -1.4531521, %v4181_v1  ;;  %v4079_v37 = vmul.f32 %v9089_v30, %v4078_v54  ;;  %vm4101_vm8 = vcmp.eq.f32.partialorder %v4100_v14, 8.507059e+37  ;;  %v4273_v54 = vmul.f32 1.442695, %v4263_v45 }
 0xdae   : > { %v4048_v29 = vmul.f32 0.3275911, %v11767_v23 }
 0xdaf   : > { %v4197_v39 = vmul.f32 %v4189_v28, %v11753_v21  ;;  %v4080_v8 = vadd.f32 %v9089_v30, %v4079_v37 }
 0xdb0   : > { %v9091_v57 = vpop.eup %9090  ;;  %v11781_v18 = vadd.f32 1.0, %v4048_v29 }
 0xdb1   : > { %v4205_v6 = vadd.f32 1.4214138, %v4197_v39  ;;  %v4092_v3 = vmul.f32 %v9091_v57, %v11749_v2  ;;  %v11778_v17 = vpop.f32.mrf.mxu3  ;;  %v4084_v19 = vsel %vm4083_vm3, %v9089_v30, %v4080_v8  ;;  %vm4097_vm11 = vweird.f32 %v9091_v57 }
 0xdb2   : > { %v11784_v59 = vsel %vm4086_vm5, %v4088_v26, %v4084_v19  ;;  %v11787_v10 = vmul.f32 0.70710677, %v11778_v17  ;;  %9092 = vrcp.f32 %v11781_v18  ;;  %vm4098_vm7 = vmor %vm4096_vm6, %vm4097_vm11  ;;  %v4117_v37 = vand.u32 2147483648, %v11781_v18 }
 0xdb3   : > { %v4213_v51 = vmul.f32 %v4205_v6, %v11753_v21  ;;  %v4093_v34 = vsub.f32 1.0, %v4092_v3  ;;  %v4182_v56 = vmul.f32 1.0614054, %v11784_v59  ;;  %9094 = vpow2.f32 %v4269_v36 }
 0xdb4   : > { %v11796_v52 = vand.u32 2147483647, %v11787_v10  ;;  %vm4111_vm13 = vweird.f32 %v11781_v18  ;;  %v4118_v3 = vor.u32 1.1754944e-38, %v4117_v37  ;;  %vm4303_vm11 = vcmp.ge.f32.partialorder %v11743_v40, 0.0 }
 0xdb5   : > { %v4221_v62 = vadd.f32 -0.28449672, %v4213_v51  ;;  %v4094_v48 = vmul.f32 %v9091_v57, %v4093_v34  ;;  %v4190_v24 = vadd.f32 -1.4531521, %v4182_v56 }
 0xdb6   : > { %v4049_v60 = vmul.f32 0.3275911, %v11796_v52 }
 0xdb7   : > { %v4229_v9 = vmul.f32 %v4221_v62, %v11753_v21  ;;  %v4095_v49 = vadd.f32 %v9091_v57, %v4094_v48  ;;  %v4198_v5 = vmul.f32 %v4190_v24, %v11784_v59 }
 0xdb8   : > { %v9093_v20 = vpop.eup %9092  ;;  %v11807_v7 = vadd.f32 1.0, %v4049_v60 }
 0xdb9   : > { %v4237_v47 = vadd.f32 0.2548296, %v4229_v9  ;;  %v4099_v46 = vsel %vm4098_vm7, %v9091_v57, %v4095_v49  ;;  %v11803_v53 = vpop.f32.mrf.mxu3  ;;  %v4206_v11 = vadd.f32 1.4214138, %v4198_v5  ;;  %v4107_v31 = vmul.f32 %v9093_v20, %v11781_v18  ;;  %v9095_v15 = vpop.eup %9094 }
 0xdba   : > { %v11805_v30 = vsel %vm4101_vm8, %v4103_v27, %v4099_v46  ;;  %9096 = vrcp.f32 %v11807_v7  ;;  %vm4112_vm4 = vweird.f32 %v9093_v20  ;;  %v4256_v57 = vsub.f32 0.0, %v11767_v23 }
 0xdbb   : > { %v4245_v2 = vmul.f32 %v4237_v47, %v11753_v21  ;;  %v4183_v13 = vmul.f32 1.0614054, %v11805_v30  ;;  %v4214_v1 = vmul.f32 %v4206_v11, %v11784_v59  ;;  %v4108_v42 = vsub.f32 1.0, %v4107_v31  ;;  %vm4113_vm1 = vmor %vm4111_vm13, %vm4112_vm4 }
 0xdbc   : > { %9098 = vpow2.f32 %v4271_v4  ;;  %v4115_v21 = vand.u32 2147483647, %v11781_v18  ;;  %v11822_v8 = vmul.f32 0.70710677, %v11803_v53  ;;  %v4130_v14 = vand.u32 2147483647, %v11807_v7 }
 0xdbd   : > { %v4285_v28 = vmul.f32 %v9095_v15, %v4245_v2  ;;  %v4191_v25 = vadd.f32 -1.4531521, %v4183_v13  ;;  %v4222_v44 = vadd.f32 -0.28449672, %v4214_v1  ;;  %v4109_v58 = vmul.f32 %v9093_v20, %v4108_v42 }
 0xdbe   : > { %9100 = vpow2.f32 %v4273_v54  ;;  %vm4116_vm9 = vcmp.eq.f32.partialorder %v4115_v21, 8.507059e+37  ;;  %v11826_v19 = vand.u32 2147483647, %v11822_v8  ;;  %v4132_v9 = vand.u32 2147483648, %v11807_v7 }
 0xdbf   : > { %v4293_v16 = vsub.f32 1.0, %v4285_v28  ;;  %v4199_v0 = vmul.f32 %v4191_v25, %v11805_v30  ;;  %v4230_v39 = vmul.f32 %v4222_v44, %v11784_v59  ;;  %v4110_v6 = vadd.f32 %v9093_v20, %v4109_v58 }
 0xdc0   : > { %v9097_v36 = vpop.eup %9096  ;;  %v4050_v45 = vmul.f32 0.3275911, %v11826_v19  ;;  %v4264_v11 = vmul.f32 %v4256_v57, %v11767_v23  ;;  %v4257_v4 = vsub.f32 0.0, %v11796_v52  ;;  %vm4126_vm2 = vweird.f32 %v11807_v7 }
 0xdc1   : > { %v4309_v29 = vsub.f32 0.0, %v4293_v16  ;;  %v4207_v50 = vadd.f32 1.4214138, %v4199_v0  ;;  %v4238_v26 = vadd.f32 0.2548296, %v4230_v39  ;;  %v4114_v34 = vsel %vm4113_vm1, %v9093_v20, %v4110_v6  ;;  %v11833_v22 = vpop.f32.mrf.mxu3 }
 0xdc2   : > { %v4122_v56 = vmul.f32 %v9097_v36, %v11807_v7  ;;  %v9099_v18 = vpop.eup %9098  ;;  %v11836_v48 = vsel %vm4116_vm9, %v4118_v3, %v4114_v34  ;;  %v11843_v60 = vmul.f32 0.70710677, %v11833_v22  ;;  %vm4127_vm15 = vweird.f32 %v9097_v36 }
 0xdc3   : > { %v4317_v12 = vsel %vm4301_vm10, %v4293_v16, %v4309_v29  ;;  %v4215_v51 = vmul.f32 %v4207_v50, %v11805_v30  ;;  %v4246_v62 = vmul.f32 %v4238_v26, %v11784_v59  ;;  %v4184_v61 = vmul.f32 1.0614054, %v11836_v48  ;;  %vm4128_vm3 = vmor %vm4126_vm2, %vm4127_vm15 }
 0xdc4   : > { %v4325_v41 = vadd.f32 1.0, %v4317_v12  ;;  %v4123_v32 = vsub.f32 1.0, %v4122_v56  ;;  %v9101_v49 = vpop.eup %9100  ;;  %v11848_v2 = vadd.f32 1.0, %v4050_v45  ;;  %v4133_v1 = vor.u32 1.1754944e-38, %v4132_v9 }
 0xdc5   : > { %v4223_v24 = vadd.f32 -0.28449672, %v4215_v51  ;;  %v4286_v27 = vmul.f32 %v9099_v18, %v4246_v62  ;;  %v4192_v47 = vadd.f32 -1.4531521, %v4184_v61  ;;  %v11855_v54 = vand.u32 2147483647, %v11843_v60 }
 0xdc6   : > { %v4333_v5 = vmul.f32 %v4325_v41, %v4021_v35  ;;  %v4124_v46 = vmul.f32 %v9097_v36, %v4123_v32  ;;  %9102 = vrcp.f32 %v11848_v2  ;;  %vm4131_vm5 = vcmp.eq.f32.partialorder %v4130_v14, 8.507059e+37 }
 0xdc7   : > { %v4231_v59 = vmul.f32 %v4223_v24, %v11805_v30  ;;  %v4294_v20 = vsub.f32 1.0, %v4286_v27  ;;  %v4200_v31 = vmul.f32 %v4192_v47, %v11836_v48  ;;  %v4022_v42 = vmul.f32 0.5, %v11731_v55 }
 0xdc8   : > { %8376 = vmatmul.msk.f32.vlgmr.msra.gmra.mxu0 %vm577_vm0, %v4333_v5  ;;  %v4125_v15 = vadd.f32 %v9097_v36, %v4124_v46  ;;  %v4275_v21 = vmul.f32 1.442695, %v4264_v11  ;;  %v4051_v57 = vmul.f32 0.3275911, %v11855_v54  ;;  %v4023_v34 = vmul.f32 0.5, %v11740_v43 }
 0xdc9   : > { %v4239_v13 = vadd.f32 0.2548296, %v4231_v59  ;;  %v4310_v35 = vsub.f32 0.0, %v4294_v20  ;;  %v4208_v28 = vadd.f32 1.4214138, %v4200_v31  ;;  %v11865_v39 = vpop.f32.mrf.mxu3  ;;  %v4147_v32 = vand.u32 2147483648, %v11848_v2 }
 0xdca   : > { %v4129_v25 = vsel %vm4128_vm3, %v9097_v36, %v4125_v15  ;;  %9104 = vpow2.f32 %v4275_v21  ;;  %v11869_v36 = vadd.f32 1.0, %v4051_v57  ;;  %v11872_v26 = vmul.f32 0.70710677, %v11865_v39 }
 0xdcb   : > { %v4247_v23 = vmul.f32 %v4239_v13, %v11805_v30  ;;  %v4318_v44 = vsel %vm4302_vm14, %v4294_v20, %v4310_v35  ;;  %v11861_v7 = vsel %vm4131_vm5, %v4133_v1, %v4129_v25  ;;  %v4216_v0 = vmul.f32 %v4208_v28, %v11836_v48 }
 0xdcc   : > { %v4326_v37 = vadd.f32 1.0, %v4318_v44  ;;  %v4185_v58 = vmul.f32 1.0614054, %v11861_v7  ;;  %v4265_v30 = vmul.f32 %v4257_v4, %v11796_v52  ;;  %v9103_v6 = vpop.eup %9102  ;;  %9106 = vrcp.f32 %v11869_v36 }
 0xdcd   : > { %v4287_v16 = vmul.f32 %v9101_v49, %v4247_v23  ;;  %v4224_v50 = vadd.f32 -0.28449672, %v4216_v0  ;;  %v4137_v52 = vmul.f32 %v9103_v6, %v11848_v2  ;;  %vm4142_vm6 = vweird.f32 %v9103_v6 }
 0xdce   : > { %v4334_v29 = vmul.f32 %v4326_v37, %v4022_v42  ;;  %v4193_v33 = vadd.f32 -1.4531521, %v4185_v58  ;;  %v4277_v56 = vmul.f32 1.442695, %v4265_v30  ;;  %v4145_v61 = vand.u32 2147483647, %v11848_v2 }
 0xdcf   : > { %v4295_v55 = vsub.f32 1.0, %v4287_v16  ;;  %v4232_v12 = vmul.f32 %v4224_v50, %v11836_v48  ;;  %v4138_v14 = vsub.f32 1.0, %v4137_v52  ;;  %v11886_v40 = vand.u32 2147483647, %v11872_v26 }
 0xdd0   : > { %v4201_v51 = vmul.f32 %v4193_v33, %v11861_v7  ;;  %8377 = vmatmul.msk.f32.gmra.mxu0 %vm577_vm0, %v4334_v29  ;;  %v9105_v5 = vpop.eup %9104  ;;  %vm4141_vm7 = vweird.f32 %v11848_v2  ;;  %v4258_v45 = vsub.f32 0.0, %v11826_v19  ;;  %9108 = vpow2.f32 %v4277_v56 }
 0xdd1   : > { %v4311_v3 = vsub.f32 0.0, %v4295_v55  ;;  %v4240_v41 = vadd.f32 0.2548296, %v4232_v12  ;;  %v4139_v43 = vmul.f32 %v9103_v6, %v4138_v14  ;;  %v4052_v20 = vmul.f32 0.3275911, %v11886_v40  ;;  %vm4143_vm8 = vmor %vm4141_vm7, %vm4142_vm6 }
 0xdd2   : > { %v4209_v62 = vadd.f32 1.4214138, %v4201_v51  ;;  %v9107_v11 = vpop.eup %9106  ;;  %vm4146_vm10 = vcmp.eq.f32.partialorder %v4145_v61, 8.507059e+37  ;;  %vm4304_vm4 = vcmp.ge.f32.partialorder %v11761_v38, 0.0  ;;  %v4266_v35 = vmul.f32 %v4258_v45, %v11826_v19 }
 0xdd3   : > { %v4319_v18 = vsel %vm4303_vm11, %v4295_v55, %v4311_v3  ;;  %v4248_v9 = vmul.f32 %v4240_v41, %v11836_v48  ;;  %v4140_v46 = vadd.f32 %v9103_v6, %v4139_v43  ;;  %v4148_v48 = vor.u32 1.1754944e-38, %v4147_v32 }
 0xdd4   : > { %v4327_v24 = vadd.f32 1.0, %v4319_v18  ;;  %v4217_v49 = vmul.f32 %v4209_v62, %v11861_v7  ;;  %v4152_v15 = vmul.f32 %v9107_v11, %v11869_v36  ;;  %v11899_v1 = vadd.f32 1.0, %v4052_v20 }
 0xdd5   : > { %v4288_v59 = vmul.f32 %v9105_v5, %v4248_v9  ;;  %v4144_v31 = vsel %vm4143_vm8, %v9103_v6, %v4140_v46  ;;  %vm4157_vm13 = vweird.f32 %v9107_v11  ;;  %v4160_v44 = vand.u32 2147483647, %v11869_v36 }
 0xdd6   : > { %v4335_v27 = vmul.f32 %v4327_v24, %v4023_v34  ;;  %v4225_v47 = vadd.f32 -0.28449672, %v4217_v49  ;;  %v11896_v2 = vsel %vm4146_vm10, %v4148_v48, %v4144_v31  ;;  %v4153_v42 = vsub.f32 1.0, %v4152_v15  ;;  %v9109_v19 = vpop.eup %9108 }
 0xdd7   : > { %v4296_v4 = vsub.f32 1.0, %v4288_v59  ;;  %v4186_v25 = vmul.f32 1.0614054, %v11896_v2  ;;  %v4162_v21 = vand.u32 2147483648, %v11869_v36  ;;  %9110 = vrcp.f32 %v11899_v1 }
 0xdd8   : > { %v4233_v13 = vmul.f32 %v4225_v47, %v11861_v7  ;;  %8378 = vmatmul.msk.f32.gmra.mxu0 %vm577_vm0, %v4335_v27  ;;  %v4154_v0 = vmul.f32 %v9107_v11, %v4153_v42  ;;  %v4024_v58 = vmul.f32 0.5, %v11751_v63  ;;  %vm4156_vm1 = vweird.f32 %v11869_v36 }
 0xdd9   : > { %v4312_v23 = vsub.f32 0.0, %v4296_v4  ;;  %v4194_v16 = vadd.f32 -1.4531521, %v4186_v25  ;;  %v4279_v33 = vmul.f32 1.442695, %v4266_v35  ;;  %vm4158_vm9 = vmor %vm4156_vm1, %vm4157_vm13  ;;  %v4163_v6 = vor.u32 1.1754944e-38, %v4162_v21 }
 0xdda   : > { %v4241_v28 = vadd.f32 0.2548296, %v4233_v13  ;;  %v4155_v55 = vadd.f32 %v9107_v11, %v4154_v0  ;;  %vm4161_vm14 = vcmp.eq.f32.partialorder %v4160_v44, 8.507059e+37  ;;  %v4259_v63 = vsub.f32 0.0, %v11855_v54 }
 0xddb   : > { %v4320_v37 = vsel %vm4304_vm4, %v4296_v4, %v4312_v23  ;;  %v4202_v29 = vmul.f32 %v4194_v16, %v11896_v2  ;;  %v4025_v41 = vmul.f32 0.5, %v11778_v17  ;;  %vm4305_vm15 = vcmp.ge.f32.partialorder %v11787_v10, 0.0 }
 0xddc   : > { %v4249_v38 = vmul.f32 %v4241_v28, %v11861_v7  ;;  %v4328_v30 = vadd.f32 1.0, %v4320_v37  ;;  %v4159_v7 = vsel %vm4158_vm9, %v9107_v11, %v4155_v55  ;;  %9112 = vpow2.f32 %v4279_v33 }
 0xddd   : > { %v4210_v12 = vadd.f32 1.4214138, %v4202_v29  ;;  %v9111_v51 = vpop.eup %9110  ;;  %v4164_v52 = vsel %vm4161_vm14, %v4163_v6, %v4159_v7  ;;  %v4267_v9 = vmul.f32 %v4259_v63, %v11855_v54  ;;  %v4175_v49 = vand.u32 2147483647, %v11899_v1 }
 0xdde   : > { %v4289_v57 = vmul.f32 %v9109_v19, %v4249_v38  ;;  %v4336_v50 = vmul.f32 %v4328_v30, %v4024_v58  ;;  %v4187_v18 = vmul.f32 1.0614054, %v4164_v52  ;;  %v4167_v36 = vmul.f32 %v9111_v51, %v11899_v1 }
 0xddf   : > { %v4218_v56 = vmul.f32 %v4210_v12, %v11896_v2  ;;  %v4177_v43 = vand.u32 2147483648, %v11899_v1  ;;  %vm4172_vm2 = vweird.f32 %v9111_v51  ;;  %vm4171_vm3 = vweird.f32 %v11899_v1 }
 0xde0   : > { %v4297_v3 = vsub.f32 1.0, %v4289_v57  ;;  %8379 = vmatmul.msk.f32.gmra.mxu0 %vm577_vm0, %v4336_v50  ;;  %v4195_v24 = vadd.f32 -1.4531521, %v4187_v18  ;;  %v4168_v61 = vsub.f32 1.0, %v4167_v36  ;;  %v4281_v20 = vmul.f32 1.442695, %v4267_v9  ;;  %vm4173_vm5 = vmor %vm4171_vm3, %vm4172_vm2 }
 0xde1   : > { %v4226_v14 = vadd.f32 -0.28449672, %v4218_v56  ;;  %v4178_v11 = vor.u32 1.1754944e-38, %v4177_v43  ;;  %vm4176_vm11 = vcmp.eq.f32.partialorder %v4175_v49, 8.507059e+37  ;;  %v4260_v31 = vsub.f32 0.0, %v11886_v40  ;;  %v14329_v9 = vld [vmem:[#allocation6_spill] sm:$0xff] }
 0xde2   : > { %v4313_v34 = vsub.f32 0.0, %v4297_v3  ;;  %v4203_v27 = vmul.f32 %v4195_v24, %v4164_v52  ;;  %v4169_v45 = vmul.f32 %v9111_v51, %v4168_v61  ;;  %v9113_v46 = vpop.eup %9112  ;;  %9114 = vpow2.f32 %v4281_v20 }
 0xde3   : > { %v4234_v5 = vmul.f32 %v4226_v14, %v11896_v2  ;;  %v4268_v42 = vmul.f32 %v4260_v31, %v11886_v40  ;;  %vm4306_vm6 = vcmp.ge.f32.partialorder %v11822_v8, 0.0  ;;  %v4026_v19 = vmul.f32 0.5, %v11803_v53  ;;  %v14328_v14 = vld [vmem:[#allocation5_spill] sm:$0xff] }
 0xde4   : > { %v4321_v62 = vsel %vm4305_vm15, %v4297_v3, %v4313_v34  ;;  %v4211_v10 = vadd.f32 1.4214138, %v4203_v27  ;;  %v4170_v47 = vadd.f32 %v9111_v51, %v4169_v45  ;;  %vm4307_vm7 = vcmp.ge.f32.partialorder %v11843_v60, 0.0  ;;  %v14330_v27 = vld [vmem:[#allocation7_spill] sm:$0xff] }
 0xde5   : > { %v4329_v32 = vadd.f32 1.0, %v4321_v62  ;;  %v4242_v59 = vadd.f32 0.2548296, %v4234_v5  ;;  %v4283_v30 = vmul.f32 1.442695, %v4268_v42  ;;  %v4027_v12 = vmul.f32 0.5, %v11833_v22 }
 0xde6   : > { %v4219_v48 = vmul.f32 %v4211_v10, %v4164_v52  ;;  %v4174_v4 = vsel %vm4173_vm5, %v9111_v51, %v4170_v47  ;;  %vm4308_vm8 = vcmp.ge.f32.partialorder %v11872_v26, 0.0  ;;  %v4028_v36 = vmul.f32 0.5, %v11865_v39  ;;  %v8875_v22 = vld [vmem:[%s14223_s14] ss:$0 sm:$0xff]  ;;  %v14331_v47 = vld [vmem:[#allocation8_spill] sm:$0xff] }
 0xde7   : > { %v4337_v17 = vmul.f32 %v4329_v32, %v4025_v41  ;;  %v4250_v54 = vmul.f32 %v4242_v59, %v11896_v2  ;;  %v4179_v13 = vsel %vm4176_vm11, %v4178_v11, %v4174_v4  ;;  %9116 = vpow2.f32 %v4283_v30  ;;  %v14334_v42 = vld [vmem:[#allocation10_spill] sm:$0xff]  ;;  %v14336_v30 = vld [vmem:[#allocation4_spill] sm:$0xff] }
 0xde8   : > { %v4227_v35 = vadd.f32 -0.28449672, %v4219_v48  ;;  %v4188_v23 = vmul.f32 1.0614054, %v4179_v13  ;;  %v9115_v0 = vpop.eup %9114  ;;  %v14332_v48 = vld [vmem:[#allocation9_spill] sm:$0xff] }
 0xde9   : > { %8380 = vmatmul.msk.f32.gmra.mxu0 %vm577_vm0, %v4337_v17  ;;  %v4290_v15 = vmul.f32 %v9113_v46, %v4250_v54 }
 0xdea   : > { %v4235_v1 = vmul.f32 %v4227_v35, %v4164_v52  ;;  %v4196_v25 = vadd.f32 -1.4531521, %v4188_v23  ;;  %v14333_v35 = vld [vmem:[#allocation3_spill] sm:$0xff] }
 0xdeb   : > { %v4298_v28 = vsub.f32 1.0, %v4290_v15 }
 0xdec   : > { %v4243_v21 = vadd.f32 0.2548296, %v4235_v1  ;;  %v4204_v37 = vmul.f32 %v4196_v25, %v4179_v13 }
 0xded   : > { %v4314_v44 = vsub.f32 0.0, %v4298_v28  ;;  %v9117_v51 = vpop.eup %9116 }
 0xdee   : > { %v4251_v38 = vmul.f32 %v4243_v21, %v4164_v52  ;;  %v4212_v16 = vadd.f32 1.4214138, %v4204_v37 }
 0xdef   : > { %v4322_v2 = vsel %vm4306_vm6, %v4298_v28, %v4314_v44 }
 0xdf0   : > { %v4330_v58 = vadd.f32 1.0, %v4322_v2  ;;  %v4291_v57 = vmul.f32 %v9115_v0, %v4251_v38  ;;  %v4220_v29 = vmul.f32 %v4212_v16, %v4179_v13  ;;  %v14335_v38 = vld [vmem:[#allocation2_spill] sm:$0xff] }
 0xdf2   : > { %v4338_v55 = vmul.f32 %v4330_v58, %v4026_v19  ;;  %v4299_v50 = vsub.f32 1.0, %v4291_v57  ;;  %v4228_v33 = vadd.f32 -0.28449672, %v4220_v29 }
 0xdf4   : > { %8381 = vmatmul.msk.f32.gmra.mxu0 %vm577_vm0, %v4338_v55  ;;  %v4315_v40 = vsub.f32 0.0, %v4299_v50  ;;  %v4236_v6 = vmul.f32 %v4228_v33, %v4179_v13 }
 0xdf6   : > { %v4323_v8 = vsel %vm4307_vm7, %v4299_v50, %v4315_v40  ;;  %v4244_v3 = vadd.f32 0.2548296, %v4236_v6 }
 0xdf7   : > { %v4331_v7 = vadd.f32 1.0, %v4323_v8 }
 0xdf8   : > { %v4252_v53 = vmul.f32 %v4244_v3, %v4179_v13 }
 0xdf9   : > { %v4339_v52 = vmul.f32 %v4331_v7, %v4027_v12 }
 0xdfa   : > { %v4292_v63 = vmul.f32 %v9117_v51, %v4252_v53 }
 0xdfc   : > { %8382 = vmatmul.msk.f32.gmra.mxu0 %vm577_vm0, %v4339_v52  ;;  %v4300_v34 = vsub.f32 1.0, %v4292_v63 }
 0xdfe   : > { %v4316_v56 = vsub.f32 0.0, %v4300_v34 }
 0xe00   : > { %v4324_v18 = vsel %vm4308_vm8, %v4300_v34, %v4316_v56 }
 0xe01   : > { %v4332_v41 = vadd.f32 1.0, %v4324_v18 }
 0xe03   : > { %v4340_v60 = vmul.f32 %v4332_v41, %v4028_v36 }
 0xe05   : > { %8383 = vmatmul.msk.f32.gmra.mxu0 %vm577_vm0, %v4340_v60 }
 0xe45   : > { %v4386_v62 = vpop.f32.mrf.mxu0 }
 0xe46   : > { %v4410_v24 = vadd.f32 %v4386_v62, %v14328_v14 }
 0xe48   : > { %v11938_v61 = vadd.f32 %v8875_v22, %v4410_v24 }
 0xe4a   : > { %v4434_v32 = vsel %vm577_vm0, %v11938_v61, 0.0 }
 0xe4b   : > { %4435 = vadd.xlane.f32.xlu1 %v4434_v32 }
 0xe4d   : > { %v4389_v26 = vpop.f32.mrf.mxu0 }
 0xe4e   : > { %v4411_v39 = vadd.f32 %v4389_v26, %v14329_v9 }
 0xe50   : > { %v11943_v49 = vadd.f32 %v8875_v22, %v4411_v39 }
 0xe52   : > { %v4437_v43 = vsel %vm577_vm0, %v11943_v49, 0.0 }
 0xe53   : > { %4438 = vadd.xlane.f32.xlu2 %v4437_v43 }
 0xe55   : > { %v4392_v5 = vpop.f32.mrf.mxu0 }
 0xe56   : > { %v4412_v45 = vadd.f32 %v4392_v5, %v14330_v27 }
 0xe58   : > { %v11948_v17 = vadd.f32 %v8875_v22, %v4412_v45 }
 0xe5a   : > { %v4440_v59 = vsel %vm577_vm0, %v11948_v17, 0.0 }
 0xe5b   : > { %4441 = vadd.xlane.f32.xlu0 %v4440_v59 }
 0xe5d   : > { %v4395_v10 = vpop.f32.mrf.mxu0 }
 0xe5e   : > { %v4413_v46 = vadd.f32 %v4395_v10, %v14331_v47 }
 0xe60   : > { %v11953_v20 = vadd.f32 %v8875_v22, %v4413_v46  ;;  %v8389_v46 = vld [vmem:[%s14213_s4 + $0x38] sm:$0xff] }
 0xe61   : > { %4673 = vmatpush.msra.mxu2 %v8389_v46 }
 0xe62   : > { %v4443_v11 = vsel %vm577_vm0, %v11953_v20, 0.0 }
 0xe63   : > { %4444 = vadd.xlane.f32.xlu1 %v4443_v11 }
 0xe66   : > { %v4398_v54 = vpop.f32.mrf.mxu0 }
 0xe67   : > { %v4414_v4 = vadd.f32 %v4398_v54, %v14332_v48  ;;  %v8388_v54 = vld [vmem:[%s14213_s4 + $0x30] sm:$0xff]  ;;  %v8387_v48 = vld [vmem:[%s14213_s4 + $0x28] sm:$0xff] }
 0xe68   : > { %4674 = vmatpush.msra.mxu2 %v8388_v54 }
 0xe69   : > { %v11958_v13 = vadd.f32 %v8875_v22, %v4414_v4  ;;  %v8386_v4 = vld [vmem:[%s14213_s4 + $0x20] sm:$0xff] }
 0xe6a   : > { %4675 = vmatpush.msra.mxu2 %v8387_v48 }
 0xe6b   : > { %v4446_v31 = vsel %vm577_vm0, %v11958_v13, 0.0 }
 0xe6c   : > { %4447 = vadd.xlane.f32.xlu2 %v4446_v31  ;;  %4676 = vmatpush.msra.mxu2 %v8386_v4 }
 0xe71   : > { %v4401_v15 = vpop.f32.mrf.mxu0 }
 0xe72   : > { %v4415_v23 = vadd.f32 %v4401_v15, %v14333_v35 }
 0xe74   : > { %v11963_v28 = vadd.f32 %v8875_v22, %v4415_v23 }
 0xe76   : > { %v4449_v1 = vsel %vm577_vm0, %v11963_v28, 0.0 }
 0xe77   : > { %4450 = vadd.xlane.f32.xlu0 %v4449_v1 }
 0xe79   : > { %v4404_v25 = vpop.f32.mrf.mxu0 }
 0xe7a   : > { %v4416_v44 = vadd.f32 %v4404_v25, %v14334_v42 }
 0xe7c   : > { %v11968_v21 = vadd.f32 %v8875_v22, %v4416_v44 }
 0xe7e   : > { %v4452_v37 = vsel %vm577_vm0, %v11968_v21, 0.0 }
 0xe7f   : > { %4453 = vadd.xlane.f32.xlu2 %v4452_v37 }
 0xe82   : > { %v4407_v19 = vpop.f32.mrf.mxu0 }
 0xe83   : > { %v4417_v57 = vadd.f32 %v4407_v19, %v14336_v30 }
 0xe85   : > { %v11981_v33 = vadd.f32 %v8875_v22, %v4417_v57 }
 0xe87   : > { %v4455_v8 = vsel %vm577_vm0, %v11981_v33, 0.0 }
 0xebe   : > { %v4436_v2 = vpop.xlane.xlu1 %4435 }
 0xebf   : > { %v4458_v16 = vmul.f32 %v4436_v2, %v14335_v38 }
 0xec1   : > { %v11974_v0 = vsub.f32 %v11938_v61, %v4458_v16 }
 0xec3   : > { %v4474_v58 = vmul.f32 %v11974_v0, %v11974_v0 }
 0xec5   : > { %v4482_v29 = vsel %vm577_vm0, %v4474_v58, 0.0 }
 0xec6   : > { %4483 = vadd.xlane.f32.xlu1 %v4482_v29  ;;  %v4439_v55 = vpop.xlane.xlu2 %4438 }
 0xec7   : > { %v4459_v50 = vmul.f32 %v4439_v55, %v14335_v38 }
 0xec9   : > { %v11984_v40 = vsub.f32 %v11943_v49, %v4459_v50 }
 0xecb   : > { %v4475_v6 = vmul.f32 %v11984_v40, %v11984_v40 }
 0xecd   : > { %v4485_v3 = vsel %vm577_vm0, %v4475_v6, 0.0  ;;  %v12051_v6 = vld [vmem:[%s14211_s2 + $0x1] ss:$0 sm:$0xff] }
 0xece   : > { %4456 = vadd.xlane.f32.xlu1 %v4455_v8  ;;  %v4442_v12 = vpop.xlane.xlu0 %4441  ;;  %4486 = vadd.xlane.f32.xlu0 %v4485_v3 }
 0xecf   : > { %v4460_v7 = vmul.f32 %v4442_v12, %v14335_v38  ;;  %v12056_v12 = vld [vmem:[%s14212_s3 + $0x1] ss:$0 sm:$0xff] }
 0xed1   : > { %v11993_v53 = vsub.f32 %v11948_v17, %v4460_v7 }
 0xed3   : > { %v4476_v51 = vmul.f32 %v11993_v53, %v11993_v53 }
 0xed5   : > { %v4488_v52 = vsel %vm577_vm0, %v4476_v51, 0.0 }
 0xed6   : > { %4489 = vadd.xlane.f32.xlu2 %v4488_v52  ;;  %v4445_v63 = vpop.xlane.xlu1 %4444 }
 0xed7   : > { %v4461_v34 = vmul.f32 %v4445_v63, %v14335_v38 }
 0xed9   : > { %v12000_v56 = vsub.f32 %v11953_v20, %v4461_v34 }
 0xedb   : > { %v4477_v18 = vmul.f32 %v12000_v56, %v12000_v56 }
 0xedd   : > { %v4491_v36 = vsel %vm577_vm0, %v4477_v18, 0.0 }
 0xede   : > { %4492 = vadd.xlane.f32.xlu0 %v4491_v36 }
 0xedf   : > { %v4448_v41 = vpop.xlane.xlu2 %4447 }
 0xee0   : > { %v4462_v60 = vmul.f32 %v4448_v41, %v14335_v38 }
 0xee2   : > { %v12007_v22 = vsub.f32 %v11958_v13, %v4462_v60 }
 0xee4   : > { %v4478_v62 = vmul.f32 %v12007_v22, %v12007_v22 }
 0xee6   : > { %v4494_v14 = vsel %vm577_vm0, %v4478_v62, 0.0 }
 0xee7   : > { %4495 = vadd.xlane.f32.xlu1 %v4494_v14 }
 0xeea   : > { %v4451_v24 = vpop.xlane.xlu0 %4450 }
 0xeeb   : > { %v4463_v32 = vmul.f32 %v4451_v24, %v14335_v38 }
 0xeed   : > { %v12014_v26 = vsub.f32 %v11963_v28, %v4463_v32 }
 0xeef   : > { %v4479_v9 = vmul.f32 %v12014_v26, %v12014_v26 }
 0xef1   : > { %v4497_v39 = vsel %vm577_vm0, %v4479_v9, 0.0 }
 0xef2   : > { %4498 = vadd.xlane.f32.xlu2 %v4497_v39  ;;  %v4454_v43 = vpop.xlane.xlu2 %4453 }
 0xef3   : > { %v4464_v5 = vmul.f32 %v4454_v43, %v14335_v38 }
 0xef5   : > { %v12021_v27 = vsub.f32 %v11968_v21, %v4464_v5 }
 0xef7   : > { %v4480_v45 = vmul.f32 %v12021_v27, %v12021_v27 }
 0xef9   : > { %v4500_v59 = vsel %vm577_vm0, %v4480_v45, 0.0 }
 0xefa   : > { %4501 = vadd.xlane.f32.xlu0 %v4500_v59 }
 0xf39   : > { %v4484_v10 = vpop.xlane.xlu1 %4483 }
 0xf3a   : > { %v4506_v47 = vmul.f32 %v4484_v10, %v14335_v38 }
 0xf3c   : > { %v4514_v11 = vadd.f32 1e-05, %v4506_v47 }
 0xf3e   : > { %9118 = vrsqrt.f32 %v4514_v11  ;;  %vm4528_vm4 = vweird.f32 %v4514_v11 }
 0xf41   : > { %v4457_v31 = vpop.xlane.xlu1 %4456  ;;  %v4487_v15 = vpop.xlane.xlu0 %4486 }
 0xf42   : > { %v4465_v35 = vmul.f32 %v4457_v31, %v14335_v38  ;;  %v4507_v23 = vmul.f32 %v4487_v15, %v14335_v38 }
 0xf44   : > { %v9119_v1 = vpop.eup %9118  ;;  %v12042_v25 = vsub.f32 %v11981_v33, %v4465_v35  ;;  %v4515_v44 = vadd.f32 1e-05, %v4507_v23 }
 0xf45   : > { %v4523_v42 = vmul.f32 %v9119_v1, %v4514_v11  ;;  %vm4529_vm10 = vweird.f32 %v9119_v1 }
 0xf46   : > { %v4481_v37 = vmul.f32 %v12042_v25, %v12042_v25  ;;  %9120 = vrsqrt.f32 %v4515_v44  ;;  %vm4530_vm13 = vmor %vm4528_vm4, %vm4529_vm10  ;;  %vm4538_vm9 = vweird.f32 %v4515_v44 }
 0xf47   : > { %v4524_v2 = vmul.f32 %v9119_v1, %v4523_v42 }
 0xf48   : > { %v4503_v16 = vsel %vm577_vm0, %v4481_v37, 0.0 }
 0xf49   : > { %v4525_v19 = vmul.f32 0.5, %v4524_v2  ;;  %4504 = vadd.xlane.f32.xlu1 %v4503_v16  ;;  %v4490_v58 = vpop.xlane.xlu2 %4489 }
 0xf4a   : > { %v4508_v57 = vmul.f32 %v4490_v58, %v14335_v38 }
 0xf4b   : > { %v4526_v30 = vsub.f32 1.5, %v4525_v19 }
 0xf4c   : > { %v9121_v29 = vpop.eup %9120  ;;  %v4516_v50 = vadd.f32 1e-05, %v4508_v57 }
 0xf4d   : > { %v4527_v55 = vmul.f32 %v9119_v1, %v4526_v30  ;;  %v4533_v8 = vmul.f32 %v9121_v29, %v4515_v44  ;;  %vm4539_vm1 = vweird.f32 %v9121_v29 }
 0xf4e   : > { %9122 = vrsqrt.f32 %v4516_v50  ;;  %vm4540_vm14 = vmor %vm4538_vm9, %vm4539_vm1  ;;  %vm4548_vm2 = vweird.f32 %v4516_v50 }
 0xf4f   : > { %v4531_v3 = vsel %vm4530_vm13, %v9119_v1, %v4527_v55  ;;  %v4534_v51 = vmul.f32 %v9121_v29, %v4533_v8 }
 0xf50   : > { %v4602_v7 = vmul.f32 %v4531_v3, %v11974_v0 }
 0xf51   : > { %v4535_v63 = vmul.f32 0.5, %v4534_v51  ;;  %v4493_v34 = vpop.xlane.xlu0 %4492 }
 0xf52   : > { %v4613_v52 = vmul.f32 %v12051_v6, %v4602_v7  ;;  %v4509_v41 = vmul.f32 %v4493_v34, %v14335_v38 }
 0xf53   : > { %v4536_v36 = vsub.f32 1.5, %v4535_v63 }
 0xf54   : > { %v4624_v18 = vadd.f32 %v12056_v12, %v4613_v52  ;;  %v9123_v60 = vpop.eup %9122  ;;  %v4517_v24 = vadd.f32 1e-05, %v4509_v41 }
 0xf55   : > { %v4537_v62 = vmul.f32 %v9121_v29, %v4536_v36  ;;  %v4543_v14 = vmul.f32 %v9123_v60, %v4516_v50  ;;  %vm4549_vm15 = vweird.f32 %v9123_v60 }
 0xf56   : > { %8390 = vmatmul.msk.f32.vlgmr.msra.gmra.mxu2 %vm577_vm0, %v4624_v18  ;;  %9124 = vrsqrt.f32 %v4517_v24  ;;  %vm4550_vm3 = vmor %vm4548_vm2, %vm4549_vm15  ;;  %vm4558_vm11 = vweird.f32 %v4517_v24 }
 0xf57   : > { %v4541_v0 = vsel %vm4540_vm14, %v9121_v29, %v4537_v62  ;;  %v4544_v32 = vmul.f32 %v9123_v60, %v4543_v14 }
 0xf58   : > { %v4603_v9 = vmul.f32 %v4541_v0, %v11984_v40 }
 0xf59   : > { %v4545_v39 = vmul.f32 0.5, %v4544_v32 }
 0xf5a   : > { %v4496_v43 = vpop.xlane.xlu1 %4495  ;;  %v4614_v5 = vmul.f32 %v12051_v6, %v4603_v9 }
 0xf5b   : > { %v4546_v45 = vsub.f32 1.5, %v4545_v39  ;;  %v4510_v59 = vmul.f32 %v4496_v43, %v14335_v38 }
 0xf5c   : > { %v4625_v10 = vadd.f32 %v12056_v12, %v4614_v5  ;;  %v9125_v47 = vpop.eup %9124 }
 0xf5d   : > { %v4547_v46 = vmul.f32 %v9123_v60, %v4546_v45  ;;  %v4518_v11 = vadd.f32 1e-05, %v4510_v59  ;;  %v4553_v54 = vmul.f32 %v9125_v47, %v4517_v24  ;;  %vm4559_vm5 = vweird.f32 %v9125_v47 }
 0xf5e   : > { %8391 = vmatmul.msk.f32.gmra.mxu2 %vm577_vm0, %v4625_v10  ;;  %vm4560_vm6 = vmor %vm4558_vm11, %vm4559_vm5  ;;  %vm14339_vm11 = vcmask 64512  }
 0xf5f   : > { %v4551_v48 = vsel %vm4550_vm3, %v9123_v60, %v4547_v46  ;;  %9126 = vrsqrt.f32 %v4518_v11  ;;  %v4554_v4 = vmul.f32 %v9125_v47, %v4553_v54  ;;  %vm4568_vm8 = vweird.f32 %v4518_v11 }
 0xf60   : > { %v4604_v40 = vmul.f32 %v4551_v48, %v11993_v53 }
 0xf61   : > { %v4555_v31 = vmul.f32 0.5, %v4554_v4 }
 0xf62   : > { %v4615_v15 = vmul.f32 %v12051_v6, %v4604_v40 }
 0xf63   : > { %v4556_v35 = vsub.f32 1.5, %v4555_v31 }
 0xf64   : > { %v4626_v23 = vadd.f32 %v12056_v12, %v4615_v15 }
 0xf65   : > { %v9127_v1 = vpop.eup %9126  ;;  %v4557_v42 = vmul.f32 %v9125_v47, %v4556_v35  ;;  %v4499_v16 = vpop.xlane.xlu2 %4498 }
 0xf66   : > { %v4563_v44 = vmul.f32 %v9127_v1, %v4518_v11  ;;  %8392 = vmatmul.msk.f32.gmra.mxu2 %vm577_vm0, %v4626_v23  ;;  %v4511_v19 = vmul.f32 %v4499_v16, %v14335_v38  ;;  %vm4569_vm7 = vweird.f32 %v9127_v1 }
 0xf67   : > { %v4561_v37 = vsel %vm4560_vm6, %v9125_v47, %v4557_v42  ;;  %vm4570_vm10 = vmor %vm4568_vm8, %vm4569_vm7 }
 0xf68   : > { %v4564_v2 = vmul.f32 %v9127_v1, %v4563_v44  ;;  %v4605_v53 = vmul.f32 %v4561_v37, %v12000_v56  ;;  %v4519_v30 = vadd.f32 1e-05, %v4511_v19  ;;  %vm14340_vm6 = vmmov %vm14339_vm11 }
 0xf69   : > { %vm14341_vm7 = vmmov %vm14340_vm6 }
 0xf6a   : > { %v4565_v58 = vmul.f32 0.5, %v4564_v2  ;;  %v4616_v57 = vmul.f32 %v12051_v6, %v4605_v53  ;;  %9128 = vrsqrt.f32 %v4519_v30  ;;  %vm4578_vm13 = vweird.f32 %v4519_v30  ;;  %vm14342_vm8 = vmmov %vm14340_vm6 }
 0xf6c   : > { %v4566_v29 = vsub.f32 1.5, %v4565_v58  ;;  %v4627_v55 = vadd.f32 %v12056_v12, %v4616_v57 }
 0xf6d   : > { %v4502_v3 = vpop.xlane.xlu0 %4501 }
 0xf6e   : > { %v4567_v50 = vmul.f32 %v9127_v1, %v4566_v29  ;;  %8393 = vmatmul.msk.f32.gmra.mxu2 %vm577_vm0, %v4627_v55  ;;  %v4512_v7 = vmul.f32 %v4502_v3, %v14335_v38 }
 0xf70   : > { %v4571_v8 = vsel %vm4570_vm10, %v9127_v1, %v4567_v50  ;;  %v9129_v51 = vpop.eup %9128  ;;  %v4520_v52 = vadd.f32 1e-05, %v4512_v7  ;;  %vm14343_vm10 = vmmov %vm14340_vm6 }
 0xf71   : > { %v4606_v56 = vmul.f32 %v4571_v8, %v12007_v22  ;;  %v4573_v34 = vmul.f32 %v9129_v51, %v4519_v30  ;;  %vm4579_vm4 = vweird.f32 %v9129_v51 }
 0xf72   : > { %9130 = vrsqrt.f32 %v4520_v52  ;;  %vm4580_vm1 = vmor %vm4578_vm13, %vm4579_vm4  ;;  %vm4588_vm14 = vweird.f32 %v4520_v52 }
 0xf73   : > { %v4617_v63 = vmul.f32 %v12051_v6, %v4606_v56  ;;  %v4574_v36 = vmul.f32 %v9129_v51, %v4573_v34  ;;  %vm14344_vm4 = vmmov %vm14340_vm6 }
 0xf74   : > { %vm14345_vm13 = vmmov %vm14344_vm4 }
 0xf75   : > { %v4628_v18 = vadd.f32 %v12056_v12, %v4617_v63  ;;  %v4575_v41 = vmul.f32 0.5, %v4574_v36 }
 0xf77   : > { %8394 = vmatmul.msk.f32.gmra.mxu2 %vm577_vm0, %v4628_v18  ;;  %v4576_v60 = vsub.f32 1.5, %v4575_v41 }
 0xf78   : > { %v9131_v62 = vpop.eup %9130 }
 0xf79   : > { %v4577_v14 = vmul.f32 %v9129_v51, %v4576_v60  ;;  %v4583_v22 = vmul.f32 %v9131_v62, %v4520_v52  ;;  %vm4589_vm9 = vweird.f32 %v9131_v62 }
 0xf7a   : > { %vm4590_vm15 = vmor %vm4588_vm14, %vm4589_vm9 }
 0xf7b   : > { %v4581_v24 = vsel %vm4580_vm1, %v9129_v51, %v4577_v14  ;;  %v4584_v0 = vmul.f32 %v9131_v62, %v4583_v22  ;;  %vm14346_vm1 = vmmov %vm14344_vm4 }
 0xf7c   : > { %v4607_v32 = vmul.f32 %v4581_v24, %v12014_v26  ;;  %vm14347_vm9 = vmmov %vm14346_vm1 }
 0xf7d   : > { %v4585_v9 = vmul.f32 0.5, %v4584_v0  ;;  %vm14348_vm14 = vmmov %vm14346_vm1 }
 0xf7e   : > { %v4618_v39 = vmul.f32 %v12051_v6, %v4607_v32 }
 0xf7f   : > { %v4586_v43 = vsub.f32 1.5, %v4585_v9 }
 0xf80   : > { %v4629_v5 = vadd.f32 %v12056_v12, %v4618_v39 }
 0xf81   : > { %v4587_v45 = vmul.f32 %v9131_v62, %v4586_v43 }
 0xf82   : > { %8395 = vmatmul.msk.f32.gmra.mxu2 %vm577_vm0, %v4629_v5 }
 0xf83   : > { %v4591_v59 = vsel %vm4590_vm15, %v9131_v62, %v4587_v45  ;;  %vm14349_vm15 = vmmov %vm14346_vm1 }
 0xf84   : > { %v4608_v10 = vmul.f32 %v4591_v59, %v12021_v27 }
 0xf86   : > { %v4619_v47 = vmul.f32 %v12051_v6, %v4608_v10 }
 0xf88   : > { %v4630_v46 = vadd.f32 %v12056_v12, %v4619_v47 }
 0xf8a   : > { %8396 = vmatmul.msk.f32.gmra.mxu2 %vm577_vm0, %v4630_v46 }
 0xfbc   : > { %v4505_v26 = vpop.xlane.xlu1 %4504 }
 0xfbd   : > { %v4513_v11 = vmul.f32 %v4505_v26, %v14335_v38 }
 0xfbf   : > { %v4521_v54 = vadd.f32 1e-05, %v4513_v11 }
 0xfc1   : > { %9132 = vrsqrt.f32 %v4521_v54  ;;  %vm4598_vm3 = vweird.f32 %v4521_v54 }
 0xfc7   : > { %v9133_v48 = vpop.eup %9132 }
 0xfc8   : > { %v4593_v40 = vmul.f32 %v9133_v48, %v4521_v54  ;;  %vm4599_vm2 = vweird.f32 %v9133_v48 }
 0xfc9   : > { %vm4600_vm5 = vmor %vm4598_vm3, %vm4599_vm2 }
 0xfca   : > { %v4594_v4 = vmul.f32 %v9133_v48, %v4593_v40  ;;  %vm14350_vm2 = vmmov %vm14346_vm1 }
 0xfcb   : > { %vm14351_vm3 = vmmov %vm14346_vm1 }
 0xfcc   : > { %v4595_v31 = vmul.f32 0.5, %v4594_v4 }
 0xfce   : > { %v4596_v15 = vsub.f32 1.5, %v4595_v31 }
 0xfd0   : > { %v4597_v35 = vmul.f32 %v9133_v48, %v4596_v15 }
 0xfd2   : > { %v4601_v27 = vsel %vm4600_vm5, %v9133_v48, %v4597_v35  ;;  %vm14352_vm5 = vmmov %vm14346_vm1 }
 0xfd3   : > { %v4609_v23 = vmul.f32 %v4601_v27, %v12042_v25 }
 0xfd5   : > { %v4620_v1 = vmul.f32 %v12051_v6, %v4609_v23 }
 0xfd7   : > { %v4631_v42 = vadd.f32 %v12056_v12, %v4620_v1 }
 0xfd9   : > { %v12094_v44 = vpop.f32.mrf.mxu2  ;;  %8397 = vmatmul.msk.f32.gmra.mxu2 %vm577_vm0, %v4631_v42 }
 0xfe1   : > { %v12097_v37 = vpop.f32.mrf.mxu2 }
 0xfe2   : > { %v12149_v12 = vpack.i.bf16 %v12094_v44, %v12097_v37 }
 0xfe9   : > { %v12099_v2 = vpop.f32.mrf.mxu2 }
 0xff1   : > { %v12101_v16 = vpop.f32.mrf.mxu2 }
 0xff2   : > { %v12193_v30 = vpack.i.bf16 %v12099_v2, %v12101_v16 }
 0xffa   : > { %v12103_v53 = vpop.f32.mrf.mxu2 }
0x1005   : > { %v12105_v19 = vpop.f32.mrf.mxu2 }
0x1006   : > { %5119 = vrot.lane.b32.xlu1 %v12105_v19, %s9432_s26  ;;  %v12141_v6 = vpack.i.bf16 %v12103_v53, %v12105_v19 }
0x100d   : > { %v12109_v25 = vpop.f32.mrf.mxu2 }
0x100e   : > { %5113 = vrot.lane.b32.xlu1 %v12099_v2, %s9432_s26  ;;  %5121 = vrot.lane.b32.xlu0 %v12109_v25, %s9432_s26 }
0x1016   : > { %5093 = vrot.lane.b32.xlu1 %v12094_v44, %s9433_s27  ;;  %5117 = vrot.lane.b32.xlu0 %v12103_v53, %s9432_s26 }
0x101e   : > { %5099 = vrot.lane.b32.xlu1 %v12101_v16, %s9433_s27  ;;  %5111 = vrot.lane.b32.xlu0 %v12097_v37, %s9432_s26 }
0x1026   : > { %5105 = vrot.lane.b32.xlu1 %v12109_v25, %s9433_s27  ;;  %5095 = vrot.lane.b32.xlu0 %v12097_v37, %s9433_s27 }
0x102e   : > { %4727 = vrot.lane.b32.xlu1 %v12109_v25, %s9431_s25  ;;  %5101 = vrot.lane.b32.xlu0 %v12103_v53, %s9433_s27 }
0x1036   : > { %4721 = vrot.lane.b32.xlu1 %v12101_v16, %s9431_s25  ;;  %4725 = vrot.lane.b32.xlu0 %v12105_v19, %s9431_s25 }
0x103e   : > { %4717 = vrot.lane.b32.xlu1 %v12097_v37, %s9431_s25  ;;  %4719 = vrot.lane.b32.xlu0 %v12099_v2, %s9431_s25 }
0x1046   : > { %8781 = vrot.lane.b32.xlu1 %v12141_v6, %s9439_s24  ;;  %4715 = vrot.lane.b32.xlu0 %v12094_v44, %s9431_s25 }
0x104e   : > { %8791 = vrot.lane.b32.xlu1 %v12149_v12, %s9439_s24 }
0x1056   : > { %5645 = vrot.lane.b32.xlu1 %v12109_v25, %s9435_s29 }
0x105c   : > { %v12155_v58 = vpop.f32.mrf.mxu2 }
0x105d   : > { %5107 = vrot.lane.b32.xlu0 %v12155_v58, %s9433_s27  ;;  %5123 = vrot.lane.b32.xlu2 %v12155_v58, %s9432_s26  ;;  %v12201_v57 = vpack.i.bf16 %v12109_v25, %v12155_v58 }
0x105e   : > { %5637 = vrot.lane.b32.xlu1 %v12099_v2, %s9435_s29 }
0x1065   : > { %5643 = vrot.lane.b32.xlu0 %v12105_v19, %s9435_s29  ;;  %5115 = vrot.lane.b32.xlu2 %v12101_v16, %s9432_s26 }
0x1066   : > { %5617 = vrot.lane.b32.xlu1 %v12094_v44, %s14337_s20 }
0x106d   : > { %5639 = vrot.lane.b32.xlu0 %v12101_v16, %s9435_s29  ;;  %5109 = vrot.lane.b32.xlu2 %v12094_v44, %s9432_s26  ;;  %s14381_s26 = smov 64  }
0x106e   : > { %5623 = vrot.lane.b32.xlu1 %v12101_v16, %s14337_s20 }
0x1075   : > { %5633 = vrot.lane.b32.xlu0 %v12094_v44, %s9435_s29  ;;  %5097 = vrot.lane.b32.xlu2 %v12099_v2, %s9433_s27 }
0x1076   : > { %6112 = vrot.lane.b32.xlu1 %v12109_v25, %s14338_s21 }
0x1078   : > { %v5120_v56 = vpop.permute.xlu1 %5119 }
0x107d   : > { %5621 = vrot.lane.b32.xlu0 %v12099_v2, %s14337_s20  ;;  %5103 = vrot.lane.b32.xlu2 %v12105_v19, %s9433_s27  ;;  %s14387_s27 = smov 48  }
0x107e   : > { %6108 = vrot.lane.b32.xlu1 %v12103_v53, %s14338_s21 }
0x1080   : > { %v5122_v29 = vpop.permute.xlu0 %5121  ;;  %v5114_v63 = vpop.permute.xlu1 %5113 }
0x1085   : > { %6110 = vrot.lane.b32.xlu0 %v12105_v19, %s14338_s21  ;;  %4723 = vrot.lane.b32.xlu2 %v12103_v53, %s9431_s25 }
0x1088   : > { %v5118_v55 = vpop.permute.xlu0 %5117  ;;  %v5094_v36 = vpop.permute.xlu1 %5093 }
0x108d   : > { %5629 = vrot.lane.b32.xlu0 %v12109_v25, %s14337_s20  ;;  %8786 = vrot.lane.b32.xlu2 %v12193_v30, %s9439_s24 }
0x1090   : > { %v5112_v50 = vpop.permute.xlu0 %5111  ;;  %v5100_v0 = vpop.permute.xlu1 %5099 }
0x1095   : > { %8796 = vrot.lane.b32.xlu0 %v12201_v57, %s9439_s24  ;;  %5641 = vrot.lane.b32.xlu2 %v12103_v53, %s9435_s29 }
0x1098   : > { %v5096_v3 = vpop.permute.xlu0 %5095  ;;  %v5106_v45 = vpop.permute.xlu1 %5105 }
0x109d   : > { %6114 = vrot.lane.b32.xlu0 %v12155_v58, %s14338_s21  ;;  %5635 = vrot.lane.b32.xlu2 %v12097_v37, %s9435_s29 }
0x10a0   : > { %v5102_v51 = vpop.permute.xlu0 %5101  ;;  %v4728_v26 = vpop.permute.xlu1 %4727 }
0x10a5   : > { %5619 = vrot.lane.b32.xlu2 %v12097_v37, %s14337_s20 }
0x10a8   : > { %v4726_v34 = vpop.permute.xlu0 %4725  ;;  %v4722_v48 = vpop.permute.xlu1 %4721 }
0x10ad   : > { %5625 = vrot.lane.b32.xlu2 %v12103_v53, %s14337_s20 }
0x10b0   : > { %v4720_v60 = vpop.permute.xlu0 %4719  ;;  %v4718_v4 = vpop.permute.xlu1 %4717 }
0x10b5   : > { %5627 = vrot.lane.b32.xlu2 %v12105_v19, %s14337_s20 }
0x10b7   : > { %v5124_v8 = vpop.permute.xlu2 %5123 }
0x10b8   : > { %8426 = vmatpush.xpose.msk.msrb.mxu2 %vm14339_vm11, %v5124_v8  ;;  %v4716_v14 = vpop.permute.xlu0 %4715  ;;  %vm14353_vm11 = vmmov %vm14346_vm1  ;;  %v8782_v15 = vpop.permute.xlu1 %8781 }
0x10b9   : > { %v8783_v23 = vunpack.i.l.bf16 %v8782_v15  ;;  %v8784_v1 = vunpack.i.h.bf16 %v8782_v15 }
0x10bc   : > { %8427 = vmatpush.xpose.msk.msrb.mxu2 %vm14340_vm6, %v5122_v29  ;;  %vm14354_vm6 = vmmov %vm14346_vm1 }
0x10bd   : > { %4729 = vrot.lane.b32.xlu2 %v12155_v58, %s9431_s25  ;;  %s14377_s25 = smov 104  }
0x10bf   : > { %v5116_v7 = vpop.permute.xlu2 %5115 }
0x10c0   : > { %8428 = vmatpush.xpose.msk.msrb.mxu2 %vm14341_vm7, %v5120_v56  ;;  %vm14355_vm7 = vmmov %vm14346_vm1  ;;  %v8792_v29 = vpop.permute.xlu1 %8791 }
0x10c1   : > { %v8794_v8 = vunpack.i.h.bf16 %v8792_v29 }
0x10c4   : > { %8429 = vmatpush.xpose.msk.msrb.mxu2 %vm14342_vm8, %v5118_v55  ;;  %vm14356_vm8 = vmmov %vm14346_vm1 }
0x10c5   : > { %5647 = vrot.lane.b32.xlu2 %v12155_v58, %s9435_s29 }
0x10c7   : > { %v5110_v52 = vpop.permute.xlu2 %5109 }
0x10c8   : > { %8430 = vmatpush.xpose.msk.msrb.mxu2 %vm14343_vm10, %v5116_v7  ;;  %vm14357_vm10 = vmmov %vm14346_vm1  ;;  %v5646_v56 = vpop.permute.xlu1 %5645 }
0x10cc   : > { %8431 = vmatpush.xpose.msk.msrb.mxu2 %vm14344_vm4, %v5114_v63  ;;  %vm14358_vm4 = vmmov %vm14346_vm1 }
0x10cf   : > { %v5098_v18 = vpop.permute.xlu2 %5097  ;;  %v5108_v24 = vpop.permute.xlu0 %5107 }
0x10d0   : > { %8432 = vmatpush.xpose.msk.msrb.mxu2 %vm14345_vm13, %v5112_v50  ;;  %vm14359_vm13 = vmmov %vm14346_vm1  ;;  %v8793_v50 = vunpack.i.l.bf16 %v8792_v29  ;;  %v5638_v7 = vpop.permute.xlu1 %5637 }
0x10d4   : > { %8433 = vmatpush.xpose.msk.msrb.mxu2 %vm14346_vm1, %v5110_v52 }
0x10d7   : > { %v5104_v41 = vpop.permute.xlu2 %5103  ;;  %8434 = vmatmul.msk.f32.vlgmr.msrb.gmra.mxu2 %vm14347_vm9, %v5094_v36  ;;  %v5644_v9 = vpop.permute.xlu0 %5643  ;;  %vm14360_vm9 = vmmov %vm14346_vm1 }
0x10df   : > { %v4724_v62 = vpop.permute.xlu2 %4723  ;;  %8435 = vmatmul.msk.f32.gmra.mxu2 %vm14348_vm14, %v5096_v3  ;;  %v5640_v43 = vpop.permute.xlu0 %5639  ;;  %vm14361_vm14 = vmmov %vm14346_vm1 }
0x10e7   : > { %v8787_v22 = vpop.permute.xlu2 %8786  ;;  %8436 = vmatmul.msk.f32.gmra.mxu2 %vm14349_vm15, %v5098_v18  ;;  %v5634_v10 = vpop.permute.xlu0 %5633  ;;  %vm14362_vm15 = vmmov %vm14346_vm1 }
0x10e8   : > { %v8788_v42 = vunpack.i.l.bf16 %v8787_v22  ;;  %v8789_v55 = vunpack.i.h.bf16 %v8787_v22 }
0x10ef   : > { %v5642_v32 = vpop.permute.xlu2 %5641  ;;  %8437 = vmatmul.msk.f32.gmra.mxu2 %vm14350_vm2, %v5100_v0  ;;  %v12243_v46 = vpop.permute.xlu0 %5621  ;;  %vm14363_vm2 = vmmov %vm14346_vm1 }
0x10f7   : > { %v5636_v39 = vpop.permute.xlu2 %5635  ;;  %8438 = vmatmul.msk.f32.gmra.mxu2 %vm14351_vm3, %v5102_v51  ;;  %v12246_v54 = vpop.permute.xlu0 %6110  ;;  %vm14364_vm3 = vmmov %vm14346_vm1 }
0x10ff   : > { %v12234_v5 = vpop.permute.xlu2 %5619  ;;  %8439 = vmatmul.msk.f32.gmra.mxu2 %vm14352_vm5, %v5104_v41  ;;  %v12251_v40 = vpop.permute.xlu0 %5629  ;;  %vm14365_vm5 = vmmov %vm14346_vm1 }
0x1107   : > { %v12237_v59 = vpop.permute.xlu2 %5625  ;;  %8440 = vmatmul.msk.f32.gmra.mxu2 %vm14353_vm11, %v5106_v45  ;;  %v8797_v31 = vpop.permute.xlu0 %8796  ;;  %vm14366_vm11 = vmmov %vm14346_vm1 }
0x1108   : > { %v8798_v35 = vunpack.i.l.bf16 %v8797_v31  ;;  %v8799_v27 = vunpack.i.h.bf16 %v8797_v31 }
0x110f   : > { %v12240_v47 = vpop.permute.xlu2 %5627  ;;  %8441 = vmatmul.msk.f32.gmra.mxu2 %vm14354_vm6, %v5108_v24  ;;  %vm14367_vm6 = vmmov %vm14346_vm1 }
0x1117   : > { %v4730_v11 = vpop.permute.xlu2 %4729 }
0x1118   : > { %8402 = vmatpush.xpose.msk.msra.mxu3 %vm14355_vm7, %v4730_v11  ;;  %vm14368_vm7 = vmmov %vm14346_vm1  ;;  %v12296_v11 = vpop.permute.xlu1 %5617 }
0x111c   : > { %8403 = vmatpush.xpose.msk.msra.mxu3 %vm14356_vm8, %v4728_v26  ;;  %vm14369_vm8 = vmmov %vm14346_vm1 }
0x111f   : > { %v5648_v3 = vpop.permute.xlu2 %5647 }
0x1120   : > { %8404 = vmatpush.xpose.msk.msra.mxu3 %vm14357_vm10, %v4726_v34  ;;  %vm14370_vm10 = vmmov %vm14346_vm1  ;;  %v12300_v31 = vpop.permute.xlu1 %5623 }
0x1124   : > { %8405 = vmatpush.xpose.msk.msra.mxu3 %vm14358_vm4, %v4724_v62  ;;  %vm14371_vm4 = vmmov %vm14346_vm1 }
0x1128   : > { %8406 = vmatpush.xpose.msk.msra.mxu3 %vm14359_vm13, %v4722_v48  ;;  %vm14372_vm13 = vmmov %vm14346_vm1 }
0x112c   : > { %8407 = vmatpush.xpose.msk.msra.mxu3 %vm14346_vm1, %v4720_v60 }
0x1130   : > { %8408 = vmatpush.xpose.msk.msra.mxu3 %vm14360_vm9, %v4718_v4  ;;  %vm14373_vm9 = vmmov %vm14346_vm1 }
0x1134   : > { %8409 = vmatpush.xpose.msk.msra.mxu3 %vm14361_vm14, %v4716_v14  ;;  %vm14374_vm14 = vmmov %vm14346_vm1 }
0x1137   : > { %8410 = vmatmul.msk.f32.vlgmr.msra.gmra.mxu3 %vm14362_vm15, %v12094_v44  ;;  %vm14375_vm15 = vmmov %vm14346_vm1 }
0x1138   : > { %5454 = vmatpush.msrb.mxu3 %v8798_v35 }
0x113a   : > { %5455 = vmatpush.msrb.mxu3 %v8799_v27 }
0x113c   : > { %5456 = vmatpush.msrb.mxu3 %v8783_v23  ;;  %v12305_v23 = vpop.permute.xlu1 %6112 }
0x113e   : > { %5457 = vmatpush.msrb.mxu3 %v8784_v1 }
0x113f   : > { %8411 = vmatmul.msk.f32.gmra.mxu3 %vm14363_vm2, %v12097_v37  ;;  %vm14376_vm2 = vmmov %vm14346_vm1 }
0x1140   : > { %5458 = vmatpush.msrb.mxu3 %v8788_v42 }
0x1142   : > { %5459 = vmatpush.msrb.mxu3 %v8789_v55 }
0x1144   : > { %5460 = vmatpush.msrb.mxu3 %v8793_v50  ;;  %v12308_v29 = vpop.permute.xlu1 %6108 }
0x1146   : > { %5461 = vmatpush.msrb.mxu3 %v8794_v8 }
0x1147   : > { %8412 = vmatmul.msk.f32.gmra.mxu3 %vm14365_vm5, %v12099_v2 }
0x1148   : > { %8466 = vmatpush.xpose.msk.msra.mxu3 %vm14364_vm3, %v5648_v3  ;;  %v12310_v3 = vpop.permute.xlu0 %6114 }
0x114c   : > { %8467 = vmatpush.xpose.msk.msra.mxu3 %vm14366_vm11, %v5646_v56 }
0x114f   : > { %8413 = vmatmul.msk.f32.gmra.mxu3 %vm14368_vm7, %v12101_v16 }
0x1150   : > { %8468 = vmatpush.xpose.msk.msra.mxu3 %vm14367_vm6, %v5644_v9 }
0x1154   : > { %8469 = vmatpush.xpose.msk.msra.mxu3 %vm14369_vm8, %v5642_v32  ;;  %vm14378_vm8 = vmmov %vm14346_vm1 }
0x1157   : > { %8414 = vmatmul.msk.f32.gmra.mxu3 %vm14371_vm4, %v12103_v53 }
0x1158   : > { %8470 = vmatpush.xpose.msk.msra.mxu3 %vm14370_vm10, %v5640_v43 }
0x115a   : > { %v5174_v51 = vpop.f32.mrf.mxu2 }
0x115b   : > { %v5198_v52 = vmul.f32 0.35355338, %v5174_v51 }
0x115c   : > { %8471 = vmatpush.xpose.msk.msra.mxu3 %vm14372_vm13, %v5638_v7 }
0x115d   : > { %v5206_v63 = vsel %vm962_vm12, %v5198_v52, -inf }
0x115e   : > { %5207 = vmax.xlane.f32.xlu2 %v5206_v63 }
0x115f   : > { %8415 = vmatmul.msk.f32.gmra.mxu3 %vm14373_vm9, %v12105_v19 }
0x1160   : > { %8472 = vmatpush.xpose.msk.msra.mxu3 %vm14346_vm1, %v5636_v39 }
0x1162   : > { %v5177_v34 = vpop.f32.mrf.mxu2 }
0x1163   : > { %v5199_v18 = vmul.f32 0.35355338, %v5177_v34 }
0x1164   : > { %8473 = vmatpush.xpose.msk.msra.mxu3 %vm14374_vm14, %v5634_v10  ;;  %vm14379_vm14 = vmmov %vm14346_vm1 }
0x1165   : > { %v5209_v36 = vsel %vm962_vm12, %v5199_v18, -inf }
0x1166   : > { %5210 = vmax.xlane.f32.xlu1 %v5209_v36 }
0x1167   : > { %8416 = vmatmul.msk.f32.gmra.mxu3 %vm14375_vm15, %v12109_v25 }
0x116a   : > { %v5180_v41 = vpop.f32.mrf.mxu2 }
0x116b   : > { %v5200_v60 = vmul.f32 0.35355338, %v5180_v41 }
0x116d   : > { %v5212_v62 = vsel %vm962_vm12, %v5200_v60, -inf }
0x116e   : > { %5213 = vmax.xlane.f32.xlu0 %v5212_v62 }
0x116f   : > { %8417 = vmatmul.msk.f32.gmra.mxu3 %vm14376_vm2, %v12155_v58 }
0x1172   : > { %v5183_v14 = vpop.f32.mrf.mxu2 }
0x1173   : > { %v5201_v35 = vmul.f32 0.35355338, %v5183_v14 }
0x1175   : > { %v5215_v27 = vsel %vm962_vm12, %v5201_v35, -inf }
0x117a   : > { %v5186_v22 = vpop.f32.mrf.mxu2 }
0x117b   : > { %v5202_v1 = vmul.f32 0.35355338, %v5186_v22 }
0x117d   : > { %v5218_v42 = vsel %vm962_vm12, %v5202_v1, -inf }
0x1182   : > { %v5189_v24 = vpop.f32.mrf.mxu2 }
0x1183   : > { %v12284_v0 = vmul.f32 0.35355338, %v5189_v24 }
0x1185   : > { %v5221_v32 = vsel %vm962_vm12, %v12284_v0, -inf }
0x1186   : > { %5222 = vmax.xlane.f32.xlu1 %v5221_v32 }
0x118a   : > { %v5192_v9 = vpop.f32.mrf.mxu2 }
0x118b   : > { %v12288_v39 = vmul.f32 0.35355338, %v5192_v9 }
0x118d   : > { %v5224_v43 = vsel %vm962_vm12, %v12288_v39, -inf }
0x118e   : > { %5225 = vmax.xlane.f32.xlu0 %v5224_v43 }
0x1192   : > { %v5195_v45 = vpop.f32.mrf.mxu2 }
0x1193   : > { %v12292_v10 = vmul.f32 0.35355338, %v5195_v45 }
0x1195   : > { %v5227_v26 = vsel %vm962_vm12, %v12292_v10, -inf }
0x1196   : > { %5228 = vmax.xlane.f32.xlu1 %v5227_v26 }
0x11ba   : > { %v4780_v48 = vpop.f32.mrf.mxu3 }
0x11bb   : > { %v12298_v4 = vmul.f32 0.35355338, %v4780_v48 }
0x11bd   : > { %v4812_v15 = vsel %vm962_vm12, %v12298_v4, -inf }
0x11be   : > { %4813 = vmax.xlane.f32.xlu2 %v4812_v15 }
0x11c6   : > { %5216 = vmax.xlane.f32.xlu2 %v5215_v27 }
0x11ce   : > { %5219 = vmax.xlane.f32.xlu2 %v5218_v42 }
0x11d1   : > { %v5208_v55 = vpop.xlane.xlu2 %5207 }
0x11d2   : > { %v5230_v50 = vsub.f32 %v5198_v52, %v5208_v55 }
0x11d4   : > { %v5238_v8 = vmul.f32 1.442695, %v5230_v50 }
0x11d6   : > { %9134 = vpow2.f32 %v5238_v8 }
0x11d9   : > { %v5211_v56 = vpop.xlane.xlu1 %5210 }
0x11da   : > { %v5231_v7 = vsub.f32 %v5199_v18, %v5211_v56 }
0x11dc   : > { %v12312_v51 = vpop.eup %9134  ;;  %v5240_v63 = vmul.f32 1.442695, %v5231_v7 }
0x11dd   : > { %v5254_v34 = vsel %vm962_vm12, %v12312_v51, 0.0 }
0x11de   : > { %9136 = vpow2.f32 %v5240_v63  ;;  %5255 = vadd.xlane.f32.xlu2 %v5254_v34 }
0x11e1   : > { %v5214_v36 = vpop.xlane.xlu0 %5213 }
0x11e2   : > { %v5232_v41 = vsub.f32 %v5200_v60, %v5214_v36  ;;  %v12334_v60 = vpop.f32.mrf.mxu3 }
0x11e4   : > { %v12316_v62 = vpop.eup %9136  ;;  %v5242_v14 = vmul.f32 1.442695, %v5232_v41 }
0x11e5   : > { %v5257_v52 = vsel %vm962_vm12, %v12316_v62, 0.0 }
0x11e6   : > { %9138 = vpow2.f32 %v5242_v14  ;;  %5258 = vadd.xlane.f32.xlu2 %v5257_v52 }
0x11ea   : > { %v4786_v24 = vpop.f32.mrf.mxu3 }
0x11ec   : > { %v12320_v22 = vpop.eup %9138 }
0x11ed   : > { %v5260_v18 = vsel %vm962_vm12, %v12320_v22, 0.0 }
0x11ee   : > { %5261 = vadd.xlane.f32.xlu0 %v5260_v18 }
0x11f2   : > { %v4789_v9 = vpop.f32.mrf.mxu3 }
0x11f3   : > { %v12357_v41 = vmul.f32 0.35355338, %v4789_v9 }
0x11f9   : > { %v5223_v50 = vpop.xlane.xlu1 %5222 }
0x11fa   : > { %v12340_v15 = vpop.f32.mrf.mxu3  ;;  %v5235_v8 = vsub.f32 %v12284_v0, %v5223_v50 }
0x11fc   : > { %v5248_v7 = vmul.f32 1.442695, %v5235_v8 }
0x1201   : > { %v5226_v34 = vpop.xlane.xlu0 %5225 }
0x1202   : > { %6104 = vrot.lane.b32.xlu0 %v12099_v2, %s14338_s21  ;;  %v4795_v56 = vpop.f32.mrf.mxu3  ;;  %v5236_v0 = vsub.f32 %v12288_v39, %v5226_v34 }
0x1203   : > { %v12355_v36 = vmul.f32 0.35355338, %v4795_v56 }
0x1204   : > { %v5250_v18 = vmul.f32 1.442695, %v5236_v0 }
0x1205   : > { %v4827_v52 = vsel %vm962_vm12, %v12355_v36, -inf }
0x120a   : > { %5631 = vrot.lane.b32.xlu0 %v12155_v58, %s14337_s20 }
0x1212   : > { %6102 = vrot.lane.b32.xlu0 %v12097_v37, %s14338_s21 }
0x121a   : > { %6100 = vrot.lane.b32.xlu0 %v12094_v44, %s14338_s21 }
0x1222   : > { %6084 = vrot.lane.b32.xlu0 %v12094_v44, %s14377_s25 }
0x122a   : > { %6086 = vrot.lane.b32.xlu0 %v12097_v37, %s14377_s25  ;;  %v12346_v37 = vmul.f32 0.35355338, %v4786_v24  ;;  %v4821_v24 = vsel %vm962_vm12, %v12357_v41, -inf }
0x122c   : > { %v4818_v63 = vsel %vm962_vm12, %v12346_v37, -inf }
0x1231   : > { %v12338_v32 = vpop.xlane.xlu2 %4813 }
0x1239   : > { %v5217_v43 = vpop.xlane.xlu2 %5216 }
0x123a   : > { %v5233_v45 = vsub.f32 %v5201_v35, %v5217_v43  ;;  %v5229_v43 = vpop.xlane.xlu1 %5228 }
0x123b   : > { %v5237_v9 = vsub.f32 %v12292_v10, %v5229_v43 }
0x123c   : > { %v5244_v26 = vmul.f32 1.442695, %v5233_v45 }
0x123d   : > { %v5252_v50 = vmul.f32 1.442695, %v5237_v9 }
0x123e   : > { %9140 = vpow2.f32 %v5244_v26 }
0x1241   : > { %v5220_v48 = vpop.xlane.xlu2 %5219 }
0x1242   : > { %v5234_v27 = vsub.f32 %v5202_v1, %v5220_v48 }
0x1244   : > { %v12342_v42 = vpop.eup %9140  ;;  %v5246_v44 = vmul.f32 1.442695, %v5234_v27 }
0x1245   : > { %v5263_v55 = vsel %vm962_vm12, %v12342_v42, 0.0 }
0x1246   : > { %9142 = vpow2.f32 %v5246_v44  ;;  %5264 = vadd.xlane.f32.xlu2 %v5263_v55 }
0x1247   : > { %9144 = vpow2.f32 %v5248_v7 }
0x124c   : > { %v12349_v35 = vpop.eup %9142 }
0x124d   : > { %v5266_v1 = vsel %vm962_vm12, %v12349_v35, 0.0  ;;  %v12364_v45 = vpop.eup %9144 }
0x124e   : > { %5267 = vadd.xlane.f32.xlu1 %v5266_v1  ;;  %4819 = vmax.xlane.f32.xlu2 %v4818_v63  ;;  %v5269_v44 = vsel %vm962_vm12, %v12364_v45, 0.0 }
0x1251   : > { %v5256_v14 = vpop.xlane.xlu2 %5255 }
0x1252   : > { %9146 = vrcp.f32 %v5256_v14  ;;  %v5289_v55 = vand.u32 2147483648, %v5256_v14  ;;  %v5287_v56 = vand.u32 2147483647, %v5256_v14  ;;  %vm5283_vm5 = vweird.f32 %v5256_v14 }
0x1253   : > { %9148 = vpow2.f32 %v5250_v18  ;;  %v4798_v18 = vpop.f32.mrf.mxu3 }
0x1254   : > { %4828 = vmax.xlane.f32.xlu0 %v4827_v52  ;;  %v5290_v10 = vor.u32 1.1754944e-38, %v5289_v55  ;;  %vm5288_vm6 = vcmp.eq.f32.partialorder %v5287_v56, 8.507059e+37 }
0x1256   : > { %4822 = vmax.xlane.f32.xlu2 %v4821_v24 }
0x1258   : > { %v9147_v26 = vpop.eup %9146 }
0x1259   : > { %v5279_v48 = vmul.f32 %v9147_v26, %v5256_v14  ;;  %v5259_v39 = vpop.xlane.xlu2 %5258  ;;  %vm5284_vm3 = vweird.f32 %v9147_v26  ;;  %v12369_v7 = vpop.eup %9148 }
0x125a   : > { %9150 = vrcp.f32 %v5259_v39  ;;  %vm5285_vm11 = vmor %vm5283_vm5, %vm5284_vm3  ;;  %vm5298_vm10 = vweird.f32 %v5259_v39 }
0x125b   : > { %v5280_v27 = vsub.f32 1.0, %v5279_v48  ;;  %9152 = vpow2.f32 %v5252_v50  ;;  %v5272_v48 = vsel %vm962_vm12, %v12369_v7, 0.0  ;;  %vm14380_vm5 = vmmov %vm14346_vm1 }
0x125c   : > { %5270 = vadd.xlane.f32.xlu0 %v5269_v44  ;;  %v5302_v44 = vand.u32 2147483647, %v5259_v39 }
0x125d   : > { %v5281_v8 = vmul.f32 %v9147_v26, %v5280_v27  ;;  %v5304_v27 = vand.u32 2147483648, %v5259_v39 }
0x125e   : > { %vm5303_vm13 = vcmp.eq.f32.partialorder %v5302_v44, 8.507059e+37  ;;  %v12411_v44 = vmul.f32 0.35355338, %v12340_v15 }
0x125f   : > { %v5282_v1 = vadd.f32 %v9147_v26, %v5281_v8  ;;  %v5305_v50 = vor.u32 1.1754944e-38, %v5304_v27 }
0x1260   : > { %v9151_v63 = vpop.eup %9150 }
0x1261   : > { %v5286_v34 = vsel %vm5285_vm11, %v9147_v26, %v5282_v1  ;;  %v5294_v0 = vmul.f32 %v9151_v63, %v5259_v39  ;;  %v5262_v52 = vpop.xlane.xlu0 %5261  ;;  %vm5299_vm7 = vweird.f32 %v9151_v63  ;;  %v12377_v26 = vpop.eup %9152 }
0x1262   : > { %v5291_v24 = vsel %vm5288_vm6, %v5290_v10, %v5286_v34  ;;  %9154 = vrcp.f32 %v5262_v52  ;;  %vm5300_vm4 = vmor %vm5298_vm10, %vm5299_vm7  ;;  %v4801_v39 = vpop.f32.mrf.mxu3  ;;  %vm5313_vm15 = vweird.f32 %v5262_v52 }
0x1263   : > { %v5292_v43 = vmul.f32 %v12312_v51, %v5291_v24  ;;  %v5295_v9 = vsub.f32 1.0, %v5294_v0  ;;  %v5319_v0 = vand.u32 2147483648, %v5262_v52 }
0x1264   : > { %5273 = vadd.xlane.f32.xlu0 %v5272_v48 }
0x1265   : > { %v5296_v14 = vmul.f32 %v9151_v63, %v5295_v9  ;;  %8442 = vmatmul.msk.f32.vlgmr.msrb.gmra.mxu3 %vm962_vm12, %v5292_v43  ;;  %v5317_v43 = vand.u32 2147483647, %v5262_v52 }
0x1266   : > { %8498 = vmatpush.xpose.msk.msrb.mxu3 %vm14378_vm8, %v12310_v3  ;;  %v5275_v3 = vsel %vm962_vm12, %v12377_v26, 0.0 }
0x1267   : > { %v5297_v55 = vadd.f32 %v9151_v63, %v5296_v14  ;;  %6106 = vrot.lane.b32.xlu1 %v12101_v16, %s14338_s21  ;;  %vm5318_vm3 = vcmp.eq.f32.partialorder %v5317_v43, 8.507059e+37  ;;  %v12408_v14 = vmul.f32 0.35355338, %v4798_v18 }
0x1268   : > { %v9155_v51 = vpop.eup %9154 }
0x1269   : > { %v5309_v8 = vmul.f32 %v9155_v51, %v5262_v52  ;;  %v5301_v56 = vsel %vm5300_vm4, %v9151_v63, %v5297_v55  ;;  %vm5314_vm9 = vweird.f32 %v9155_v51 }
0x126a   : > { %8499 = vmatpush.xpose.msk.msrb.mxu3 %vm14346_vm1, %v12305_v23  ;;  %v5306_v1 = vsel %vm5303_vm13, %v5305_v50, %v5301_v56  ;;  %v12391_v23 = vmul.f32 0.35355338, %v4801_v39  ;;  %vm5315_vm2 = vmor %vm5313_vm15, %vm5314_vm9 }
0x126b   : > { %v5310_v10 = vsub.f32 1.0, %v5309_v8  ;;  %v5307_v34 = vmul.f32 %v12316_v62, %v5306_v1  ;;  %v5320_v62 = vor.u32 1.1754944e-38, %v5319_v0  ;;  %vm14382_vm9 = vmmov %vm14380_vm5 }
0x126c   : > { %5276 = vadd.xlane.f32.xlu0 %v5275_v3  ;;  %v4833_v27 = vsel %vm962_vm12, %v12391_v23, -inf }
0x126d   : > { %v5311_v24 = vmul.f32 %v9155_v51, %v5310_v10  ;;  %8443 = vmatmul.msk.f32.gmra.mxu3 %vm962_vm12, %v5307_v34 }
0x126e   : > { %8500 = vmatpush.xpose.msk.msrb.mxu3 %vm14379_vm14, %v12246_v54  ;;  %6088 = vrot.lane.b32.xlu2 %v12099_v2, %s14377_s25  ;;  %v12402_v2 = vmul.f32 0.35355338, %v12334_v60  ;;  %v4824_v60 = vsel %vm962_vm12, %v12411_v44, -inf }
0x126f   : > { %v5312_v63 = vadd.f32 %v9155_v51, %v5311_v24 }
0x1271   : > { %v5316_v9 = vsel %vm5315_vm2, %v9155_v51, %v5312_v63 }
0x1272   : > { %8501 = vmatpush.xpose.msk.msrb.mxu3 %vm14380_vm5, %v12308_v29  ;;  %v5321_v48 = vsel %vm5318_vm3, %v5320_v62, %v5316_v9  ;;  %v4815_v29 = vsel %vm962_vm12, %v12402_v2, -inf  ;;  %vm14383_vm3 = vmmov %vm14380_vm5 }
0x1273   : > { %v5322_v54 = vmul.f32 %v12320_v22, %v5321_v48  ;;  %v4830_v22 = vsel %vm962_vm12, %v12408_v14, -inf }
0x1274   : > { %4834 = vmax.xlane.f32.xlu0 %v4833_v27  ;;  %v12404_v52 = vpop.permute.xlu0 %6104 }
0x1275   : > { %8444 = vmatmul.msk.f32.gmra.mxu3 %vm962_vm12, %v5322_v54 }
0x127c   : > { %v12415_v55 = vpop.permute.xlu0 %5631 }
0x1284   : > { %v12419_v51 = vpop.permute.xlu0 %6102 }
0x1288   : > { %8801 = vrot.lane.b32.xlu0 %v12201_v57, %s14381_s26 }
0x128c   : > { %v12421_v50 = vpop.permute.xlu0 %6100 }
0x1291   : > { %4816 = vmax.xlane.f32.xlu1 %v4815_v29 }
0x1294   : > { %v12427_v15 = vpop.permute.xlu0 %6084 }
0x1297   : > { %4831 = vmax.xlane.f32.xlu2 %v4830_v22 }
0x1299   : > { %4825 = vmax.xlane.f32.xlu1 %v4824_v60 }
0x129c   : > { %v12433_v8 = vpop.permute.xlu0 %6086 }
0x12af   : > { %6094 = vrot.lane.b32.xlu2 %v12105_v19, %s14377_s25 }
0x12b2   : > { %6090 = vrot.lane.b32.xlu1 %v12101_v16, %s14377_s25 }
0x12b7   : > { %8811 = vrot.lane.b32.xlu2 %v12193_v30, %s14381_s26 }
0x12b9   : > { %v5265_v18 = vpop.xlane.xlu2 %5264 }
0x12ba   : > { %9156 = vrcp.f32 %v5265_v18  ;;  %6092 = vrot.lane.b32.xlu1 %v12103_v53, %s14377_s25  ;;  %v5334_v10 = vand.u32 2147483648, %v5265_v18  ;;  %v5332_v34 = vand.u32 2147483647, %v5265_v18  ;;  %vm5328_vm6 = vweird.f32 %v5265_v18 }
0x12bc   : > { %v5335_v53 = vor.u32 1.1754944e-38, %v5334_v10  ;;  %vm5333_vm8 = vcmp.eq.f32.partialorder %v5332_v34, 8.507059e+37 }
0x12bf   : > { %6096 = vrot.lane.b32.xlu2 %v12109_v25, %s14377_s25 }
0x12c0   : > { %v9157_v56 = vpop.eup %9156 }
0x12c1   : > { %v5324_v19 = vmul.f32 %v9157_v56, %v5265_v18  ;;  %v5268_v1 = vpop.xlane.xlu1 %5267  ;;  %vm5329_vm11 = vweird.f32 %v9157_v56 }
0x12c2   : > { %9158 = vrcp.f32 %v5268_v1  ;;  %vm5330_vm7 = vmor %vm5328_vm6, %vm5329_vm11  ;;  %v5349_v48 = vand.u32 2147483648, %v5268_v1  ;;  %v5347_v54 = vand.u32 2147483647, %v5268_v1  ;;  %vm5343_vm4 = vweird.f32 %v5268_v1 }
0x12c3   : > { %v5325_v16 = vsub.f32 1.0, %v5324_v19  ;;  %vm14384_vm11 = vmmov %vm14383_vm3 }
0x12c4   : > { %v5350_v60 = vor.u32 1.1754944e-38, %v5349_v48  ;;  %vm5348_vm1 = vcmp.eq.f32.partialorder %v5347_v54, 8.507059e+37 }
0x12c5   : > { %v5326_v3 = vmul.f32 %v9157_v56, %v5325_v16  ;;  %v4820_v16 = vpop.xlane.xlu2 %4819 }
0x12c6   : > { %v4838_v34 = vsub.f32 %v12346_v37, %v4820_v16 }
0x12c7   : > { %v5327_v39 = vadd.f32 %v9157_v56, %v5326_v3  ;;  %v12437_v0 = vpop.xlane.xlu0 %4828 }
0x12c8   : > { %v9159_v24 = vpop.eup %9158 }
0x12c9   : > { %v5339_v43 = vmul.f32 %v9159_v24, %v5268_v1  ;;  %v5331_v63 = vsel %vm5330_vm7, %v9157_v56, %v5327_v39  ;;  %vm5344_vm10 = vweird.f32 %v9159_v24  ;;  %v4836_v56 = vsub.f32 %v12298_v4, %v12338_v32 }
0x12ca   : > { %v5336_v25 = vsel %vm5333_vm8, %v5335_v53, %v5331_v63  ;;  %vm5345_vm13 = vmor %vm5343_vm4, %vm5344_vm10 }
0x12cb   : > { %v5340_v62 = vsub.f32 1.0, %v5339_v43  ;;  %v5337_v9 = vmul.f32 %v12342_v42, %v5336_v25  ;;  %v4844_v3 = vmul.f32 1.442695, %v4836_v56  ;;  %vm14385_vm10 = vmmov %vm14383_vm3 }
0x12cd   : > { %v5341_v27 = vmul.f32 %v9159_v24, %v5340_v62  ;;  %8445 = vmatmul.msk.f32.gmra.mxu3 %vm962_vm12, %v5337_v9 }
0x12cf   : > { %v5342_v29 = vadd.f32 %v9159_v24, %v5341_v27  ;;  %v5271_v22 = vpop.xlane.xlu0 %5270 }
0x12d0   : > { %9160 = vrcp.f32 %v5271_v22  ;;  %v5364_v32 = vand.u32 2147483648, %v5271_v22  ;;  %v5362_v63 = vand.u32 2147483647, %v5271_v22  ;;  %vm5358_vm15 = vweird.f32 %v5271_v22 }
0x12d1   : > { %v5346_v18 = vsel %vm5345_vm13, %v9159_v24, %v5342_v29  ;;  %v4848_v24 = vmul.f32 1.442695, %v4838_v34 }
0x12d2   : > { %v5351_v19 = vsel %vm5348_vm1, %v5350_v60, %v5346_v18  ;;  %v5365_v37 = vor.u32 1.1754944e-38, %v5364_v32  ;;  %vm5363_vm5 = vcmp.eq.f32.partialorder %v5362_v63, 8.507059e+37 }
0x12d3   : > { %v5352_v42 = vmul.f32 %v12349_v35, %v5351_v19 }
0x12d5   : > { %8446 = vmatmul.msk.f32.gmra.mxu3 %vm962_vm12, %v5352_v42 }
0x12d6   : > { %v9161_v10 = vpop.eup %9160 }
0x12d7   : > { %v5354_v1 = vmul.f32 %v9161_v10, %v5271_v22  ;;  %v5274_v39 = vpop.xlane.xlu0 %5273  ;;  %vm5359_vm14 = vweird.f32 %v9161_v10 }
0x12d8   : > { %9162 = vrcp.f32 %v5274_v39  ;;  %vm5360_vm2 = vmor %vm5358_vm15, %vm5359_vm14  ;;  %v5379_v60 = vand.u32 2147483648, %v5274_v39  ;;  %v5377_v56 = vand.u32 2147483647, %v5274_v39  ;;  %vm5373_vm7 = vweird.f32 %v5274_v39 }
0x12d9   : > { %v5355_v53 = vsub.f32 1.0, %v5354_v1  ;;  %v6107_v43 = vpop.permute.xlu1 %6106  ;;  %9164 = vpow2.f32 %v4844_v3  ;;  %vm14386_vm15 = vmmov %vm14383_vm3 }
0x12da   : > { %8502 = vmatpush.xpose.msk.msrb.mxu3 %vm14382_vm9, %v6107_v43  ;;  %9166 = vpow2.f32 %v4848_v24  ;;  %vm5378_vm4 = vcmp.eq.f32.partialorder %v5377_v56, 8.507059e+37 }
0x12db   : > { %v5356_v4 = vmul.f32 %v9161_v10, %v5355_v53 }
0x12dd   : > { %v5357_v35 = vadd.f32 %v9161_v10, %v5356_v4 }
0x12de   : > { %v9163_v25 = vpop.eup %9162  ;;  %8503 = vmatpush.xpose.msk.msrb.mxu3 %vm14383_vm3, %v12404_v52 }
0x12df   : > { %v5369_v62 = vmul.f32 %v9163_v25, %v5274_v39  ;;  %v5277_v9 = vpop.xlane.xlu0 %5276  ;;  %v5361_v48 = vsel %vm5360_vm2, %v9161_v10, %v5357_v35  ;;  %v12449_v27 = vpop.eup %9164  ;;  %vm5374_vm6 = vweird.f32 %v9163_v25  ;;  %v5380_v10 = vor.u32 1.1754944e-38, %v5379_v60  ;;  %vm14388_vm2 = vmmov %vm14383_vm3 }
0x12e0   : > { %9168 = vrcp.f32 %v5277_v9  ;;  %v5366_v29 = vsel %vm5363_vm5, %v5365_v37, %v5361_v48  ;;  %v4860_v52 = vsel %vm962_vm12, %v12449_v27, 0.0  ;;  %v12456_v19 = vpop.eup %9166  ;;  %vm5375_vm8 = vmor %vm5373_vm7, %vm5374_vm6  ;;  %v5394_v43 = vand.u32 2147483648, %v5277_v9 }
0x12e1   : > { %v5370_v54 = vsub.f32 1.0, %v5369_v62  ;;  %v5367_v22 = vmul.f32 %v12364_v45, %v5366_v29  ;;  %v5392_v39 = vand.u32 2147483647, %v5277_v9  ;;  %vm5388_vm1 = vweird.f32 %v5277_v9  ;;  %vm14389_vm3 = vmmov %vm14388_vm2 }
0x12e2   : > { %8504 = vmatpush.xpose.msk.msrb.mxu3 %vm14384_vm11, %v12419_v51  ;;  %v4866_v51 = vsel %vm962_vm12, %v12456_v19, 0.0  ;;  %vm14390_vm5 = vmmov %vm14388_vm2 }
0x12e3   : > { %v5371_v18 = vmul.f32 %v9163_v25, %v5370_v54  ;;  %8447 = vmatmul.msk.f32.gmra.mxu3 %vm962_vm12, %v5367_v22  ;;  %vm5393_vm14 = vcmp.eq.f32.partialorder %v5392_v39, 8.507059e+37  ;;  %vm14391_vm11 = vmmov %vm14388_vm2 }
0x12e4   : > { %4861 = vadd.xlane.f32.xlu1 %v4860_v52  ;;  %vm14392_vm6 = vmmov %vm14388_vm2 }
0x12e5   : > { %v5372_v16 = vadd.f32 %v9163_v25, %v5371_v18  ;;  %vm14393_vm7 = vmmov %vm14388_vm2 }
0x12e6   : > { %v9169_v42 = vpop.eup %9168  ;;  %8505 = vmatpush.xpose.msk.msrb.mxu3 %vm14385_vm10, %v12421_v50  ;;  %v5395_v50 = vor.u32 1.1754944e-38, %v5394_v43  ;;  %vm14395_vm10 = vmmov %vm14388_vm2 }
0x12e7   : > { %v5384_v45 = vmul.f32 %v9169_v42, %v5277_v9  ;;  %v5376_v3 = vsel %vm5375_vm8, %v9163_v25, %v5372_v16  ;;  %vm5389_vm13 = vweird.f32 %v9169_v42  ;;  %v12466_v25 = vpop.xlane.xlu0 %4834  ;;  %v4823_v9 = vpop.xlane.xlu2 %4822  ;;  %vm14394_vm8 = vmmov %vm14388_vm2 }
0x12e8   : > { %4867 = vadd.xlane.f32.xlu2 %v4866_v51  ;;  %v5381_v34 = vsel %vm5378_vm4, %v5380_v10, %v5376_v3  ;;  %vm5390_vm9 = vmor %vm5388_vm1, %vm5389_vm13 }
0x12e9   : > { %v5385_v1 = vsub.f32 1.0, %v5384_v45  ;;  %v5382_v53 = vmul.f32 %v12369_v7, %v5381_v34  ;;  %v12519_v45 = vpop.f32.mrf.mxu3  ;;  %vm14396_vm4 = vmmov %vm14388_vm2 }
0x12ea   : > { %vm14397_vm13 = vmmov %vm14388_vm2 }
0x12eb   : > { %v5386_v24 = vmul.f32 %v9169_v42, %v5385_v1  ;;  %8448 = vmatmul.msk.f32.gmra.mxu3 %vm962_vm12, %v5382_v53  ;;  %vm14398_vm1 = vmmov %vm14388_vm2 }
0x12ed   : > { %v5387_v4 = vadd.f32 %v9169_v42, %v5386_v24 }
0x12ef   : > { %v5391_v32 = vsel %vm5390_vm9, %v9169_v42, %v5387_v4  ;;  %v6089_v60 = vpop.permute.xlu2 %6088  ;;  %vm14399_vm9 = vmmov %vm14398_vm1 }
0x12f0   : > { %v5396_v63 = vsel %vm5393_vm14, %v5395_v50, %v5391_v32  ;;  %vm14400_vm14 = vmmov %vm14398_vm1 }
0x12f1   : > { %v5397_v35 = vmul.f32 %v12377_v26, %v5396_v63 }
0x12f3   : > { %8449 = vmatmul.msk.f32.gmra.mxu3 %vm962_vm12, %v5397_v35 }
0x12fa   : > { %v8802_v7 = vpop.permute.xlu0 %8801 }
0x12fb   : > { %v8803_v37 = vunpack.i.l.bf16 %v8802_v7  ;;  %8474 = vmatmul.msk.f32.vlgmr.msra.gmra.mxu3 %vm14386_vm15, %v12296_v11  ;;  %v8804_v62 = vunpack.i.h.bf16 %v8802_v7  ;;  %v4839_v11 = vsub.f32 %v12357_v41, %v4823_v9  ;;  %vm14401_vm15 = vmmov %vm14398_vm1 }
0x12fd   : > { %8806 = vrot.lane.b32.xlu1 %v12141_v6, %s14381_s26  ;;  %5060 = vmatpush.msrb.mxu0 %v8803_v37  ;;  %v4850_v29 = vmul.f32 1.442695, %v4839_v11 }
0x12ff   : > { %5061 = vmatpush.msrb.mxu0 %v8804_v62 }
0x1300   : > { %8831 = vrot.lane.b32.xlu2 %v12193_v30, %s14387_s27 }
0x1303   : > { %8475 = vmatmul.msk.f32.gmra.mxu3 %vm14388_vm2, %v12234_v5  ;;  %v4841_v5 = vsub.f32 %v12355_v36, %v12437_v0 }
0x1304   : > { %v4817_v26 = vpop.xlane.xlu1 %4816 }
0x1305   : > { %v4837_v48 = vsub.f32 %v12402_v2, %v4817_v26  ;;  %8816 = vrot.lane.b32.xlu1 %v12149_v12, %s14381_s26  ;;  %v4854_v41 = vmul.f32 1.442695, %v4841_v5 }
0x1307   : > { %v4846_v54 = vmul.f32 1.442695, %v4837_v48 }
0x1309   : > { %9170 = vpow2.f32 %v4846_v54 }
0x130a   : > { %9172 = vpow2.f32 %v4850_v29  ;;  %v4832_v18 = vpop.xlane.xlu2 %4831 }
0x130b   : > { %8476 = vmatmul.msk.f32.gmra.mxu3 %vm14389_vm3, %v12243_v46  ;;  %9174 = vpow2.f32 %v4854_v41 }
0x130d   : > { %6098 = vrot.lane.b32.xlu1 %v12155_v58, %s14377_s25  ;;  %v4842_v58 = vsub.f32 %v12408_v14, %v4832_v18  ;;  %s14471_s25 = sshll.u32 %s14480_s19, 6 }
0x130e   : > { %s494_s29 = scalar_lea.vmem %s14224_s15, %s14471_s25 }
0x130f   : > { %v12485_v22 = vpop.eup %9170  ;;  %v4856_v36 = vmul.f32 1.442695, %v4842_v58 }
0x1310   : > { %v4863_v2 = vsel %vm962_vm12, %v12485_v22, 0.0  ;;  %v12493_v56 = vpop.eup %9172 }
0x1311   : > { %4864 = vadd.xlane.f32.xlu0 %v4863_v2  ;;  %v4869_v46 = vsel %vm962_vm12, %v12493_v56, 0.0  ;;  %v12500_v0 = vpop.eup %9174  ;;  %9176 = vpow2.f32 %v4856_v36 }
0x1312   : > { %v4875_v52 = vsel %vm962_vm12, %v12500_v0, 0.0  ;;  %v6095_v34 = vpop.permute.xlu2 %6094 }
0x1313   : > { %8477 = vmatmul.msk.f32.gmra.mxu3 %vm14390_vm5, %v12300_v31  ;;  %v4826_v31 = vpop.xlane.xlu1 %4825 }
0x1314   : > { %v4840_v16 = vsub.f32 %v12411_v44, %v4826_v31  ;;  %v12525_v44 = vpop.f32.mrf.mxu3 }
0x1316   : > { %v4852_v10 = vmul.f32 1.442695, %v4840_v16 }
0x1317   : > { %v12506_v14 = vpop.eup %9176 }
0x1318   : > { %v4878_v42 = vsel %vm962_vm12, %v12506_v14, 0.0  ;;  %9178 = vpow2.f32 %v4852_v10 }
0x1319   : > { %4870 = vadd.xlane.f32.xlu0 %v4869_v46 }
0x131a   : > { %v8812_v43 = vpop.permute.xlu2 %8811 }
0x131b   : > { %8478 = vmatmul.msk.f32.gmra.mxu3 %vm14391_vm11, %v12237_v59  ;;  %v8813_v11 = vunpack.i.l.bf16 %v8812_v43  ;;  %v8814_v29 = vunpack.i.h.bf16 %v8812_v43 }
0x131e   : > { %v12513_v59 = vpop.eup %9178 }
0x1321   : > { %4876 = vadd.xlane.f32.xlu0 %v4875_v52 }
0x1322   : > { %v6097_v63 = vpop.permute.xlu2 %6096 }
0x1323   : > { %8479 = vmatmul.msk.f32.gmra.mxu3 %vm14392_vm6, %v12240_v47  ;;  %v4872_v47 = vsel %vm962_vm12, %v12513_v59, 0.0  ;;  %vm14402_vm6 = vmmov %vm14398_vm1 }
0x1329   : > { %4879 = vadd.xlane.f32.xlu0 %v4878_v42 }
0x132b   : > { %8480 = vmatmul.msk.f32.gmra.mxu3 %vm14393_vm7, %v12251_v40  ;;  %v6091_v40 = vpop.permute.xlu1 %6090 }
0x1333   : > { %8481 = vmatmul.msk.f32.gmra.mxu3 %vm14394_vm8, %v12415_v55  ;;  %v12530_v55 = vpop.f32.mrf.mxu3  ;;  %v6093_v51 = vpop.permute.xlu1 %6092 }
0x1337   : > { %4873 = vadd.xlane.f32.xlu1 %v4872_v47 }
0x133b   : > { %8506 = vmatmul.msk.f32.vlgmr.msrb.gmra.mxu3 %vm14395_vm10, %v12427_v15  ;;  %v4843_v15 = vsub.f32 %v12391_v23, %v12466_v25 }
0x133d   : > { %8826 = vrot.lane.b32.xlu0 %v12141_v6, %s14387_s27  ;;  %v4858_v1 = vmul.f32 1.442695, %v4843_v15 }
0x1343   : > { %8507 = vmatmul.msk.f32.gmra.mxu3 %vm14396_vm4, %v12433_v8 }
0x134b   : > { %8508 = vmatmul.msk.f32.gmra.mxu3 %vm14397_vm13, %v6089_v60 }
0x1350   : > { %8821 = vrot.lane.b32.xlu1 %v12201_v57, %s14387_s27  ;;  %v12537_v3 = vpop.f32.mrf.mxu3 }
0x1353   : > { %8509 = vmatmul.msk.f32.gmra.mxu3 %vm14398_vm1, %v6091_v40 }
0x1357   : > { %v4862_v53 = vpop.xlane.xlu1 %4861 }
0x1358   : > { %9180 = vrcp.f32 %v4862_v53  ;;  %v12540_v8 = vpop.f32.mrf.mxu3  ;;  %v4895_v9 = vand.u32 2147483648, %v4862_v53  ;;  %vm4889_vm3 = vweird.f32 %v4862_v53  ;;  %v4893_v48 = vand.u32 2147483647, %v4862_v53 }
0x1359   : > { %9182 = vpow2.f32 %v4858_v1 }
0x135a   : > { %v4896_v60 = vor.u32 1.1754944e-38, %v4895_v9  ;;  %vm4894_vm11 = vcmp.eq.f32.partialorder %v4893_v48, 8.507059e+37 }
0x135b   : > { %8510 = vmatmul.msk.f32.gmra.mxu3 %vm14399_vm9, %v6093_v51  ;;  %v4868_v36 = vpop.xlane.xlu2 %4867 }
0x135c   : > { %9184 = vrcp.f32 %v4868_v36  ;;  %vm4919_vm1 = vweird.f32 %v4868_v36 }
0x135e   : > { %v9181_v24 = vpop.eup %9180 }
0x135f   : > { %v12542_v39 = vpop.eup %9182  ;;  %v4885_v4 = vmul.f32 %v9181_v24, %v4862_v53  ;;  %vm4890_vm2 = vweird.f32 %v9181_v24 }
0x1360   : > { %v4881_v23 = vsel %vm962_vm12, %v12542_v39, 0.0  ;;  %vm4891_vm5 = vmor %vm4889_vm3, %vm4890_vm2 }
0x1361   : > { %v4886_v32 = vsub.f32 1.0, %v4885_v4 }
0x1362   : > { %v9185_v47 = vpop.eup %9184 }
0x1363   : > { %8511 = vmatmul.msk.f32.gmra.mxu3 %vm14400_vm14, %v6095_v34  ;;  %v4887_v35 = vmul.f32 %v9181_v24, %v4886_v32  ;;  %v4915_v51 = vmul.f32 %v9185_v47, %v4868_v36  ;;  %vm4920_vm4 = vweird.f32 %v9185_v47 }
0x1364   : > { %vm4921_vm9 = vmor %vm4919_vm1, %vm4920_vm4 }
0x1365   : > { %v4888_v62 = vadd.f32 %v9181_v24, %v4887_v35  ;;  %v4916_v43 = vsub.f32 1.0, %v4915_v51 }
0x1366   : > { %v12547_v50 = vpop.f32.mrf.mxu3 }
0x1367   : > { %4882 = vadd.xlane.f32.xlu0 %v4881_v23  ;;  %v4892_v54 = vsel %vm4891_vm5, %v9181_v24, %v4888_v62  ;;  %v4917_v35 = vmul.f32 %v9185_v47, %v4916_v43 }
0x1368   : > { %v4897_v41 = vsel %vm4894_vm11, %v4896_v60, %v4892_v54 }
0x1369   : > { %v4898_v46 = vmul.f32 %v12449_v27, %v4897_v41  ;;  %v4918_v54 = vadd.f32 %v9185_v47, %v4917_v35  ;;  %v4923_v41 = vand.u32 2147483647, %v4868_v36 }
0x136b   : > { %8512 = vmatmul.msk.f32.gmra.mxu3 %vm14401_vm15, %v6097_v63  ;;  %vm4924_vm14 = vcmp.eq.f32.partialorder %v4923_v41, 8.507059e+37 }
0x136e   : > { %v12550_v25 = vpop.f32.mrf.mxu3 }
0x136f   : > { %v8807_v7 = vpop.permute.xlu1 %8806 }
0x1370   : > { %v8808_v37 = vunpack.i.l.bf16 %v8807_v7  ;;  %v8809_v26 = vunpack.i.h.bf16 %v8807_v7 }
0x1372   : > { %5062 = vmatpush.msrb.mxu0 %v8808_v37 }
0x1374   : > { %5063 = vmatpush.msrb.mxu0 %v8809_v26 }
0x1376   : > { %5064 = vmatpush.msrb.mxu0 %v8813_v11  ;;  %v12552_v5 = vpop.f32.mrf.mxu3 }
0x1377   : > { %v8817_v2 = vpop.permute.xlu1 %8816 }
0x1378   : > { %v8818_v18 = vunpack.i.l.bf16 %v8817_v2  ;;  %5065 = vmatpush.msrb.mxu0 %v8814_v29  ;;  %v8819_v58 = vunpack.i.h.bf16 %v8817_v2  ;;  %v4925_v29 = vand.u32 2147483648, %v4868_v36 }
0x137a   : > { %5066 = vmatpush.msrb.mxu0 %v8818_v18 }
0x137c   : > { %5067 = vmatpush.msrb.mxu0 %v8819_v58 }
0x137d   : > { %8418 = vmatmul.msk.f32.vlgmr.msrb.gmra.mxu0 %vm962_vm12, %v4898_v46 }
0x137e   : > { %v5698_v52 = vpop.f32.mrf.mxu3 }
0x137f   : > { %v6099_v31 = vpop.permute.xlu1 %6098  ;;  %v12556_v16 = vmul.f32 0.35355338, %v5698_v52  ;;  %v4922_v52 = vsel %vm4921_vm9, %v9185_v47, %v4918_v54 }
0x1380   : > { %8513 = vmatmul.msk.f32.gmra.mxu3 %vm14402_vm6, %v6099_v31  ;;  %v4926_v31 = vor.u32 1.1754944e-38, %v4925_v29 }
0x1381   : > { %v5730_v42 = vsel %vm962_vm12, %v12556_v16, -inf }
0x1382   : > { %5731 = vmax.xlane.f32.xlu2 %v5730_v42  ;;  %v4927_v42 = vsel %vm4924_vm14, %v4926_v31, %v4922_v52 }
0x1384   : > { %v4865_v10 = vpop.xlane.xlu0 %4864 }
0x1385   : > { %9186 = vrcp.f32 %v4865_v10  ;;  %v4910_v32 = vand.u32 2147483648, %v4865_v10  ;;  %v4908_v7 = vand.u32 2147483647, %v4865_v10  ;;  %vm4904_vm8 = vweird.f32 %v4865_v10 }
0x1386   : > { %v5701_v40 = vpop.f32.mrf.mxu3 }
0x1387   : > { %v12561_v27 = vmul.f32 0.35355338, %v5701_v40  ;;  %v4911_v26 = vor.u32 1.1754944e-38, %v4910_v32  ;;  %vm4909_vm13 = vcmp.eq.f32.partialorder %v4908_v7, 8.507059e+37 }
0x1389   : > { %v5733_v15 = vsel %vm962_vm12, %v12561_v27, -inf }
0x138a   : > { %5734 = vmax.xlane.f32.xlu0 %v5733_v15  ;;  %v4928_v15 = vmul.f32 %v12456_v19, %v4927_v42 }
0x138b   : > { %v9187_v34 = vpop.eup %9186 }
0x138c   : > { %v4900_v1 = vmul.f32 %v9187_v34, %v4865_v10  ;;  %v4871_v53 = vpop.xlane.xlu0 %4870  ;;  %vm4905_vm7 = vweird.f32 %v9187_v34 }
0x138d   : > { %9188 = vrcp.f32 %v4871_v53  ;;  %vm4906_vm10 = vmor %vm4904_vm8, %vm4905_vm7  ;;  %v4940_v40 = vand.u32 2147483648, %v4871_v53  ;;  %vm4934_vm2 = vweird.f32 %v4871_v53  ;;  %v4938_v51 = vand.u32 2147483647, %v4871_v53 }
0x138e   : > { %v4901_v24 = vsub.f32 1.0, %v4900_v1  ;;  %v5704_v4 = vpop.f32.mrf.mxu3 }
0x138f   : > { %v12565_v63 = vmul.f32 0.35355338, %v5704_v4  ;;  %v4941_v1 = vor.u32 1.1754944e-38, %v4940_v40  ;;  %vm4939_vm5 = vcmp.eq.f32.partialorder %v4938_v51, 8.507059e+37 }
0x1390   : > { %v4902_v23 = vmul.f32 %v9187_v34, %v4901_v24 }
0x1391   : > { %v5736_v62 = vsel %vm962_vm12, %v12565_v63, -inf }
0x1392   : > { %v4903_v37 = vadd.f32 %v9187_v34, %v4902_v23  ;;  %5737 = vmax.xlane.f32.xlu2 %v5736_v62 }
0x1393   : > { %v9189_v9 = vpop.eup %9188 }
0x1394   : > { %v4930_v48 = vmul.f32 %v9189_v9, %v4871_v53  ;;  %v4907_v11 = vsel %vm4906_vm10, %v9187_v34, %v4903_v37  ;;  %vm4935_vm15 = vweird.f32 %v9189_v9  ;;  %v8399_v53 = vld [vmem:[%s14214_s5 + $0x28] sm:$0xff] }
0x1395   : > { %v4912_v2 = vsel %vm4909_vm13, %v4911_v26, %v4907_v11  ;;  %vm4936_vm3 = vmor %vm4934_vm2, %vm4935_vm15  ;;  %5526 = vmatpush.msra.mxu0 %v8399_v53 }
0x1396   : > { %v4931_v60 = vsub.f32 1.0, %v4930_v48  ;;  %v12569_v18 = vpop.f32.mrf.mxu3  ;;  %v4913_v58 = vmul.f32 %v12485_v22, %v4912_v2  ;;  %v4877_v22 = vpop.xlane.xlu0 %4876 }
0x1397   : > { %9190 = vrcp.f32 %v4877_v22  ;;  %v4970_v51 = vand.u32 2147483648, %v4877_v22  ;;  %vm4964_vm4 = vweird.f32 %v4877_v22 }
0x1398   : > { %v4932_v46 = vmul.f32 %v9189_v9, %v4931_v60  ;;  %8419 = vmatmul.msk.f32.gmra.mxu0 %vm962_vm12, %v4913_v58 }
0x1399   : > { %v4971_v53 = vor.u32 1.1754944e-38, %v4970_v51 }
0x139a   : > { %v4933_v10 = vadd.f32 %v9189_v9, %v4932_v46 }
0x139c   : > { %v4937_v47 = vsel %vm4936_vm3, %v9189_v9, %v4933_v10 }
0x139d   : > { %v4942_v24 = vsel %vm4939_vm5, %v4941_v1, %v4937_v47  ;;  %v9191_v23 = vpop.eup %9190 }
0x139e   : > { %8836 = vrot.lane.b32.xlu0 %v12149_v12, %s14387_s27  ;;  %v5710_v36 = vpop.f32.mrf.mxu3  ;;  %v4943_v4 = vmul.f32 %v12493_v56, %v4942_v24  ;;  %v12588_v32 = vpop.xlane.xlu0 %4879  ;;  %v4960_v7 = vmul.f32 %v9191_v23, %v4877_v22  ;;  %vm4965_vm7 = vweird.f32 %v9191_v23 }
0x139f   : > { %v12576_v34 = vmul.f32 0.35355338, %v5710_v36  ;;  %vm4966_vm13 = vmor %vm4964_vm4, %vm4965_vm7  ;;  %vm4979_vm14 = vweird.f32 %v12588_v32  ;;  %vm14405_vm7 = vcmask 64512  }
0x13a0   : > { %8420 = vmatmul.msk.f32.gmra.mxu0 %vm962_vm12, %v4928_v15  ;;  %v4961_v26 = vsub.f32 1.0, %v4960_v7  ;;  %v4968_v15 = vand.u32 2147483647, %v4877_v22  ;;  %v4985_v22 = vand.u32 2147483648, %v12588_v32  ;;  %vm14408_vm4 = vmmov %vm14405_vm7 }
0x13a1   : > { %v5742_v43 = vsel %vm962_vm12, %v12576_v34, -inf }
0x13a2   : > { %5743 = vmax.xlane.f32.xlu2 %v5742_v43  ;;  %v4962_v29 = vmul.f32 %v9191_v23, %v4961_v26  ;;  %vm4969_vm1 = vcmp.eq.f32.partialorder %v4968_v15, 8.507059e+37  ;;  %v12606_v26 = vmul.f32 0.35355338, %v12569_v18  ;;  %v4986_v18 = vor.u32 1.1754944e-38, %v4985_v22 }
0x13a4   : > { %v4963_v42 = vadd.f32 %v9191_v23, %v4962_v29 }
0x13a6   : > { %v12584_v19 = vpop.f32.mrf.mxu3  ;;  %v4967_v43 = vsel %vm4966_vm13, %v9191_v23, %v4963_v42  ;;  %v4983_v23 = vand.u32 2147483647, %v12588_v32  ;;  %vm14409_vm13 = vmmov %vm14408_vm4 }
0x13a7   : > { %v12621_v42 = vmul.f32 0.35355338, %v12584_v19 }
0x13a8   : > { %8421 = vmatmul.msk.f32.gmra.mxu0 %vm962_vm12, %v4943_v4  ;;  %vm4984_vm2 = vcmp.eq.f32.partialorder %v4983_v23, 8.507059e+37 }
0x13aa   : > { %v4874_v35 = vpop.xlane.xlu1 %4873 }
0x13ab   : > { %9192 = vrcp.f32 %v4874_v35  ;;  %v4955_v60 = vand.u32 2147483648, %v4874_v35  ;;  %v4953_v58 = vand.u32 2147483647, %v4874_v35  ;;  %vm4949_vm6 = vweird.f32 %v4874_v35 }
0x13ac   : > { %9194 = vrcp.f32 %v12588_v32 }
0x13ad   : > { %v4956_v31 = vor.u32 1.1754944e-38, %v4955_v60  ;;  %vm4954_vm10 = vcmp.eq.f32.partialorder %v4953_v58, 8.507059e+37  ;;  %v8832_v58 = vpop.permute.xlu2 %8831 }
0x13ae   : > { %v5716_v37 = vpop.f32.mrf.mxu3 }
0x13af   : > { %v12591_v62 = vmul.f32 0.35355338, %v5716_v37 }
0x13b1   : > { %v9193_v9 = vpop.eup %9192  ;;  %v5748_v11 = vsel %vm962_vm12, %v12591_v62, -inf }
0x13b2   : > { %v4945_v48 = vmul.f32 %v9193_v9, %v4874_v35  ;;  %v9195_v56 = vpop.eup %9194  ;;  %5749 = vmax.xlane.f32.xlu1 %v5748_v11  ;;  %vm4950_vm11 = vweird.f32 %v9193_v9  ;;  %v4972_v35 = vsel %vm4969_vm1, %v4971_v53, %v4967_v43  ;;  %v8398_v43 = vld [vmem:[%s14214_s5 + $0x20] sm:$0xff]  ;;  %vm14410_vm1 = vmmov %vm14408_vm4 }
0x13b3   : > { %v4975_v2 = vmul.f32 %v9195_v56, %v12588_v32  ;;  %vm4951_vm8 = vmor %vm4949_vm6, %vm4950_vm11  ;;  %vm4980_vm9 = vweird.f32 %v9195_v56  ;;  %v4973_v11 = vmul.f32 %v12500_v0, %v4972_v35  ;;  %v5739_v0 = vsel %vm962_vm12, %v12606_v26, -inf  ;;  %5591 = vmatpush.msra.mxu2 %v8398_v43 }
0x13b4   : > { %v4946_v54 = vsub.f32 1.0, %v4945_v48  ;;  %v8827_v48 = vpop.permute.xlu0 %8826  ;;  %vm12611_vm15 = vmor %vm4979_vm14, %vm4980_vm9 }
0x13b5   : > { %v4976_v10 = vsub.f32 1.0, %v4975_v2  ;;  %v8828_v2 = vunpack.i.l.bf16 %v8827_v48  ;;  %v8829_v32 = vunpack.i.h.bf16 %v8827_v48  ;;  %vm14411_vm9 = vmmov %vm14410_vm1 }
0x13b6   : > { %v4947_v41 = vmul.f32 %v9193_v9, %v4946_v54  ;;  %v12596_v46 = vpop.f32.mrf.mxu3  ;;  %vm14412_vm14 = vmmov %vm14410_vm1 }
0x13b7   : > { %v4977_v1 = vmul.f32 %v9195_v56, %v4976_v10  ;;  %v8834_v10 = vunpack.i.h.bf16 %v8832_v58  ;;  %v12632_v19 = vmul.f32 0.35355338, %v12596_v46 }
0x13b8   : > { %v4948_v52 = vadd.f32 %v9193_v9, %v4947_v41 }
0x13b9   : > { %v4978_v7 = vadd.f32 %v9195_v56, %v4977_v1 }
0x13ba   : > { %v4952_v40 = vsel %vm4951_vm8, %v9193_v9, %v4948_v52  ;;  %vm14406_vm8 = vmmov %vm14405_vm7 }
0x13bb   : > { %v4957_v36 = vsel %vm4954_vm10, %v4956_v31, %v4952_v40  ;;  %v4982_v60 = vsel %vm12611_vm15, %v9195_v56, %v4978_v7  ;;  %v8833_v31 = vunpack.i.l.bf16 %v8832_v58  ;;  %vm14407_vm10 = vmmov %vm14405_vm7 }
0x13bc   : > { %v4958_v47 = vmul.f32 %v12513_v59, %v4957_v36  ;;  %v4987_v52 = vsel %vm4984_vm2, %v4986_v18, %v4982_v60  ;;  %v5745_v36 = vsel %vm962_vm12, %v12621_v42, -inf  ;;  %vm14413_vm15 = vmmov %vm14410_vm1 }
0x13bd   : > { %v4988_v56 = vmul.f32 %v12506_v14, %v4987_v52  ;;  %vm14414_vm2 = vmmov %vm14410_vm1 }
0x13be   : > { %8422 = vmatmul.msk.f32.gmra.mxu0 %vm962_vm12, %v4958_v47  ;;  %v6165_v24 = vpop.f32.mrf.mxu3  ;;  %v5751_v47 = vsel %vm962_vm12, %v12632_v19, -inf }
0x13bf   : > { %v12600_v4 = vmul.f32 0.35355338, %v6165_v24 }
0x13c1   : > { %v6197_v9 = vsel %vm962_vm12, %v12600_v4, -inf }
0x13c2   : > { %v8822_v37 = vpop.permute.xlu1 %8821  ;;  %6198 = vmax.xlane.f32.xlu2 %v6197_v9 }
0x13c3   : > { %v8823_v59 = vunpack.i.l.bf16 %v8822_v37  ;;  %v8824_v29 = vunpack.i.h.bf16 %v8822_v37 }
0x13c5   : > { %5978 = vmatpush.msrb.mxu0 %v8823_v59 }
0x13c6   : > { %8423 = vmatmul.msk.f32.gmra.mxu0 %vm962_vm12, %v4973_v11  ;;  %v6168_v41 = vpop.f32.mrf.mxu3 }
0x13c7   : > { %5979 = vmatpush.msrb.mxu0 %v8824_v29  ;;  %v12639_v53 = vmul.f32 0.35355338, %v6168_v41 }
0x13c8   : > { %5740 = vmax.xlane.f32.xlu0 %v5739_v0 }
0x13c9   : > { %5980 = vmatpush.msrb.mxu0 %v8828_v2  ;;  %v6200_v46 = vsel %vm962_vm12, %v12639_v53, -inf }
0x13cb   : > { %5981 = vmatpush.msrb.mxu0 %v8829_v32 }
0x13cd   : > { %5982 = vmatpush.msrb.mxu0 %v8833_v31 }
0x13ce   : > { %8424 = vmatmul.msk.f32.gmra.mxu0 %vm962_vm12, %v4988_v56  ;;  %v6171_v40 = vpop.f32.mrf.mxu3 }
0x13cf   : > { %5983 = vmatpush.msrb.mxu0 %v8834_v10  ;;  %v12625_v51 = vmul.f32 0.35355338, %v6171_v40 }
0x13d0   : > { %5746 = vmax.xlane.f32.xlu0 %v5745_v36 }
0x13d1   : > { %v6203_v15 = vsel %vm962_vm12, %v12625_v51, -inf }
0x13d2   : > { %6204 = vmax.xlane.f32.xlu1 %v6203_v15 }
0x13d6   : > { %v6174_v14 = vpop.f32.mrf.mxu3 }
0x13d7   : > { %v12647_v22 = vmul.f32 0.35355338, %v6174_v14 }
0x13d8   : > { %5752 = vmax.xlane.f32.xlu0 %v5751_v47 }
0x13d9   : > { %v6206_v18 = vsel %vm962_vm12, %v12647_v22, -inf }
0x13da   : > { %v4883_v1 = vpop.xlane.xlu0 %4882 }
0x13db   : > { %9196 = vrcp.f32 %v4883_v1  ;;  %v5000_v23 = vand.u32 2147483648, %v4883_v1  ;;  %v4998_v11 = vand.u32 2147483647, %v4883_v1  ;;  %vm4994_vm5 = vweird.f32 %v4883_v1 }
0x13dd   : > { %v5001_v2 = vor.u32 1.1754944e-38, %v5000_v23  ;;  %vm4999_vm6 = vcmp.eq.f32.partialorder %v4998_v11, 8.507059e+37 }
0x13de   : > { %v6177_v24 = vpop.f32.mrf.mxu3 }
0x13df   : > { %v12641_v35 = vmul.f32 0.35355338, %v6177_v24 }
0x13e0   : > { %6201 = vmax.xlane.f32.xlu0 %v6200_v46 }
0x13e1   : > { %v9197_v7 = vpop.eup %9196  ;;  %v6209_v9 = vsel %vm962_vm12, %v12641_v35, -inf }
0x13e2   : > { %v4990_v37 = vmul.f32 %v9197_v7, %v4883_v1  ;;  %6210 = vmax.xlane.f32.xlu2 %v6209_v9  ;;  %vm4995_vm3 = vweird.f32 %v9197_v7 }
0x13e3   : > { %vm4996_vm11 = vmor %vm4994_vm5, %vm4995_vm3 }
0x13e4   : > { %v4991_v59 = vsub.f32 1.0, %v4990_v37  ;;  %vm14415_vm3 = vmmov %vm14410_vm1 }
0x13e5   : > { %vm14416_vm5 = vmmov %vm14410_vm1 }
0x13e6   : > { %v4992_v48 = vmul.f32 %v9197_v7, %v4991_v59  ;;  %v6180_v54 = vpop.f32.mrf.mxu3 }
0x13e7   : > { %v12649_v60 = vmul.f32 0.35355338, %v6180_v54 }
0x13e8   : > { %v4993_v29 = vadd.f32 %v9197_v7, %v4992_v48  ;;  %6207 = vmax.xlane.f32.xlu0 %v6206_v18 }
0x13e9   : > { %v6212_v41 = vsel %vm962_vm12, %v12649_v60, -inf }
0x13ea   : > { %v4997_v58 = vsel %vm4996_vm11, %v9197_v7, %v4993_v29  ;;  %6213 = vmax.xlane.f32.xlu1 %v6212_v41  ;;  %vm14417_vm11 = vmmov %vm14410_vm1 }
0x13eb   : > { %v5002_v0 = vsel %vm4999_vm6, %v5001_v2, %v4997_v58  ;;  %vm14418_vm6 = vmmov %vm14410_vm1 }
0x13ec   : > { %v5003_v32 = vmul.f32 %v12542_v39, %v5002_v0 }
0x13ee   : > { %8425 = vmatmul.msk.f32.gmra.mxu0 %vm962_vm12, %v5003_v32  ;;  %v6183_v52 = vpop.f32.mrf.mxu3 }
0x13ef   : > { %v12657_v31 = vmul.f32 0.35355338, %v6183_v52 }
0x13f1   : > { %v6215_v56 = vsel %vm962_vm12, %v12657_v31, -inf }
0x13f2   : > { %6216 = vmax.xlane.f32.xlu0 %v6215_v56 }
0x13f5   : > { %v5732_v10 = vpop.xlane.xlu2 %5731 }
0x13f6   : > { %8450 = vmatmul.msk.f32.vlgmr.msra.gmra.mxu0 %vm14405_vm7, %v12519_v45  ;;  %v5754_v36 = vsub.f32 %v12556_v16, %v5732_v10  ;;  %vm14420_vm7 = vmmov %vm14410_vm1 }
0x13f8   : > { %v5762_v39 = vmul.f32 1.442695, %v5754_v36 }
0x13fa   : > { %v5069_v40 = vpop.f32.mrf.mxu0  ;;  %9198 = vpow2.f32 %v5762_v39 }
0x13fb   : > { %8458 = vmatmul.msk.f32.vlgmr.msra.gmra.mxu2 %vm14406_vm8, %v5069_v40  ;;  %vm14421_vm8 = vmmov %vm14410_vm1 }
0x13fd   : > { %v5735_v15 = vpop.xlane.xlu0 %5734 }
0x13fe   : > { %8451 = vmatmul.msk.f32.gmra.mxu0 %vm14407_vm10, %v12525_v44  ;;  %v5755_v1 = vsub.f32 %v12561_v27, %v5735_v15 }
0x1400   : > { %v5764_v44 = vmul.f32 1.442695, %v5755_v1  ;;  %v12675_v46 = vpop.eup %9198 }
0x1401   : > { %v5778_v27 = vsel %vm962_vm12, %v12675_v46, 0.0 }
0x1403   : > { %v6186_v14 = vpop.f32.mrf.mxu3 }
0x1404   : > { %v12667_v47 = vmul.f32 0.35355338, %v6186_v14 }
0x1405   : > { %v5738_v43 = vpop.xlane.xlu2 %5737 }
0x1406   : > { %8452 = vmatmul.msk.f32.gmra.mxu0 %vm14408_vm4, %v12530_v55  ;;  %v6218_v45 = vsel %vm962_vm12, %v12667_v47, -inf  ;;  %v5756_v16 = vsub.f32 %v12565_v63, %v5738_v43 }
0x1407   : > { %6219 = vmax.xlane.f32.xlu2 %v6218_v45 }
0x1408   : > { %v5766_v24 = vmul.f32 1.442695, %v5756_v16 }
0x140a   : > { %9200 = vpow2.f32 %v5766_v24 }
0x140b   : > { %9202 = vpow2.f32 %v5764_v44 }
0x140e   : > { %8453 = vmatmul.msk.f32.gmra.mxu0 %vm14409_vm13, %v12537_v3 }
0x140f   : > { %5779 = vadd.xlane.f32.xlu2 %v5778_v27 }
0x1410   : > { %v12681_v55 = vpop.eup %9200  ;;  %v8837_v7 = vpop.permute.xlu0 %8836 }
0x1411   : > { %v8838_v37 = vunpack.i.l.bf16 %v8837_v7  ;;  %v5784_v63 = vsel %vm962_vm12, %v12681_v55, 0.0  ;;  %v12685_v9 = vpop.eup %9202  ;;  %v8839_v59 = vunpack.i.h.bf16 %v8837_v7 }
0x1412   : > { %5785 = vadd.xlane.f32.xlu1 %v5784_v63  ;;  %v5781_v11 = vsel %vm962_vm12, %v12685_v9, 0.0 }
0x1413   : > { %5984 = vmatpush.msrb.mxu0 %v8838_v37 }
0x1415   : > { %v5072_v23 = vpop.f32.mrf.mxu0  ;;  %5985 = vmatpush.msrb.mxu0 %v8839_v59  ;;  %v5744_v48 = vpop.xlane.xlu2 %5743 }
0x1416   : > { %v5758_v3 = vsub.f32 %v12576_v34, %v5744_v48  ;;  %8454 = vmatmul.msk.f32.gmra.mxu0 %vm14410_vm1, %v12540_v8  ;;  %8459 = vmatmul.msk.f32.gmra.mxu2 %vm14411_vm9, %v5072_v23 }
0x1417   : > { %5782 = vadd.xlane.f32.xlu2 %v5781_v11 }
0x1418   : > { %v5770_v54 = vmul.f32 1.442695, %v5758_v3 }
0x141a   : > { %9204 = vpow2.f32 %v5770_v54 }
0x141d   : > { %v5075_v29 = vpop.f32.mrf.mxu0 }
0x141e   : > { %8455 = vmatmul.msk.f32.gmra.mxu0 %vm14412_vm14, %v12547_v50  ;;  %8460 = vmatmul.msk.f32.gmra.mxu2 %vm14413_vm15, %v5075_v29 }
0x1420   : > { %v12696_v18 = vpop.eup %9204 }
0x1421   : > { %v5790_v34 = vsel %vm962_vm12, %v12696_v18, 0.0 }
0x1422   : > { %5791 = vadd.xlane.f32.xlu1 %v5790_v34 }
0x1425   : > { %v5078_v8 = vpop.f32.mrf.mxu0  ;;  %v5750_v2 = vpop.xlane.xlu1 %5749 }
0x1426   : > { %v5760_v41 = vsub.f32 %v12591_v62, %v5750_v2  ;;  %8456 = vmatmul.msk.f32.gmra.mxu0 %vm14414_vm2, %v12550_v25  ;;  %8461 = vmatmul.msk.f32.gmra.mxu2 %vm14415_vm3, %v5078_v8 }
0x1428   : > { %v5774_v58 = vmul.f32 1.442695, %v5760_v41 }
0x142a   : > { %9206 = vpow2.f32 %v5774_v58 }
0x142e   : > { %8457 = vmatmul.msk.f32.gmra.mxu0 %vm14416_vm5, %v12552_v5 }
0x1430   : > { %v12706_v50 = vpop.eup %9206 }
0x1431   : > { %v5796_v0 = vsel %vm962_vm12, %v12706_v50, 0.0 }
0x1432   : > { %5797 = vadd.xlane.f32.xlu0 %v5796_v0 }
0x1435   : > { %v6199_v10 = vpop.xlane.xlu2 %6198 }
0x1436   : > { %v6221_v39 = vsub.f32 %v12600_v4, %v6199_v10 }
0x1438   : > { %v6229_v14 = vmul.f32 1.442695, %v6221_v39 }
0x143b   : > { %v5081_v32 = vpop.f32.mrf.mxu0  ;;  %v5741_v52 = vpop.xlane.xlu0 %5740 }
0x143c   : > { %8462 = vmatmul.msk.f32.gmra.mxu2 %vm14417_vm11, %v5081_v32  ;;  %v5757_v62 = vsub.f32 %v12606_v26, %v5741_v52 }
0x143e   : > { %v5768_v25 = vmul.f32 1.442695, %v5757_v62 }
0x1440   : > { %9208 = vpow2.f32 %v5768_v25 }
0x1443   : > { %v5084_v56 = vpop.f32.mrf.mxu0  ;;  %v5747_v40 = vpop.xlane.xlu0 %5746 }
0x1444   : > { %8463 = vmatmul.msk.f32.gmra.mxu2 %vm14418_vm6, %v5084_v56  ;;  %v5759_v5 = vsub.f32 %v12621_v42, %v5747_v40 }
0x1445   : > { %v6205_v27 = vpop.xlane.xlu1 %6204 }
0x1446   : > { %v12714_v36 = vpop.eup %9208  ;;  %v5772_v15 = vmul.f32 1.442695, %v5759_v5  ;;  %8841 = vrot.lane.b32.xlu0 %v12201_v57, %s14419_s16  ;;  %v6223_v37 = vsub.f32 %v12625_v51, %v6205_v27 }
0x1447   : > { %v5787_v26 = vsel %vm962_vm12, %v12714_v36, 0.0 }
0x1448   : > { %9210 = vpow2.f32 %v5772_v15  ;;  %5788 = vadd.xlane.f32.xlu2 %v5787_v26  ;;  %v6233_v59 = vmul.f32 1.442695, %v6223_v37 }
0x1449   : > { %9212 = vpow2.f32 %v6229_v14 }
0x144b   : > { %v5087_v1 = vpop.f32.mrf.mxu0  ;;  %v5753_v43 = vpop.xlane.xlu0 %5752 }
0x144c   : > { %8464 = vmatmul.msk.f32.gmra.mxu2 %vm14420_vm7, %v5087_v1 }
0x144e   : > { %v12722_v45 = vpop.eup %9210 }
0x144f   : > { %v5793_v4 = vsel %vm962_vm12, %v12722_v45, 0.0  ;;  %v12726_v16 = vpop.eup %9212 }
0x1450   : > { %5794 = vadd.xlane.f32.xlu1 %v5793_v4  ;;  %v6245_v44 = vsel %vm962_vm12, %v12726_v16, 0.0 }
0x1453   : > { %v6202_v42 = vpop.xlane.xlu0 %6201 }
0x1454   : > { %v6222_v57 = vsub.f32 %v12639_v53, %v6202_v42 }
0x1455   : > { %v12747_v34 = vpop.xlane.xlu2 %6210 }
0x1456   : > { %v6231_v24 = vmul.f32 1.442695, %v6222_v57 }
0x1458   : > { %9214 = vpow2.f32 %v6231_v24  ;;  %6246 = vadd.xlane.f32.xlu1 %v6245_v44 }
0x1459   : > { %9216 = vpow2.f32 %v6233_v59 }
0x145b   : > { %v12738_v53 = vpop.xlane.xlu0 %6207 }
0x145c   : > { %v6224_v44 = vsub.f32 %v12647_v22, %v12738_v53 }
0x145d   : > { %v6214_v23 = vpop.xlane.xlu1 %6213 }
0x145e   : > { %v12731_v7 = vpop.eup %9214  ;;  %v6226_v48 = vsub.f32 %v12649_v60, %v6214_v23  ;;  %v5761_v60 = vsub.f32 %v12632_v19, %v5753_v43 }
0x145f   : > { %v6248_v63 = vsel %vm962_vm12, %v12731_v7, 0.0  ;;  %v12742_v51 = vpop.eup %9216 }
0x1460   : > { %8846 = vrot.lane.b32.xlu2 %v12141_v6, %s14419_s16  ;;  %6249 = vadd.xlane.f32.xlu1 %v6248_v63  ;;  %v6239_v3 = vmul.f32 1.442695, %v6226_v48  ;;  %v6251_v6 = vsel %vm962_vm12, %v12742_v51, 0.0  ;;  %v5776_v0 = vmul.f32 1.442695, %v5761_v60 }
0x1462   : > { %9218 = vpow2.f32 %v6239_v3  ;;  %v6235_v3 = vmul.f32 1.442695, %v6224_v44 }
0x1465   : > { %v6217_v54 = vpop.xlane.xlu0 %6216 }
0x1466   : > { %v6227_v29 = vsub.f32 %v12657_v31, %v6217_v54 }
0x1468   : > { %v6241_v8 = vmul.f32 1.442695, %v6227_v29  ;;  %v12749_v2 = vpop.eup %9218 }
0x1469   : > { %v6260_v41 = vsel %vm962_vm12, %v12749_v2, 0.0 }
0x146a   : > { %9220 = vpow2.f32 %v6241_v8 }
0x146b   : > { %v5090_v11 = vpop.f32.mrf.mxu0 }
0x146c   : > { %8465 = vmatmul.msk.f32.gmra.mxu2 %vm14421_vm8, %v5090_v11 }
0x1470   : > { %6252 = vadd.xlane.f32.xlu0 %v6251_v6  ;;  %v12757_v32 = vpop.eup %9220 }
0x1471   : > { %v6263_v62 = vsel %vm962_vm12, %v12757_v32, 0.0 }
0x1478   : > { %6261 = vadd.xlane.f32.xlu0 %v6260_v41 }
0x1479   : > { %8851 = vrot.lane.b32.xlu1 %v12193_v30, %s14419_s16 }
0x147a   : > { %v6220_v31 = vpop.xlane.xlu2 %6219 }
0x147b   : > { %v6228_v58 = vsub.f32 %v12667_v47, %v6220_v31 }
0x147d   : > { %v6243_v52 = vmul.f32 1.442695, %v6228_v58 }
0x147f   : > { %9222 = vpow2.f32 %v6243_v52 }
0x1480   : > { %9224 = vpow2.f32 %v5776_v0  ;;  %6264 = vadd.xlane.f32.xlu0 %v6263_v62 }
0x1482   : > { %v5780_v19 = vpop.xlane.xlu2 %5779 }
0x1483   : > { %9226 = vrcp.f32 %v5780_v19  ;;  %v5813_v14 = vand.u32 2147483648, %v5780_v19  ;;  %v5811_v43 = vand.u32 2147483647, %v5780_v19  ;;  %vm5807_vm4 = vweird.f32 %v5780_v19 }
0x1485   : > { %v12761_v25 = vpop.eup %9222  ;;  %v5786_v30 = vpop.xlane.xlu1 %5785  ;;  %v5814_v57 = vor.u32 1.1754944e-38, %v5813_v14  ;;  %vm5812_vm1 = vcmp.eq.f32.partialorder %v5811_v43, 8.507059e+37 }
0x1486   : > { %v12763_v56 = vpop.eup %9224  ;;  %v6266_v47 = vsel %vm962_vm12, %v12761_v25, 0.0  ;;  %9228 = vrcp.f32 %v5786_v30  ;;  %v5843_v41 = vand.u32 2147483648, %v5786_v30  ;;  %vm5837_vm5 = vweird.f32 %v5786_v30 }
0x1487   : > { %v5799_v40 = vsel %vm962_vm12, %v12763_v56, 0.0  ;;  %v5841_v31 = vand.u32 2147483647, %v5786_v30 }
0x1488   : > { %6267 = vadd.xlane.f32.xlu0 %v6266_v47  ;;  %v5844_v62 = vor.u32 1.1754944e-38, %v5843_v41 }
0x1489   : > { %v9227_v10 = vpop.eup %9226  ;;  %5800 = vadd.xlane.f32.xlu2 %v5799_v40  ;;  %vm5842_vm6 = vcmp.eq.f32.partialorder %v5841_v31, 8.507059e+37  ;;  %v6225_v40 = vsub.f32 %v12641_v35, %v12747_v34 }
0x148a   : > { %v5803_v5 = vmul.f32 %v9227_v10, %v5780_v19  ;;  %v5783_v39 = vpop.xlane.xlu2 %5782  ;;  %vm5808_vm10 = vweird.f32 %v9227_v10 }
0x148b   : > { %9230 = vrcp.f32 %v5783_v39  ;;  %vm5809_vm13 = vmor %vm5807_vm4, %vm5808_vm10  ;;  %v5828_v11 = vand.u32 2147483648, %v5783_v39  ;;  %v5826_v6 = vand.u32 2147483647, %v5783_v39  ;;  %vm5822_vm14 = vweird.f32 %v5783_v39 }
0x148c   : > { %v5804_v15 = vsub.f32 1.0, %v5803_v5  ;;  %v9229_v26 = vpop.eup %9228  ;;  %9232 = vpow2.f32 %v6235_v3 }
0x148d   : > { %v5833_v4 = vmul.f32 %v9229_v26, %v5786_v30  ;;  %v5829_v22 = vor.u32 1.1754944e-38, %v5828_v11  ;;  %vm5838_vm2 = vweird.f32 %v9229_v26  ;;  %vm5827_vm3 = vcmp.eq.f32.partialorder %v5826_v6, 8.507059e+37 }
0x148e   : > { %v5805_v1 = vmul.f32 %v9227_v10, %v5804_v15  ;;  %vm5839_vm11 = vmor %vm5837_vm5, %vm5838_vm2 }
0x148f   : > { %v5834_v63 = vsub.f32 1.0, %v5833_v4 }
0x1490   : > { %v5806_v42 = vadd.f32 %v9227_v10, %v5805_v1 }
0x1491   : > { %v9231_v24 = vpop.eup %9230  ;;  %v5835_v54 = vmul.f32 %v9229_v26, %v5834_v63 }
0x1492   : > { %v5810_v27 = vsel %vm5809_vm13, %v9227_v10, %v5806_v42  ;;  %v5818_v59 = vmul.f32 %v9231_v24, %v5783_v39  ;;  %vm5823_vm9 = vweird.f32 %v9231_v24  ;;  %v12775_v52 = vpop.eup %9232 }
0x1493   : > { %v5815_v37 = vsel %vm5812_vm1, %v5814_v57, %v5810_v27  ;;  %vm5824_vm15 = vmor %vm5822_vm14, %vm5823_vm9  ;;  %v5836_v53 = vadd.f32 %v9229_v26, %v5835_v54  ;;  %v6254_v47 = vsel %vm962_vm12, %v12775_v52, 0.0  ;;  %v12787_v57 = vpop.f32.mrf.mxu0 }
0x1494   : > { %v5816_v23 = vmul.f32 %v12675_v46, %v5815_v37  ;;  %v5819_v48 = vsub.f32 1.0, %v5818_v59 }
0x1495   : > { %v5840_v0 = vsel %vm5839_vm11, %v9229_v26, %v5836_v53  ;;  %v5792_v10 = vpop.xlane.xlu1 %5791  ;;  %v6237_v26 = vmul.f32 1.442695, %v6225_v40 }
0x1496   : > { %8482 = vmatmul.msk.f32.vlgmr.msrb.gmra.mxu0 %vm962_vm12, %v5816_v23  ;;  %v5820_v29 = vmul.f32 %v9231_v24, %v5819_v48  ;;  %v5845_v19 = vsel %vm5842_vm6, %v5844_v62, %v5840_v0  ;;  %9234 = vrcp.f32 %v5792_v10  ;;  %v5873_v53 = vand.u32 2147483648, %v5792_v10 }
0x1497   : > { %v5846_v30 = vmul.f32 %v12681_v55, %v5845_v19  ;;  %vm5867_vm1 = vweird.f32 %v5792_v10  ;;  %v5871_v31 = vand.u32 2147483647, %v5792_v10 }
0x1498   : > { %v5821_v8 = vadd.f32 %v9231_v24, %v5820_v29 }
0x1499   : > { %vm5872_vm14 = vcmp.eq.f32.partialorder %v5871_v31, 8.507059e+37 }
0x149a   : > { %v5825_v60 = vsel %vm5824_vm15, %v9231_v24, %v5821_v8 }
0x149b   : > { %v5830_v46 = vsel %vm5827_vm3, %v5829_v22, %v5825_v60 }
0x149c   : > { %v5831_v58 = vmul.f32 %v12685_v9, %v5830_v46  ;;  %v9235_v14 = vpop.eup %9234  ;;  %v12794_v46 = vpop.f32.mrf.mxu0 }
0x149d   : > { %v5863_v55 = vmul.f32 %v9235_v14, %v5792_v10  ;;  %vm5868_vm4 = vweird.f32 %v9235_v14 }
0x149e   : > { %8483 = vmatmul.msk.f32.gmra.mxu0 %vm962_vm12, %v5831_v58  ;;  %vm5869_vm9 = vmor %vm5867_vm1, %vm5868_vm4 }
0x149f   : > { %v5864_v24 = vsub.f32 1.0, %v5863_v55 }
0x14a1   : > { %8856 = vrot.lane.b32.xlu2 %v12149_v12, %s14419_s16  ;;  %v5865_v59 = vmul.f32 %v9235_v14, %v5864_v24 }
0x14a3   : > { %6255 = vadd.xlane.f32.xlu1 %v6254_v47  ;;  %v5866_v22 = vadd.f32 %v9235_v14, %v5865_v59  ;;  %v5874_v47 = vor.u32 1.1754944e-38, %v5873_v53 }
0x14a5   : > { %v12783_v9 = vpop.xlane.xlu0 %5797  ;;  %v5870_v19 = vsel %vm5869_vm9, %v9235_v14, %v5866_v22 }
0x14a6   : > { %8484 = vmatmul.msk.f32.gmra.mxu0 %vm962_vm12, %v5846_v30  ;;  %v5875_v30 = vsel %vm5872_vm14, %v5874_v47, %v5870_v19  ;;  %vm5897_vm6 = vweird.f32 %v12783_v9 }
0x14a7   : > { %v5876_v10 = vmul.f32 %v12696_v18, %v5875_v30  ;;  %v5901_v18 = vand.u32 2147483647, %v12783_v9 }
0x14b8   : > { %v8842_v5 = vpop.permute.xlu0 %8841 }
0x14b9   : > { %v8843_v39 = vunpack.i.l.bf16 %v8842_v5  ;;  %v8844_v15 = vunpack.i.h.bf16 %v8842_v5 }
0x14bb   : > { %v5789_v12 = vpop.xlane.xlu2 %5788  ;;  %6445 = vmatpush.msra.mxu0 %v8843_v39 }
0x14bc   : > { %9236 = vrcp.f32 %v5789_v12  ;;  %v5858_v37 = vand.u32 2147483648, %v5789_v12  ;;  %v5856_v23 = vand.u32 2147483647, %v5789_v12  ;;  %vm5852_vm8 = vweird.f32 %v5789_v12 }
0x14bd   : > { %6446 = vmatpush.msra.mxu0 %v8844_v15  ;;  %9238 = vpow2.f32 %v6237_v26 }
0x14be   : > { %v5859_v54 = vor.u32 1.1754944e-38, %v5858_v37  ;;  %vm5857_vm13 = vcmp.eq.f32.partialorder %v5856_v23, 8.507059e+37 }
0x14c2   : > { %v9237_v1 = vpop.eup %9236 }
0x14c3   : > { %v5848_v43 = vmul.f32 %v9237_v1, %v5789_v12  ;;  %v5795_v4 = vpop.xlane.xlu1 %5794  ;;  %v8847_v42 = vpop.permute.xlu2 %8846  ;;  %vm5853_vm7 = vweird.f32 %v9237_v1 }
0x14c4   : > { %9240 = vrcp.f32 %v5795_v4  ;;  %v8848_v34 = vunpack.i.l.bf16 %v8847_v42  ;;  %v12789_v44 = vpop.eup %9238  ;;  %v8849_v63 = vunpack.i.h.bf16 %v8847_v42  ;;  %vm5854_vm10 = vmor %vm5852_vm8, %vm5853_vm7  ;;  %v5888_v39 = vand.u32 2147483648, %v5795_v4 }
0x14c5   : > { %v5849_v35 = vsub.f32 1.0, %v5848_v43  ;;  %9242 = vrcp.f32 %v12783_v9  ;;  %v6257_v3 = vsel %vm962_vm12, %v12789_v44, 0.0  ;;  %vm5882_vm2 = vweird.f32 %v5795_v4 }
0x14c6   : > { %6447 = vmatpush.msra.mxu0 %v8848_v34  ;;  %v5886_v15 = vand.u32 2147483647, %v5795_v4  ;;  %v5889_v55 = vor.u32 1.1754944e-38, %v5888_v39  ;;  %v5903_v42 = vand.u32 2147483648, %v12783_v9  ;;  %vm5902_vm8 = vcmp.eq.f32.partialorder %v5901_v18, 8.507059e+37 }
0x14c7   : > { %v5850_v27 = vmul.f32 %v9237_v1, %v5849_v35 }
0x14c8   : > { %6448 = vmatpush.msra.mxu0 %v8849_v63  ;;  %vm5887_vm5 = vcmp.eq.f32.partialorder %v5886_v15, 8.507059e+37  ;;  %v5904_v35 = vor.u32 1.1754944e-38, %v5903_v42 }
0x14c9   : > { %v5851_v48 = vadd.f32 %v9237_v1, %v5850_v27 }
0x14ca   : > { %v9241_v11 = vpop.eup %9240  ;;  %6258 = vadd.xlane.f32.xlu2 %v6257_v3 }
0x14cb   : > { %v5878_v29 = vmul.f32 %v9241_v11, %v5795_v4  ;;  %v5855_v6 = vsel %vm5854_vm10, %v9237_v1, %v5851_v48  ;;  %v9243_v8 = vpop.eup %9242  ;;  %vm5883_vm15 = vweird.f32 %v9241_v11  ;;  %v12803_v14 = vpop.xlane.xlu1 %6246  ;;  %v8400_v48 = vld [vmem:[%s14214_s5 + $0x30] sm:$0xff] }
0x14cc   : > { %v5860_v41 = vsel %vm5857_vm13, %v5859_v54, %v5855_v6  ;;  %v5893_v0 = vmul.f32 %v9243_v8, %v12783_v9  ;;  %vm5884_vm3 = vmor %vm5882_vm2, %vm5883_vm15  ;;  %vm5898_vm11 = vweird.f32 %v9243_v8  ;;  %6050 = vmatpush.msrb.mxu2 %v8400_v48  ;;  %9244 = vrcp.f32 %v12803_v14 }
0x14cd   : > { %v5879_v60 = vsub.f32 1.0, %v5878_v29  ;;  %v5861_v58 = vmul.f32 %v12714_v36, %v5860_v41  ;;  %v12800_v36 = vpop.f32.mrf.mxu0  ;;  %vm5899_vm7 = vmor %vm5897_vm6, %vm5898_vm11  ;;  %vm6274_vm14 = vweird.f32 %v12803_v14  ;;  %v6278_v42 = vand.u32 2147483647, %v12803_v14 }
0x14ce   : > { %v5894_v40 = vsub.f32 1.0, %v5893_v0 }
0x14cf   : > { %v5880_v62 = vmul.f32 %v9241_v11, %v5879_v60  ;;  %8485 = vmatmul.msk.f32.gmra.mxu0 %vm962_vm12, %v5861_v58  ;;  %vm6279_vm2 = vcmp.eq.f32.partialorder %v6278_v42, 8.507059e+37 }
0x14d0   : > { %v5895_v12 = vmul.f32 %v9243_v8, %v5894_v40 }
0x14d1   : > { %v5881_v5 = vadd.f32 %v9241_v11, %v5880_v62 }
0x14d2   : > { %v5896_v43 = vadd.f32 %v9243_v8, %v5895_v12 }
0x14d3   : > { %v5885_v26 = vsel %vm5884_vm3, %v9241_v11, %v5881_v5  ;;  %v12812_v27 = vpop.xlane.xlu1 %6249  ;;  %v9245_v11 = vpop.eup %9244  ;;  %vm14422_vm3 = vcmask 64512  }
0x14d4   : > { %v5890_v1 = vsel %vm5887_vm5, %v5889_v55, %v5885_v26  ;;  %v5900_v24 = vsel %vm5899_vm7, %v9243_v8, %v5896_v43  ;;  %v6270_v54 = vmul.f32 %v9245_v11, %v12803_v14  ;;  %vm6275_vm13 = vweird.f32 %v9245_v11 }
0x14d5   : > { %v5891_v4 = vmul.f32 %v12722_v45, %v5890_v1  ;;  %v12810_v34 = vpop.f32.mrf.mxu0  ;;  %v5905_v37 = vsel %vm5902_vm8, %v5904_v35, %v5900_v24  ;;  %v6280_v1 = vand.u32 2147483648, %v12803_v14  ;;  %vm6276_vm15 = vmor %vm6274_vm14, %vm6275_vm13  ;;  %v6295_v14 = vand.u32 2147483648, %v12812_v27 }
0x14d6   : > { %v5906_v63 = vmul.f32 %v12706_v50, %v5905_v37  ;;  %v6271_v8 = vsub.f32 1.0, %v6270_v54  ;;  %vm6289_vm11 = vweird.f32 %v12812_v27  ;;  %v6293_v48 = vand.u32 2147483647, %v12812_v27  ;;  %vm14424_vm14 = vmmov %vm14422_vm3 }
0x14d7   : > { %8486 = vmatmul.msk.f32.gmra.mxu0 %vm962_vm12, %v5876_v10  ;;  %v6281_v37 = vor.u32 1.1754944e-38, %v6280_v1 }
0x14d8   : > { %v6272_v0 = vmul.f32 %v9245_v11, %v6271_v8  ;;  %vm6294_vm7 = vcmp.eq.f32.partialorder %v6293_v48, 8.507059e+37  ;;  %v8401_v48 = vld [vmem:[%s14214_s5 + $0x38] sm:$0xff] }
0x14d9   : > { %6517 = vmatpush.msra.mxu2 %v8401_v48 }
0x14da   : > { %v6273_v10 = vadd.f32 %v9245_v11, %v6272_v0 }
0x14dd   : > { %v12816_v23 = vpop.f32.mrf.mxu0 }
0x14df   : > { %8487 = vmatmul.msk.f32.gmra.mxu0 %vm962_vm12, %v5891_v4  ;;  %v6277_v4 = vsel %vm6276_vm15, %v9245_v11, %v6273_v10 }
0x14e3   : > { %v12828_v22 = vpop.xlane.xlu0 %6252 }
0x14e5   : > { %v12821_v3 = vpop.f32.mrf.mxu0 }
0x14e7   : > { %8488 = vmatmul.msk.f32.gmra.mxu0 %vm962_vm12, %v5906_v63 }
0x14eb   : > { %v8852_v59 = vpop.permute.xlu1 %8851  ;;  %v6262_v1 = vpop.xlane.xlu0 %6261 }
0x14ec   : > { %v8853_v9 = vunpack.i.l.bf16 %v8852_v59  ;;  %v8854_v45 = vunpack.i.h.bf16 %v8852_v59  ;;  %v6282_v59 = vsel %vm6279_vm2, %v6281_v37, %v6277_v4 }
0x14ed   : > { %v12826_v29 = vpop.f32.mrf.mxu0 }
0x14ee   : > { %6449 = vmatpush.msra.mxu0 %v8853_v9 }
0x14f0   : > { %6450 = vmatpush.msra.mxu0 %v8854_v45 }
0x14f5   : > { %v12832_v5 = vpop.f32.mrf.mxu0 }
0x14fc   : > { %v5801_v50 = vpop.xlane.xlu2 %5800 }
0x14fd   : > { %9246 = vrcp.f32 %v5801_v50  ;;  %v5918_v62 = vand.u32 2147483648, %v5801_v50  ;;  %v5916_v40 = vand.u32 2147483647, %v5801_v50  ;;  %vm5912_vm4 = vweird.f32 %v5801_v50 }
0x14fe   : > { %9248 = vrcp.f32 %v12812_v27 }
0x14ff   : > { %9250 = vrcp.f32 %v12828_v22  ;;  %v5919_v15 = vor.u32 1.1754944e-38, %v5918_v62  ;;  %vm5917_vm9 = vcmp.eq.f32.partialorder %v5916_v40, 8.507059e+37 }
0x1503   : > { %v9247_v6 = vpop.eup %9246 }
0x1504   : > { %v5908_v53 = vmul.f32 %v9247_v6, %v5801_v50  ;;  %v8857_v60 = vpop.permute.xlu2 %8856  ;;  %v9249_v41 = vpop.eup %9248  ;;  %vm5913_vm10 = vweird.f32 %v9247_v6 }
0x1505   : > { %v8858_v31 = vunpack.i.l.bf16 %v8857_v60  ;;  %v8859_v19 = vunpack.i.h.bf16 %v8857_v60  ;;  %v6285_v47 = vmul.f32 %v9249_v41, %v12812_v27  ;;  %vm5914_vm1 = vmor %vm5912_vm4, %vm5913_vm10  ;;  %v9251_v55 = vpop.eup %9250  ;;  %vm6290_vm5 = vweird.f32 %v9249_v41 }
0x1506   : > { %v5909_v58 = vsub.f32 1.0, %v5908_v53  ;;  %v6300_v35 = vmul.f32 %v9251_v55, %v12828_v22  ;;  %vm6291_vm6 = vmor %vm6289_vm11, %vm6290_vm5  ;;  %vm6305_vm8 = vweird.f32 %v9251_v55  ;;  %vm6304_vm4 = vweird.f32 %v12828_v22 }
0x1507   : > { %6451 = vmatpush.msra.mxu0 %v8858_v31  ;;  %v6286_v12 = vsub.f32 1.0, %v6285_v47  ;;  %vm14423_vm10 = vmmov %vm14422_vm3  ;;  %v6310_v31 = vand.u32 2147483648, %v12828_v22  ;;  %v6308_v27 = vand.u32 2147483647, %v12828_v22 }
0x1508   : > { %v5910_v30 = vmul.f32 %v9247_v6, %v5909_v58  ;;  %v6301_v45 = vsub.f32 1.0, %v6300_v35  ;;  %vm6306_vm13 = vmor %vm6304_vm4, %vm6305_vm8  ;;  %vm6349_vm4 = vweird.f32 %v6262_v1 }
0x1509   : > { %6452 = vmatpush.msra.mxu0 %v8859_v19  ;;  %v6287_v24 = vmul.f32 %v9249_v41, %v6286_v12  ;;  %v6311_v19 = vor.u32 1.1754944e-38, %v6310_v31 }
0x150a   : > { %v5911_v39 = vadd.f32 %v9247_v6, %v5910_v30  ;;  %v6302_v50 = vmul.f32 %v9251_v55, %v6301_v45 }
0x150b   : > { %v6288_v9 = vadd.f32 %v9249_v41, %v6287_v24 }
0x150c   : > { %v5915_v26 = vsel %vm5914_vm1, %v9247_v6, %v5911_v39  ;;  %v6296_v6 = vor.u32 1.1754944e-38, %v6295_v14  ;;  %v6303_v60 = vadd.f32 %v9251_v55, %v6302_v50  ;;  %vm6309_vm1 = vcmp.eq.f32.partialorder %v6308_v27, 8.507059e+37 }
0x150d   : > { %v5920_v43 = vsel %vm5917_vm9, %v5919_v15, %v5915_v26  ;;  %v6292_v54 = vsel %vm6291_vm6, %v9249_v41, %v6288_v9  ;;  %v6353_v27 = vand.u32 2147483647, %v6262_v1 }
0x150e   : > { %v5921_v18 = vmul.f32 %v12763_v56, %v5920_v43  ;;  %v6283_v56 = vmul.f32 %v12726_v16, %v6282_v59  ;;  %v6297_v53 = vsel %vm6294_vm7, %v6296_v6, %v6292_v54  ;;  %v6307_v62 = vsel %vm6306_vm13, %v9251_v55, %v6303_v60  ;;  %v6265_v43 = vpop.xlane.xlu0 %6264 }
0x150f   : > { %v6298_v0 = vmul.f32 %v12731_v7, %v6297_v53  ;;  %v6312_v40 = vsel %vm6309_vm1, %v6311_v19, %v6307_v62  ;;  %vm6354_vm1 = vcmp.eq.f32.partialorder %v6353_v27, 8.507059e+37 }
0x1510   : > { %8489 = vmatmul.msk.f32.gmra.mxu0 %vm962_vm12, %v5921_v18  ;;  %v6313_v10 = vmul.f32 %v12742_v51, %v6312_v40 }
0x1513   : > { %v5987_v63 = vpop.f32.mrf.mxu0 }
0x1514   : > { %8490 = vmatmul.msk.f32.vlgmr.msrb.gmra.mxu2 %vm14422_vm3, %v5987_v63 }
0x1516   : > { %v6256_v11 = vpop.xlane.xlu1 %6255  ;;  %v12857_v35 = vpop.xlane.xlu0 %6267 }
0x1517   : > { %9252 = vrcp.f32 %v6256_v11  ;;  %v6325_v15 = vand.u32 2147483648, %v6256_v11  ;;  %vm6319_vm15 = vweird.f32 %v6256_v11  ;;  %v6323_v22 = vand.u32 2147483647, %v6256_v11 }
0x1518   : > { %8514 = vmatmul.msk.f32.vlgmr.msra.gmra.mxu0 %vm962_vm12, %v6283_v56  ;;  %9254 = vrcp.f32 %v6262_v1 }
0x1519   : > { %v6326_v12 = vor.u32 1.1754944e-38, %v6325_v15  ;;  %vm6324_vm3 = vcmp.eq.f32.partialorder %v6323_v22, 8.507059e+37  ;;  %v6370_v15 = vand.u32 2147483648, %v6265_v43 }
0x151b   : > { %v5990_v8 = vpop.f32.mrf.mxu0 }
0x151c   : > { %8491 = vmatmul.msk.f32.gmra.mxu2 %vm14423_vm10, %v5990_v8 }
0x151d   : > { %v9253_v16 = vpop.eup %9252 }
0x151e   : > { %v6315_v58 = vmul.f32 %v9253_v16, %v6256_v11  ;;  %vm6320_vm9 = vweird.f32 %v9253_v16  ;;  %v9255_v42 = vpop.eup %9254 }
0x151f   : > { %vm6321_vm2 = vmor %vm6319_vm15, %vm6320_vm9  ;;  %v6345_v4 = vmul.f32 %v9255_v42, %v6262_v1  ;;  %vm6350_vm6 = vweird.f32 %v9255_v42  ;;  %vm6364_vm15 = vweird.f32 %v6265_v43 }
0x1520   : > { %v6316_v41 = vsub.f32 1.0, %v6315_v58  ;;  %8515 = vmatmul.msk.f32.gmra.mxu0 %vm962_vm12, %v6298_v0  ;;  %vm6351_vm13 = vmor %vm6349_vm4, %vm6350_vm6  ;;  %vm6379_vm6 = vweird.f32 %v12857_v35 }
0x1521   : > { %v6346_v24 = vsub.f32 1.0, %v6345_v4  ;;  %vm14427_vm4 = vmmov %vm14423_vm10 }
0x1522   : > { %v6317_v47 = vmul.f32 %v9253_v16, %v6316_v41 }
0x1523   : > { %v5993_v30 = vpop.f32.mrf.mxu0  ;;  %v6347_v9 = vmul.f32 %v9255_v42, %v6346_v24 }
0x1524   : > { %v6318_v39 = vadd.f32 %v9253_v16, %v6317_v47  ;;  %8492 = vmatmul.msk.f32.gmra.mxu2 %vm14424_vm14, %v5993_v30  ;;  %vm14425_vm14 = vmmov %vm14423_vm10 }
0x1525   : > { %v6348_v54 = vadd.f32 %v9255_v42, %v6347_v9 }
0x1526   : > { %v6322_v7 = vsel %vm6321_vm2, %v9253_v16, %v6318_v39  ;;  %v6355_v16 = vand.u32 2147483648, %v6262_v1 }
0x1527   : > { %v6327_v26 = vsel %vm6324_vm3, %v6326_v12, %v6322_v7  ;;  %v6352_v62 = vsel %vm6351_vm13, %v9255_v42, %v6348_v54  ;;  %v6371_v12 = vor.u32 1.1754944e-38, %v6370_v15  ;;  %v6385_v42 = vand.u32 2147483648, %v12857_v35  ;;  %vm14428_vm13 = vmmov %vm14427_vm4 }
0x1528   : > { %8516 = vmatmul.msk.f32.gmra.mxu0 %vm962_vm12, %v6313_v10  ;;  %v6328_v55 = vmul.f32 %v12775_v52, %v6327_v26  ;;  %v6356_v19 = vor.u32 1.1754944e-38, %v6355_v16 }
0x1529   : > { %v6386_v4 = vor.u32 1.1754944e-38, %v6385_v42 }
0x152a   : > { %v6357_v47 = vsel %vm6354_vm1, %v6356_v19, %v6352_v62  ;;  %vm14429_vm1 = vmmov %vm14427_vm4 }
0x152b   : > { %v6358_v22 = vmul.f32 %v12749_v2, %v6357_v47 }
0x1530   : > { %8517 = vmatmul.msk.f32.gmra.mxu0 %vm962_vm12, %v6328_v55 }
0x153d   : > { %v6259_v18 = vpop.xlane.xlu2 %6258 }
0x153e   : > { %9256 = vrcp.f32 %v6259_v18  ;;  %v6340_v52 = vand.u32 2147483648, %v6259_v18  ;;  %v6338_v56 = vand.u32 2147483647, %v6259_v18  ;;  %vm6334_vm11 = vweird.f32 %v6259_v18 }
0x153f   : > { %9258 = vrcp.f32 %v6265_v43 }
0x1540   : > { %9260 = vrcp.f32 %v12857_v35  ;;  %v6341_v50 = vor.u32 1.1754944e-38, %v6340_v52  ;;  %vm6339_vm8 = vcmp.eq.f32.partialorder %v6338_v56, 8.507059e+37 }
0x1544   : > { %v9257_v51 = vpop.eup %9256 }
0x1545   : > { %v6330_v37 = vmul.f32 %v9257_v51, %v6259_v18  ;;  %v9259_v63 = vpop.eup %9258  ;;  %vm6335_vm5 = vweird.f32 %v9257_v51 }
0x1546   : > { %v6360_v45 = vmul.f32 %v9259_v63, %v6265_v43  ;;  %vm6336_vm7 = vmor %vm6334_vm11, %vm6335_vm5  ;;  %v9261_v60 = vpop.eup %9260  ;;  %vm6365_vm9 = vweird.f32 %v9259_v63 }
0x1547   : > { %v6331_v59 = vsub.f32 1.0, %v6330_v37  ;;  %v6375_v41 = vmul.f32 %v9261_v60, %v12857_v35  ;;  %vm6366_vm2 = vmor %vm6364_vm15, %vm6365_vm9  ;;  %vm6380_vm5 = vweird.f32 %v9261_v60 }
0x1548   : > { %v6361_v6 = vsub.f32 1.0, %v6360_v45  ;;  %vm14426_vm11 = vmmov %vm14423_vm10 }
0x1549   : > { %v6332_v14 = vmul.f32 %v9257_v51, %v6331_v59  ;;  %v6376_v40 = vsub.f32 1.0, %v6375_v41  ;;  %vm14430_vm9 = vmmov %vm14429_vm1 }
0x154a   : > { %v6362_v0 = vmul.f32 %v9259_v63, %v6361_v6  ;;  %vm14432_vm15 = vmmov %vm14429_vm1 }
0x154b   : > { %v6333_v11 = vadd.f32 %v9257_v51, %v6332_v14  ;;  %v6377_v10 = vmul.f32 %v9261_v60, %v6376_v40 }
0x154c   : > { %v5996_v8 = vpop.f32.mrf.mxu0  ;;  %v6363_v30 = vadd.f32 %v9259_v63, %v6362_v0 }
0x154d   : > { %v6337_v53 = vsel %vm6336_vm7, %v9257_v51, %v6333_v11  ;;  %8493 = vmatmul.msk.f32.gmra.mxu2 %vm14423_vm10, %v5996_v8  ;;  %v6378_v55 = vadd.f32 %v9261_v60, %v6377_v10  ;;  %vm6381_vm7 = vmor %vm6379_vm6, %vm6380_vm5 }
0x154e   : > { %v6342_v31 = vsel %vm6339_vm8, %v6341_v50, %v6337_v53  ;;  %v6367_v7 = vsel %vm6366_vm2, %v9259_v63, %v6363_v30  ;;  %v5593_v63 = vpop.f32.mrf.mxu2  ;;  %vm14433_vm2 = vmmov %vm14429_vm1 }
0x154f   : > { %v6343_v58 = vmul.f32 %v12789_v44, %v6342_v31  ;;  %v6368_v44 = vand.u32 2147483647, %v6265_v43  ;;  %v6383_v43 = vand.u32 2147483647, %v12857_v35  ;;  %v6382_v18 = vsel %vm6381_vm7, %v9261_v60, %v6378_v55  ;;  %vm14435_vm5 = vmmov %vm14429_vm1 }
0x1550   : > { %v5594_v19 = vadd.f32 %v5593_v63, %v12787_v57 }
0x1551   : > { %8518 = vmatmul.msk.f32.gmra.mxu0 %vm962_vm12, %v6343_v58  ;;  %vm6369_vm3 = vcmp.eq.f32.partialorder %v6368_v44, 8.507059e+37  ;;  %vm6384_vm8 = vcmp.eq.f32.partialorder %v6383_v43, 8.507059e+37 }
0x1552   : > { %v6372_v26 = vsel %vm6369_vm3, %v6371_v12, %v6367_v7  ;;  %v6387_v51 = vsel %vm6384_vm8, %v6386_v4, %v6382_v18  ;;  %vm14434_vm3 = vmmov %vm14429_vm1 }
0x1553   : > { %v6373_v2 = vmul.f32 %v12757_v32, %v6372_v26  ;;  %v6388_v37 = vmul.f32 %v12761_v25, %v6387_v51 }
0x1554   : > { %v5999_v39 = vpop.f32.mrf.mxu0 }
0x1555   : > { %8494 = vmatmul.msk.f32.gmra.mxu2 %vm14425_vm14, %v5999_v39  ;;  %vm14431_vm14 = vmmov %vm14429_vm1  ;;  %v12897_v39 = vld [vmem:[%s14215_s6 + $0x1] ss:$0 sm:$0xff] }
0x1556   : > { %v5596_v35 = vpop.f32.mrf.mxu2 }
0x1557   : > { %v5597_v44 = vadd.f32 %v5596_v35, %v12794_v46 }
0x1559   : > { %8519 = vmatmul.msk.f32.gmra.mxu0 %vm962_vm12, %v6358_v22 }
0x155c   : > { %v6002_v1 = vpop.f32.mrf.mxu0 }
0x155d   : > { %8495 = vmatmul.msk.f32.gmra.mxu2 %vm14426_vm11, %v6002_v1 }
0x155e   : > { %v5599_v9 = vpop.f32.mrf.mxu2 }
0x155f   : > { %v5600_v55 = vadd.f32 %v5599_v9, %v12800_v36 }
0x1561   : > { %8520 = vmatmul.msk.f32.gmra.mxu0 %vm962_vm12, %v6373_v2 }
0x1564   : > { %v6005_v24 = vpop.f32.mrf.mxu0 }
0x1565   : > { %8496 = vmatmul.msk.f32.gmra.mxu2 %vm14423_vm10, %v6005_v24 }
0x1566   : > { %v5602_v45 = vpop.f32.mrf.mxu2 }
0x1567   : > { %v5603_v18 = vadd.f32 %v5602_v45, %v12810_v34 }
0x1569   : > { %8521 = vmatmul.msk.f32.gmra.mxu0 %vm962_vm12, %v6388_v37 }
0x156e   : > { %v5605_v56 = vpop.f32.mrf.mxu2 }
0x156f   : > { %v5606_v34 = vadd.f32 %v5605_v56, %v12816_v23 }
0x1576   : > { %v5608_v48 = vpop.f32.mrf.mxu2 }
0x157e   : > { %v12885_v11 = vpop.f32.mrf.mxu2 }
0x157f   : > { %v5612_v23 = vadd.f32 %v12885_v11, %v12826_v29 }
0x1586   : > { %v12887_v50 = vpop.f32.mrf.mxu2 }
0x1587   : > { %v5615_v29 = vadd.f32 %v12887_v50, %v12832_v5 }
0x158d   : > { %v6008_v59 = vpop.f32.mrf.mxu0 }
0x158e   : > { %8497 = vmatmul.msk.f32.gmra.mxu2 %vm14427_vm4, %v6008_v59 }
0x1595   : > { %v6454_v32 = vpop.f32.mrf.mxu0 }
0x1596   : > { %8522 = vmatmul.msk.f32.vlgmr.msra.gmra.mxu2 %vm14428_vm13, %v6454_v32 }
0x1597   : > { %v6052_v6 = vpop.f32.mrf.mxu2 }
0x1598   : > { %v6076_v47 = vadd.f32 %v6052_v6, %v5594_v19 }
0x159d   : > { %v6457_v52 = vpop.f32.mrf.mxu0 }
0x159e   : > { %8523 = vmatmul.msk.f32.gmra.mxu2 %vm14429_vm1, %v6457_v52  ;;  %v5609_v52 = vadd.f32 %v5608_v48, %v12821_v3 }
0x159f   : > { %v6055_v53 = vpop.f32.mrf.mxu2 }
0x15a0   : > { %v6077_v10 = vadd.f32 %v6055_v53, %v5597_v44 }
0x15a5   : > { %v6460_v14 = vpop.f32.mrf.mxu0 }
0x15a6   : > { %8524 = vmatmul.msk.f32.gmra.mxu2 %vm14430_vm9, %v6460_v14 }
0x15a7   : > { %v6058_v16 = vpop.f32.mrf.mxu2 }
0x15ad   : > { %v6463_v25 = vpop.f32.mrf.mxu0 }
0x15ae   : > { %8525 = vmatmul.msk.f32.gmra.mxu2 %vm14431_vm14, %v6463_v25 }
0x15ce   : > { %v6466_v54 = vpop.f32.mrf.mxu0 }
0x15cf   : > { %8526 = vmatmul.msk.f32.gmra.mxu2 %vm14432_vm15, %v6466_v54 }
0x15d0   : > { %v6061_v27 = vpop.f32.mrf.mxu2 }
0x15d6   : > { %v6469_v8 = vpop.f32.mrf.mxu0 }
0x15d7   : > { %8527 = vmatmul.msk.f32.gmra.mxu2 %vm14433_vm2, %v6469_v8 }
0x15d8   : > { %v6064_v58 = vpop.f32.mrf.mxu2 }
0x15d9   : > { %v6080_v59 = vadd.f32 %v6064_v58, %v5606_v34 }
0x15de   : > { %v6472_v60 = vpop.f32.mrf.mxu0 }
0x15df   : > { %8528 = vmatmul.msk.f32.gmra.mxu2 %vm14434_vm3, %v6472_v60 }
0x15e0   : > { %v6067_v0 = vpop.f32.mrf.mxu2 }
0x15e6   : > { %v6475_v31 = vpop.f32.mrf.mxu0 }
0x15e7   : > { %8529 = vmatmul.msk.f32.gmra.mxu2 %vm14435_vm5, %v6475_v31 }
0x15e8   : > { %v6070_v41 = vpop.f32.mrf.mxu2 }
0x1611   : > { %v6073_v62 = vpop.f32.mrf.mxu2 }
0x1612   : > { %v6083_v31 = vadd.f32 %v6073_v62, %v5615_v29 }
0x1619   : > { %v6519_v30 = vpop.f32.mrf.mxu2 }
0x161a   : > { %v6543_v40 = vadd.f32 %v6519_v30, %v6076_v47 }
0x161c   : > { %v6551_v15 = vadd.f32 %v6543_v40, %v11938_v61  ;;  %v6078_v61 = vadd.f32 %v6058_v16, %v5600_v55 }
0x161e   : > { %v12902_v22 = vadd.f32 %v12897_v39, %v6551_v15 }
0x1620   : > { %14436 = vst [vmem:[#allocation20_spill] sm:$0xff] %v12902_v22  ;;  %v6576_v7 = vsel %vm577_vm0, %v12902_v22, 0.0 }
0x1621   : > { %6577 = vadd.xlane.f32.xlu1 %v6576_v7  ;;  %v6522_v57 = vpop.f32.mrf.mxu2 }
0x1622   : > { %v6544_v12 = vadd.f32 %v6522_v57, %v6077_v10 }
0x1624   : > { %v6552_v26 = vadd.f32 %v6544_v12, %v11943_v49  ;;  %v6079_v49 = vadd.f32 %v6061_v27, %v5603_v18 }
0x1626   : > { %v12909_v1 = vadd.f32 %v12897_v39, %v6552_v26 }
0x1628   : > { %14437 = vst [vmem:[#allocation14_spill] sm:$0xff] %v12909_v1  ;;  %v6579_v46 = vsel %vm577_vm0, %v12909_v1, 0.0 }
0x1629   : > { %6580 = vadd.xlane.f32.xlu2 %v6579_v46  ;;  %v6525_v42 = vpop.f32.mrf.mxu2 }
0x162a   : > { %v6545_v43 = vadd.f32 %v6525_v42, %v6078_v61 }
0x162c   : > { %v6553_v2 = vadd.f32 %v6545_v43, %v11948_v17 }
0x162e   : > { %v12916_v4 = vadd.f32 %v12897_v39, %v6553_v2 }
0x1630   : > { %14438 = vst [vmem:[#allocation23_spill] sm:$0xff] %v12916_v4  ;;  %v6582_v36 = vsel %vm577_vm0, %v12916_v4, 0.0 }
0x1631   : > { %6583 = vadd.xlane.f32.xlu0 %v6582_v36  ;;  %v6528_v51 = vpop.f32.mrf.mxu2 }
0x1632   : > { %v6546_v24 = vadd.f32 %v6528_v51, %v6079_v49 }
0x1634   : > { %v6554_v37 = vadd.f32 %v6546_v24, %v11953_v20  ;;  %v6081_v20 = vadd.f32 %v6067_v0, %v5609_v52  ;;  %v8536_v52 = vld [vmem:[%s14218_s9 + $0x38] sm:$0xff] }
0x1635   : > { %6820 = vmatpush.msra.mxu3 %v8536_v52 }
0x1636   : > { %v12922_v63 = vadd.f32 %v12897_v39, %v6554_v37 }
0x1638   : > { %14439 = vst [vmem:[#allocation16_spill] sm:$0xff] %v12922_v63  ;;  %v6585_v17 = vsel %vm577_vm0, %v12922_v63, 0.0 }
0x1639   : > { %6586 = vadd.xlane.f32.xlu1 %v6585_v17 }
0x1652   : > { %v6531_v35 = vpop.f32.mrf.mxu2 }
0x1653   : > { %v6547_v32 = vadd.f32 %v6531_v35, %v6080_v59 }
0x1655   : > { %v6555_v9 = vadd.f32 %v6547_v32, %v11958_v13  ;;  %v6082_v13 = vadd.f32 %v6070_v41, %v5612_v23 }
0x1657   : > { %v12930_v45 = vadd.f32 %v12897_v39, %v6555_v9 }
0x1659   : > { %14440 = vst [vmem:[#allocation12_spill] sm:$0xff] %v12930_v45  ;;  %v6588_v14 = vsel %vm577_vm0, %v12930_v45, 0.0 }
0x165a   : > { %6589 = vadd.xlane.f32.xlu2 %v6588_v14  ;;  %v6534_v25 = vpop.f32.mrf.mxu2  ;;  %v8535_v14 = vld [vmem:[%s14218_s9 + $0x30] sm:$0xff] }
0x165b   : > { %v6548_v54 = vadd.f32 %v6534_v25, %v6081_v20  ;;  %6821 = vmatpush.msra.mxu3 %v8535_v14 }
0x165d   : > { %v6556_v6 = vadd.f32 %v6548_v54, %v11963_v28  ;;  %v8534_v54 = vld [vmem:[%s14218_s9 + $0x28] sm:$0xff] }
0x165e   : > { %6822 = vmatpush.msra.mxu3 %v8534_v54 }
0x165f   : > { %v12938_v56 = vadd.f32 %v12897_v39, %v6556_v6  ;;  %v8533_v6 = vld [vmem:[%s14218_s9 + $0x20] sm:$0xff] }
0x1660   : > { %6823 = vmatpush.msra.mxu3 %v8533_v6 }
0x1661   : > { %14441 = vst [vmem:[#allocation18_spill] sm:$0xff] %v12938_v56  ;;  %v6591_v3 = vsel %vm577_vm0, %v12938_v56, 0.0 }
0x1662   : > { %6592 = vadd.xlane.f32.xlu0 %v6591_v3  ;;  %v6537_v48 = vpop.f32.mrf.mxu2 }
0x1663   : > { %v6549_v8 = vadd.f32 %v6537_v48, %v6082_v13 }
0x1665   : > { %v6557_v53 = vadd.f32 %v6549_v8, %v11968_v21 }
0x1667   : > { %v12944_v60 = vadd.f32 %v12897_v39, %v6557_v53 }
0x1669   : > { %14442 = vst [vmem:[#allocation11_spill] sm:$0xff] %v12944_v60  ;;  %v6594_v28 = vsel %vm577_vm0, %v12944_v60, 0.0 }
0x166a   : > { %6595 = vadd.xlane.f32.xlu2 %v6594_v28  ;;  %v6540_v11 = vpop.f32.mrf.mxu2 }
0x166b   : > { %v6550_v58 = vadd.f32 %v6540_v11, %v6083_v31 }
0x166d   : > { %v6558_v41 = vadd.f32 %v6550_v58, %v11981_v33 }
0x166f   : > { %v12960_v50 = vadd.f32 %v12897_v39, %v6558_v41 }
0x1671   : > { %14443 = vst [vmem:[#allocation13_spill] sm:$0xff] %v12960_v50  ;;  %v6597_v33 = vsel %vm577_vm0, %v12960_v50, 0.0 }
0x1694   : > { %v6578_v16 = vpop.xlane.xlu1 %6577 }
0x1695   : > { %v6600_v27 = vmul.f32 %v6578_v16, %v14335_v38 }
0x1697   : > { %v12952_v0 = vsub.f32 %v12902_v22, %v6600_v27 }
0x1699   : > { %v6616_v21 = vmul.f32 %v12952_v0, %v12952_v0 }
0x169b   : > { %v6624_v19 = vsel %vm577_vm0, %v6616_v21, 0.0 }
0x169c   : > { %v6581_v47 = vpop.xlane.xlu2 %6580  ;;  %6625 = vadd.xlane.f32.xlu1 %v6624_v19 }
0x169d   : > { %v6601_v5 = vmul.f32 %v6581_v47, %v14335_v38 }
0x169f   : > { %v12963_v62 = vsub.f32 %v12909_v1, %v6601_v5  ;;  %v8627_v1 = vld [vmem:[%s14221_s12 + $0x20] sm:$0xff] }
0x16a1   : > { %v6617_v30 = vmul.f32 %v12963_v62, %v12963_v62 }
0x16a3   : > { %v6627_v40 = vsel %vm577_vm0, %v6617_v30, 0.0 }
0x16a4   : > { %v6584_v15 = vpop.xlane.xlu0 %6583  ;;  %6628 = vadd.xlane.f32.xlu0 %v6627_v40  ;;  %6598 = vadd.xlane.f32.xlu1 %v6597_v33  ;;  %v13030_v40 = vld [vmem:[%s14216_s7 + $0x1] ss:$0 sm:$0xff] }
0x16a5   : > { %v6602_v44 = vmul.f32 %v6584_v15, %v14335_v38 }
0x16a7   : > { %v12972_v10 = vsub.f32 %v12916_v4, %v6602_v44  ;;  %v13035_v44 = vld [vmem:[%s14217_s8 + $0x1] ss:$0 sm:$0xff] }
0x16a9   : > { %v6618_v39 = vmul.f32 %v12972_v10, %v12972_v10 }
0x16ab   : > { %v6630_v7 = vsel %vm577_vm0, %v6618_v39, 0.0 }
0x16ac   : > { %v6587_v57 = vpop.xlane.xlu1 %6586  ;;  %6631 = vadd.xlane.f32.xlu2 %v6630_v7 }
0x16ad   : > { %v6603_v12 = vmul.f32 %v6587_v57, %v14335_v38 }
0x16af   : > { %v12979_v26 = vsub.f32 %v12922_v63, %v6603_v12 }
0x16b1   : > { %v6619_v55 = vmul.f32 %v12979_v26, %v12979_v26 }
0x16b3   : > { %v6633_v61 = vsel %vm577_vm0, %v6619_v55, 0.0 }
0x16b4   : > { %6634 = vadd.xlane.f32.xlu0 %v6633_v61 }
0x16cd   : > { %v6590_v46 = vpop.xlane.xlu2 %6589 }
0x16ce   : > { %v6604_v42 = vmul.f32 %v6590_v46, %v14335_v38 }
0x16d0   : > { %v12986_v43 = vsub.f32 %v12930_v45, %v6604_v42 }
0x16d2   : > { %v6620_v2 = vmul.f32 %v12986_v43, %v12986_v43 }
0x16d4   : > { %v6636_v18 = vsel %vm577_vm0, %v6620_v2, 0.0 }
0x16d5   : > { %v6593_v49 = vpop.xlane.xlu0 %6592  ;;  %6637 = vadd.xlane.f32.xlu1 %v6636_v18 }
0x16d6   : > { %v6605_v36 = vmul.f32 %v6593_v49, %v14335_v38 }
0x16d8   : > { %v12993_v51 = vsub.f32 %v12938_v56, %v6605_v36 }
0x16da   : > { %v6621_v24 = vmul.f32 %v12993_v51, %v12993_v51 }
0x16dc   : > { %v6639_v37 = vsel %vm577_vm0, %v6621_v24, 0.0 }
0x16dd   : > { %6640 = vadd.xlane.f32.xlu2 %v6639_v37  ;;  %v6596_v17 = vpop.xlane.xlu2 %6595 }
0x16de   : > { %v6606_v34 = vmul.f32 %v6596_v17, %v14335_v38 }
0x16e0   : > { %v13000_v59 = vsub.f32 %v12944_v60, %v6606_v34 }
0x16e2   : > { %v6622_v35 = vmul.f32 %v13000_v59, %v13000_v59 }
0x16e4   : > { %v6642_v32 = vsel %vm577_vm0, %v6622_v35, 0.0 }
0x16e5   : > { %6643 = vadd.xlane.f32.xlu0 %v6642_v32 }
0x170f   : > { %v6626_v9 = vpop.xlane.xlu1 %6625 }
0x1710   : > { %v6648_v20 = vmul.f32 %v6626_v9, %v14335_v38 }
0x1712   : > { %v6656_v25 = vadd.f32 1e-05, %v6648_v20 }
0x1714   : > { %9262 = vrsqrt.f32 %v6656_v25  ;;  %vm6670_vm6 = vweird.f32 %v6656_v25 }
0x1717   : > { %v6629_v23 = vpop.xlane.xlu0 %6628  ;;  %v6599_v13 = vpop.xlane.xlu1 %6598 }
0x1718   : > { %v6649_v3 = vmul.f32 %v6629_v23, %v14335_v38  ;;  %v6607_v48 = vmul.f32 %v6599_v13, %v14335_v38 }
0x171a   : > { %v9263_v8 = vpop.eup %9262  ;;  %v6657_v53 = vadd.f32 1e-05, %v6649_v3  ;;  %v13021_v28 = vsub.f32 %v12960_v50, %v6607_v48 }
0x171b   : > { %v6665_v29 = vmul.f32 %v9263_v8, %v6656_v25  ;;  %vm6671_vm11 = vweird.f32 %v9263_v8 }
0x171c   : > { %9264 = vrsqrt.f32 %v6657_v53  ;;  %v6623_v11 = vmul.f32 %v13021_v28, %v13021_v28  ;;  %vm6672_vm7 = vmor %vm6670_vm6, %vm6671_vm11  ;;  %vm6680_vm10 = vweird.f32 %v6657_v53 }
0x171d   : > { %v6666_v16 = vmul.f32 %v9263_v8, %v6665_v29 }
0x171e   : > { %v6645_v31 = vsel %vm577_vm0, %v6623_v11, 0.0 }
0x171f   : > { %v6667_v27 = vmul.f32 0.5, %v6666_v16  ;;  %v6632_v58 = vpop.xlane.xlu2 %6631  ;;  %6646 = vadd.xlane.f32.xlu1 %v6645_v31 }
0x1720   : > { %v6650_v21 = vmul.f32 %v6632_v58, %v14335_v38 }
0x1721   : > { %v6668_v41 = vsub.f32 1.5, %v6667_v27 }
0x1722   : > { %v9265_v19 = vpop.eup %9264  ;;  %v6658_v47 = vadd.f32 1e-05, %v6650_v21 }
0x1723   : > { %v6669_v5 = vmul.f32 %v9263_v8, %v6668_v41  ;;  %v6675_v30 = vmul.f32 %v9265_v19, %v6657_v53  ;;  %vm6681_vm8 = vweird.f32 %v9265_v19 }
0x1724   : > { %9266 = vrsqrt.f32 %v6658_v47  ;;  %vm6682_vm4 = vmor %vm6680_vm10, %vm6681_vm8  ;;  %vm6690_vm1 = vweird.f32 %v6658_v47 }
0x1725   : > { %v6673_v33 = vsel %vm6672_vm7, %v9263_v8, %v6669_v5  ;;  %v6676_v15 = vmul.f32 %v9265_v19, %v6675_v30 }
0x1726   : > { %v6744_v39 = vmul.f32 %v6673_v33, %v12952_v0 }
0x1727   : > { %v6677_v7 = vmul.f32 0.5, %v6676_v15  ;;  %v6635_v57 = vpop.xlane.xlu0 %6634 }
0x1728   : > { %v6755_v12 = vmul.f32 %v13030_v40, %v6744_v39  ;;  %v6651_v55 = vmul.f32 %v6635_v57, %v14335_v38 }
0x1729   : > { %v6678_v61 = vsub.f32 1.5, %v6677_v7 }
0x172a   : > { %v9267_v46 = vpop.eup %9266  ;;  %v6766_v42 = vadd.f32 %v13035_v44, %v6755_v12  ;;  %v6659_v2 = vadd.f32 1e-05, %v6651_v55 }
0x172b   : > { %v6679_v18 = vmul.f32 %v9265_v19, %v6678_v61  ;;  %v6685_v49 = vmul.f32 %v9267_v46, %v6658_v47  ;;  %vm6691_vm13 = vweird.f32 %v9267_v46 }
0x172c   : > { %9268 = vrsqrt.f32 %v6659_v2  ;;  %8538 = vmatmul.msk.f32.vlgmr.msra.gmra.mxu3 %vm577_vm0, %v6766_v42  ;;  %vm6692_vm9 = vmor %vm6690_vm1, %vm6691_vm13  ;;  %vm6700_vm15 = vweird.f32 %v6659_v2 }
0x172d   : > { %v6683_v0 = vsel %vm6682_vm4, %v9265_v19, %v6679_v18  ;;  %v6686_v36 = vmul.f32 %v9267_v46, %v6685_v49 }
0x172e   : > { %v6745_v24 = vmul.f32 %v6683_v0, %v12963_v62 }
0x172f   : > { %v6687_v37 = vmul.f32 0.5, %v6686_v36 }
0x1730   : > { %v6756_v17 = vmul.f32 %v13030_v40, %v6745_v24 }
0x1731   : > { %v6688_v34 = vsub.f32 1.5, %v6687_v37 }
0x1732   : > { %v9269_v35 = vpop.eup %9268  ;;  %v6767_v32 = vadd.f32 %v13035_v44, %v6756_v17 }
0x1733   : > { %v6689_v9 = vmul.f32 %v9267_v46, %v6688_v34  ;;  %v6695_v52 = vmul.f32 %v9269_v35, %v6659_v2  ;;  %vm6701_vm14 = vweird.f32 %v9269_v35 }
0x1734   : > { %8539 = vmatmul.msk.f32.gmra.mxu3 %vm577_vm0, %v6767_v32  ;;  %vm6702_vm2 = vmor %vm6700_vm15, %vm6701_vm14 }
0x1735   : > { %v6693_v20 = vsel %vm6692_vm9, %v9267_v46, %v6689_v9  ;;  %v6696_v14 = vmul.f32 %v9269_v35, %v6695_v52 }
0x1736   : > { %v6746_v25 = vmul.f32 %v6693_v20, %v12972_v10 }
0x1737   : > { %v6697_v54 = vmul.f32 0.5, %v6696_v14 }
0x1738   : > { %v6757_v62 = vmul.f32 %v13030_v40, %v6746_v25 }
0x1739   : > { %v6698_v6 = vsub.f32 1.5, %v6697_v54 }
0x173a   : > { %v6768_v23 = vadd.f32 %v13035_v44, %v6757_v62 }
0x173b   : > { %v6699_v13 = vmul.f32 %v9269_v35, %v6698_v6 }
0x173c   : > { %8540 = vmatmul.msk.f32.gmra.mxu3 %vm577_vm0, %v6768_v23 }
0x173d   : > { %v6703_v3 = vsel %vm6702_vm2, %v9269_v35, %v6699_v13 }
0x173e   : > { %v6747_v48 = vmul.f32 %v6703_v3, %v12979_v26 }
0x1740   : > { %v6758_v8 = vmul.f32 %v13030_v40, %v6747_v48 }
0x1742   : > { %v6769_v53 = vadd.f32 %v13035_v44, %v6758_v8 }
0x1744   : > { %8541 = vmatmul.msk.f32.gmra.mxu3 %vm577_vm0, %v6769_v53 }
0x1748   : > { %v6638_v10 = vpop.xlane.xlu1 %6637 }
0x1749   : > { %v6652_v29 = vmul.f32 %v6638_v10, %v14335_v38 }
0x174b   : > { %v6660_v11 = vadd.f32 1e-05, %v6652_v29 }
0x174d   : > { %9270 = vrsqrt.f32 %v6660_v11  ;;  %vm6710_vm5 = vweird.f32 %v6660_v11 }
0x1750   : > { %v6641_v16 = vpop.xlane.xlu2 %6640 }
0x1751   : > { %v6653_v31 = vmul.f32 %v6641_v16, %v14335_v38 }
0x1753   : > { %v9271_v27 = vpop.eup %9270  ;;  %v6661_v58 = vadd.f32 1e-05, %v6653_v31 }
0x1754   : > { %v6705_v21 = vmul.f32 %v9271_v27, %v6660_v11  ;;  %vm6711_vm3 = vweird.f32 %v9271_v27 }
0x1755   : > { %9272 = vrsqrt.f32 %v6661_v58  ;;  %vm6712_vm11 = vmor %vm6710_vm5, %vm6711_vm3  ;;  %vm6720_vm7 = vweird.f32 %v6661_v58 }
0x1756   : > { %v6706_v41 = vmul.f32 %v9271_v27, %v6705_v21 }
0x1758   : > { %v6707_v26 = vmul.f32 0.5, %v6706_v41  ;;  %v6644_v19 = vpop.xlane.xlu0 %6643 }
0x1759   : > { %v6654_v47 = vmul.f32 %v6644_v19, %v14335_v38 }
0x175a   : > { %v6708_v5 = vsub.f32 1.5, %v6707_v26 }
0x175b   : > { %v9273_v30 = vpop.eup %9272  ;;  %v6662_v33 = vadd.f32 1e-05, %v6654_v47 }
0x175c   : > { %v6709_v15 = vmul.f32 %v9271_v27, %v6708_v5  ;;  %v6715_v39 = vmul.f32 %v9273_v30, %v6661_v58  ;;  %vm6721_vm6 = vweird.f32 %v9273_v30 }
0x175d   : > { %9274 = vrsqrt.f32 %v6662_v33  ;;  %vm6722_vm8 = vmor %vm6720_vm7, %vm6721_vm6  ;;  %vm6730_vm4 = vweird.f32 %v6662_v33 }
0x175e   : > { %v6713_v7 = vsel %vm6712_vm11, %v9271_v27, %v6709_v15  ;;  %v6716_v57 = vmul.f32 %v9273_v30, %v6715_v39  ;;  %v13077_v27 = vld [vmem:[%s14219_s10 + $0x1] ss:$0 sm:$0xff] }
0x175f   : > { %v6748_v12 = vmul.f32 %v6713_v7, %v12986_v43 }
0x1760   : > { %v6717_v55 = vmul.f32 0.5, %v6716_v57 }
0x1761   : > { %v6759_v61 = vmul.f32 %v13030_v40, %v6748_v12 }
0x1762   : > { %v6718_v46 = vsub.f32 1.5, %v6717_v55 }
0x1763   : > { %v9275_v42 = vpop.eup %9274  ;;  %v6770_v2 = vadd.f32 %v13035_v44, %v6759_v61 }
0x1764   : > { %v6719_v18 = vmul.f32 %v9273_v30, %v6718_v46  ;;  %v6725_v49 = vmul.f32 %v9275_v42, %v6662_v33  ;;  %vm6731_vm10 = vweird.f32 %v9275_v42 }
0x1765   : > { %8542 = vmatmul.msk.f32.gmra.mxu3 %vm577_vm0, %v6770_v2  ;;  %vm6732_vm13 = vmor %vm6730_vm4, %vm6731_vm10 }
0x1766   : > { %v6723_v0 = vsel %vm6722_vm8, %v9273_v30, %v6719_v18  ;;  %v6726_v36 = vmul.f32 %v9275_v42, %v6725_v49 }
0x1767   : > { %v6749_v24 = vmul.f32 %v6723_v0, %v12993_v51 }
0x1768   : > { %v6727_v37 = vmul.f32 0.5, %v6726_v36 }
0x1769   : > { %v6760_v43 = vmul.f32 %v13030_v40, %v6749_v24 }
0x176a   : > { %v6728_v17 = vsub.f32 1.5, %v6727_v37 }
0x176b   : > { %v6771_v34 = vadd.f32 %v13035_v44, %v6760_v43 }
0x176c   : > { %v6729_v35 = vmul.f32 %v9275_v42, %v6728_v17 }
0x176d   : > { %8543 = vmatmul.msk.f32.gmra.mxu3 %vm577_vm0, %v6771_v34 }
0x176e   : > { %v6733_v32 = vsel %vm6732_vm13, %v9275_v42, %v6729_v35 }
0x176f   : > { %v6750_v9 = vmul.f32 %v6733_v32, %v13000_v59 }
0x1771   : > { %v6761_v52 = vmul.f32 %v13030_v40, %v6750_v9 }
0x1773   : > { %v6772_v20 = vadd.f32 %v13035_v44, %v6761_v52 }
0x1775   : > { %8544 = vmatmul.msk.f32.gmra.mxu3 %vm577_vm0, %v6772_v20 }
0x1792   : > { %v6647_v51 = vpop.xlane.xlu1 %6646 }
0x1793   : > { %v6655_v14 = vmul.f32 %v6647_v51, %v14335_v38 }
0x1795   : > { %v6663_v25 = vadd.f32 1e-05, %v6655_v14 }
0x1797   : > { %9276 = vrsqrt.f32 %v6663_v25  ;;  %vm6740_vm9 = vweird.f32 %v6663_v25 }
0x179d   : > { %v9277_v54 = vpop.eup %9276 }
0x179e   : > { %v6735_v62 = vmul.f32 %v9277_v54, %v6663_v25  ;;  %vm6741_vm1 = vweird.f32 %v9277_v54 }
0x179f   : > { %vm6742_vm14 = vmor %vm6740_vm9, %vm6741_vm1 }
0x17a0   : > { %v6736_v6 = vmul.f32 %v9277_v54, %v6735_v62 }
0x17a2   : > { %v6737_v23 = vmul.f32 0.5, %v6736_v6 }
0x17a4   : > { %v6738_v13 = vsub.f32 1.5, %v6737_v23 }
0x17a6   : > { %v6739_v3 = vmul.f32 %v9277_v54, %v6738_v13 }
0x17a8   : > { %v6743_v59 = vsel %vm6742_vm14, %v9277_v54, %v6739_v3 }
0x17a9   : > { %v6751_v48 = vmul.f32 %v6743_v59, %v13021_v28 }
0x17ab   : > { %v6762_v8 = vmul.f32 %v13030_v40, %v6751_v48 }
0x17ad   : > { %v6773_v53 = vadd.f32 %v13035_v44, %v6762_v8 }
0x17af   : > { %8545 = vmatmul.msk.f32.gmra.mxu3 %vm577_vm0, %v6773_v53  ;;  %v6825_v38 = vpop.f32.mrf.mxu3 }
0x17b0   : > { %v13083_v40 = vadd.f32 %v13077_v27, %v6825_v38 }
0x17b2   : > { %v13098_v19 = vmul.f32 0.70710677, %v13083_v40 }
0x17b4   : > { %v13119_v7 = vand.u32 2147483647, %v13098_v19 }
0x17b6   : > { %v6873_v2 = vmul.f32 0.3275911, %v13119_v7 }
0x17b7   : > { %v6828_v10 = vpop.f32.mrf.mxu3 }
0x17b8   : > { %v13092_v41 = vadd.f32 %v13077_v27, %v6828_v10  ;;  %v13149_v43 = vadd.f32 1.0, %v6873_v2 }
0x17ba   : > { %v13113_v15 = vmul.f32 0.70710677, %v13092_v41  ;;  %vm6894_vm13 = vweird.f32 %v13149_v43 }
0x17bc   : > { %v13134_v46 = vand.u32 2147483647, %v13113_v15 }
0x17be   : > { %v6874_v24 = vmul.f32 0.3275911, %v13134_v46 }
0x17bf   : > { %v6831_v29 = vpop.f32.mrf.mxu3 }
0x17c0   : > { %v13107_v30 = vadd.f32 %v13077_v27, %v6831_v29  ;;  %v13157_v9 = vadd.f32 1.0, %v6874_v24 }
0x17c2   : > { %v13128_v55 = vmul.f32 0.70710677, %v13107_v30  ;;  %vm6909_vm8 = vweird.f32 %v13157_v9 }
0x17c4   : > { %v13143_v0 = vand.u32 2147483647, %v13128_v55 }
0x17c6   : > { %v6875_v35 = vmul.f32 0.3275911, %v13143_v0 }
0x17c7   : > { %v6834_v11 = vpop.f32.mrf.mxu3 }
0x17c8   : > { %v13101_v47 = vadd.f32 %v13077_v27, %v6834_v11  ;;  %v13164_v20 = vadd.f32 1.0, %v6875_v35 }
0x17ca   : > { %v13122_v57 = vmul.f32 0.70710677, %v13101_v47  ;;  %vm6924_vm2 = vweird.f32 %v13164_v20 }
0x17cc   : > { %v13139_v18 = vand.u32 2147483647, %v13122_v57 }
0x17ce   : > { %v6876_v17 = vmul.f32 0.3275911, %v13139_v18 }
0x17d0   : > { %v13161_v52 = vadd.f32 1.0, %v6876_v17 }
0x17e8   : > { %v6837_v16 = vpop.f32.mrf.mxu3 }
0x17e9   : > { %v13089_v21 = vadd.f32 %v13077_v27, %v6837_v16 }
0x17eb   : > { %v13110_v33 = vmul.f32 0.70710677, %v13089_v21 }
0x17ed   : > { %v13131_v61 = vand.u32 2147483647, %v13110_v33 }
0x17ef   : > { %v6877_v36 = vmul.f32 0.3275911, %v13131_v61 }
0x17f0   : > { %v6840_v31 = vpop.f32.mrf.mxu3 }
0x17f1   : > { %v13086_v44 = vadd.f32 %v13077_v27, %v6840_v31  ;;  %v13155_v32 = vadd.f32 1.0, %v6877_v36 }
0x17f3   : > { %v13104_v5 = vmul.f32 0.70710677, %v13086_v44  ;;  %vm6954_vm9 = vweird.f32 %v13155_v32  ;;  %v6958_v2 = vand.u32 2147483647, %v13155_v32 }
0x17f5   : > { %v13125_v12 = vand.u32 2147483647, %v13104_v5 }
0x17f7   : > { %v6878_v49 = vmul.f32 0.3275911, %v13125_v12 }
0x17f8   : > { %v6843_v58 = vpop.f32.mrf.mxu3 }
0x17f9   : > { %v13080_v28 = vadd.f32 %v13077_v27, %v6843_v58  ;;  %v13152_v34 = vadd.f32 1.0, %v6878_v49  ;;  %v6945_v49 = vand.u32 2147483648, %v13161_v52 }
0x17fb   : > { %v13095_v26 = vmul.f32 0.70710677, %v13080_v28  ;;  %vm6969_vm1 = vweird.f32 %v13152_v34 }
0x17fd   : > { %v13116_v39 = vand.u32 2147483647, %v13095_v26 }
0x17ff   : > { %v6879_v42 = vmul.f32 0.3275911, %v13116_v39 }
0x1801   : > { %v13147_v37 = vadd.f32 1.0, %v6879_v42 }
0x1803   : > { %9278 = vrcp.f32 %v13147_v37  ;;  %vm6984_vm11 = vweird.f32 %v13147_v37 }
0x1804   : > { %9280 = vrcp.f32 %v13149_v43 }
0x1805   : > { %9282 = vrcp.f32 %v13152_v34 }
0x1806   : > { %9284 = vrcp.f32 %v13155_v32 }
0x1807   : > { %9286 = vrcp.f32 %v13157_v9 }
0x1808   : > { %9288 = vrcp.f32 %v13161_v52 }
0x1809   : > { %v13169_v51 = vpop.eup %9278  ;;  %9290 = vrcp.f32 %v13164_v20 }
0x180a   : > { %v13171_v14 = vpop.eup %9280  ;;  %v6980_v62 = vmul.f32 %v13169_v51, %v13147_v37  ;;  %vm6985_vm15 = vweird.f32 %v13169_v51 }
0x180b   : > { %v13174_v25 = vpop.eup %9282  ;;  %v6890_v3 = vmul.f32 %v13171_v14, %v13149_v43  ;;  %vm6895_vm7 = vweird.f32 %v13171_v14  ;;  %vm13226_vm10 = vmor %vm6984_vm11, %vm6985_vm15 }
0x180c   : > { %v13176_v54 = vpop.eup %9284  ;;  %v6965_v13 = vmul.f32 %v13174_v25, %v13152_v34  ;;  %v6981_v8 = vsub.f32 1.0, %v6980_v62  ;;  %vm6970_vm6 = vweird.f32 %v13174_v25 }
0x180d   : > { %v13180_v6 = vpop.eup %9286  ;;  %v6950_v59 = vmul.f32 %v13176_v54, %v13155_v32  ;;  %v6891_v29 = vsub.f32 1.0, %v6890_v3  ;;  %v6930_v3 = vand.u32 2147483648, %v13164_v20  ;;  %vm6955_vm4 = vweird.f32 %v13176_v54  ;;  %vm13243_vm14 = vmor %vm6969_vm1, %vm6970_vm6 }
0x180e   : > { %v13182_v23 = vpop.eup %9288  ;;  %v6905_v53 = vmul.f32 %v13180_v6, %v13157_v9  ;;  %v6966_v10 = vsub.f32 1.0, %v6965_v13  ;;  %v6982_v31 = vmul.f32 %v13169_v51, %v6981_v8  ;;  %v6928_v8 = vand.u32 2147483647, %v13164_v20  ;;  %vm13251_vm11 = vmor %vm6954_vm9, %vm6955_vm4 }
0x180f   : > { %v13190_v48 = vpop.eup %9290  ;;  %v6935_v38 = vmul.f32 %v13182_v23, %v13161_v52  ;;  %v6951_v16 = vsub.f32 1.0, %v6950_v59  ;;  %v6892_v17 = vmul.f32 %v13171_v14, %v6891_v29  ;;  %vm6910_vm5 = vweird.f32 %v13180_v6 }
0x1810   : > { %v6920_v11 = vmul.f32 %v13190_v48, %v13164_v20  ;;  %v6906_v58 = vsub.f32 1.0, %v6905_v53  ;;  %v6967_v36 = vmul.f32 %v13174_v25, %v6966_v10  ;;  %v6983_v59 = vadd.f32 %v13169_v51, %v6982_v31 }
0x1811   : > { %v6936_v42 = vsub.f32 1.0, %v6935_v38  ;;  %v6952_v13 = vmul.f32 %v13176_v54, %v6951_v16  ;;  %v6990_v10 = vand.u32 2147483648, %v13147_v37  ;;  %vm6925_vm3 = vweird.f32 %v13190_v48 }
0x1812   : > { %v6921_v62 = vsub.f32 1.0, %v6920_v11  ;;  %v6907_v53 = vmul.f32 %v13180_v6, %v6906_v58  ;;  %v6988_v29 = vand.u32 2147483647, %v13147_v37  ;;  %v6968_v11 = vadd.f32 %v13174_v25, %v6967_v36 }
0x1813   : > { %v6937_v38 = vmul.f32 %v13182_v23, %v6936_v42  ;;  %v6975_v31 = vand.u32 2147483648, %v13152_v34  ;;  %v6953_v37 = vadd.f32 %v13176_v54, %v6952_v13  ;;  %v6960_v42 = vand.u32 2147483648, %v13155_v32 }
0x1814   : > { %v6922_v16 = vmul.f32 %v13190_v48, %v6921_v62  ;;  %v6987_v36 = vsel %vm13226_vm10, %v13169_v51, %v6983_v59  ;;  %v6973_v62 = vand.u32 2147483647, %v13152_v34  ;;  %v6991_v24 = vor.u32 1.1754944e-38, %v6990_v10 }
0x1815   : > { %vm6989_vm15 = vcmp.eq.f32.partialorder %v6988_v29, 8.507059e+37  ;;  %v6972_v51 = vsel %vm13243_vm14, %v13174_v25, %v6968_v11  ;;  %v6938_v59 = vadd.f32 %v13182_v23, %v6937_v38  ;;  %vm6940_vm10 = vweird.f32 %v13182_v23  ;;  %vm13285_vm14 = vmor %vm6924_vm2, %vm6925_vm3 }
0x1816   : > { %v6976_v10 = vor.u32 1.1754944e-38, %v6975_v31  ;;  %v13257_v58 = vsel %vm6989_vm15, %v6991_v24, %v6987_v36  ;;  %v6957_v32 = vsel %vm13251_vm11, %v13176_v54, %v6953_v37  ;;  %v6923_v29 = vadd.f32 %v13190_v48, %v6922_v16  ;;  %vm13302_vm3 = vmor %vm6909_vm8, %vm6910_vm5 }
0x1817   : > { %vm6939_vm6 = vweird.f32 %v13161_v52  ;;  %v6961_v25 = vor.u32 1.1754944e-38, %v6960_v42  ;;  %vm6974_vm4 = vcmp.eq.f32.partialorder %v6973_v62, 8.507059e+37  ;;  %v6943_v13 = vand.u32 2147483647, %v13161_v52  ;;  %vm13319_vm11 = vmor %vm6894_vm13, %vm6895_vm7 }
0x1818   : > { %v13268_v35 = vsel %vm6974_vm4, %v6976_v10, %v6972_v51  ;;  %vm6959_vm1 = vcmp.eq.f32.partialorder %v6958_v2, 8.507059e+37  ;;  %vm13270_vm9 = vmor %vm6939_vm6, %vm6940_vm10  ;;  %v6908_v54 = vadd.f32 %v13180_v6, %v6907_v53  ;;  %v7015_v16 = vmul.f32 1.0614054, %v13257_v58 }
0x1819   : > { %v13276_v31 = vsel %vm6959_vm1, %v6961_v25, %v6957_v32  ;;  %v6942_v52 = vsel %vm13270_vm9, %v13182_v23, %v6938_v59  ;;  %v6893_v2 = vadd.f32 %v13171_v14, %v6892_v17  ;;  %v6946_v37 = vor.u32 1.1754944e-38, %v6945_v49 }
0x181a   : > { %v6927_v42 = vsel %vm13285_vm14, %v13190_v48, %v6923_v29  ;;  %v6913_v23 = vand.u32 2147483647, %v13157_v9  ;;  %v6931_v36 = vor.u32 1.1754944e-38, %v6930_v3  ;;  %v7014_v62 = vmul.f32 1.0614054, %v13268_v35 }
0x181b   : > { %vm6944_vm15 = vcmp.eq.f32.partialorder %v6943_v13, 8.507059e+37  ;;  %vm6929_vm2 = vcmp.eq.f32.partialorder %v6928_v8, 8.507059e+37  ;;  %v7013_v48 = vmul.f32 1.0614054, %v13276_v31  ;;  %v6912_v3 = vsel %vm13302_vm3, %v13180_v6, %v6908_v54 }
0x181c   : > { %v13310_v17 = vsel %vm6944_vm15, %v6946_v37, %v6942_v52  ;;  %v14458_v51 = vand.u32 2147483648, %v13157_v9  ;;  %v7023_v59 = vadd.f32 -1.4531521, %v7015_v16  ;;  %v13325_v10 = vsel %vm6929_vm2, %v6931_v36, %v6927_v42 }
0x181d   : > { %v6897_v32 = vsel %vm13319_vm11, %v13171_v14, %v6893_v2  ;;  %v14459_v6 = vand.u32 2147483648, %v13149_v43  ;;  %vm6914_vm5 = vcmp.eq.f32.partialorder %v6913_v23, 8.507059e+37  ;;  %v7012_v13 = vmul.f32 1.0614054, %v13310_v17 }
0x181e   : > { %v6916_v34 = vor.u32 1.1754944e-38, %v14458_v51  ;;  %v14460_v9 = vand.u32 2147483647, %v13149_v43  ;;  %v7021_v16 = vadd.f32 -1.4531521, %v7013_v48  ;;  %v14461_v14 = vsub.f32 0.0, %v13119_v7 }
0x181f   : > { %v6901_v29 = vor.u32 1.1754944e-38, %v14459_v6  ;;  %v7011_v52 = vmul.f32 1.0614054, %v13325_v10  ;;  %v7031_v37 = vmul.f32 %v7023_v59, %v13257_v58  ;;  %v7083_v42 = vsub.f32 0.0, %v13143_v0 }
0x1820   : > { %v13334_v24 = vsel %vm6914_vm5, %v6916_v34, %v6912_v3  ;;  %vm6899_vm7 = vcmp.eq.f32.partialorder %v14460_v9, 8.507059e+37  ;;  %v7089_v2 = vmul.f32 %v14461_v14, %v13119_v7  ;;  %v7020_v36 = vadd.f32 -1.4531521, %v7012_v13 }
0x1821   : > { %v7010_v23 = vmul.f32 1.0614054, %v13334_v24  ;;  %v7029_v20 = vmul.f32 %v7021_v16, %v13276_v31  ;;  %v7019_v48 = vadd.f32 -1.4531521, %v7011_v52  ;;  %v7039_v8 = vadd.f32 1.4214138, %v7031_v37 }
0x1822   : > { %v7097_v3 = vmul.f32 1.442695, %v7089_v2  ;;  %v7091_v51 = vmul.f32 %v7083_v42, %v13143_v0  ;;  %v7028_v59 = vmul.f32 %v7020_v36, %v13310_v17  ;;  %v7082_v9 = vsub.f32 0.0, %v13134_v46 }
0x1823   : > { %v7018_v7 = vadd.f32 -1.4531521, %v7010_v23  ;;  %v7047_v13 = vmul.f32 %v7039_v8, %v13257_v58  ;;  %v7087_v52 = vsub.f32 0.0, %v13116_v39  ;;  %v7086_v23 = vsub.f32 0.0, %v13125_v12 }
0x1824   : > { %v7101_v16 = vmul.f32 1.442695, %v7091_v51  ;;  %v7036_v37 = vadd.f32 1.4214138, %v7028_v59  ;;  %v7084_v8 = vsub.f32 0.0, %v13139_v18  ;;  %v7085_v51 = vsub.f32 0.0, %v13131_v61 }
0x1825   : > { %v7026_v0 = vmul.f32 %v7018_v7, %v13334_v24  ;;  %v7095_v7 = vmul.f32 %v7087_v52, %v13116_v39  ;;  %vm7135_vm4 = vcmp.ge.f32.partialorder %v13095_v26, 0.0  ;;  %vm7134_vm1 = vcmp.ge.f32.partialorder %v13104_v5, 0.0 }
0x1826   : > { %v7044_v50 = vmul.f32 %v7036_v37, %v13310_v17  ;;  %v7093_v52 = vmul.f32 %v7085_v51, %v13131_v61  ;;  %vm7133_vm14 = vcmp.ge.f32.partialorder %v13110_v33, 0.0  ;;  %vm7132_vm15 = vcmp.ge.f32.partialorder %v13122_v57, 0.0 }
0x1827   : > { %vm7131_vm2 = vcmp.ge.f32.partialorder %v13128_v55, 0.0  ;;  %vm7130_vm3 = vcmp.ge.f32.partialorder %v13113_v15, 0.0  ;;  %v6853_v57 = vmul.f32 0.5, %v13089_v21  ;;  %vm7129_vm11 = vcmp.ge.f32.partialorder %v13098_v19, 0.0 }
0x1828   : > { %v6851_v15 = vmul.f32 0.5, %v13107_v30 }
0x1832   : > { %v6846_v11 = vpop.f32.mrf.mxu3 }
0x1833   : > { %v13266_v38 = vadd.f32 %v13077_v27, %v6846_v11  ;;  %v7022_v11 = vadd.f32 -1.4531521, %v7014_v62  ;;  %v13339_v27 = vsel %vm6899_vm7, %v6901_v29, %v6897_v32  ;;  %v7037_v29 = vadd.f32 1.4214138, %v7029_v20 }
0x1834   : > { %v7009_v62 = vmul.f32 1.0614054, %v13339_v27 }
0x1835   : > { %v13291_v53 = vmul.f32 0.70710677, %v13266_v38  ;;  %v7030_v43 = vmul.f32 %v7022_v11, %v13268_v35  ;;  %v7045_v36 = vmul.f32 %v7037_v29, %v13276_v31  ;;  %v7094_v29 = vmul.f32 %v7086_v23, %v13125_v12 }
0x1836   : > { %v7017_v32 = vadd.f32 -1.4531521, %v7009_v62  ;;  %v7052_v12 = vadd.f32 -0.28449672, %v7044_v50 }
0x1837   : > { %v13307_v49 = vand.u32 2147483647, %v13291_v53  ;;  %v7038_v34 = vadd.f32 1.4214138, %v7030_v43  ;;  %v7053_v39 = vadd.f32 -0.28449672, %v7045_v36 }
0x1838   : > { %v7025_v42 = vmul.f32 %v7017_v32, %v13339_v27  ;;  %v7060_v50 = vmul.f32 %v7052_v12, %v13310_v17  ;;  %vm7136_vm9 = vcmp.ge.f32.partialorder %v13291_v53, 0.0 }
0x1839   : > { %v6880_v25 = vmul.f32 0.3275911, %v13307_v49  ;;  %v7046_v2 = vmul.f32 %v7038_v34, %v13268_v35  ;;  %v7034_v34 = vadd.f32 1.4214138, %v7026_v0  ;;  %v7109_v0 = vmul.f32 1.442695, %v7095_v7 }
0x183a   : > { %v7061_v61 = vmul.f32 %v7053_v39, %v13276_v31  ;;  %v7068_v39 = vadd.f32 0.2548296, %v7060_v50 }
0x183b   : > { %v6888_v54 = vadd.f32 1.0, %v6880_v25  ;;  %v7027_v25 = vmul.f32 %v7019_v48, %v13325_v10  ;;  %v7042_v23 = vmul.f32 %v7034_v34, %v13334_v24 }
0x183d   : > { %9292 = vrcp.f32 %v6888_v54  ;;  %v7005_v43 = vand.u32 2147483648, %v6888_v54  ;;  %v7035_v62 = vadd.f32 1.4214138, %v7027_v25  ;;  %v7003_v48 = vand.u32 2147483647, %v6888_v54 }
0x183e   : > { %9294 = vpow2.f32 %v7097_v3  ;;  %v7055_v3 = vadd.f32 -0.28449672, %v7047_v13  ;;  %vm6999_vm13 = vweird.f32 %v6888_v54  ;;  %v7050_v34 = vadd.f32 -0.28449672, %v7042_v23 }
0x183f   : > { %v7006_v25 = vor.u32 1.1754944e-38, %v7005_v43  ;;  %v7043_v13 = vmul.f32 %v7035_v62, %v13325_v10  ;;  %vm7004_vm6 = vcmp.eq.f32.partialorder %v7003_v48, 8.507059e+37  ;;  %9296 = vpow2.f32 %v7101_v16 }
0x1840   : > { %v7063_v56 = vmul.f32 %v7055_v3, %v13257_v58  ;;  %9298 = vpow2.f32 %v7109_v0  ;;  %v7090_v16 = vmul.f32 %v7082_v9, %v13134_v46 }
0x1841   : > { %v7051_v48 = vadd.f32 -0.28449672, %v7043_v13 }
0x1842   : > { %v7071_v36 = vadd.f32 0.2548296, %v7063_v56  ;;  %v7099_v46 = vmul.f32 1.442695, %v7090_v16 }
0x1843   : > { %v9293_v6 = vpop.eup %9292 }
0x1844   : > { %v6995_v11 = vmul.f32 %v9293_v6, %v6888_v54  ;;  %vm7000_vm8 = vweird.f32 %v9293_v6  ;;  %v13364_v59 = vpop.eup %9294  ;;  %v7088_v54 = vsub.f32 0.0, %v13307_v49  ;;  %v7079_v56 = vmul.f32 %v7071_v36, %v13257_v58 }
0x1845   : > { %vm7001_vm10 = vmor %vm6999_vm13, %vm7000_vm8 }
0x1846   : > { %v6996_v14 = vsub.f32 1.0, %v6995_v11  ;;  %v7054_v11 = vadd.f32 -0.28449672, %v7046_v2  ;;  %v7096_v3 = vmul.f32 %v7088_v54, %v13307_v49 }
0x1848   : > { %v6997_v20 = vmul.f32 %v9293_v6, %v6996_v14  ;;  %v7033_v14 = vadd.f32 1.4214138, %v7025_v42  ;;  %v7062_v37 = vmul.f32 %v7054_v11, %v13268_v35  ;;  %v7092_v42 = vmul.f32 %v7084_v8, %v13139_v18 }
0x1849   : > { %v7069_v11 = vadd.f32 0.2548296, %v7061_v61  ;;  %v7111_v13 = vmul.f32 1.442695, %v7096_v3 }
0x184a   : > { %v6998_v32 = vadd.f32 %v9293_v6, %v6997_v20  ;;  %v7041_v43 = vmul.f32 %v7033_v14, %v13339_v27  ;;  %v7070_v7 = vadd.f32 0.2548296, %v7062_v37  ;;  %v7103_v18 = vmul.f32 1.442695, %v7092_v42 }
0x184b   : > { %v7077_v58 = vmul.f32 %v7069_v11, %v13276_v31 }
0x184c   : > { %v7002_v60 = vsel %vm7001_vm10, %v9293_v6, %v6998_v32  ;;  %v7107_v6 = vmul.f32 1.442695, %v7094_v29  ;;  %v7049_v8 = vadd.f32 -0.28449672, %v7041_v43  ;;  %v7059_v29 = vmul.f32 %v7051_v48, %v13325_v10 }
0x184d   : > { %v7007_v20 = vsel %vm7004_vm6, %v7006_v25, %v7002_v60  ;;  %v7105_v60 = vmul.f32 1.442695, %v7093_v52  ;;  %v9297_v25 = vpop.eup %9296  ;;  %v7078_v14 = vmul.f32 %v7070_v7, %v13268_v35  ;;  %v7058_v52 = vmul.f32 %v7050_v34, %v13334_v24 }
0x184e   : > { %v7016_v2 = vmul.f32 1.0614054, %v7007_v20  ;;  %9300 = vpow2.f32 %v7107_v6  ;;  %v9299_v0 = vpop.eup %9298  ;;  %v7057_v9 = vmul.f32 %v7049_v8, %v13339_v27  ;;  %v7067_v37 = vadd.f32 0.2548296, %v7059_v29 }
0x184f   : > { %9302 = vpow2.f32 %v7105_v60  ;;  %v7076_v6 = vmul.f32 %v7068_v39, %v13310_v17  ;;  %v7066_v35 = vadd.f32 0.2548296, %v7058_v52 }
0x1850   : > { %v7024_v62 = vadd.f32 -1.4531521, %v7016_v2  ;;  %9304 = vpow2.f32 %v7103_v18  ;;  %v7119_v2 = vmul.f32 %v9299_v0, %v7079_v56  ;;  %v7075_v60 = vmul.f32 %v7067_v37, %v13325_v10 }
0x1851   : > { %9306 = vpow2.f32 %v7111_v13  ;;  %v7074_v50 = vmul.f32 %v7066_v35, %v13334_v24 }
0x1852   : > { %v7032_v51 = vmul.f32 %v7024_v62, %v7007_v20  ;;  %9308 = vpow2.f32 %v7099_v46  ;;  %v7065_v62 = vadd.f32 0.2548296, %v7057_v9  ;;  %v7127_v61 = vsub.f32 1.0, %v7119_v2 }
0x1853   : > { %v6856_v46 = vmul.f32 0.5, %v13266_v38 }
0x1854   : > { %v7040_v32 = vadd.f32 1.4214138, %v7032_v51  ;;  %v9301_v12 = vpop.eup %9300  ;;  %v7073_v16 = vmul.f32 %v7065_v62, %v13339_v27  ;;  %v7143_v17 = vsub.f32 0.0, %v7127_v61 }
0x1855   : > { %v7118_v42 = vmul.f32 %v9301_v12, %v7078_v14  ;;  %v9303_v43 = vpop.eup %9302 }
0x1856   : > { %v7048_v49 = vmul.f32 %v7040_v32, %v7007_v20  ;;  %v7117_v48 = vmul.f32 %v9303_v43, %v7077_v58  ;;  %v9305_v3 = vpop.eup %9304  ;;  %v7115_v32 = vmul.f32 %v9297_v25, %v7075_v60  ;;  %v7113_v10 = vmul.f32 %v13364_v59, %v7073_v16  ;;  %v9357_v16 = vld [vmem:[%s14210_s1 + $0x1a8] sm:$0xff] }
0x1857   : > { %v7126_v7 = vsub.f32 1.0, %v7118_v42  ;;  %v7116_v31 = vmul.f32 %v9305_v3, %v7076_v6  ;;  %v9307_v34 = vpop.eup %9306  ;;  %v7151_v14 = vsel %vm7135_vm4, %v7127_v61, %v7143_v17  ;;  %v6855_v58 = vmul.f32 0.5, %v13080_v28  ;;  %v9359_v17 = vld [vmem:[%s14210_s1 + $0x18] sm:$0xff] }
0x1858   : > { %v7056_v54 = vadd.f32 -0.28449672, %v7048_v49  ;;  %v7125_v8 = vsub.f32 1.0, %v7117_v48  ;;  %v9309_v56 = vpop.eup %9308  ;;  %v7123_v24 = vsub.f32 1.0, %v7115_v32  ;;  %v7159_v26 = vadd.f32 1.0, %v7151_v14  ;;  %v9361_v32 = vld [vmem:[%s14210_s1 + $0x108] sm:$0xff] }
0x1859   : > { %v7142_v29 = vsub.f32 0.0, %v7126_v7  ;;  %v7124_v13 = vsub.f32 1.0, %v7116_v31  ;;  %v7114_v49 = vmul.f32 %v9309_v56, %v7074_v50  ;;  %v7121_v2 = vsub.f32 1.0, %v7113_v10  ;;  %v9354_v31 = vld [vmem:[%s14210_s1 + $0x1a0] sm:$0xff]  ;;  %v9355_v50 = vld [vmem:[%s14210_s1 + $0xf8] sm:$0xff]  ;;  %v9369_v14 = vld [vmem:[%s14210_s1 + $0x1c8] sm:$0xff] }
0x185a   : > { %v7064_v23 = vmul.f32 %v7056_v54, %v7007_v20  ;;  %v7141_v39 = vsub.f32 0.0, %v7125_v8  ;;  %v7139_v59 = vsub.f32 0.0, %v7123_v24  ;;  %v7167_v33 = vmul.f32 %v7159_v26, %v6855_v58  ;;  %v9362_v56 = vld [vmem:[%s14210_s1 + $0x20] sm:$0xff]  ;;  %v9367_v10 = vld [vmem:[%s14210_s1 + $0x118] sm:$0xff] }
0x185b   : > { %v7150_v52 = vsel %vm7134_vm1, %v7126_v7, %v7142_v29  ;;  %v7140_v25 = vsub.f32 0.0, %v7124_v13  ;;  %v7122_v0 = vsub.f32 1.0, %v7114_v49  ;;  %v7137_v6 = vsub.f32 0.0, %v7121_v2  ;;  %v9353_v7 = vld [vmem:[%s14210_s1 + $0x8] sm:$0xff]  ;;  %v9364_v29 = vld [vmem:[%s14210_s1 + $0x110] sm:$0xff]  ;;  %v9366_v49 = vld [vmem:[%s14210_s1 + $0x1c0] sm:$0xff] }
0x185c   : > { %v7072_v36 = vadd.f32 0.2548296, %v7064_v23  ;;  %v7149_v54 = vsel %vm7133_vm14, %v7125_v8, %v7141_v39  ;;  %v7158_v37 = vadd.f32 1.0, %v7150_v52  ;;  %v6854_v23 = vmul.f32 0.5, %v13086_v44  ;;  %v9360_v8 = vld [vmem:[%s14210_s1 + $0x1b0] sm:$0xff]  ;;  %v9370_v39 = vld [vmem:[%s14210_s1 + $0x120] sm:$0xff] }
0x185d   : > { %v7148_v53 = vsel %vm7132_vm15, %v7124_v13, %v7140_v25  ;;  %v7138_v12 = vsub.f32 0.0, %v7122_v0  ;;  %v7157_v38 = vadd.f32 1.0, %v7149_v54  ;;  %v7147_v42 = vsel %vm7131_vm2, %v7123_v24, %v7139_v59  ;;  %v9365_v13 = vld [vmem:[%s14210_s1 + $0x28] sm:$0xff]  ;;  %v9371_v24 = vld [vmem:[%s14210_s1 + $0x38] sm:$0xff]  ;;  %v9374_v25 = vld [vmem:[%s14210_s1 + $0x40] sm:$0xff] }
0x185e   : > { %v7080_v51 = vmul.f32 %v7072_v36, %v7007_v20  ;;  %v7166_v28 = vmul.f32 %v7158_v37, %v6854_v23  ;;  %v7156_v35 = vadd.f32 1.0, %v7148_v53  ;;  %v6852_v44 = vmul.f32 0.5, %v13101_v47  ;;  %v9373_v52 = vld [vmem:[%s14210_s1 + $0x128] sm:$0xff]  ;;  %v9378_v26 = vld [vmem:[%s14210_s1 + $0x1e0] sm:$0xff]  ;;  %v9379_v54 = vld [vmem:[%s14210_s1 + $0x138] sm:$0xff] }
0x185f   : > { %v7146_v43 = vsel %vm7130_vm3, %v7122_v0, %v7138_v12  ;;  %v7165_v55 = vmul.f32 %v7157_v38, %v6853_v57  ;;  %v7155_v62 = vadd.f32 1.0, %v7147_v42  ;;  %v7145_v36 = vsel %vm7129_vm11, %v7121_v2, %v7137_v6  ;;  %v9375_v0 = vld [vmem:[%s14210_s1 + $0x1d8] sm:$0xff]  ;;  %v9380_v59 = vld [vmem:[%s14210_s1 + $0x50] sm:$0xff]  ;;  %v9381_v2 = vld [vmem:[%s14210_s1 + $0x1e8] sm:$0xff] }
0x1860   : > { %v7120_v18 = vmul.f32 %v9307_v34, %v7080_v51  ;;  %v7164_v21 = vmul.f32 %v7156_v35, %v6852_v44  ;;  %v7154_v61 = vadd.f32 1.0, %v7146_v43  ;;  %v6850_v48 = vmul.f32 0.5, %v13092_v41  ;;  %v9350_v41 = vld [vmem:[%s14210_s1] sm:$0xff]  ;;  %v9352_v51 = vld [vmem:[%s14210_s1 + $0xf0] sm:$0xff]  ;;  %v9385_v53 = vld [vmem:[%s14210_s1 + $0x148] sm:$0xff] }
0x1861   : > { %v7163_v19 = vmul.f32 %v7155_v62, %v6851_v15  ;;  %v7153_v60 = vadd.f32 1.0, %v7145_v36  ;;  %v6849_v47 = vmul.f32 0.5, %v13083_v40  ;;  %v9351_v40 = vld [vmem:[%s14210_s1 + $0x198] sm:$0xff]  ;;  %v9356_v34 = vld [vmem:[%s14210_s1 + $0x10] sm:$0xff]  ;;  %v9382_v58 = vld [vmem:[%s14210_s1 + $0x140] sm:$0xff] }
0x1862   : > { %v7128_v11 = vsub.f32 1.0, %v7120_v18  ;;  %v7162_v3 = vmul.f32 %v7154_v61, %v6850_v48  ;;  %v9358_v18 = vld [vmem:[%s14210_s1 + $0x100] sm:$0xff]  ;;  %v9384_v37 = vld [vmem:[%s14210_s1 + $0x1f0] sm:$0xff]  ;;  %v9387_v23 = vld [vmem:[%s14210_s1 + $0x1f8] sm:$0xff] }
0x1863   : > { %v7161_v30 = vmul.f32 %v7153_v60, %v6849_v47  ;;  %v9386_v12 = vld [vmem:[%s14210_s1 + $0x60] sm:$0xff]  ;;  %v9389_v38 = vld [vmem:[%s14210_s1 + $0x68] sm:$0xff]  ;;  %v9391_v6 = vld [vmem:[%s14210_s1 + $0x158] sm:$0xff] }
0x1864   : > { %v7144_v20 = vsub.f32 0.0, %v7128_v11  ;;  %v9390_v42 = vld [vmem:[%s14210_s1 + $0x200] sm:$0xff]  ;;  %v9392_v57 = vld [vmem:[%s14210_s1 + $0x70] sm:$0xff]  ;;  %v9395_v43 = vld [vmem:[%s14210_s1 + $0x78] sm:$0xff] }
0x1865   : > { %v9394_v35 = vld [vmem:[%s14210_s1 + $0x160] sm:$0xff]  ;;  %v9396_v44 = vld [vmem:[%s14210_s1 + $0x210] sm:$0xff]  ;;  %v9399_v15 = vld [vmem:[%s14210_s1 + $0x218] sm:$0xff] }
0x1866   : > { %v7152_v27 = vsel %vm7136_vm9, %v7128_v11, %v7144_v20  ;;  %v9363_v11 = vld [vmem:[%s14210_s1 + $0x1b8] sm:$0xff]  ;;  %v9368_v20 = vld [vmem:[%s14210_s1 + $0x30] sm:$0xff]  ;;  %v9398_v36 = vld [vmem:[%s14210_s1 + $0x80] sm:$0xff] }
0x1867   : > { %v7160_v9 = vadd.f32 1.0, %v7152_v27  ;;  %v9372_v27 = vld [vmem:[%s14210_s1 + $0x1d0] sm:$0xff]  ;;  %v9401_v48 = vld [vmem:[%s14210_s1 + $0x88] sm:$0xff]  ;;  %v9403_v60 = vld [vmem:[%s14210_s1 + $0x178] sm:$0xff] }
0x1869   : > { %v7168_v5 = vmul.f32 %v7160_v9, %v6856_v46  ;;  %v9376_v46 = vld [vmem:[%s14210_s1 + $0x130] sm:$0xff]  ;;  %v9377_v9 = vld [vmem:[%s14210_s1 + $0x48] sm:$0xff] }
0x186b   : > { %7177 = vmatpush.msrb.mxu0 %v7168_v5  ;;  %8664 = vmatpush.msrb.mxu2 %v7168_v5 }
0x186c   : > { %8665 = vmatpush.msrb.mxu3 %v7168_v5  ;;  %v9383_v5 = vld [vmem:[%s14210_s1 + $0x58] sm:$0xff] }
0x186d   : > { %7178 = vmatpush.msrb.mxu0 %v7167_v33  ;;  %8666 = vmatpush.msrb.mxu2 %v7167_v33 }
0x186e   : > { %8667 = vmatpush.msrb.mxu3 %v7167_v33  ;;  %v9388_v33 = vld [vmem:[%s14210_s1 + $0x150] sm:$0xff] }
0x186f   : > { %7179 = vmatpush.msrb.mxu0 %v7166_v28  ;;  %8668 = vmatpush.msrb.mxu2 %v7166_v28 }
0x1870   : > { %8669 = vmatpush.msrb.mxu3 %v7166_v28  ;;  %v9393_v28 = vld [vmem:[%s14210_s1 + $0x208] sm:$0xff] }
0x1871   : > { %7180 = vmatpush.msrb.mxu0 %v7165_v55  ;;  %8670 = vmatpush.msrb.mxu2 %v7165_v55 }
0x1872   : > { %8671 = vmatpush.msrb.mxu3 %v7165_v55  ;;  %v9397_v55 = vld [vmem:[%s14210_s1 + $0x168] sm:$0xff] }
0x1873   : > { %7181 = vmatpush.msrb.mxu0 %v7164_v21  ;;  %8672 = vmatpush.msrb.mxu2 %v7164_v21 }
0x1874   : > { %8673 = vmatpush.msrb.mxu3 %v7164_v21  ;;  %v9400_v21 = vld [vmem:[%s14210_s1 + $0x170] sm:$0xff] }
0x1875   : > { %7182 = vmatpush.msrb.mxu0 %v7163_v19  ;;  %8674 = vmatpush.msrb.mxu2 %v7163_v19 }
0x1876   : > { %8675 = vmatpush.msrb.mxu3 %v7163_v19  ;;  %v9402_v19 = vld [vmem:[%s14210_s1 + $0x220] sm:$0xff] }
0x1877   : > { %7183 = vmatpush.msrb.mxu0 %v7162_v3  ;;  %8676 = vmatpush.msrb.mxu2 %v7162_v3 }
0x1878   : > { %8677 = vmatpush.msrb.mxu3 %v7162_v3  ;;  %v9404_v3 = vld [vmem:[%s14210_s1 + $0x90] sm:$0xff] }
0x1879   : > { %7184 = vmatpush.msrb.mxu0 %v7161_v30  ;;  %8678 = vmatpush.msrb.mxu2 %v7161_v30 }
0x187a   : > { %8679 = vmatpush.msrb.mxu3 %v7161_v30  ;;  %8546 = vmatmul.msk.f32.vlgmr.msrb.gmra.mxu0 %vm962_vm12, %v9350_v41  ;;  %v9405_v41 = vld [vmem:[%s14210_s1 + $0x228] sm:$0xff] }
0x187b   : > { %8597 = vmatmul.msk.f32.vlgmr.msrb.gmra.mxu3 %vm962_vm12, %v9351_v40  ;;  %8576 = vmatmul.msk.f32.vlgmr.msrb.gmra.mxu2 %vm962_vm12, %v9352_v51  ;;  %v9406_v40 = vld [vmem:[%s14210_s1 + $0x180] sm:$0xff] }
0x1882   : > { %8547 = vmatmul.msk.f32.gmra.mxu0 %vm962_vm12, %v9353_v7  ;;  %v9407_v7 = vld [vmem:[%s14210_s1 + $0x98] sm:$0xff] }
0x1883   : > { %8598 = vmatmul.msk.f32.gmra.mxu3 %vm962_vm12, %v9354_v31  ;;  %8577 = vmatmul.msk.f32.gmra.mxu2 %vm962_vm12, %v9355_v50  ;;  %v9408_v50 = vld [vmem:[%s14210_s1 + $0x230] sm:$0xff] }
0x188a   : > { %8548 = vmatmul.msk.f32.gmra.mxu0 %vm962_vm12, %v9356_v34  ;;  %v9409_v34 = vld [vmem:[%s14210_s1 + $0x188] sm:$0xff] }
0x188b   : > { %8599 = vmatmul.msk.f32.gmra.mxu3 %vm962_vm12, %v9357_v16  ;;  %8578 = vmatmul.msk.f32.gmra.mxu2 %vm962_vm12, %v9358_v18  ;;  %v9410_v18 = vld [vmem:[%s14210_s1 + $0xa0] sm:$0xff] }
0x1892   : > { %8549 = vmatmul.msk.f32.gmra.mxu0 %vm962_vm12, %v9359_v17 }
0x1893   : > { %8600 = vmatmul.msk.f32.gmra.mxu3 %vm962_vm12, %v9360_v8  ;;  %8579 = vmatmul.msk.f32.gmra.mxu2 %vm962_vm12, %v9361_v32  ;;  %v9411_v8 = vld [vmem:[%s14210_s1 + $0x238] sm:$0xff]  ;;  %v9412_v32 = vld [vmem:[%s14210_s1 + $0x190] sm:$0xff] }
0x189a   : > { %8550 = vmatmul.msk.f32.gmra.mxu0 %vm962_vm12, %v9362_v56 }
0x189b   : > { %8601 = vmatmul.msk.f32.gmra.mxu3 %vm962_vm12, %v9363_v11  ;;  %8580 = vmatmul.msk.f32.gmra.mxu2 %vm962_vm12, %v9364_v29  ;;  %v9413_v11 = vld [vmem:[%s14210_s1 + $0xa8] sm:$0xff] }
0x18a2   : > { %8551 = vmatmul.msk.f32.gmra.mxu0 %vm962_vm12, %v9365_v13 }
0x18a3   : > { %8602 = vmatmul.msk.f32.gmra.mxu3 %vm962_vm12, %v9366_v49  ;;  %8581 = vmatmul.msk.f32.gmra.mxu2 %vm962_vm12, %v9367_v10  ;;  %v9414_v49 = vld [vmem:[%s14210_s1 + $0xb0] sm:$0xff] }
0x18aa   : > { %8552 = vmatmul.msk.f32.gmra.mxu0 %vm962_vm12, %v9368_v20 }
0x18ab   : > { %8603 = vmatmul.msk.f32.gmra.mxu3 %vm962_vm12, %v9369_v14  ;;  %8582 = vmatmul.msk.f32.gmra.mxu2 %vm962_vm12, %v9370_v39  ;;  %v9415_v39 = vld [vmem:[%s14210_s1 + $0xb8] sm:$0xff] }
0x18b2   : > { %8553 = vmatmul.msk.f32.gmra.mxu0 %vm962_vm12, %v9371_v24  ;;  %v8630_v24 = vld [vmem:[%s14221_s12 + $0x38] sm:$0xff] }
0x18b3   : > { %8604 = vmatmul.msk.f32.gmra.mxu3 %vm962_vm12, %v9372_v27  ;;  %8583 = vmatmul.msk.f32.gmra.mxu2 %vm962_vm12, %v9373_v52 }
0x18b4   : > { %7632 = vmatpush.msra.mxu2 %v8630_v24 }
0x18ba   : > { %8554 = vmatmul.msk.f32.gmra.mxu0 %vm962_vm12, %v9374_v25 }
0x18bb   : > { %8605 = vmatmul.msk.f32.gmra.mxu3 %vm962_vm12, %v9375_v0  ;;  %8584 = vmatmul.msk.f32.gmra.mxu2 %vm962_vm12, %v9376_v46  ;;  %v9416_v0 = vld [vmem:[%s14210_s1 + $0xc0] sm:$0xff] }
0x18c2   : > { %8555 = vmatmul.msk.f32.gmra.mxu0 %vm962_vm12, %v9377_v9 }
0x18c3   : > { %8606 = vmatmul.msk.f32.gmra.mxu3 %vm962_vm12, %v9378_v26  ;;  %8585 = vmatmul.msk.f32.gmra.mxu2 %vm962_vm12, %v9379_v54  ;;  %v9417_v54 = vld [vmem:[%s14210_s1 + $0xc8] sm:$0xff] }
0x18ca   : > { %8556 = vmatmul.msk.f32.gmra.mxu0 %vm962_vm12, %v9380_v59 }
0x18cb   : > { %8607 = vmatmul.msk.f32.gmra.mxu3 %vm962_vm12, %v9381_v2  ;;  %8586 = vmatmul.msk.f32.gmra.mxu2 %vm962_vm12, %v9382_v58  ;;  %v9418_v58 = vld [vmem:[%s14210_s1 + $0xd0] sm:$0xff] }
0x18d2   : > { %8557 = vmatmul.msk.f32.gmra.mxu0 %vm962_vm12, %v9383_v5 }
0x18d3   : > { %8608 = vmatmul.msk.f32.gmra.mxu3 %vm962_vm12, %v9384_v37  ;;  %8587 = vmatmul.msk.f32.gmra.mxu2 %vm962_vm12, %v9385_v53 }
0x18da   : > { %8558 = vmatmul.msk.f32.gmra.mxu0 %vm962_vm12, %v9386_v12  ;;  %v9419_v12 = vld [vmem:[%s14210_s1 + $0xd8] sm:$0xff] }
0x18db   : > { %8609 = vmatmul.msk.f32.gmra.mxu3 %vm962_vm12, %v9387_v23  ;;  %8588 = vmatmul.msk.f32.gmra.mxu2 %vm962_vm12, %v9388_v33 }
0x18e2   : > { %8559 = vmatmul.msk.f32.gmra.mxu0 %vm962_vm12, %v9389_v38  ;;  %v9420_v38 = vld [vmem:[%s14210_s1 + $0xe0] sm:$0xff] }
0x18e3   : > { %8610 = vmatmul.msk.f32.gmra.mxu3 %vm962_vm12, %v9390_v42  ;;  %8589 = vmatmul.msk.f32.gmra.mxu2 %vm962_vm12, %v9391_v6  ;;  %v8629_v42 = vld [vmem:[%s14221_s12 + $0x30] sm:$0xff] }
0x18e4   : > { %7633 = vmatpush.msra.mxu2 %v8629_v42 }
0x18ea   : > { %8560 = vmatmul.msk.f32.gmra.mxu0 %vm962_vm12, %v9392_v57 }
0x18eb   : > { %8611 = vmatmul.msk.f32.gmra.mxu3 %vm962_vm12, %v9393_v28  ;;  %8590 = vmatmul.msk.f32.gmra.mxu2 %vm962_vm12, %v9394_v35  ;;  %v9421_v35 = vld [vmem:[%s14210_s1 + $0xe8] sm:$0xff] }
0x18f2   : > { %8561 = vmatmul.msk.f32.gmra.mxu0 %vm962_vm12, %v9395_v43 }
0x18f3   : > { %8612 = vmatmul.msk.f32.gmra.mxu3 %vm962_vm12, %v9396_v44  ;;  %8591 = vmatmul.msk.f32.gmra.mxu2 %vm962_vm12, %v9397_v55  ;;  %v13758_v44 = vld [vmem:[%s14220_s11 + $0x9] ss:$0 sm:$0xff]  ;;  %v13763_v55 = vld [vmem:[%s14220_s11 + $0xa] ss:$0 sm:$0xff] }
0x18f7   : > { %v13599_v62 = vpop.f32.mrf.mxu0 }
0x18fa   : > { %8562 = vmatmul.msk.f32.gmra.mxu0 %vm962_vm12, %v9398_v36 }
0x18fb   : > { %8613 = vmatmul.msk.f32.gmra.mxu3 %vm962_vm12, %v9399_v15  ;;  %8592 = vmatmul.msk.f32.gmra.mxu2 %vm962_vm12, %v9400_v21 }
0x18fe   : > { %v13633_v30 = vpop.f32.mrf.mxu2  ;;  %v13689_v20 = vpop.f32.mrf.mxu3 }
0x18ff   : > { %v13613_v61 = vpop.f32.mrf.mxu0 }
0x1902   : > { %8563 = vmatmul.msk.f32.gmra.mxu0 %vm962_vm12, %v9401_v48 }
0x1903   : > { %8614 = vmatmul.msk.f32.gmra.mxu3 %vm962_vm12, %v9402_v19  ;;  %8593 = vmatmul.msk.f32.gmra.mxu2 %vm962_vm12, %v9403_v60 }
0x1906   : > { %v13649_v31 = vpop.f32.mrf.mxu2  ;;  %v13700_v52 = vpop.f32.mrf.mxu3 }
0x1907   : > { %v13627_v47 = vpop.f32.mrf.mxu0 }
0x190a   : > { %8564 = vmatmul.msk.f32.gmra.mxu0 %vm962_vm12, %v9404_v3 }
0x190b   : > { %8615 = vmatmul.msk.f32.gmra.mxu3 %vm962_vm12, %v9405_v41  ;;  %8594 = vmatmul.msk.f32.gmra.mxu2 %vm962_vm12, %v9406_v40 }
0x190e   : > { %v13665_v17 = vpop.f32.mrf.mxu2  ;;  %v13712_v26 = vpop.f32.mrf.mxu3 }
0x190f   : > { %v13643_v51 = vpop.f32.mrf.mxu0 }
0x1912   : > { %8565 = vmatmul.msk.f32.gmra.mxu0 %vm962_vm12, %v9407_v7 }
0x1913   : > { %8616 = vmatmul.msk.f32.gmra.mxu3 %vm962_vm12, %v9408_v50  ;;  %8595 = vmatmul.msk.f32.gmra.mxu2 %vm962_vm12, %v9409_v34 }
0x1916   : > { %v13681_v29 = vpop.f32.mrf.mxu2  ;;  %v13726_v5 = vpop.f32.mrf.mxu3 }
0x1917   : > { %v13659_v16 = vpop.f32.mrf.mxu0 }
0x191a   : > { %8566 = vmatmul.msk.f32.gmra.mxu0 %vm962_vm12, %v9410_v18 }
0x191b   : > { %8617 = vmatmul.msk.f32.gmra.mxu3 %vm962_vm12, %v9411_v8  ;;  %8596 = vmatmul.msk.f32.gmra.mxu2 %vm962_vm12, %v9412_v32 }
0x191e   : > { %v13687_v10 = vpop.f32.mrf.mxu2  ;;  %v13734_v23 = vpop.f32.mrf.mxu3 }
0x191f   : > { %v13675_v56 = vpop.f32.mrf.mxu0  ;;  %14462 = vst [vmem:[#allocation21_spill] sm:$0xff] %v13734_v23 }
0x1922   : > { %8567 = vmatmul.msk.f32.gmra.mxu0 %vm962_vm12, %v9413_v11  ;;  %v8628_v11 = vld [vmem:[%s14221_s12 + $0x28] sm:$0xff] }
0x1923   : > { %7634 = vmatpush.msra.mxu2 %v8628_v11 }
0x1925   : > { %7635 = vmatpush.msra.mxu2 %v8627_v1 }
0x1926   : > { %v13698_v27 = vpop.f32.mrf.mxu2  ;;  %v13745_v57 = vpop.f32.mrf.mxu3 }
0x1927   : > { %v7204_v13 = vpop.f32.mrf.mxu0 }
0x1928   : > { %v7413_v15 = vmul.f32 %v13758_v44, %v7204_v13 }
0x192a   : > { %8568 = vmatmul.msk.f32.gmra.mxu0 %vm962_vm12, %v9414_v49 }
0x192e   : > { %v13708_v46 = vpop.f32.mrf.mxu2  ;;  %v13767_v48 = vpop.f32.mrf.mxu3 }
0x192f   : > { %v7207_v14 = vpop.f32.mrf.mxu0 }
0x1930   : > { %v7414_v41 = vmul.f32 %v13758_v44, %v7207_v14 }
0x1932   : > { %8569 = vmatmul.msk.f32.gmra.mxu0 %vm962_vm12, %v9415_v39 }
0x1936   : > { %v13720_v2 = vpop.f32.mrf.mxu2  ;;  %v13773_v50 = vpop.f32.mrf.mxu3 }
0x1937   : > { %v13702_v25 = vpop.f32.mrf.mxu0 }
0x193a   : > { %8570 = vmatmul.msk.f32.gmra.mxu0 %vm962_vm12, %v9416_v0 }
0x193e   : > { %v7300_v53 = vpop.f32.mrf.mxu2  ;;  %v13777_v8 = vpop.f32.mrf.mxu3 }
0x193f   : > { %v13710_v9 = vpop.f32.mrf.mxu0 }
0x1942   : > { %8571 = vmatmul.msk.f32.gmra.mxu0 %vm962_vm12, %v9417_v54 }
0x1946   : > { %v7303_v6 = vpop.f32.mrf.mxu2  ;;  %v13784_v49 = vpop.f32.mrf.mxu3 }
0x1947   : > { %v13718_v59 = vpop.f32.mrf.mxu0 }
0x194a   : > { %8572 = vmatmul.msk.f32.gmra.mxu0 %vm962_vm12, %v9418_v58 }
0x194e   : > { %v13753_v43 = vpop.f32.mrf.mxu2  ;;  %v13792_v0 = vpop.f32.mrf.mxu3 }
0x194f   : > { %v13728_v37 = vpop.f32.mrf.mxu0 }
0x1952   : > { %8573 = vmatmul.msk.f32.gmra.mxu0 %vm962_vm12, %v9419_v12 }
0x1956   : > { %v13769_v3 = vpop.f32.mrf.mxu2  ;;  %v13798_v12 = vpop.f32.mrf.mxu3 }
0x1957   : > { %v13736_v33 = vpop.f32.mrf.mxu0  ;;  %14463 = vst [vmem:[#allocation15_spill] sm:$0xff] %v13798_v12 }
0x195a   : > { %8574 = vmatmul.msk.f32.gmra.mxu0 %vm962_vm12, %v9420_v38 }
0x195e   : > { %v13775_v18 = vpop.f32.mrf.mxu2 }
0x195f   : > { %v13747_v28 = vpop.f32.mrf.mxu0 }
0x1962   : > { %8575 = vmatmul.msk.f32.gmra.mxu0 %vm962_vm12, %v9421_v35  ;;  %v13804_v35 = vpop.f32.mrf.mxu3 }
0x1963   : > { %14464 = vst [vmem:[#allocation24_spill] sm:$0xff] %v13804_v35 }
0x1966   : > { %v13782_v13 = vpop.f32.mrf.mxu2 }
0x1967   : > { %v7228_v36 = vpop.f32.mrf.mxu0 }
0x1968   : > { %v7434_v21 = vmul.f32 %v13763_v55, %v7228_v36  ;;  %v13809_v36 = vld [vmem:[%s14220_s11 + $0xc] ss:$0 sm:$0xff] }
0x1969   : > { %v7477_v23 = vmul.f32 %v13809_v36, %v13649_v31  ;;  %v13846_v31 = vld [vmem:[%s14220_s11 + $0xe] ss:$0 sm:$0xff] }
0x196a   : > { %v7442_v19 = vadd.f32 %v7434_v21, %v7413_v15  ;;  %v13814_v15 = vld [vmem:[%s14220_s11 + $0xb] ss:$0 sm:$0xff]  ;;  %v7378_v22 = vpop.f32.mrf.mxu3 }
0x196e   : > { %v13788_v39 = vpop.f32.mrf.mxu2 }
0x196f   : > { %v7231_v60 = vpop.f32.mrf.mxu0 }
0x1970   : > { %v7435_v40 = vmul.f32 %v13763_v55, %v7231_v60 }
0x1972   : > { %v7443_v7 = vadd.f32 %v7435_v40, %v7414_v41  ;;  %v7476_v41 = vmul.f32 %v13809_v36, %v13633_v30  ;;  %v13822_v40 = vld [vmem:[%s14220_s11 + $0xd] ss:$0 sm:$0xff] }
0x1973   : > { %v7497_v63 = vmul.f32 %v13822_v40, %v7300_v53  ;;  %v7407_v53 = vmul.f32 %v13758_v44, %v13599_v62  ;;  %v13852_v62 = vld [vmem:[%s14220_s11 + $0xf] ss:$0 sm:$0xff] }
0x1976   : > { %v13796_v58 = vpop.f32.mrf.mxu2 }
0x1977   : > { %v7234_v34 = vpop.f32.mrf.mxu0 }
0x1978   : > { %v7449_v1 = vmul.f32 %v13814_v15, %v7234_v34 }
0x197e   : > { %v13802_v42 = vpop.f32.mrf.mxu2 }
0x197f   : > { %v7237_v32 = vpop.f32.mrf.mxu0 }
0x1986   : > { %v13824_v45 = vpop.f32.mrf.mxu2 }
0x1987   : > { %v13786_v14 = vpop.f32.mrf.mxu0  ;;  %14465 = vst [vmem:[#allocation17_spill] sm:$0xff] %v13824_v45 }
0x198f   : > { %v13790_v24 = vpop.f32.mrf.mxu0 }
0x1997   : > { %v13794_v54 = vpop.f32.mrf.mxu0 }
0x199f   : > { %v13800_v38 = vpop.f32.mrf.mxu0 }
0x19a7   : > { %v7252_v21 = vpop.f32.mrf.mxu0 }
0x19a8   : > { %v7455_v60 = vmul.f32 %v13814_v15, %v7252_v21 }
0x19aa   : > { %v7463_v11 = vadd.f32 %v7455_v60, %v7442_v19  ;;  %v7428_v19 = vmul.f32 %v13763_v55, %v13702_v25 }
0x19ac   : > { %v7484_v4 = vadd.f32 %v7476_v41, %v7463_v11  ;;  %v7498_v41 = vmul.f32 %v13822_v40, %v7303_v6  ;;  %v7436_v11 = vadd.f32 %v7428_v19, %v7407_v53  ;;  %v7429_v6 = vmul.f32 %v13763_v55, %v13710_v9  ;;  %v13863_v19 = vld [vmem:[%s14220_s11 + $0x10] ss:$0 sm:$0xff]  ;;  %v13872_v9 = vld [vmem:[%s14220_s11 + $0x11] ss:$0 sm:$0xff] }
0x19ad   : > { %v7450_v53 = vmul.f32 %v13814_v15, %v7237_v32 }
0x19ae   : > { %v13830_v21 = vadd.f32 %v7497_v63, %v7484_v4  ;;  %v7330_v63 = vpop.f32.mrf.mxu2  ;;  %v7457_v12 = vadd.f32 %v7449_v1, %v7436_v11 }
0x19af   : > { %v7255_v30 = vpop.f32.mrf.mxu0 }
0x19b0   : > { %v7456_v35 = vmul.f32 %v13814_v15, %v7255_v30 }
0x19b2   : > { %v7464_v60 = vadd.f32 %v7456_v35, %v7443_v7  ;;  %v7381_v7 = vpop.f32.mrf.mxu3  ;;  %v7408_v35 = vmul.f32 %v13758_v44, %v13613_v61 }
0x19b4   : > { %v7485_v4 = vadd.f32 %v7477_v23, %v7464_v60  ;;  %v7491_v23 = vmul.f32 %v13822_v40, %v13665_v17  ;;  %v7512_v60 = vmul.f32 %v13846_v31, %v13753_v43  ;;  %v7533_v17 = vmul.f32 %v13852_v62, %v7330_v63 }
0x19b5   : > { %v7437_v1 = vadd.f32 %v7429_v6, %v7408_v35  ;;  %v7575_v43 = vmul.f32 %v13872_v9, %v7378_v22  ;;  %v7492_v63 = vmul.f32 %v13822_v40, %v13681_v29  ;;  %v7409_v35 = vmul.f32 %v13758_v44, %v13627_v47 }
0x19b6   : > { %v13841_v45 = vadd.f32 %v7498_v41, %v7485_v4  ;;  %v7333_v11 = vpop.f32.mrf.mxu2  ;;  %v7451_v22 = vmul.f32 %v13814_v15, %v13786_v14  ;;  %v7493_v14 = vmul.f32 %v13822_v40, %v13687_v10 }
0x19b7   : > { %v7258_v30 = vpop.f32.mrf.mxu0 }
0x19b8   : > { %v7470_v25 = vmul.f32 %v13809_v36, %v7258_v30  ;;  %v7458_v30 = vadd.f32 %v7450_v53, %v7437_v1 }
0x19ba   : > { %v7478_v34 = vadd.f32 %v7470_v25, %v7457_v12  ;;  %v7554_v12 = vmul.f32 %v13863_v19, %v13745_v57  ;;  %v7513_v57 = vmul.f32 %v13846_v31, %v13769_v3 }
0x19bc   : > { %v7499_v41 = vadd.f32 %v7491_v23, %v7478_v34  ;;  %v7430_v23 = vmul.f32 %v13763_v55, %v13718_v59  ;;  %v7555_v59 = vmul.f32 %v13863_v19, %v13767_v48  ;;  %v7514_v48 = vmul.f32 %v13846_v31, %v13775_v18 }
0x19be   : > { %v7520_v61 = vadd.f32 %v7512_v60, %v7499_v41  ;;  %v7384_v60 = vpop.f32.mrf.mxu3  ;;  %v7438_v29 = vadd.f32 %v7430_v23, %v7409_v35 }
0x19bf   : > { %v7261_v4 = vpop.f32.mrf.mxu0 }
0x19c0   : > { %v7541_v25 = vadd.f32 %v7533_v17, %v7520_v61  ;;  %v7471_v32 = vmul.f32 %v13809_v36, %v7261_v4  ;;  %v7534_v17 = vmul.f32 %v13852_v62, %v7333_v11  ;;  %v7459_v47 = vadd.f32 %v7451_v22, %v7438_v29 }
0x19c1   : > { %v7431_v11 = vmul.f32 %v13763_v55, %v13728_v37  ;;  %v7556_v37 = vmul.f32 %v13863_v19, %v13773_v50  ;;  %v7577_v22 = vmul.f32 %v13872_v9, %v7384_v60  ;;  %v7515_v50 = vmul.f32 %v13846_v31, %v13782_v13 }
0x19c2   : > { %v7562_v6 = vadd.f32 %v7554_v12, %v7541_v25  ;;  %v7479_v34 = vadd.f32 %v7471_v32, %v7458_v30  ;;  %v7576_v12 = vmul.f32 %v13872_v9, %v7381_v7  ;;  %v7336_v30 = vpop.f32.mrf.mxu2  ;;  %v7410_v32 = vmul.f32 %v13758_v44, %v13643_v51 }
0x19c3   : > { %v7452_v7 = vmul.f32 %v13814_v15, %v13790_v24  ;;  %v7494_v24 = vmul.f32 %v13822_v40, %v13698_v27  ;;  %v7453_v60 = vmul.f32 %v13814_v15, %v13794_v54 }
0x19c4   : > { %v7583_v53 = vadd.f32 %v7575_v43, %v7562_v6  ;;  %v7500_v41 = vadd.f32 %v7492_v63, %v7479_v34  ;;  %v7535_v6 = vmul.f32 %v13852_v62, %v7336_v30  ;;  %v7439_v10 = vadd.f32 %v7431_v11, %v7410_v32 }
0x19c5   : > { %v7454_v32 = vmul.f32 %v13814_v15, %v13800_v38 }
0x19c6   : > { %v7521_v1 = vadd.f32 %v7513_v57, %v7500_v41  ;;  %8631 = vmatmul.msk.f32.vlgmr.msra.gmra.mxu2 %vm577_vm0, %v7583_v53  ;;  %v7387_v34 = vpop.f32.mrf.mxu3  ;;  %v7460_v51 = vadd.f32 %v7452_v7, %v7439_v10  ;;  %v7432_v41 = vmul.f32 %v13763_v55, %v13736_v33  ;;  %v7557_v33 = vmul.f32 %v13863_v19, %v13777_v8 }
0x19c7   : > { %v7264_v61 = vpop.f32.mrf.mxu0  ;;  %v7578_v13 = vmul.f32 %v13872_v9, %v7387_v34  ;;  %v7516_v8 = vmul.f32 %v13846_v31, %v13788_v39  ;;  %v7496_v34 = vmul.f32 %v13822_v40, %v13720_v2 }
0x19c8   : > { %v7542_v3 = vadd.f32 %v7534_v17, %v7521_v1  ;;  %v7472_v4 = vmul.f32 %v13809_v36, %v7264_v61  ;;  %v7411_v1 = vmul.f32 %v13758_v44, %v13659_v16 }
0x19ca   : > { %v7563_v43 = vadd.f32 %v7555_v59, %v7542_v3  ;;  %v7480_v25 = vadd.f32 %v7472_v4, %v7459_v47  ;;  %v7536_v47 = vmul.f32 %v13852_v62, %v13689_v20  ;;  %v7440_v27 = vadd.f32 %v7432_v41, %v7411_v1  ;;  %v14466_v41 = vld [vmem:[#allocation15_spill] sm:$0xff] }
0x19cb   : > { %v7433_v20 = vmul.f32 %v13763_v55, %v13747_v28  ;;  %v8642_v28 = vld [vmem:[%s14222_s13 + $0x38] sm:$0xff] }
0x19cc   : > { %v7584_v63 = vadd.f32 %v7576_v12, %v7563_v43  ;;  %v7501_v23 = vadd.f32 %v7493_v14, %v7480_v25  ;;  %v7461_v4 = vadd.f32 %v7453_v60, %v7440_v27  ;;  %v7495_v14 = vmul.f32 %v13822_v40, %v13708_v46  ;;  %8022 = vmatpush.msra.mxu3 %v8642_v28 }
0x19cd   : > { %v7412_v25 = vmul.f32 %v13758_v44, %v13675_v56  ;;  %v8641_v56 = vld [vmem:[%s14222_s13 + $0x30] sm:$0xff]  ;;  %v7558_v44 = vmul.f32 %v13863_v19, %v13784_v49  ;;  %v7518_v49 = vmul.f32 %v13846_v31, %v13802_v42 }
0x19ce   : > { %v7522_v35 = vadd.f32 %v7514_v48, %v7501_v23  ;;  %8632 = vmatmul.msk.f32.gmra.mxu2 %vm577_vm0, %v7584_v63  ;;  %v7390_v3 = vpop.f32.mrf.mxu3  ;;  %v7537_v63 = vmul.f32 %v13852_v62, %v13700_v52  ;;  %8023 = vmatpush.msra.mxu3 %v8641_v56 }
0x19cf   : > { %v7267_v57 = vpop.f32.mrf.mxu0  ;;  %v7441_v46 = vadd.f32 %v7433_v20, %v7412_v25  ;;  %v7579_v52 = vmul.f32 %v13872_v9, %v7390_v3  ;;  %v7526_v40 = vadd.f32 %v7518_v49, %v13830_v21 }
0x19d0   : > { %v7543_v18 = vadd.f32 %v7535_v6, %v7522_v35  ;;  %v7473_v53 = vmul.f32 %v13809_v36, %v7267_v57 }
0x19d1   : > { %v7462_v39 = vadd.f32 %v7454_v32, %v7441_v46 }
0x19d2   : > { %v7564_v17 = vadd.f32 %v7556_v37, %v7543_v18  ;;  %v7481_v29 = vadd.f32 %v7473_v53, %v7460_v51  ;;  %v7517_v37 = vmul.f32 %v13846_v31, %v13796_v58  ;;  %v7539_v58 = vmul.f32 %v13852_v62, %v13726_v5 }
0x19d4   : > { %v7585_v59 = vadd.f32 %v7577_v22, %v7564_v17  ;;  %v7502_v61 = vadd.f32 %v7494_v24, %v7481_v29  ;;  %v7538_v22 = vmul.f32 %v13852_v62, %v13712_v26  ;;  %v7560_v17 = vmul.f32 %v13863_v19, %v14466_v41  ;;  %v14467_v29 = vld [vmem:[#allocation17_spill] sm:$0xff] }
0x19d5   : > { %v7547_v26 = vadd.f32 %v7539_v58, %v7526_v40  ;;  %v7519_v1 = vmul.f32 %v13846_v31, %v14467_v29  ;;  %v8639_v29 = vld [vmem:[%s14222_s13 + $0x20] sm:$0xff] }
0x19d6   : > { %v7523_v12 = vadd.f32 %v7515_v50, %v7502_v61  ;;  %8633 = vmatmul.msk.f32.gmra.mxu2 %vm577_vm0, %v7585_v59  ;;  %v7393_v6 = vpop.f32.mrf.mxu3  ;;  %v14468_v59 = vld [vmem:[#allocation21_spill] sm:$0xff]  ;;  %v14469_v61 = vld [vmem:[#allocation24_spill] sm:$0xff] }
0x19d7   : > { %v7270_v16 = vpop.f32.mrf.mxu0  ;;  %v7580_v2 = vmul.f32 %v13872_v9, %v7393_v6  ;;  %v7527_v21 = vadd.f32 %v7519_v1, %v13841_v45  ;;  %v7540_v5 = vmul.f32 %v13852_v62, %v14468_v59 }
0x19d8   : > { %v7544_v30 = vadd.f32 %v7536_v47, %v7523_v12  ;;  %v7474_v54 = vmul.f32 %v13809_v36, %v7270_v16  ;;  %v7561_v47 = vmul.f32 %v13863_v19, %v14469_v61 }
0x19d9   : > { %v7548_v12 = vadd.f32 %v7540_v5, %v7527_v21 }
0x19da   : > { %v7482_v11 = vadd.f32 %v7474_v54, %v7461_v4  ;;  %v7565_v43 = vadd.f32 %v7557_v33, %v7544_v30 }
0x19db   : > { %v7569_v31 = vadd.f32 %v7561_v47, %v7548_v12 }
0x19dc   : > { %v7503_v48 = vadd.f32 %v7495_v14, %v7482_v11  ;;  %v7586_v7 = vadd.f32 %v7578_v13, %v7565_v43 }
0x19de   : > { %v7524_v23 = vadd.f32 %v7516_v8, %v7503_v48  ;;  %8634 = vmatmul.msk.f32.gmra.mxu2 %vm577_vm0, %v7586_v7  ;;  %v7396_v24 = vpop.f32.mrf.mxu3 }
0x19df   : > { %v7273_v55 = vpop.f32.mrf.mxu0  ;;  %v7581_v60 = vmul.f32 %v13872_v9, %v7396_v24 }
0x19e0   : > { %v7545_v38 = vadd.f32 %v7537_v63, %v7524_v23  ;;  %v7475_v15 = vmul.f32 %v13809_v36, %v7273_v55  ;;  %v7559_v36 = vmul.f32 %v13863_v19, %v13792_v0  ;;  %v7568_v0 = vadd.f32 %v7560_v17, %v7547_v26 }
0x19e2   : > { %v7483_v10 = vadd.f32 %v7475_v15, %v7462_v39  ;;  %v7566_v35 = vadd.f32 %v7558_v44, %v7545_v38  ;;  %v7589_v27 = vadd.f32 %v7581_v60, %v7568_v0 }
0x19e4   : > { %v7504_v57 = vadd.f32 %v7496_v34, %v7483_v10  ;;  %v7587_v51 = vadd.f32 %v7579_v52, %v7566_v35 }
0x19e6   : > { %v7525_v18 = vadd.f32 %v7517_v37, %v7504_v57  ;;  %8635 = vmatmul.msk.f32.gmra.mxu2 %vm577_vm0, %v7587_v51  ;;  %v7399_v33 = vpop.f32.mrf.mxu3 }
0x19e7   : > { %v7582_v3 = vmul.f32 %v13872_v9, %v7399_v33 }
0x19e8   : > { %v7546_v53 = vadd.f32 %v7538_v22, %v7525_v18 }
0x19e9   : > { %v7590_v16 = vadd.f32 %v7582_v3, %v7569_v31 }
0x19ea   : > { %v7567_v42 = vadd.f32 %v7559_v36, %v7546_v53 }
0x19ec   : > { %v7588_v50 = vadd.f32 %v7580_v2, %v7567_v42  ;;  %v8640_v2 = vld [vmem:[%s14222_s13 + $0x28] sm:$0xff] }
0x19ed   : > { %8024 = vmatpush.msra.mxu3 %v8640_v2 }
0x19ee   : > { %8636 = vmatmul.msk.f32.gmra.mxu2 %vm577_vm0, %v7588_v50 }
0x19ef   : > { %8025 = vmatpush.msra.mxu3 %v8639_v29 }
0x19f6   : > { %8637 = vmatmul.msk.f32.gmra.mxu2 %vm577_vm0, %v7589_v27 }
0x19fe   : > { %8638 = vmatmul.msk.f32.gmra.mxu2 %vm577_vm0, %v7590_v16 }
0x1a49   : > { %v13979_v4 = vpop.f32.mrf.mxu2 }
0x1a4a   : > { %v13982_v45 = vmul.f32 0.70710677, %v13979_v4 }
0x1a4c   : > { %v7677_v62 = vand.u32 2147483647, %v13982_v45  ;;  %vm7941_vm2 = vcmp.ge.f32.partialorder %v13982_v45, 0.0 }
0x1a4e   : > { %v7685_v13 = vmul.f32 0.3275911, %v7677_v62  ;;  %v7893_v52 = vsub.f32 0.0, %v7677_v62 }
0x1a50   : > { %v7693_v19 = vadd.f32 1.0, %v7685_v13  ;;  %v7901_v49 = vmul.f32 %v7893_v52, %v7677_v62  ;;  %v7661_v52 = vmul.f32 0.5, %v13979_v4 }
0x1a51   : > { %v13985_v30 = vpop.f32.mrf.mxu2 }
0x1a52   : > { %9310 = vrcp.f32 %v7693_v19  ;;  %v13988_v54 = vmul.f32 0.70710677, %v13985_v30  ;;  %v7712_v48 = vand.u32 2147483648, %v7693_v19  ;;  %v7710_v46 = vand.u32 2147483647, %v7693_v19 }
0x1a53   : > { %vm7706_vm5 = vweird.f32 %v7693_v19  ;;  %v7909_v24 = vmul.f32 1.442695, %v7901_v49 }
0x1a54   : > { %v13991_v9 = vand.u32 2147483647, %v13988_v54  ;;  %v7713_v56 = vor.u32 1.1754944e-38, %v7712_v48  ;;  %vm7711_vm8 = vcmp.eq.f32.partialorder %v7710_v46, 8.507059e+37 }
0x1a56   : > { %v7686_v14 = vmul.f32 0.3275911, %v13991_v9  ;;  %v7894_v50 = vsub.f32 0.0, %v13991_v9 }
0x1a58   : > { %v9311_v20 = vpop.eup %9310  ;;  %v7694_v43 = vadd.f32 1.0, %v7686_v14  ;;  %v7902_v16 = vmul.f32 %v7894_v50, %v13991_v9 }
0x1a59   : > { %v7702_v11 = vmul.f32 %v9311_v20, %v7693_v19  ;;  %v13994_v25 = vpop.f32.mrf.mxu2  ;;  %vm7707_vm12 = vweird.f32 %v9311_v20 }
0x1a5a   : > { %v13997_v8 = vmul.f32 0.70710677, %v13994_v25  ;;  %9312 = vrcp.f32 %v7694_v43  ;;  %vm7708_vm7 = vmor %vm7706_vm5, %vm7707_vm12  ;;  %v7727_v57 = vand.u32 2147483648, %v7694_v43  ;;  %v7725_v22 = vand.u32 2147483647, %v7694_v43 }
0x1a5b   : > { %v7703_v32 = vsub.f32 1.0, %v7702_v11  ;;  %vm7721_vm10 = vweird.f32 %v7694_v43 }
0x1a5c   : > { %v14000_v7 = vand.u32 2147483647, %v13997_v8  ;;  %v7728_v41 = vor.u32 1.1754944e-38, %v7727_v57  ;;  %vm7726_vm4 = vcmp.eq.f32.partialorder %v7725_v22, 8.507059e+37 }
0x1a5d   : > { %v7704_v63 = vmul.f32 %v9311_v20, %v7703_v32 }
0x1a5e   : > { %v7687_v23 = vmul.f32 0.3275911, %v14000_v7  ;;  %v7895_v27 = vsub.f32 0.0, %v14000_v7 }
0x1a5f   : > { %v7705_v28 = vadd.f32 %v9311_v20, %v7704_v63 }
0x1a60   : > { %v14003_v44 = vadd.f32 1.0, %v7687_v23  ;;  %v9313_v55 = vpop.eup %9312  ;;  %v7903_v11 = vmul.f32 %v7895_v27, %v14000_v7  ;;  %v7911_v23 = vmul.f32 1.442695, %v7902_v16 }
0x1a61   : > { %v7709_v39 = vsel %vm7708_vm7, %v9311_v20, %v7705_v28  ;;  %v14005_v38 = vpop.f32.mrf.mxu2  ;;  %v7717_v6 = vmul.f32 %v9313_v55, %v7694_v43  ;;  %vm7722_vm13 = vweird.f32 %v9313_v55  ;;  %vm7942_vm7 = vcmp.ge.f32.partialorder %v13988_v54, 0.0 }
0x1a62   : > { %v14007_v15 = vsel %vm7711_vm8, %v7713_v56, %v7709_v39  ;;  %9314 = vrcp.f32 %v14003_v44  ;;  %v14012_v35 = vmul.f32 0.70710677, %v14005_v38  ;;  %vm7723_vm6 = vmor %vm7721_vm10, %vm7722_vm13  ;;  %v7742_v47 = vand.u32 2147483648, %v14003_v44 }
0x1a63   : > { %v7821_v34 = vmul.f32 1.0614054, %v14007_v15  ;;  %v7718_v10 = vsub.f32 1.0, %v7717_v6  ;;  %v7740_v31 = vand.u32 2147483647, %v14003_v44  ;;  %vm7736_vm9 = vweird.f32 %v14003_v44 }
0x1a64   : > { %v14015_v18 = vand.u32 2147483647, %v14012_v35  ;;  %v7743_v20 = vor.u32 1.1754944e-38, %v7742_v47 }
0x1a65   : > { %v7829_v37 = vadd.f32 -1.4531521, %v7821_v34  ;;  %v7719_v51 = vmul.f32 %v9313_v55, %v7718_v10  ;;  %vm7741_vm15 = vcmp.eq.f32.partialorder %v7740_v31, 8.507059e+37  ;;  %v7913_v34 = vmul.f32 1.442695, %v7903_v11 }
0x1a66   : > { %v7688_v58 = vmul.f32 0.3275911, %v14015_v18 }
0x1a67   : > { %v7837_v36 = vmul.f32 %v7829_v37, %v14007_v15  ;;  %v7720_v53 = vadd.f32 %v9313_v55, %v7719_v51 }
0x1a68   : > { %v9315_v40 = vpop.eup %9314  ;;  %v14029_v0 = vadd.f32 1.0, %v7688_v58 }
0x1a69   : > { %v7845_v42 = vadd.f32 1.4214138, %v7837_v36  ;;  %v7732_v17 = vmul.f32 %v9315_v40, %v14003_v44  ;;  %v14023_v26 = vpop.f32.mrf.mxu2  ;;  %v7724_v1 = vsel %vm7723_vm6, %v9313_v55, %v7720_v53  ;;  %vm7737_vm1 = vweird.f32 %v9315_v40 }
0x1a6a   : > { %v14032_v21 = vsel %vm7726_vm4, %v7728_v41, %v7724_v1  ;;  %v14035_v5 = vmul.f32 0.70710677, %v14023_v26  ;;  %9316 = vrcp.f32 %v14029_v0  ;;  %vm7738_vm14 = vmor %vm7736_vm9, %vm7737_vm1  ;;  %v7757_v51 = vand.u32 2147483648, %v14029_v0 }
0x1a6b   : > { %v7853_v60 = vmul.f32 %v7845_v42, %v14007_v15  ;;  %v7733_v59 = vsub.f32 1.0, %v7732_v17  ;;  %v7822_v61 = vmul.f32 1.0614054, %v14032_v21  ;;  %9318 = vpow2.f32 %v7909_v24 }
0x1a6c   : > { %v14044_v62 = vand.u32 2147483647, %v14035_v5  ;;  %vm7751_vm11 = vweird.f32 %v14029_v0  ;;  %v7758_v29 = vor.u32 1.1754944e-38, %v7757_v51  ;;  %vm7943_vm4 = vcmp.ge.f32.partialorder %v13997_v8, 0.0 }
0x1a6d   : > { %v7861_v12 = vadd.f32 -0.28449672, %v7853_v60  ;;  %v7734_v33 = vmul.f32 %v9315_v40, %v7733_v59  ;;  %v7830_v3 = vadd.f32 -1.4531521, %v7822_v61 }
0x1a6e   : > { %v7689_v43 = vmul.f32 0.3275911, %v14044_v62 }
0x1a6f   : > { %v7869_v13 = vmul.f32 %v7861_v12, %v14007_v15  ;;  %v7735_v19 = vadd.f32 %v9315_v40, %v7734_v33  ;;  %v7838_v14 = vmul.f32 %v7830_v3, %v14032_v21 }
0x1a70   : > { %v9317_v63 = vpop.eup %9316  ;;  %v14055_v56 = vadd.f32 1.0, %v7689_v43 }
0x1a71   : > { %v7877_v32 = vadd.f32 0.2548296, %v7869_v13  ;;  %v7739_v48 = vsel %vm7738_vm14, %v9315_v40, %v7735_v19  ;;  %v14051_v9 = vpop.f32.mrf.mxu2  ;;  %v7846_v46 = vadd.f32 1.4214138, %v7838_v14  ;;  %v7747_v7 = vmul.f32 %v9317_v63, %v14029_v0  ;;  %v9319_v39 = vpop.eup %9318 }
0x1a72   : > { %v14053_v28 = vsel %vm7741_vm15, %v7743_v20, %v7739_v48  ;;  %9320 = vrcp.f32 %v14055_v56  ;;  %vm7752_vm3 = vweird.f32 %v9317_v63  ;;  %v7896_v40 = vsub.f32 0.0, %v14015_v18 }
0x1a73   : > { %v7885_v44 = vmul.f32 %v7877_v32, %v14007_v15  ;;  %v7823_v55 = vmul.f32 1.0614054, %v14053_v28  ;;  %v7854_v6 = vmul.f32 %v7846_v46, %v14032_v21  ;;  %v7748_v49 = vsub.f32 1.0, %v7747_v7  ;;  %vm7753_vm12 = vmor %vm7751_vm11, %vm7752_vm3 }
0x1a74   : > { %9322 = vpow2.f32 %v7911_v23  ;;  %v7755_v15 = vand.u32 2147483647, %v14029_v0  ;;  %v14070_v53 = vmul.f32 0.70710677, %v14051_v9  ;;  %v7770_v31 = vand.u32 2147483647, %v14055_v56 }
0x1a75   : > { %v7925_v10 = vmul.f32 %v9319_v39, %v7885_v44  ;;  %v7831_v37 = vadd.f32 -1.4531521, %v7823_v55  ;;  %v7862_v57 = vadd.f32 -0.28449672, %v7854_v6  ;;  %v7749_v4 = vmul.f32 %v9317_v63, %v7748_v49 }
0x1a76   : > { %9324 = vpow2.f32 %v7913_v34  ;;  %vm7756_vm5 = vcmp.eq.f32.partialorder %v7755_v15, 8.507059e+37  ;;  %v14074_v1 = vand.u32 2147483647, %v14070_v53  ;;  %v7772_v13 = vand.u32 2147483648, %v14055_v56 }
0x1a77   : > { %v7933_v22 = vsub.f32 1.0, %v7925_v10  ;;  %v7839_v36 = vmul.f32 %v7831_v37, %v14053_v28  ;;  %v7870_v2 = vmul.f32 %v7862_v57, %v14032_v21  ;;  %v7750_v24 = vadd.f32 %v9317_v63, %v7749_v4 }
0x1a78   : > { %v9321_v41 = vpop.eup %9320  ;;  %v7690_v11 = vmul.f32 0.3275911, %v14074_v1  ;;  %v7904_v46 = vmul.f32 %v7896_v40, %v14015_v18  ;;  %v7897_v23 = vsub.f32 0.0, %v14044_v62  ;;  %vm7766_vm13 = vweird.f32 %v14055_v56 }
0x1a79   : > { %v7949_v58 = vsub.f32 0.0, %v7933_v22  ;;  %v7847_v42 = vadd.f32 1.4214138, %v7839_v36  ;;  %v7878_v17 = vadd.f32 0.2548296, %v7870_v2  ;;  %v7754_v59 = vsel %vm7753_vm12, %v9317_v63, %v7750_v24  ;;  %v14081_v47 = vpop.f32.mrf.mxu2 }
0x1a7a   : > { %v7762_v61 = vmul.f32 %v9321_v41, %v14055_v56  ;;  %v9323_v0 = vpop.eup %9322  ;;  %v14084_v33 = vsel %vm7756_vm5, %v7758_v29, %v7754_v59  ;;  %v14091_v43 = vmul.f32 0.70710677, %v14081_v47  ;;  %vm7767_vm8 = vweird.f32 %v9321_v41 }
0x1a7b   : > { %v7957_v50 = vsel %vm7941_vm2, %v7933_v22, %v7949_v58  ;;  %v7855_v60 = vmul.f32 %v7847_v42, %v14053_v28  ;;  %v7886_v12 = vmul.f32 %v7878_v17, %v14032_v21  ;;  %v7824_v45 = vmul.f32 1.0614054, %v14084_v33  ;;  %vm7768_vm10 = vmor %vm7766_vm13, %vm7767_vm8 }
0x1a7c   : > { %v7965_v27 = vadd.f32 1.0, %v7957_v50  ;;  %v7763_v16 = vsub.f32 1.0, %v7762_v61  ;;  %v9325_v19 = vpop.eup %9324  ;;  %v14096_v44 = vadd.f32 1.0, %v7690_v11  ;;  %v7773_v6 = vor.u32 1.1754944e-38, %v7772_v13 }
0x1a7d   : > { %v7863_v3 = vadd.f32 -0.28449672, %v7855_v60  ;;  %v7926_v20 = vmul.f32 %v9323_v0, %v7886_v12  ;;  %v7832_v32 = vadd.f32 -1.4531521, %v7824_v45  ;;  %v14103_v34 = vand.u32 2147483647, %v14091_v43 }
0x1a7e   : > { %v7973_v14 = vmul.f32 %v7965_v27, %v7661_v52  ;;  %v7764_v48 = vmul.f32 %v9321_v41, %v7763_v16  ;;  %9326 = vrcp.f32 %v14096_v44  ;;  %vm7771_vm6 = vcmp.eq.f32.partialorder %v7770_v31, 8.507059e+37 }
0x1a7f   : > { %v7871_v21 = vmul.f32 %v7863_v3, %v14053_v28  ;;  %v7934_v63 = vsub.f32 1.0, %v7926_v20  ;;  %v7840_v7 = vmul.f32 %v7832_v32, %v14084_v33  ;;  %v7662_v49 = vmul.f32 0.5, %v13985_v30 }
0x1a80   : > { %8643 = vmatmul.msk.f32.vlgmr.msra.gmra.mxu3 %vm577_vm0, %v7973_v14  ;;  %v7765_v39 = vadd.f32 %v9321_v41, %v7764_v48  ;;  %v7915_v15 = vmul.f32 1.442695, %v7904_v46  ;;  %v7691_v40 = vmul.f32 0.3275911, %v14103_v34  ;;  %v7663_v59 = vmul.f32 0.5, %v13994_v25 }
0x1a81   : > { %v7879_v55 = vadd.f32 0.2548296, %v7871_v21  ;;  %v7950_v52 = vsub.f32 0.0, %v7934_v63  ;;  %v7848_v10 = vadd.f32 1.4214138, %v7840_v7  ;;  %v14113_v2 = vpop.f32.mrf.mxu2  ;;  %v7787_v16 = vand.u32 2147483648, %v14096_v44 }
0x1a82   : > { %v7769_v37 = vsel %vm7768_vm10, %v9321_v41, %v7765_v39  ;;  %9328 = vpow2.f32 %v7915_v15  ;;  %v14117_v41 = vadd.f32 1.0, %v7691_v40  ;;  %v14120_v17 = vmul.f32 0.70710677, %v14113_v2 }
0x1a83   : > { %v7887_v18 = vmul.f32 %v7879_v55, %v14053_v28  ;;  %v7958_v57 = vsel %vm7942_vm7, %v7934_v63, %v7950_v52  ;;  %v14109_v56 = vsel %vm7771_vm6, %v7773_v6, %v7769_v37  ;;  %v7856_v36 = vmul.f32 %v7848_v10, %v14084_v33 }
0x1a84   : > { %v7966_v51 = vadd.f32 1.0, %v7958_v57  ;;  %v7825_v4 = vmul.f32 1.0614054, %v14109_v56  ;;  %v7905_v28 = vmul.f32 %v7897_v23, %v14044_v62  ;;  %v9327_v24 = vpop.eup %9326  ;;  %9330 = vrcp.f32 %v14117_v41 }
0x1a85   : > { %v7927_v22 = vmul.f32 %v9325_v19, %v7887_v18  ;;  %v7864_v42 = vadd.f32 -0.28449672, %v7856_v36  ;;  %v7777_v62 = vmul.f32 %v9327_v24, %v14096_v44  ;;  %vm7782_vm1 = vweird.f32 %v9327_v24 }
0x1a86   : > { %v7974_v58 = vmul.f32 %v7966_v51, %v7662_v49  ;;  %v7833_v54 = vadd.f32 -1.4531521, %v7825_v4  ;;  %v7917_v61 = vmul.f32 1.442695, %v7905_v28  ;;  %v7785_v45 = vand.u32 2147483647, %v14096_v44 }
0x1a87   : > { %v7935_v30 = vsub.f32 1.0, %v7927_v22  ;;  %v7872_v50 = vmul.f32 %v7864_v42, %v14084_v33  ;;  %v7778_v31 = vsub.f32 1.0, %v7777_v62  ;;  %v14134_v8 = vand.u32 2147483647, %v14120_v17 }
0x1a88   : > { %v7841_v60 = vmul.f32 %v7833_v54, %v14109_v56  ;;  %8644 = vmatmul.msk.f32.gmra.mxu3 %vm577_vm0, %v7974_v58  ;;  %v9329_v14 = vpop.eup %9328  ;;  %vm7781_vm9 = vweird.f32 %v14096_v44  ;;  %v7898_v11 = vsub.f32 0.0, %v14074_v1  ;;  %9332 = vpow2.f32 %v7917_v61 }
0x1a89   : > { %v7951_v29 = vsub.f32 0.0, %v7935_v30  ;;  %v7880_v27 = vadd.f32 0.2548296, %v7872_v50  ;;  %v7779_v25 = vmul.f32 %v9327_v24, %v7778_v31  ;;  %v7692_v63 = vmul.f32 0.3275911, %v14134_v8  ;;  %vm7783_vm14 = vmor %vm7781_vm9, %vm7782_vm1 }
0x1a8a   : > { %v7849_v12 = vadd.f32 1.4214138, %v7841_v60  ;;  %v9331_v46 = vpop.eup %9330  ;;  %vm7786_vm15 = vcmp.eq.f32.partialorder %v7785_v45, 8.507059e+37  ;;  %vm7944_vm2 = vcmp.ge.f32.partialorder %v14012_v35, 0.0  ;;  %v7906_v52 = vmul.f32 %v7898_v11, %v14074_v1 }
0x1a8b   : > { %v7959_v0 = vsel %vm7943_vm4, %v7935_v30, %v7951_v29  ;;  %v7888_v13 = vmul.f32 %v7880_v27, %v14084_v33  ;;  %v7780_v48 = vadd.f32 %v9327_v24, %v7779_v25  ;;  %v7788_v33 = vor.u32 1.1754944e-38, %v7787_v16 }
0x1a8c   : > { %v7967_v3 = vadd.f32 1.0, %v7959_v0  ;;  %v7857_v19 = vmul.f32 %v7849_v12, %v14109_v56  ;;  %v7792_v39 = vmul.f32 %v9331_v46, %v14117_v41  ;;  %v14147_v6 = vadd.f32 1.0, %v7692_v63 }
0x1a8d   : > { %v7928_v21 = vmul.f32 %v9329_v14, %v7888_v13  ;;  %v7784_v7 = vsel %vm7783_vm14, %v9327_v24, %v7780_v48  ;;  %vm7797_vm3 = vweird.f32 %v9331_v46  ;;  %v7800_v57 = vand.u32 2147483647, %v14117_v41 }
0x1a8e   : > { %v7975_v20 = vmul.f32 %v7967_v3, %v7663_v59  ;;  %v7865_v32 = vadd.f32 -0.28449672, %v7857_v19  ;;  %v14144_v44 = vsel %vm7786_vm15, %v7788_v33, %v7784_v7  ;;  %v7793_v49 = vsub.f32 1.0, %v7792_v39  ;;  %v9333_v1 = vpop.eup %9332 }
0x1a8f   : > { %v7936_v23 = vsub.f32 1.0, %v7928_v21  ;;  %v7826_v37 = vmul.f32 1.0614054, %v14144_v44  ;;  %v7802_v15 = vand.u32 2147483648, %v14117_v41  ;;  %9334 = vrcp.f32 %v14147_v6 }
0x1a90   : > { %v7873_v55 = vmul.f32 %v7865_v32, %v14109_v56  ;;  %8645 = vmatmul.msk.f32.gmra.mxu3 %vm577_vm0, %v7975_v20  ;;  %v7794_v36 = vmul.f32 %v9331_v46, %v7793_v49  ;;  %v7664_v4 = vmul.f32 0.5, %v14005_v38  ;;  %vm7796_vm11 = vweird.f32 %v14117_v41 }
0x1a91   : > { %v7952_v18 = vsub.f32 0.0, %v7936_v23  ;;  %v7834_v22 = vadd.f32 -1.4531521, %v7826_v37  ;;  %v7919_v54 = vmul.f32 1.442695, %v7906_v52  ;;  %vm7798_vm12 = vmor %vm7796_vm11, %vm7797_vm3  ;;  %v7803_v24 = vor.u32 1.1754944e-38, %v7802_v15 }
0x1a92   : > { %v7881_v10 = vadd.f32 0.2548296, %v7873_v55  ;;  %v7795_v30 = vadd.f32 %v9331_v46, %v7794_v36  ;;  %vm7801_vm5 = vcmp.eq.f32.partialorder %v7800_v57, 8.507059e+37  ;;  %v7899_v38 = vsub.f32 0.0, %v14103_v34 }
0x1a93   : > { %v7960_v51 = vsel %vm7944_vm2, %v7936_v23, %v7952_v18  ;;  %v7842_v58 = vmul.f32 %v7834_v22, %v14144_v44  ;;  %v7665_v27 = vmul.f32 0.5, %v14023_v26  ;;  %vm7945_vm7 = vcmp.ge.f32.partialorder %v14035_v5, 0.0 }
0x1a94   : > { %v7889_v35 = vmul.f32 %v7881_v10, %v14109_v56  ;;  %v7968_v28 = vadd.f32 1.0, %v7960_v51  ;;  %v7799_v56 = vsel %vm7798_vm12, %v9331_v46, %v7795_v30  ;;  %9336 = vpow2.f32 %v7919_v54 }
0x1a95   : > { %v7850_v50 = vadd.f32 1.4214138, %v7842_v58  ;;  %v9335_v60 = vpop.eup %9334  ;;  %v7804_v62 = vsel %vm7801_vm5, %v7803_v24, %v7799_v56  ;;  %v7907_v13 = vmul.f32 %v7899_v38, %v14103_v34  ;;  %v7815_v19 = vand.u32 2147483647, %v14147_v6 }
0x1a96   : > { %v7929_v40 = vmul.f32 %v9333_v1, %v7889_v35  ;;  %v7976_v42 = vmul.f32 %v7968_v28, %v7664_v4  ;;  %v7827_v0 = vmul.f32 1.0614054, %v7804_v62  ;;  %v7807_v41 = vmul.f32 %v9335_v60, %v14147_v6 }
0x1a97   : > { %v7858_v61 = vmul.f32 %v7850_v50, %v14144_v44  ;;  %v7817_v25 = vand.u32 2147483648, %v14147_v6  ;;  %vm7812_vm8 = vweird.f32 %v9335_v60  ;;  %vm7811_vm13 = vweird.f32 %v14147_v6 }
0x1a98   : > { %v7937_v29 = vsub.f32 1.0, %v7929_v40  ;;  %8646 = vmatmul.msk.f32.gmra.mxu3 %vm577_vm0, %v7976_v42  ;;  %v7835_v3 = vadd.f32 -1.4531521, %v7827_v0  ;;  %v7808_v45 = vsub.f32 1.0, %v7807_v41  ;;  %v7921_v63 = vmul.f32 1.442695, %v7907_v13  ;;  %vm7813_vm10 = vmor %vm7811_vm13, %vm7812_vm8 }
0x1a99   : > { %v7866_v31 = vadd.f32 -0.28449672, %v7858_v61  ;;  %v7818_v46 = vor.u32 1.1754944e-38, %v7817_v25  ;;  %vm7816_vm6 = vcmp.eq.f32.partialorder %v7815_v19, 8.507059e+37  ;;  %v7900_v7 = vsub.f32 0.0, %v14134_v8  ;;  %v14473_v25 = vld [vmem:[#allocation23_spill] sm:$0xff] }
0x1a9a   : > { %v7953_v59 = vsub.f32 0.0, %v7937_v29  ;;  %v7843_v20 = vmul.f32 %v7835_v3, %v7804_v62  ;;  %v7809_v11 = vmul.f32 %v9335_v60, %v7808_v45  ;;  %v9337_v48 = vpop.eup %9336  ;;  %9338 = vpow2.f32 %v7921_v63  ;;  %v14472_v45 = vld [vmem:[#allocation14_spill] sm:$0xff] }
0x1a9b   : > { %v7874_v14 = vmul.f32 %v7866_v31, %v14144_v44  ;;  %v7908_v49 = vmul.f32 %v7900_v7, %v14134_v8  ;;  %vm7946_vm4 = vcmp.ge.f32.partialorder %v14070_v53, 0.0  ;;  %v7666_v1 = vmul.f32 0.5, %v14051_v9  ;;  %v14470_v31 = vld [vmem:[#allocation20_spill] sm:$0xff] }
0x1a9c   : > { %v7961_v12 = vsel %vm7945_vm7, %v7937_v29, %v7953_v59  ;;  %v7851_v5 = vadd.f32 1.4214138, %v7843_v20  ;;  %v7810_v32 = vadd.f32 %v9335_v60, %v7809_v11  ;;  %vm7947_vm1 = vcmp.ge.f32.partialorder %v14091_v43, 0.0 }
0x1a9d   : > { %v7969_v16 = vadd.f32 1.0, %v7961_v12  ;;  %v7882_v21 = vadd.f32 0.2548296, %v7874_v14  ;;  %v7923_v28 = vmul.f32 1.442695, %v7908_v49  ;;  %v7667_v50 = vmul.f32 0.5, %v14081_v47 }
0x1a9e   : > { %v7859_v33 = vmul.f32 %v7851_v5, %v7804_v62  ;;  %v7814_v23 = vsel %vm7813_vm10, %v9335_v60, %v7810_v32  ;;  %vm7948_vm9 = vcmp.ge.f32.partialorder %v14120_v17, 0.0  ;;  %v7668_v41 = vmul.f32 0.5, %v14113_v2  ;;  %v8891_v47 = vld [vmem:[%s14223_s14 + $0x1] ss:$0 sm:$0xff] }
0x1a9f   : > { %v7977_v26 = vmul.f32 %v7969_v16, %v7665_v27  ;;  %v7890_v34 = vmul.f32 %v7882_v21, %v14144_v44  ;;  %v7819_v55 = vsel %vm7816_vm6, %v7818_v46, %v7814_v23  ;;  %9340 = vpow2.f32 %v7923_v28 }
0x1aa0   : > { %v7867_v52 = vadd.f32 -0.28449672, %v7859_v33  ;;  %v7828_v18 = vmul.f32 1.0614054, %v7819_v55  ;;  %v9339_v36 = vpop.eup %9338  ;;  %v14476_v33 = vld [vmem:[#allocation18_spill] sm:$0xff] }
0x1aa1   : > { %8647 = vmatmul.msk.f32.gmra.mxu3 %vm577_vm0, %v7977_v26  ;;  %v7930_v39 = vmul.f32 %v9337_v48, %v7890_v34  ;;  %v14474_v26 = vld [vmem:[#allocation16_spill] sm:$0xff] }
0x1aa2   : > { %v7875_v6 = vmul.f32 %v7867_v52, %v7804_v62  ;;  %v7836_v37 = vadd.f32 -1.4531521, %v7828_v18  ;;  %v14475_v48 = vld [vmem:[#allocation12_spill] sm:$0xff] }
0x1aa3   : > { %v7938_v10 = vsub.f32 1.0, %v7930_v39  ;;  %v14477_v39 = vld [vmem:[#allocation11_spill] sm:$0xff] }
0x1aa4   : > { %v7883_v15 = vadd.f32 0.2548296, %v7875_v6  ;;  %v7844_v51 = vmul.f32 %v7836_v37, %v7819_v55  ;;  %v14478_v6 = vld [vmem:[#allocation13_spill] sm:$0xff] }
0x1aa5   : > { %v7954_v57 = vsub.f32 0.0, %v7938_v10  ;;  %v9341_v60 = vpop.eup %9340 }
0x1aa6   : > { %v7891_v35 = vmul.f32 %v7883_v15, %v7804_v62  ;;  %v7852_v22 = vadd.f32 1.4214138, %v7844_v51 }
0x1aa7   : > { %v7962_v44 = vsel %vm7946_vm4, %v7938_v10, %v7954_v57 }
0x1aa8   : > { %v7970_v4 = vadd.f32 1.0, %v7962_v44  ;;  %v7931_v40 = vmul.f32 %v9339_v36, %v7891_v35  ;;  %v7860_v58 = vmul.f32 %v7852_v22, %v7819_v55 }
0x1aaa   : > { %v7978_v30 = vmul.f32 %v7970_v4, %v7666_v1  ;;  %v7939_v42 = vsub.f32 1.0, %v7931_v40  ;;  %v7868_v54 = vadd.f32 -0.28449672, %v7860_v58 }
0x1aac   : > { %8648 = vmatmul.msk.f32.gmra.mxu3 %vm577_vm0, %v7978_v30  ;;  %v7955_v8 = vsub.f32 0.0, %v7939_v42  ;;  %v7876_v24 = vmul.f32 %v7868_v54, %v7819_v55 }
0x1aae   : > { %v7963_v53 = vsel %vm7947_vm1, %v7939_v42, %v7955_v8  ;;  %v7884_v29 = vadd.f32 0.2548296, %v7876_v24 }
0x1aaf   : > { %v7971_v56 = vadd.f32 1.0, %v7963_v53 }
0x1ab0   : > { %v7892_v9 = vmul.f32 %v7884_v29, %v7819_v55 }
0x1ab1   : > { %v7979_v62 = vmul.f32 %v7971_v56, %v7667_v50 }
0x1ab2   : > { %v7932_v38 = vmul.f32 %v9341_v60, %v7892_v9 }
0x1ab4   : > { %8649 = vmatmul.msk.f32.gmra.mxu3 %vm577_vm0, %v7979_v62  ;;  %v7940_v59 = vsub.f32 1.0, %v7932_v38 }
0x1ab6   : > { %v7956_v61 = vsub.f32 0.0, %v7940_v59 }
0x1ab8   : > { %v7964_v0 = vsel %vm7948_vm9, %v7940_v59, %v7956_v61 }
0x1ab9   : > { %v7972_v43 = vadd.f32 1.0, %v7964_v0 }
0x1abb   : > { %v7980_v27 = vmul.f32 %v7972_v43, %v7668_v41 }
0x1abd   : > { %8650 = vmatmul.msk.f32.gmra.mxu3 %vm577_vm0, %v7980_v27 }
0x1b03   : > { %v8027_v12 = vpop.f32.mrf.mxu3 }
0x1b04   : > { %v8051_v3 = vadd.f32 %v8027_v12, %v14470_v31 }
0x1b06   : > { %v8064_v17 = vadd.f32 %v8891_v47, %v8051_v3 }
0x1b08   : > { %8072 = vst.msk [vmem:[%s494_s29] sm:$0xff] %vm577_vm0, %v8064_v17 }
0x1b0b   : > { %v8030_v2 = vpop.f32.mrf.mxu3 }
0x1b0c   : > { %v8052_v16 = vadd.f32 %v8030_v2, %v14472_v45 }
0x1b0e   : > { %v8065_v13 = vadd.f32 %v8891_v47, %v8052_v16 }
0x1b10   : > { %8073 = vst.msk [vmem:[%s494_s29 + $0x8] sm:$0xff] %vm577_vm0, %v8065_v13 }
0x1b13   : > { %v8033_v19 = vpop.f32.mrf.mxu3 }
0x1b14   : > { %v8053_v14 = vadd.f32 %v8033_v19, %v14473_v25 }
0x1b16   : > { %v8066_v20 = vadd.f32 %v8891_v47, %v8053_v14 }
0x1b18   : > { %8074 = vst.msk [vmem:[%s494_s29 + $0x10] sm:$0xff] %vm577_vm0, %v8066_v20 }
0x1b1b   : > { %v8036_v11 = vpop.f32.mrf.mxu3 }
0x1b1c   : > { %v8054_v21 = vadd.f32 %v8036_v11, %v14474_v26 }
0x1b1e   : > { %v8067_v5 = vadd.f32 %v8891_v47, %v8054_v21 }
0x1b20   : > { %8075 = vst.msk [vmem:[%s494_s29 + $0x18] sm:$0xff] %vm577_vm0, %v8067_v5 }
0x1b24   : > { %v8039_v32 = vpop.f32.mrf.mxu3 }
0x1b25   : > { %v8055_v63 = vadd.f32 %v8039_v32, %v14475_v48 }
0x1b27   : > { %v8068_v46 = vadd.f32 %v8891_v47, %v8055_v63 }
0x1b29   : > { %8076 = vst.msk [vmem:[%s494_s29 + $0x20] sm:$0xff] %vm577_vm0, %v8068_v46 }
0x1b2f   : > { %v8042_v34 = vpop.f32.mrf.mxu3 }
0x1b30   : > { %v8056_v23 = vadd.f32 %v8042_v34, %v14476_v33 }
0x1b32   : > { %v8069_v55 = vadd.f32 %v8891_v47, %v8056_v23 }
0x1b34   : > { %8077 = vst.msk [vmem:[%s494_s29 + $0x28] sm:$0xff] %vm577_vm0, %v8069_v55 }
0x1b37   : > { %v8045_v7 = vpop.f32.mrf.mxu3 }
0x1b38   : > { %v8057_v52 = vadd.f32 %v8045_v7, %v14477_v39 }
0x1b3a   : > { %v8070_v18 = vadd.f32 %v8891_v47, %v8057_v52 }
0x1b3c   : > { %8078 = vst.msk [vmem:[%s494_s29 + $0x30] sm:$0xff] %vm577_vm0, %v8070_v18 }
0x1b40   : > { %v8048_v10 = vpop.f32.mrf.mxu3 }
0x1b41   : > { %v8058_v37 = vadd.f32 %v8048_v10, %v14478_v6 }
0x1b43   : > { %v8071_v49 = vadd.f32 %v8891_v47, %v8058_v37 }
0x1b45   : > { %8079 = vst.msk [vmem:[%s494_s29 + $0x38] sm:$0xff] %vm577_vm0, %v8071_v49 }
0x1b46 PF: > { %s25_s18 = sadd.s32 1, %s9428_s18  }
0x1b47   : > { %p22_p4 = scmp.ge.s32.totalorder %s25_s18, 4  }
0x1b49   :  { %24 = sbr.rel (!%p22_p4) target bundleno = 1 (0x1), region = 139 }

</bundles_post_ra>
